<compile_context>
chip_gen: v7x
topology: tpu7x:2x2x1
jax: 0.10.0
libtpu: 0.0.40
codegen_flags: <defaults>
</compile_context>

<pallas_src>
import functools

import jax
import jax.numpy as jnp
from jax.experimental import pallas as pl
from jax.experimental.pallas import tpu as pltpu


# ---------------- fused conv3x3(pad=1) + bias + ReLU + maxpool2x2 ----------------

def _conv3x3_relu_pool_kernel(xe_ref, xo_ref, w_ref, b_ref, o_ref, *,
                              H, W2, Cin, Cout, n_chunks):
    # xe_ref/xo_ref: (1, H+2, W2+1, Cin) even/odd padded columns of one image (NHWC).
    # w_ref: (9, Cin, Cout) conv taps in (kh*3+kw) order.  b_ref: (1, Cout).
    # o_ref: (1, H/2, W2, Cout) pooled output.
    H2 = H // 2
    H2c = H2 // n_chunks          # pooled output rows per chunk
    Hc = 2 * H2c                  # conv output rows per chunk
    Mc = Hc * W2                  # matmul M per (chunk, column-parity)
    bias = b_ref[...]             # (1, Cout)
    srcs = (xe_ref, xo_ref)
    # (source parity, column offset) for kernel dx = 0, 1, 2:
    #   output col 2j   reads padded cols 2j, 2j+1, 2j+2 -> xe[j], xo[j], xe[j+1]
    #   output col 2j+1 reads padded cols 2j+1, 2j+2, 2j+3 -> xo[j], xe[j+1], xo[j+1]
    col_taps = (((0, 0), (1, 0), (0, 1)),
                ((1, 0), (0, 1), (1, 1)))

    for ci in range(n_chunks):
        r0 = ci * Hc              # first conv output row of this chunk
        pooled_w = None
        for par in range(2):      # even / odd output columns
            acc = None
            for dy in range(3):
                for dx in range(3):
                    si, c0 = col_taps[par][dx]
                    # (Hc, W2, Cin) window; static slice offsets only.
                    v = srcs[si][0, r0 + dy:r0 + dy + Hc, c0:c0 + W2, :]
                    d = jnp.dot(v.reshape(Mc, Cin), w_ref[dy * 3 + dx],
                                preferred_element_type=jnp.float32)
                    acc = d if acc is None else acc + d
            a = jnp.maximum(acc + bias, 0.0)                     # bias + ReLU
            pooled_w = a if pooled_w is None else jnp.maximum(pooled_w, a)  # pool over W
        # pool over H: rows 2*ii and 2*ii+1 of this chunk -> pooled row ci*H2c + ii.
        for ii in range(H2c):
            top = pooled_w[(2 * ii) * W2:(2 * ii + 1) * W2]      # (W2, Cout)
            bot = pooled_w[(2 * ii + 1) * W2:(2 * ii + 2) * W2]
            o_ref[0, ci * H2c + ii] = jnp.maximum(top, bot).astype(o_ref.dtype)


def conv3x3_relu_pool(x, w9, b):
    # x: (B, H, W, Cin) NHWC, w9: (9, Cin, Cout), b: (1, Cout)
    B, H, W, Cin = x.shape
    Cout = w9.shape[-1]
    assert H % 2 == 0 and W % 2 == 0
    H2, W2 = H // 2, W // 2

    # Zero pad (PyTorch padding=1) and split padded columns by parity (cheap XLA glue
    # on the small raw activation; the 9x im2col expansion never touches HBM).
    xp = jnp.pad(x, ((0, 0), (1, 1), (1, 1), (0, 0)))   # (B, H+2, W+2, Cin)
    xe = xp[:, :, 0::2, :]                              # (B, H+2, W2+1, Cin)
    xo = xp[:, :, 1::2, :]                              # (B, H+2, W2+1, Cin)

    # Chunk rows inside the kernel to bound live vregs (no extra grid steps).
    H2c = 4
    while H2 % H2c:
        H2c //= 2
    n_chunks = H2 // H2c

    kernel = functools.partial(_conv3x3_relu_pool_kernel, H=H, W2=W2,
                               Cin=Cin, Cout=Cout, n_chunks=n_chunks)
    return pl.pallas_call(
        kernel,
        out_shape=jax.ShapeDtypeStruct((B, H2, W2, Cout), jnp.float32),
        grid=(B,),
        in_specs=[
            pl.BlockSpec((1, H + 2, W2 + 1, Cin), lambda i: (i, 0, 0, 0)),
            pl.BlockSpec((1, H + 2, W2 + 1, Cin), lambda i: (i, 0, 0, 0)),
            pl.BlockSpec((9, Cin, Cout), lambda i: (0, 0, 0)),   # weights resident
            pl.BlockSpec((1, Cout), lambda i: (0, 0)),           # bias resident
        ],
        out_specs=pl.BlockSpec((1, H2, W2, Cout), lambda i: (i, 0, 0, 0)),
        compiler_params=pltpu.CompilerParams(dimension_semantics=("parallel",)),
    )(xe, xo, w9, b)


# ---------------- fused fc1 + ReLU + fc2 ----------------

def _fc1_relu_fc2_kernel(x_ref, w1_ref, b1_ref, w2_ref, b2_ref, o_ref):
    h = jnp.dot(x_ref[...], w1_ref[...], preferred_element_type=jnp.float32)
    h = jnp.maximum(h + b1_ref[...], 0.0)                 # stays in VMEM/vregs
    y = jnp.dot(h, w2_ref[...], preferred_element_type=jnp.float32) + b2_ref[...]
    o_ref[...] = y.astype(o_ref.dtype)


def fc1_relu_fc2(x, w1, b1, w2, b2):
    # x: (M, 4096), w1: (4096, 128), b1: (1, 128), w2: (128, 10), b2: (1, 10)
    M, K = x.shape
    K1, N1 = w1.shape
    N12, N2 = w2.shape
    assert K == K1 and N1 == N12
    TM = 256 if M >= 256 else max(8, pl.cdiv(M, 8) * 8)
    Mp = pl.cdiv(M, TM) * TM
    if Mp != M:
        x = jnp.pad(x, ((0, Mp - M), (0, 0)))
    out = pl.pallas_call(
        _fc1_relu_fc2_kernel,
        out_shape=jax.ShapeDtypeStruct((Mp, N2), jnp.float32),
        grid=(Mp // TM,),
        in_specs=[
            pl.BlockSpec((TM, K), lambda i: (i, 0)),      # activation row tile
            pl.BlockSpec((K, N1), lambda i: (0, 0)),      # fc1 weight, resident (2 MiB)
            pl.BlockSpec((1, N1), lambda i: (0, 0)),
            pl.BlockSpec((N1, N2), lambda i: (0, 0)),     # fc2 weight, resident
            pl.BlockSpec((1, N2), lambda i: (0, 0)),
        ],
        out_specs=pl.BlockSpec((TM, N2), lambda i: (i, 0)),
        compiler_params=pltpu.CompilerParams(dimension_semantics=("parallel",)),
    )(x, w1, b1, w2, b2)
    return out[:M]


# ---------------- parameters ----------------

def init_params(key):
    # PyTorch-layout parameters (what nn.Conv2d / nn.Linear hold).
    ks = jax.random.split(key, 8)
    p = {}
    p["w1"] = 0.05 * jax.random.normal(ks[0], (32, 3, 3, 3), jnp.float32)        # OIHW
    p["b1"] = 0.05 * jax.random.normal(ks[1], (32,), jnp.float32)
    p["w2"] = 0.05 * jax.random.normal(ks[2], (64, 32, 3, 3), jnp.float32)       # OIHW
    p["b2"] = 0.05 * jax.random.normal(ks[3], (64,), jnp.float32)
    p["wf1"] = 0.02 * jax.random.normal(ks[4], (128, 64 * 8 * 8), jnp.float32)   # (out, in)
    p["bf1"] = 0.02 * jax.random.normal(ks[5], (128,), jnp.float32)
    p["wf2"] = 0.02 * jax.random.normal(ks[6], (10, 128), jnp.float32)           # (out, in)
    p["bf2"] = 0.02 * jax.random.normal(ks[7], (10,), jnp.float32)
    return p


def prepare_params(p):
    # One-time re-layout into kernel-friendly layouts (outside forward()).
    q = {}
    # conv OIHW -> (kh, kw, I, O) -> (9, I, O)
    q["w1"] = jnp.transpose(p["w1"], (2, 3, 1, 0)).reshape(9, 3, 32)
    q["b1"] = p["b1"].reshape(1, 32)
    q["w2"] = jnp.transpose(p["w2"], (2, 3, 1, 0)).reshape(9, 32, 64)
    q["b2"] = p["b2"].reshape(1, 64)
    # fc1: PyTorch flattens NCHW as (C,H,W); our activations flatten NHWC as (H,W,C).
    # Permute fc1's 4096 input rows once so forward() needs no activation transpose:
    # wf1_hwc[h*8*64 + w*64 + c, o] == wf1_pt[o, c*64 + h*8 + w]
    wf1 = p["wf1"].reshape(128, 64, 8, 8)                     # (out, C, H, W)
    q["wf1"] = jnp.transpose(wf1, (2, 3, 1, 0)).reshape(64 * 8 * 8, 128)
    q["bf1"] = p["bf1"].reshape(1, 128)
    q["wf2"] = p["wf2"].T                                     # (128, 10)
    q["bf2"] = p["bf2"].reshape(1, 10)
    return q


# ---------------- model ----------------

@jax.jit
def forward(kp, x_nchw):
    # x_nchw: (B, 3, 32, 32) float32, matching the PyTorch module's input.
    x = jnp.transpose(x_nchw, (0, 2, 3, 1))                   # NCHW -> NHWC (input only)
    h = conv3x3_relu_pool(x, kp["w1"], kp["b1"])              # (B, 16, 16, 32)
    h = conv3x3_relu_pool(h, kp["w2"], kp["b2"])              # (B, 8, 8, 64)
    h = h.reshape(h.shape[0], -1)                             # (B, 4096) in (H,W,C) order
    return fc1_relu_fc2(h, kp["wf1"], kp["bf1"], kp["wf2"], kp["bf2"])  # (B, 10)


if __name__ == "__main__":
    key = jax.random.PRNGKey(0)
    pkey, xkey = jax.random.split(key)
    params = prepare_params(init_params(pkey))
    # Spatial size must be 32x32 (CIFAR) for the 64*8*8 flatten to be valid.
    x = jax.random.normal(xkey, (2, 3, 32, 32), jnp.float32)
    out = forward(params, x)
    jax.block_until_ready(out)
    assert out.shape == (2, 10) and out.dtype == jnp.float32
    print("KERNEL_OK")
</pallas_src>

<mosaic_0001>
module attributes {stable_mosaic.version = 11 : i64} {
  func.func @_conv3x3_relu_pool_kernel(%arg0: i32, %arg1: memref<1x18x9x32xf32, #tpu.memory_space<vmem>>, %arg2: memref<1x18x9x32xf32, #tpu.memory_space<vmem>>, %arg3: memref<9x32x64xf32, #tpu.memory_space<vmem>>, %arg4: memref<1x64xf32, #tpu.memory_space<vmem>>, %arg5: memref<1x8x8x64xf32, #tpu.memory_space<vmem>>) attributes {dimension_semantics = [#tpu.dimension_semantics<parallel>], iteration_bounds = array<i64: 2>, scalar_prefetch = 0 : i64, scratch_operands = 0 : i64, tpu.core_type = #tpu.core_type<tc>, window_params = [{transform_indices = @transform_0, window_bounds = array<i64: 1, 18, 9, 32>}, {transform_indices = @transform_1, window_bounds = array<i64: 1, 18, 9, 32>}, {pipeline_mode = #tpu.pipeline_mode<synchronous>, transform_indices = @transform_2, window_bounds = array<i64: 9, 32, 64>}, {pipeline_mode = #tpu.pipeline_mode<synchronous>, transform_indices = @transform_3, window_bounds = array<i64: 1, 64>}, {transform_indices = @transform_4, window_bounds = array<i64: 1, 8, 8, 64>}]} {
    %c0 = arith.constant 0 : index
    %c0_0 = arith.constant 0 : index
    %0 = vector.load %arg4[%c0, %c0_0] : memref<1x64xf32, #tpu.memory_space<vmem>>, vector<1x64xf32>
    %c0_1 = arith.constant 0 : index
    %c0_2 = arith.constant 0 : index
    %c0_3 = arith.constant 0 : index
    %c0_4 = arith.constant 0 : index
    %1 = vector.load %arg1[%c0_1, %c0_2, %c0_3, %c0_4] : memref<1x18x9x32xf32, #tpu.memory_space<vmem>>, vector<1x8x8x32xf32>
    %2 = vector.shape_cast %1 : vector<1x8x8x32xf32> to vector<8x8x32xf32>
    %3 = vector.shape_cast %2 : vector<8x8x32xf32> to vector<64x32xf32>
    %c0_5 = arith.constant 0 : index
    %c0_6 = arith.constant 0 : index
    %c0_7 = arith.constant 0 : index
    %4 = vector.load %arg3[%c0_5, %c0_6, %c0_7] : memref<9x32x64xf32, #tpu.memory_space<vmem>>, vector<1x32x64xf32>
    %5 = vector.shape_cast %4 : vector<1x32x64xf32> to vector<32x64xf32>
    %cst = arith.constant dense<0.000000e+00> : vector<64x64xf32>
    %6 = tpu.matmul %3, %5, %cst {dimension_numbers = #tpu.dot_dimension_numbers<[1], [0], [0], [1], [0, 0, 1, 1], [], []>} : vector<64x32xf32>, vector<32x64xf32>, vector<64x64xf32> -> vector<64x64xf32>
    %c0_8 = arith.constant 0 : index
    %c0_9 = arith.constant 0 : index
    %c0_10 = arith.constant 0 : index
    %c0_11 = arith.constant 0 : index
    %7 = vector.load %arg2[%c0_8, %c0_9, %c0_10, %c0_11] : memref<1x18x9x32xf32, #tpu.memory_space<vmem>>, vector<1x8x8x32xf32>
    %8 = vector.shape_cast %7 : vector<1x8x8x32xf32> to vector<8x8x32xf32>
    %9 = vector.shape_cast %8 : vector<8x8x32xf32> to vector<64x32xf32>
    %c1 = arith.constant 1 : index
    %c0_12 = arith.constant 0 : index
    %c0_13 = arith.constant 0 : index
    %10 = vector.load %arg3[%c1, %c0_12, %c0_13] : memref<9x32x64xf32, #tpu.memory_space<vmem>>, vector<1x32x64xf32>
    %11 = vector.shape_cast %10 : vector<1x32x64xf32> to vector<32x64xf32>
    %cst_14 = arith.constant dense<0.000000e+00> : vector<64x64xf32>
    %12 = tpu.matmul %9, %11, %cst_14 {dimension_numbers = #tpu.dot_dimension_numbers<[1], [0], [0], [1], [0, 0, 1, 1], [], []>} : vector<64x32xf32>, vector<32x64xf32>, vector<64x64xf32> -> vector<64x64xf32>
    %13 = arith.addf %6, %12 : vector<64x64xf32>
    %c0_15 = arith.constant 0 : index
    %c0_16 = arith.constant 0 : index
    %c1_17 = arith.constant 1 : index
    %c0_18 = arith.constant 0 : index
    %14 = vector.load %arg1[%c0_15, %c0_16, %c1_17, %c0_18] : memref<1x18x9x32xf32, #tpu.memory_space<vmem>>, vector<1x8x8x32xf32>
    %15 = vector.shape_cast %14 : vector<1x8x8x32xf32> to vector<8x8x32xf32>
    %16 = vector.shape_cast %15 : vector<8x8x32xf32> to vector<64x32xf32>
    %c2 = arith.constant 2 : index
    %c0_19 = arith.constant 0 : index
    %c0_20 = arith.constant 0 : index
    %17 = vector.load %arg3[%c2, %c0_19, %c0_20] : memref<9x32x64xf32, #tpu.memory_space<vmem>>, vector<1x32x64xf32>
    %18 = vector.shape_cast %17 : vector<1x32x64xf32> to vector<32x64xf32>
    %cst_21 = arith.constant dense<0.000000e+00> : vector<64x64xf32>
    %19 = tpu.matmul %16, %18, %cst_21 {dimension_numbers = #tpu.dot_dimension_numbers<[1], [0], [0], [1], [0, 0, 1, 1], [], []>} : vector<64x32xf32>, vector<32x64xf32>, vector<64x64xf32> -> vector<64x64xf32>
    %20 = arith.addf %13, %19 : vector<64x64xf32>
    %c0_22 = arith.constant 0 : index
    %c1_23 = arith.constant 1 : index
    %c0_24 = arith.constant 0 : index
    %c0_25 = arith.constant 0 : index
    %21 = vector.load %arg1[%c0_22, %c1_23, %c0_24, %c0_25] : memref<1x18x9x32xf32, #tpu.memory_space<vmem>>, vector<1x8x8x32xf32>
    %22 = vector.shape_cast %21 : vector<1x8x8x32xf32> to vector<8x8x32xf32>
    %23 = vector.shape_cast %22 : vector<8x8x32xf32> to vector<64x32xf32>
    %c3 = arith.constant 3 : index
    %c0_26 = arith.constant 0 : index
    %c0_27 = arith.constant 0 : index
    %24 = vector.load %arg3[%c3, %c0_26, %c0_27] : memref<9x32x64xf32, #tpu.memory_space<vmem>>, vector<1x32x64xf32>
    %25 = vector.shape_cast %24 : vector<1x32x64xf32> to vector<32x64xf32>
    %cst_28 = arith.constant dense<0.000000e+00> : vector<64x64xf32>
    %26 = tpu.matmul %23, %25, %cst_28 {dimension_numbers = #tpu.dot_dimension_numbers<[1], [0], [0], [1], [0, 0, 1, 1], [], []>} : vector<64x32xf32>, vector<32x64xf32>, vector<64x64xf32> -> vector<64x64xf32>
    %27 = arith.addf %20, %26 : vector<64x64xf32>
    %c0_29 = arith.constant 0 : index
    %c1_30 = arith.constant 1 : index
    %c0_31 = arith.constant 0 : index
    %c0_32 = arith.constant 0 : index
    %28 = vector.load %arg2[%c0_29, %c1_30, %c0_31, %c0_32] : memref<1x18x9x32xf32, #tpu.memory_space<vmem>>, vector<1x8x8x32xf32>
    %29 = vector.shape_cast %28 : vector<1x8x8x32xf32> to vector<8x8x32xf32>
    %30 = vector.shape_cast %29 : vector<8x8x32xf32> to vector<64x32xf32>
    %c4 = arith.constant 4 : index
    %c0_33 = arith.constant 0 : index
    %c0_34 = arith.constant 0 : index
    %31 = vector.load %arg3[%c4, %c0_33, %c0_34] : memref<9x32x64xf32, #tpu.memory_space<vmem>>, vector<1x32x64xf32>
    %32 = vector.shape_cast %31 : vector<1x32x64xf32> to vector<32x64xf32>
    %cst_35 = arith.constant dense<0.000000e+00> : vector<64x64xf32>
    %33 = tpu.matmul %30, %32, %cst_35 {dimension_numbers = #tpu.dot_dimension_numbers<[1], [0], [0], [1], [0, 0, 1, 1], [], []>} : vector<64x32xf32>, vector<32x64xf32>, vector<64x64xf32> -> vector<64x64xf32>
    %34 = arith.addf %27, %33 : vector<64x64xf32>
    %c0_36 = arith.constant 0 : index
    %c1_37 = arith.constant 1 : index
    %c1_38 = arith.constant 1 : index
    %c0_39 = arith.constant 0 : index
    %35 = vector.load %arg1[%c0_36, %c1_37, %c1_38, %c0_39] : memref<1x18x9x32xf32, #tpu.memory_space<vmem>>, vector<1x8x8x32xf32>
    %36 = vector.shape_cast %35 : vector<1x8x8x32xf32> to vector<8x8x32xf32>
    %37 = vector.shape_cast %36 : vector<8x8x32xf32> to vector<64x32xf32>
    %c5 = arith.constant 5 : index
    %c0_40 = arith.constant 0 : index
    %c0_41 = arith.constant 0 : index
    %38 = vector.load %arg3[%c5, %c0_40, %c0_41] : memref<9x32x64xf32, #tpu.memory_space<vmem>>, vector<1x32x64xf32>
    %39 = vector.shape_cast %38 : vector<1x32x64xf32> to vector<32x64xf32>
    %cst_42 = arith.constant dense<0.000000e+00> : vector<64x64xf32>
    %40 = tpu.matmul %37, %39, %cst_42 {dimension_numbers = #tpu.dot_dimension_numbers<[1], [0], [0], [1], [0, 0, 1, 1], [], []>} : vector<64x32xf32>, vector<32x64xf32>, vector<64x64xf32> -> vector<64x64xf32>
    %41 = arith.addf %34, %40 : vector<64x64xf32>
    %c0_43 = arith.constant 0 : index
    %c2_44 = arith.constant 2 : index
    %c0_45 = arith.constant 0 : index
    %c0_46 = arith.constant 0 : index
    %42 = vector.load %arg1[%c0_43, %c2_44, %c0_45, %c0_46] : memref<1x18x9x32xf32, #tpu.memory_space<vmem>>, vector<1x8x8x32xf32>
    %43 = vector.shape_cast %42 : vector<1x8x8x32xf32> to vector<8x8x32xf32>
    %44 = vector.shape_cast %43 : vector<8x8x32xf32> to vector<64x32xf32>
    %c6 = arith.constant 6 : index
    %c0_47 = arith.constant 0 : index
    %c0_48 = arith.constant 0 : index
    %45 = vector.load %arg3[%c6, %c0_47, %c0_48] : memref<9x32x64xf32, #tpu.memory_space<vmem>>, vector<1x32x64xf32>
    %46 = vector.shape_cast %45 : vector<1x32x64xf32> to vector<32x64xf32>
    %cst_49 = arith.constant dense<0.000000e+00> : vector<64x64xf32>
    %47 = tpu.matmul %44, %46, %cst_49 {dimension_numbers = #tpu.dot_dimension_numbers<[1], [0], [0], [1], [0, 0, 1, 1], [], []>} : vector<64x32xf32>, vector<32x64xf32>, vector<64x64xf32> -> vector<64x64xf32>
    %48 = arith.addf %41, %47 : vector<64x64xf32>
    %c0_50 = arith.constant 0 : index
    %c2_51 = arith.constant 2 : index
    %c0_52 = arith.constant 0 : index
    %c0_53 = arith.constant 0 : index
    %49 = vector.load %arg2[%c0_50, %c2_51, %c0_52, %c0_53] : memref<1x18x9x32xf32, #tpu.memory_space<vmem>>, vector<1x8x8x32xf32>
    %50 = vector.shape_cast %49 : vector<1x8x8x32xf32> to vector<8x8x32xf32>
    %51 = vector.shape_cast %50 : vector<8x8x32xf32> to vector<64x32xf32>
    %c7 = arith.constant 7 : index
    %c0_54 = arith.constant 0 : index
    %c0_55 = arith.constant 0 : index
    %52 = vector.load %arg3[%c7, %c0_54, %c0_55] : memref<9x32x64xf32, #tpu.memory_space<vmem>>, vector<1x32x64xf32>
    %53 = vector.shape_cast %52 : vector<1x32x64xf32> to vector<32x64xf32>
    %cst_56 = arith.constant dense<0.000000e+00> : vector<64x64xf32>
    %54 = tpu.matmul %51, %53, %cst_56 {dimension_numbers = #tpu.dot_dimension_numbers<[1], [0], [0], [1], [0, 0, 1, 1], [], []>} : vector<64x32xf32>, vector<32x64xf32>, vector<64x64xf32> -> vector<64x64xf32>
    %55 = arith.addf %48, %54 : vector<64x64xf32>
    %c0_57 = arith.constant 0 : index
    %c2_58 = arith.constant 2 : index
    %c1_59 = arith.constant 1 : index
    %c0_60 = arith.constant 0 : index
    %56 = vector.load %arg1[%c0_57, %c2_58, %c1_59, %c0_60] : memref<1x18x9x32xf32, #tpu.memory_space<vmem>>, vector<1x8x8x32xf32>
    %57 = vector.shape_cast %56 : vector<1x8x8x32xf32> to vector<8x8x32xf32>
    %58 = vector.shape_cast %57 : vector<8x8x32xf32> to vector<64x32xf32>
    %c8 = arith.constant 8 : index
    %c0_61 = arith.constant 0 : index
    %c0_62 = arith.constant 0 : index
    %59 = vector.load %arg3[%c8, %c0_61, %c0_62] : memref<9x32x64xf32, #tpu.memory_space<vmem>>, vector<1x32x64xf32>
    %60 = vector.shape_cast %59 : vector<1x32x64xf32> to vector<32x64xf32>
    %cst_63 = arith.constant dense<0.000000e+00> : vector<64x64xf32>
    %61 = tpu.matmul %58, %60, %cst_63 {dimension_numbers = #tpu.dot_dimension_numbers<[1], [0], [0], [1], [0, 0, 1, 1], [], []>} : vector<64x32xf32>, vector<32x64xf32>, vector<64x64xf32> -> vector<64x64xf32>
    %62 = arith.addf %55, %61 : vector<64x64xf32>
    %63 = vector.broadcast %0 : vector<1x64xf32> to vector<64x64xf32>
    %64 = arith.addf %62, %63 : vector<64x64xf32>
    %cst_64 = arith.constant 0.000000e+00 : f32
    %65 = vector.broadcast %cst_64 : f32 to vector<64x64xf32>
    %66 = arith.maximumf %64, %65 : vector<64x64xf32>
    %c0_65 = arith.constant 0 : index
    %c0_66 = arith.constant 0 : index
    %c0_67 = arith.constant 0 : index
    %c0_68 = arith.constant 0 : index
    %67 = vector.load %arg2[%c0_65, %c0_66, %c0_67, %c0_68] : memref<1x18x9x32xf32, #tpu.memory_space<vmem>>, vector<1x8x8x32xf32>
    %68 = vector.shape_cast %67 : vector<1x8x8x32xf32> to vector<8x8x32xf32>
    %69 = vector.shape_cast %68 : vector<8x8x32xf32> to vector<64x32xf32>
    %c0_69 = arith.constant 0 : index
    %c0_70 = arith.constant 0 : index
    %c0_71 = arith.constant 0 : index
    %70 = vector.load %arg3[%c0_69, %c0_70, %c0_71] : memref<9x32x64xf32, #tpu.memory_space<vmem>>, vector<1x32x64xf32>
    %71 = vector.shape_cast %70 : vector<1x32x64xf32> to vector<32x64xf32>
    %cst_72 = arith.constant dense<0.000000e+00> : vector<64x64xf32>
    %72 = tpu.matmul %69, %71, %cst_72 {dimension_numbers = #tpu.dot_dimension_numbers<[1], [0], [0], [1], [0, 0, 1, 1], [], []>} : vector<64x32xf32>, vector<32x64xf32>, vector<64x64xf32> -> vector<64x64xf32>
    %c0_73 = arith.constant 0 : index
    %c0_74 = arith.constant 0 : index
    %c1_75 = arith.constant 1 : index
    %c0_76 = arith.constant 0 : index
    %73 = vector.load %arg1[%c0_73, %c0_74, %c1_75, %c0_76] : memref<1x18x9x32xf32, #tpu.memory_space<vmem>>, vector<1x8x8x32xf32>
    %74 = vector.shape_cast %73 : vector<1x8x8x32xf32> to vector<8x8x32xf32>
    %75 = vector.shape_cast %74 : vector<8x8x32xf32> to vector<64x32xf32>
    %c1_77 = arith.constant 1 : index
    %c0_78 = arith.constant 0 : index
    %c0_79 = arith.constant 0 : index
    %76 = vector.load %arg3[%c1_77, %c0_78, %c0_79] : memref<9x32x64xf32, #tpu.memory_space<vmem>>, vector<1x32x64xf32>
    %77 = vector.shape_cast %76 : vector<1x32x64xf32> to vector<32x64xf32>
    %cst_80 = arith.constant dense<0.000000e+00> : vector<64x64xf32>
    %78 = tpu.matmul %75, %77, %cst_80 {dimension_numbers = #tpu.dot_dimension_numbers<[1], [0], [0], [1], [0, 0, 1, 1], [], []>} : vector<64x32xf32>, vector<32x64xf32>, vector<64x64xf32> -> vector<64x64xf32>
    %79 = arith.addf %72, %78 : vector<64x64xf32>
    %c0_81 = arith.constant 0 : index
    %c0_82 = arith.constant 0 : index
    %c1_83 = arith.constant 1 : index
    %c0_84 = arith.constant 0 : index
    %80 = vector.load %arg2[%c0_81, %c0_82, %c1_83, %c0_84] : memref<1x18x9x32xf32, #tpu.memory_space<vmem>>, vector<1x8x8x32xf32>
    %81 = vector.shape_cast %80 : vector<1x8x8x32xf32> to vector<8x8x32xf32>
    %82 = vector.shape_cast %81 : vector<8x8x32xf32> to vector<64x32xf32>
    %c2_85 = arith.constant 2 : index
    %c0_86 = arith.constant 0 : index
    %c0_87 = arith.constant 0 : index
    %83 = vector.load %arg3[%c2_85, %c0_86, %c0_87] : memref<9x32x64xf32, #tpu.memory_space<vmem>>, vector<1x32x64xf32>
    %84 = vector.shape_cast %83 : vector<1x32x64xf32> to vector<32x64xf32>
    %cst_88 = arith.constant dense<0.000000e+00> : vector<64x64xf32>
    %85 = tpu.matmul %82, %84, %cst_88 {dimension_numbers = #tpu.dot_dimension_numbers<[1], [0], [0], [1], [0, 0, 1, 1], [], []>} : vector<64x32xf32>, vector<32x64xf32>, vector<64x64xf32> -> vector<64x64xf32>
    %86 = arith.addf %79, %85 : vector<64x64xf32>
    %c0_89 = arith.constant 0 : index
    %c1_90 = arith.constant 1 : index
    %c0_91 = arith.constant 0 : index
    %c0_92 = arith.constant 0 : index
    %87 = vector.load %arg2[%c0_89, %c1_90, %c0_91, %c0_92] : memref<1x18x9x32xf32, #tpu.memory_space<vmem>>, vector<1x8x8x32xf32>
    %88 = vector.shape_cast %87 : vector<1x8x8x32xf32> to vector<8x8x32xf32>
    %89 = vector.shape_cast %88 : vector<8x8x32xf32> to vector<64x32xf32>
    %c3_93 = arith.constant 3 : index
    %c0_94 = arith.constant 0 : index
    %c0_95 = arith.constant 0 : index
    %90 = vector.load %arg3[%c3_93, %c0_94, %c0_95] : memref<9x32x64xf32, #tpu.memory_space<vmem>>, vector<1x32x64xf32>
    %91 = vector.shape_cast %90 : vector<1x32x64xf32> to vector<32x64xf32>
    %cst_96 = arith.constant dense<0.000000e+00> : vector<64x64xf32>
    %92 = tpu.matmul %89, %91, %cst_96 {dimension_numbers = #tpu.dot_dimension_numbers<[1], [0], [0], [1], [0, 0, 1, 1], [], []>} : vector<64x32xf32>, vector<32x64xf32>, vector<64x64xf32> -> vector<64x64xf32>
    %93 = arith.addf %86, %92 : vector<64x64xf32>
    %c0_97 = arith.constant 0 : index
    %c1_98 = arith.constant 1 : index
    %c1_99 = arith.constant 1 : index
    %c0_100 = arith.constant 0 : index
    %94 = vector.load %arg1[%c0_97, %c1_98, %c1_99, %c0_100] : memref<1x18x9x32xf32, #tpu.memory_space<vmem>>, vector<1x8x8x32xf32>
    %95 = vector.shape_cast %94 : vector<1x8x8x32xf32> to vector<8x8x32xf32>
    %96 = vector.shape_cast %95 : vector<8x8x32xf32> to vector<64x32xf32>
    %c4_101 = arith.constant 4 : index
    %c0_102 = arith.constant 0 : index
    %c0_103 = arith.constant 0 : index
    %97 = vector.load %arg3[%c4_101, %c0_102, %c0_103] : memref<9x32x64xf32, #tpu.memory_space<vmem>>, vector<1x32x64xf32>
    %98 = vector.shape_cast %97 : vector<1x32x64xf32> to vector<32x64xf32>
    %cst_104 = arith.constant dense<0.000000e+00> : vector<64x64xf32>
    %99 = tpu.matmul %96, %98, %cst_104 {dimension_numbers = #tpu.dot_dimension_numbers<[1], [0], [0], [1], [0, 0, 1, 1], [], []>} : vector<64x32xf32>, vector<32x64xf32>, vector<64x64xf32> -> vector<64x64xf32>
    %100 = arith.addf %93, %99 : vector<64x64xf32>
    %c0_105 = arith.constant 0 : index
    %c1_106 = arith.constant 1 : index
    %c1_107 = arith.constant 1 : index
    %c0_108 = arith.constant 0 : index
    %101 = vector.load %arg2[%c0_105, %c1_106, %c1_107, %c0_108] : memref<1x18x9x32xf32, #tpu.memory_space<vmem>>, vector<1x8x8x32xf32>
    %102 = vector.shape_cast %101 : vector<1x8x8x32xf32> to vector<8x8x32xf32>
    %103 = vector.shape_cast %102 : vector<8x8x32xf32> to vector<64x32xf32>
    %c5_109 = arith.constant 5 : index
    %c0_110 = arith.constant 0 : index
    %c0_111 = arith.constant 0 : index
    %104 = vector.load %arg3[%c5_109, %c0_110, %c0_111] : memref<9x32x64xf32, #tpu.memory_space<vmem>>, vector<1x32x64xf32>
    %105 = vector.shape_cast %104 : vector<1x32x64xf32> to vector<32x64xf32>
    %cst_112 = arith.constant dense<0.000000e+00> : vector<64x64xf32>
    %106 = tpu.matmul %103, %105, %cst_112 {dimension_numbers = #tpu.dot_dimension_numbers<[1], [0], [0], [1], [0, 0, 1, 1], [], []>} : vector<64x32xf32>, vector<32x64xf32>, vector<64x64xf32> -> vector<64x64xf32>
    %107 = arith.addf %100, %106 : vector<64x64xf32>
    %c0_113 = arith.constant 0 : index
    %c2_114 = arith.constant 2 : index
    %c0_115 = arith.constant 0 : index
    %c0_116 = arith.constant 0 : index
    %108 = vector.load %arg2[%c0_113, %c2_114, %c0_115, %c0_116] : memref<1x18x9x32xf32, #tpu.memory_space<vmem>>, vector<1x8x8x32xf32>
    %109 = vector.shape_cast %108 : vector<1x8x8x32xf32> to vector<8x8x32xf32>
    %110 = vector.shape_cast %109 : vector<8x8x32xf32> to vector<64x32xf32>
    %c6_117 = arith.constant 6 : index
    %c0_118 = arith.constant 0 : index
    %c0_119 = arith.constant 0 : index
    %111 = vector.load %arg3[%c6_117, %c0_118, %c0_119] : memref<9x32x64xf32, #tpu.memory_space<vmem>>, vector<1x32x64xf32>
    %112 = vector.shape_cast %111 : vector<1x32x64xf32> to vector<32x64xf32>
    %cst_120 = arith.constant dense<0.000000e+00> : vector<64x64xf32>
    %113 = tpu.matmul %110, %112, %cst_120 {dimension_numbers = #tpu.dot_dimension_numbers<[1], [0], [0], [1], [0, 0, 1, 1], [], []>} : vector<64x32xf32>, vector<32x64xf32>, vector<64x64xf32> -> vector<64x64xf32>
    %114 = arith.addf %107, %113 : vector<64x64xf32>
    %c0_121 = arith.constant 0 : index
    %c2_122 = arith.constant 2 : index
    %c1_123 = arith.constant 1 : index
    %c0_124 = arith.constant 0 : index
    %115 = vector.load %arg1[%c0_121, %c2_122, %c1_123, %c0_124] : memref<1x18x9x32xf32, #tpu.memory_space<vmem>>, vector<1x8x8x32xf32>
    %116 = vector.shape_cast %115 : vector<1x8x8x32xf32> to vector<8x8x32xf32>
    %117 = vector.shape_cast %116 : vector<8x8x32xf32> to vector<64x32xf32>
    %c7_125 = arith.constant 7 : index
    %c0_126 = arith.constant 0 : index
    %c0_127 = arith.constant 0 : index
    %118 = vector.load %arg3[%c7_125, %c0_126, %c0_127] : memref<9x32x64xf32, #tpu.memory_space<vmem>>, vector<1x32x64xf32>
    %119 = vector.shape_cast %118 : vector<1x32x64xf32> to vector<32x64xf32>
    %cst_128 = arith.constant dense<0.000000e+00> : vector<64x64xf32>
    %120 = tpu.matmul %117, %119, %cst_128 {dimension_numbers = #tpu.dot_dimension_numbers<[1], [0], [0], [1], [0, 0, 1, 1], [], []>} : vector<64x32xf32>, vector<32x64xf32>, vector<64x64xf32> -> vector<64x64xf32>
    %121 = arith.addf %114, %120 : vector<64x64xf32>
    %c0_129 = arith.constant 0 : index
    %c2_130 = arith.constant 2 : index
    %c1_131 = arith.constant 1 : index
    %c0_132 = arith.constant 0 : index
    %122 = vector.load %arg2[%c0_129, %c2_130, %c1_131, %c0_132] : memref<1x18x9x32xf32, #tpu.memory_space<vmem>>, vector<1x8x8x32xf32>
    %123 = vector.shape_cast %122 : vector<1x8x8x32xf32> to vector<8x8x32xf32>
    %124 = vector.shape_cast %123 : vector<8x8x32xf32> to vector<64x32xf32>
    %c8_133 = arith.constant 8 : index
    %c0_134 = arith.constant 0 : index
    %c0_135 = arith.constant 0 : index
    %125 = vector.load %arg3[%c8_133, %c0_134, %c0_135] : memref<9x32x64xf32, #tpu.memory_space<vmem>>, vector<1x32x64xf32>
    %126 = vector.shape_cast %125 : vector<1x32x64xf32> to vector<32x64xf32>
    %cst_136 = arith.constant dense<0.000000e+00> : vector<64x64xf32>
    %127 = tpu.matmul %124, %126, %cst_136 {dimension_numbers = #tpu.dot_dimension_numbers<[1], [0], [0], [1], [0, 0, 1, 1], [], []>} : vector<64x32xf32>, vector<32x64xf32>, vector<64x64xf32> -> vector<64x64xf32>
    %128 = arith.addf %121, %127 : vector<64x64xf32>
    %129 = vector.broadcast %0 : vector<1x64xf32> to vector<64x64xf32>
    %130 = arith.addf %128, %129 : vector<64x64xf32>
    %cst_137 = arith.constant 0.000000e+00 : f32
    %131 = vector.broadcast %cst_137 : f32 to vector<64x64xf32>
    %132 = arith.maximumf %130, %131 : vector<64x64xf32>
    %133 = arith.maximumf %66, %132 : vector<64x64xf32>
    %134 = vector.extract_strided_slice %133 {offsets = [0, 0], sizes = [8, 64], strides = [1, 1]} : vector<64x64xf32> to vector<8x64xf32>
    %135 = vector.extract_strided_slice %133 {offsets = [8, 0], sizes = [8, 64], strides = [1, 1]} : vector<64x64xf32> to vector<8x64xf32>
    %136 = arith.maximumf %134, %135 : vector<8x64xf32>
    %c0_138 = arith.constant 0 : index
    %c0_139 = arith.constant 0 : index
    %c0_140 = arith.constant 0 : index
    %c0_141 = arith.constant 0 : index
    %137 = vector.load %arg5[%c0_138, %c0_139, %c0_140, %c0_141] : memref<1x8x8x64xf32, #tpu.memory_space<vmem>>, vector<1x1x8x64xf32>
    %138 = vector.shape_cast %137 : vector<1x1x8x64xf32> to vector<8x64xf32>
    %139 = vector.shape_cast %136 : vector<8x64xf32> to vector<1x1x8x64xf32>
    tpu.vector_store %arg5[%c0_138, %c0_139, %c0_140, %c0_141], %139 {strides = array<i32>} : memref<1x8x8x64xf32, #tpu.memory_space<vmem>>, vector<1x1x8x64xf32>,
    %140 = vector.extract_strided_slice %133 {offsets = [16, 0], sizes = [8, 64], strides = [1, 1]} : vector<64x64xf32> to vector<8x64xf32>
    %141 = vector.extract_strided_slice %133 {offsets = [24, 0], sizes = [8, 64], strides = [1, 1]} : vector<64x64xf32> to vector<8x64xf32>
    %142 = arith.maximumf %140, %141 : vector<8x64xf32>
    %c0_142 = arith.constant 0 : index
    %c1_143 = arith.constant 1 : index
    %c0_144 = arith.constant 0 : index
    %c0_145 = arith.constant 0 : index
    %143 = vector.load %arg5[%c0_142, %c1_143, %c0_144, %c0_145] : memref<1x8x8x64xf32, #tpu.memory_space<vmem>>, vector<1x1x8x64xf32>
    %144 = vector.shape_cast %143 : vector<1x1x8x64xf32> to vector<8x64xf32>
    %145 = vector.shape_cast %142 : vector<8x64xf32> to vector<1x1x8x64xf32>
    tpu.vector_store %arg5[%c0_142, %c1_143, %c0_144, %c0_145], %145 {strides = array<i32>} : memref<1x8x8x64xf32, #tpu.memory_space<vmem>>, vector<1x1x8x64xf32>,
    %146 = vector.extract_strided_slice %133 {offsets = [32, 0], sizes = [8, 64], strides = [1, 1]} : vector<64x64xf32> to vector<8x64xf32>
    %147 = vector.extract_strided_slice %133 {offsets = [40, 0], sizes = [8, 64], strides = [1, 1]} : vector<64x64xf32> to vector<8x64xf32>
    %148 = arith.maximumf %146, %147 : vector<8x64xf32>
    %c0_146 = arith.constant 0 : index
    %c2_147 = arith.constant 2 : index
    %c0_148 = arith.constant 0 : index
    %c0_149 = arith.constant 0 : index
    %149 = vector.load %arg5[%c0_146, %c2_147, %c0_148, %c0_149] : memref<1x8x8x64xf32, #tpu.memory_space<vmem>>, vector<1x1x8x64xf32>
    %150 = vector.shape_cast %149 : vector<1x1x8x64xf32> to vector<8x64xf32>
    %151 = vector.shape_cast %148 : vector<8x64xf32> to vector<1x1x8x64xf32>
    tpu.vector_store %arg5[%c0_146, %c2_147, %c0_148, %c0_149], %151 {strides = array<i32>} : memref<1x8x8x64xf32, #tpu.memory_space<vmem>>, vector<1x1x8x64xf32>,
    %152 = vector.extract_strided_slice %133 {offsets = [48, 0], sizes = [8, 64], strides = [1, 1]} : vector<64x64xf32> to vector<8x64xf32>
    %153 = vector.extract_strided_slice %133 {offsets = [56, 0], sizes = [8, 64], strides = [1, 1]} : vector<64x64xf32> to vector<8x64xf32>
    %154 = arith.maximumf %152, %153 : vector<8x64xf32>
    %c0_150 = arith.constant 0 : index
    %c3_151 = arith.constant 3 : index
    %c0_152 = arith.constant 0 : index
    %c0_153 = arith.constant 0 : index
    %155 = vector.load %arg5[%c0_150, %c3_151, %c0_152, %c0_153] : memref<1x8x8x64xf32, #tpu.memory_space<vmem>>, vector<1x1x8x64xf32>
    %156 = vector.shape_cast %155 : vector<1x1x8x64xf32> to vector<8x64xf32>
    %157 = vector.shape_cast %154 : vector<8x64xf32> to vector<1x1x8x64xf32>
    tpu.vector_store %arg5[%c0_150, %c3_151, %c0_152, %c0_153], %157 {strides = array<i32>} : memref<1x8x8x64xf32, #tpu.memory_space<vmem>>, vector<1x1x8x64xf32>,
    %c0_154 = arith.constant 0 : index
    %c8_155 = arith.constant 8 : index
    %c0_156 = arith.constant 0 : index
    %c0_157 = arith.constant 0 : index
    %158 = vector.load %arg1[%c0_154, %c8_155, %c0_156, %c0_157] : memref<1x18x9x32xf32, #tpu.memory_space<vmem>>, vector<1x8x8x32xf32>
    %159 = vector.shape_cast %158 : vector<1x8x8x32xf32> to vector<8x8x32xf32>
    %160 = vector.shape_cast %159 : vector<8x8x32xf32> to vector<64x32xf32>
    %c0_158 = arith.constant 0 : index
    %c0_159 = arith.constant 0 : index
    %c0_160 = arith.constant 0 : index
    %161 = vector.load %arg3[%c0_158, %c0_159, %c0_160] : memref<9x32x64xf32, #tpu.memory_space<vmem>>, vector<1x32x64xf32>
    %162 = vector.shape_cast %161 : vector<1x32x64xf32> to vector<32x64xf32>
    %cst_161 = arith.constant dense<0.000000e+00> : vector<64x64xf32>
    %163 = tpu.matmul %160, %162, %cst_161 {dimension_numbers = #tpu.dot_dimension_numbers<[1], [0], [0], [1], [0, 0, 1, 1], [], []>} : vector<64x32xf32>, vector<32x64xf32>, vector<64x64xf32> -> vector<64x64xf32>
    %c0_162 = arith.constant 0 : index
    %c8_163 = arith.constant 8 : index
    %c0_164 = arith.constant 0 : index
    %c0_165 = arith.constant 0 : index
    %164 = vector.load %arg2[%c0_162, %c8_163, %c0_164, %c0_165] : memref<1x18x9x32xf32, #tpu.memory_space<vmem>>, vector<1x8x8x32xf32>
    %165 = vector.shape_cast %164 : vector<1x8x8x32xf32> to vector<8x8x32xf32>
    %166 = vector.shape_cast %165 : vector<8x8x32xf32> to vector<64x32xf32>
    %c1_166 = arith.constant 1 : index
    %c0_167 = arith.constant 0 : index
    %c0_168 = arith.constant 0 : index
    %167 = vector.load %arg3[%c1_166, %c0_167, %c0_168] : memref<9x32x64xf32, #tpu.memory_space<vmem>>, vector<1x32x64xf32>
    %168 = vector.shape_cast %167 : vector<1x32x64xf32> to vector<32x64xf32>
    %cst_169 = arith.constant dense<0.000000e+00> : vector<64x64xf32>
    %169 = tpu.matmul %166, %168, %cst_169 {dimension_numbers = #tpu.dot_dimension_numbers<[1], [0], [0], [1], [0, 0, 1, 1], [], []>} : vector<64x32xf32>, vector<32x64xf32>, vector<64x64xf32> -> vector<64x64xf32>
    %170 = arith.addf %163, %169 : vector<64x64xf32>
    %c0_170 = arith.constant 0 : index
    %c8_171 = arith.constant 8 : index
    %c1_172 = arith.constant 1 : index
    %c0_173 = arith.constant 0 : index
    %171 = vector.load %arg1[%c0_170, %c8_171, %c1_172, %c0_173] : memref<1x18x9x32xf32, #tpu.memory_space<vmem>>, vector<1x8x8x32xf32>
    %172 = vector.shape_cast %171 : vector<1x8x8x32xf32> to vector<8x8x32xf32>
    %173 = vector.shape_cast %172 : vector<8x8x32xf32> to vector<64x32xf32>
    %c2_174 = arith.constant 2 : index
    %c0_175 = arith.constant 0 : index
    %c0_176 = arith.constant 0 : index
    %174 = vector.load %arg3[%c2_174, %c0_175, %c0_176] : memref<9x32x64xf32, #tpu.memory_space<vmem>>, vector<1x32x64xf32>
    %175 = vector.shape_cast %174 : vector<1x32x64xf32> to vector<32x64xf32>
    %cst_177 = arith.constant dense<0.000000e+00> : vector<64x64xf32>
    %176 = tpu.matmul %173, %175, %cst_177 {dimension_numbers = #tpu.dot_dimension_numbers<[1], [0], [0], [1], [0, 0, 1, 1], [], []>} : vector<64x32xf32>, vector<32x64xf32>, vector<64x64xf32> -> vector<64x64xf32>
    %177 = arith.addf %170, %176 : vector<64x64xf32>
    %c0_178 = arith.constant 0 : index
    %c9 = arith.constant 9 : index
    %c0_179 = arith.constant 0 : index
    %c0_180 = arith.constant 0 : index
    %178 = vector.load %arg1[%c0_178, %c9, %c0_179, %c0_180] : memref<1x18x9x32xf32, #tpu.memory_space<vmem>>, vector<1x8x8x32xf32>
    %179 = vector.shape_cast %178 : vector<1x8x8x32xf32> to vector<8x8x32xf32>
    %180 = vector.shape_cast %179 : vector<8x8x32xf32> to vector<64x32xf32>
    %c3_181 = arith.constant 3 : index
    %c0_182 = arith.constant 0 : index
    %c0_183 = arith.constant 0 : index
    %181 = vector.load %arg3[%c3_181, %c0_182, %c0_183] : memref<9x32x64xf32, #tpu.memory_space<vmem>>, vector<1x32x64xf32>
    %182 = vector.shape_cast %181 : vector<1x32x64xf32> to vector<32x64xf32>
    %cst_184 = arith.constant dense<0.000000e+00> : vector<64x64xf32>
    %183 = tpu.matmul %180, %182, %cst_184 {dimension_numbers = #tpu.dot_dimension_numbers<[1], [0], [0], [1], [0, 0, 1, 1], [], []>} : vector<64x32xf32>, vector<32x64xf32>, vector<64x64xf32> -> vector<64x64xf32>
    %184 = arith.addf %177, %183 : vector<64x64xf32>
    %c0_185 = arith.constant 0 : index
    %c9_186 = arith.constant 9 : index
    %c0_187 = arith.constant 0 : index
    %c0_188 = arith.constant 0 : index
    %185 = vector.load %arg2[%c0_185, %c9_186, %c0_187, %c0_188] : memref<1x18x9x32xf32, #tpu.memory_space<vmem>>, vector<1x8x8x32xf32>
    %186 = vector.shape_cast %185 : vector<1x8x8x32xf32> to vector<8x8x32xf32>
    %187 = vector.shape_cast %186 : vector<8x8x32xf32> to vector<64x32xf32>
    %c4_189 = arith.constant 4 : index
    %c0_190 = arith.constant 0 : index
    %c0_191 = arith.constant 0 : index
    %188 = vector.load %arg3[%c4_189, %c0_190, %c0_191] : memref<9x32x64xf32, #tpu.memory_space<vmem>>, vector<1x32x64xf32>
    %189 = vector.shape_cast %188 : vector<1x32x64xf32> to vector<32x64xf32>
    %cst_192 = arith.constant dense<0.000000e+00> : vector<64x64xf32>
    %190 = tpu.matmul %187, %189, %cst_192 {dimension_numbers = #tpu.dot_dimension_numbers<[1], [0], [0], [1], [0, 0, 1, 1], [], []>} : vector<64x32xf32>, vector<32x64xf32>, vector<64x64xf32> -> vector<64x64xf32>
    %191 = arith.addf %184, %190 : vector<64x64xf32>
    %c0_193 = arith.constant 0 : index
    %c9_194 = arith.constant 9 : index
    %c1_195 = arith.constant 1 : index
    %c0_196 = arith.constant 0 : index
    %192 = vector.load %arg1[%c0_193, %c9_194, %c1_195, %c0_196] : memref<1x18x9x32xf32, #tpu.memory_space<vmem>>, vector<1x8x8x32xf32>
    %193 = vector.shape_cast %192 : vector<1x8x8x32xf32> to vector<8x8x32xf32>
    %194 = vector.shape_cast %193 : vector<8x8x32xf32> to vector<64x32xf32>
    %c5_197 = arith.constant 5 : index
    %c0_198 = arith.constant 0 : index
    %c0_199 = arith.constant 0 : index
    %195 = vector.load %arg3[%c5_197, %c0_198, %c0_199] : memref<9x32x64xf32, #tpu.memory_space<vmem>>, vector<1x32x64xf32>
    %196 = vector.shape_cast %195 : vector<1x32x64xf32> to vector<32x64xf32>
    %cst_200 = arith.constant dense<0.000000e+00> : vector<64x64xf32>
    %197 = tpu.matmul %194, %196, %cst_200 {dimension_numbers = #tpu.dot_dimension_numbers<[1], [0], [0], [1], [0, 0, 1, 1], [], []>} : vector<64x32xf32>, vector<32x64xf32>, vector<64x64xf32> -> vector<64x64xf32>
    %198 = arith.addf %191, %197 : vector<64x64xf32>
    %c0_201 = arith.constant 0 : index
    %c10 = arith.constant 10 : index
    %c0_202 = arith.constant 0 : index
    %c0_203 = arith.constant 0 : index
    %199 = vector.load %arg1[%c0_201, %c10, %c0_202, %c0_203] : memref<1x18x9x32xf32, #tpu.memory_space<vmem>>, vector<1x8x8x32xf32>
    %200 = vector.shape_cast %199 : vector<1x8x8x32xf32> to vector<8x8x32xf32>
    %201 = vector.shape_cast %200 : vector<8x8x32xf32> to vector<64x32xf32>
    %c6_204 = arith.constant 6 : index
    %c0_205 = arith.constant 0 : index
    %c0_206 = arith.constant 0 : index
    %202 = vector.load %arg3[%c6_204, %c0_205, %c0_206] : memref<9x32x64xf32, #tpu.memory_space<vmem>>, vector<1x32x64xf32>
    %203 = vector.shape_cast %202 : vector<1x32x64xf32> to vector<32x64xf32>
    %cst_207 = arith.constant dense<0.000000e+00> : vector<64x64xf32>
    %204 = tpu.matmul %201, %203, %cst_207 {dimension_numbers = #tpu.dot_dimension_numbers<[1], [0], [0], [1], [0, 0, 1, 1], [], []>} : vector<64x32xf32>, vector<32x64xf32>, vector<64x64xf32> -> vector<64x64xf32>
    %205 = arith.addf %198, %204 : vector<64x64xf32>
    %c0_208 = arith.constant 0 : index
    %c10_209 = arith.constant 10 : index
    %c0_210 = arith.constant 0 : index
    %c0_211 = arith.constant 0 : index
    %206 = vector.load %arg2[%c0_208, %c10_209, %c0_210, %c0_211] : memref<1x18x9x32xf32, #tpu.memory_space<vmem>>, vector<1x8x8x32xf32>
    %207 = vector.shape_cast %206 : vector<1x8x8x32xf32> to vector<8x8x32xf32>
    %208 = vector.shape_cast %207 : vector<8x8x32xf32> to vector<64x32xf32>
    %c7_212 = arith.constant 7 : index
    %c0_213 = arith.constant 0 : index
    %c0_214 = arith.constant 0 : index
    %209 = vector.load %arg3[%c7_212, %c0_213, %c0_214] : memref<9x32x64xf32, #tpu.memory_space<vmem>>, vector<1x32x64xf32>
    %210 = vector.shape_cast %209 : vector<1x32x64xf32> to vector<32x64xf32>
    %cst_215 = arith.constant dense<0.000000e+00> : vector<64x64xf32>
    %211 = tpu.matmul %208, %210, %cst_215 {dimension_numbers = #tpu.dot_dimension_numbers<[1], [0], [0], [1], [0, 0, 1, 1], [], []>} : vector<64x32xf32>, vector<32x64xf32>, vector<64x64xf32> -> vector<64x64xf32>
    %212 = arith.addf %205, %211 : vector<64x64xf32>
    %c0_216 = arith.constant 0 : index
    %c10_217 = arith.constant 10 : index
    %c1_218 = arith.constant 1 : index
    %c0_219 = arith.constant 0 : index
    %213 = vector.load %arg1[%c0_216, %c10_217, %c1_218, %c0_219] : memref<1x18x9x32xf32, #tpu.memory_space<vmem>>, vector<1x8x8x32xf32>
    %214 = vector.shape_cast %213 : vector<1x8x8x32xf32> to vector<8x8x32xf32>
    %215 = vector.shape_cast %214 : vector<8x8x32xf32> to vector<64x32xf32>
    %c8_220 = arith.constant 8 : index
    %c0_221 = arith.constant 0 : index
    %c0_222 = arith.constant 0 : index
    %216 = vector.load %arg3[%c8_220, %c0_221, %c0_222] : memref<9x32x64xf32, #tpu.memory_space<vmem>>, vector<1x32x64xf32>
    %217 = vector.shape_cast %216 : vector<1x32x64xf32> to vector<32x64xf32>
    %cst_223 = arith.constant dense<0.000000e+00> : vector<64x64xf32>
    %218 = tpu.matmul %215, %217, %cst_223 {dimension_numbers = #tpu.dot_dimension_numbers<[1], [0], [0], [1], [0, 0, 1, 1], [], []>} : vector<64x32xf32>, vector<32x64xf32>, vector<64x64xf32> -> vector<64x64xf32>
    %219 = arith.addf %212, %218 : vector<64x64xf32>
    %220 = vector.broadcast %0 : vector<1x64xf32> to vector<64x64xf32>
    %221 = arith.addf %219, %220 : vector<64x64xf32>
    %cst_224 = arith.constant 0.000000e+00 : f32
    %222 = vector.broadcast %cst_224 : f32 to vector<64x64xf32>
    %223 = arith.maximumf %221, %222 : vector<64x64xf32>
    %c0_225 = arith.constant 0 : index
    %c8_226 = arith.constant 8 : index
    %c0_227 = arith.constant 0 : index
    %c0_228 = arith.constant 0 : index
    %224 = vector.load %arg2[%c0_225, %c8_226, %c0_227, %c0_228] : memref<1x18x9x32xf32, #tpu.memory_space<vmem>>, vector<1x8x8x32xf32>
    %225 = vector.shape_cast %224 : vector<1x8x8x32xf32> to vector<8x8x32xf32>
    %226 = vector.shape_cast %225 : vector<8x8x32xf32> to vector<64x32xf32>
    %c0_229 = arith.constant 0 : index
    %c0_230 = arith.constant 0 : index
    %c0_231 = arith.constant 0 : index
    %227 = vector.load %arg3[%c0_229, %c0_230, %c0_231] : memref<9x32x64xf32, #tpu.memory_space<vmem>>, vector<1x32x64xf32>
    %228 = vector.shape_cast %227 : vector<1x32x64xf32> to vector<32x64xf32>
    %cst_232 = arith.constant dense<0.000000e+00> : vector<64x64xf32>
    %229 = tpu.matmul %226, %228, %cst_232 {dimension_numbers = #tpu.dot_dimension_numbers<[1], [0], [0], [1], [0, 0, 1, 1], [], []>} : vector<64x32xf32>, vector<32x64xf32>, vector<64x64xf32> -> vector<64x64xf32>
    %c0_233 = arith.constant 0 : index
    %c8_234 = arith.constant 8 : index
    %c1_235 = arith.constant 1 : index
    %c0_236 = arith.constant 0 : index
    %230 = vector.load %arg1[%c0_233, %c8_234, %c1_235, %c0_236] : memref<1x18x9x32xf32, #tpu.memory_space<vmem>>, vector<1x8x8x32xf32>
    %231 = vector.shape_cast %230 : vector<1x8x8x32xf32> to vector<8x8x32xf32>
    %232 = vector.shape_cast %231 : vector<8x8x32xf32> to vector<64x32xf32>
    %c1_237 = arith.constant 1 : index
    %c0_238 = arith.constant 0 : index
    %c0_239 = arith.constant 0 : index
    %233 = vector.load %arg3[%c1_237, %c0_238, %c0_239] : memref<9x32x64xf32, #tpu.memory_space<vmem>>, vector<1x32x64xf32>
    %234 = vector.shape_cast %233 : vector<1x32x64xf32> to vector<32x64xf32>
    %cst_240 = arith.constant dense<0.000000e+00> : vector<64x64xf32>
    %235 = tpu.matmul %232, %234, %cst_240 {dimension_numbers = #tpu.dot_dimension_numbers<[1], [0], [0], [1], [0, 0, 1, 1], [], []>} : vector<64x32xf32>, vector<32x64xf32>, vector<64x64xf32> -> vector<64x64xf32>
    %236 = arith.addf %229, %235 : vector<64x64xf32>
    %c0_241 = arith.constant 0 : index
    %c8_242 = arith.constant 8 : index
    %c1_243 = arith.constant 1 : index
    %c0_244 = arith.constant 0 : index
    %237 = vector.load %arg2[%c0_241, %c8_242, %c1_243, %c0_244] : memref<1x18x9x32xf32, #tpu.memory_space<vmem>>, vector<1x8x8x32xf32>
    %238 = vector.shape_cast %237 : vector<1x8x8x32xf32> to vector<8x8x32xf32>
    %239 = vector.shape_cast %238 : vector<8x8x32xf32> to vector<64x32xf32>
    %c2_245 = arith.constant 2 : index
    %c0_246 = arith.constant 0 : index
    %c0_247 = arith.constant 0 : index
    %240 = vector.load %arg3[%c2_245, %c0_246, %c0_247] : memref<9x32x64xf32, #tpu.memory_space<vmem>>, vector<1x32x64xf32>
    %241 = vector.shape_cast %240 : vector<1x32x64xf32> to vector<32x64xf32>
    %cst_248 = arith.constant dense<0.000000e+00> : vector<64x64xf32>
    %242 = tpu.matmul %239, %241, %cst_248 {dimension_numbers = #tpu.dot_dimension_numbers<[1], [0], [0], [1], [0, 0, 1, 1], [], []>} : vector<64x32xf32>, vector<32x64xf32>, vector<64x64xf32> -> vector<64x64xf32>
    %243 = arith.addf %236, %242 : vector<64x64xf32>
    %c0_249 = arith.constant 0 : index
    %c9_250 = arith.constant 9 : index
    %c0_251 = arith.constant 0 : index
    %c0_252 = arith.constant 0 : index
    %244 = vector.load %arg2[%c0_249, %c9_250, %c0_251, %c0_252] : memref<1x18x9x32xf32, #tpu.memory_space<vmem>>, vector<1x8x8x32xf32>
    %245 = vector.shape_cast %244 : vector<1x8x8x32xf32> to vector<8x8x32xf32>
    %246 = vector.shape_cast %245 : vector<8x8x32xf32> to vector<64x32xf32>
    %c3_253 = arith.constant 3 : index
    %c0_254 = arith.constant 0 : index
    %c0_255 = arith.constant 0 : index
    %247 = vector.load %arg3[%c3_253, %c0_254, %c0_255] : memref<9x32x64xf32, #tpu.memory_space<vmem>>, vector<1x32x64xf32>
    %248 = vector.shape_cast %247 : vector<1x32x64xf32> to vector<32x64xf32>
    %cst_256 = arith.constant dense<0.000000e+00> : vector<64x64xf32>
    %249 = tpu.matmul %246, %248, %cst_256 {dimension_numbers = #tpu.dot_dimension_numbers<[1], [0], [0], [1], [0, 0, 1, 1], [], []>} : vector<64x32xf32>, vector<32x64xf32>, vector<64x64xf32> -> vector<64x64xf32>
    %250 = arith.addf %243, %249 : vector<64x64xf32>
    %c0_257 = arith.constant 0 : index
    %c9_258 = arith.constant 9 : index
    %c1_259 = arith.constant 1 : index
    %c0_260 = arith.constant 0 : index
    %251 = vector.load %arg1[%c0_257, %c9_258, %c1_259, %c0_260] : memref<1x18x9x32xf32, #tpu.memory_space<vmem>>, vector<1x8x8x32xf32>
    %252 = vector.shape_cast %251 : vector<1x8x8x32xf32> to vector<8x8x32xf32>
    %253 = vector.shape_cast %252 : vector<8x8x32xf32> to vector<64x32xf32>
    %c4_261 = arith.constant 4 : index
    %c0_262 = arith.constant 0 : index
    %c0_263 = arith.constant 0 : index
    %254 = vector.load %arg3[%c4_261, %c0_262, %c0_263] : memref<9x32x64xf32, #tpu.memory_space<vmem>>, vector<1x32x64xf32>
    %255 = vector.shape_cast %254 : vector<1x32x64xf32> to vector<32x64xf32>
    %cst_264 = arith.constant dense<0.000000e+00> : vector<64x64xf32>
    %256 = tpu.matmul %253, %255, %cst_264 {dimension_numbers = #tpu.dot_dimension_numbers<[1], [0], [0], [1], [0, 0, 1, 1], [], []>} : vector<64x32xf32>, vector<32x64xf32>, vector<64x64xf32> -> vector<64x64xf32>
    %257 = arith.addf %250, %256 : vector<64x64xf32>
    %c0_265 = arith.constant 0 : index
    %c9_266 = arith.constant 9 : index
    %c1_267 = arith.constant 1 : index
    %c0_268 = arith.constant 0 : index
    %258 = vector.load %arg2[%c0_265, %c9_266, %c1_267, %c0_268] : memref<1x18x9x32xf32, #tpu.memory_space<vmem>>, vector<1x8x8x32xf32>
    %259 = vector.shape_cast %258 : vector<1x8x8x32xf32> to vector<8x8x32xf32>
    %260 = vector.shape_cast %259 : vector<8x8x32xf32> to vector<64x32xf32>
    %c5_269 = arith.constant 5 : index
    %c0_270 = arith.constant 0 : index
    %c0_271 = arith.constant 0 : index
    %261 = vector.load %arg3[%c5_269, %c0_270, %c0_271] : memref<9x32x64xf32, #tpu.memory_space<vmem>>, vector<1x32x64xf32>
    %262 = vector.shape_cast %261 : vector<1x32x64xf32> to vector<32x64xf32>
    %cst_272 = arith.constant dense<0.000000e+00> : vector<64x64xf32>
    %263 = tpu.matmul %260, %262, %cst_272 {dimension_numbers = #tpu.dot_dimension_numbers<[1], [0], [0], [1], [0, 0, 1, 1], [], []>} : vector<64x32xf32>, vector<32x64xf32>, vector<64x64xf32> -> vector<64x64xf32>
    %264 = arith.addf %257, %263 : vector<64x64xf32>
    %c0_273 = arith.constant 0 : index
    %c10_274 = arith.constant 10 : index
    %c0_275 = arith.constant 0 : index
    %c0_276 = arith.constant 0 : index
    %265 = vector.load %arg2[%c0_273, %c10_274, %c0_275, %c0_276] : memref<1x18x9x32xf32, #tpu.memory_space<vmem>>, vector<1x8x8x32xf32>
    %266 = vector.shape_cast %265 : vector<1x8x8x32xf32> to vector<8x8x32xf32>
    %267 = vector.shape_cast %266 : vector<8x8x32xf32> to vector<64x32xf32>
    %c6_277 = arith.constant 6 : index
    %c0_278 = arith.constant 0 : index
    %c0_279 = arith.constant 0 : index
    %268 = vector.load %arg3[%c6_277, %c0_278, %c0_279] : memref<9x32x64xf32, #tpu.memory_space<vmem>>, vector<1x32x64xf32>
    %269 = vector.shape_cast %268 : vector<1x32x64xf32> to vector<32x64xf32>
    %cst_280 = arith.constant dense<0.000000e+00> : vector<64x64xf32>
    %270 = tpu.matmul %267, %269, %cst_280 {dimension_numbers = #tpu.dot_dimension_numbers<[1], [0], [0], [1], [0, 0, 1, 1], [], []>} : vector<64x32xf32>, vector<32x64xf32>, vector<64x64xf32> -> vector<64x64xf32>
    %271 = arith.addf %264, %270 : vector<64x64xf32>
    %c0_281 = arith.constant 0 : index
    %c10_282 = arith.constant 10 : index
    %c1_283 = arith.constant 1 : index
    %c0_284 = arith.constant 0 : index
    %272 = vector.load %arg1[%c0_281, %c10_282, %c1_283, %c0_284] : memref<1x18x9x32xf32, #tpu.memory_space<vmem>>, vector<1x8x8x32xf32>
    %273 = vector.shape_cast %272 : vector<1x8x8x32xf32> to vector<8x8x32xf32>
    %274 = vector.shape_cast %273 : vector<8x8x32xf32> to vector<64x32xf32>
    %c7_285 = arith.constant 7 : index
    %c0_286 = arith.constant 0 : index
    %c0_287 = arith.constant 0 : index
    %275 = vector.load %arg3[%c7_285, %c0_286, %c0_287] : memref<9x32x64xf32, #tpu.memory_space<vmem>>, vector<1x32x64xf32>
    %276 = vector.shape_cast %275 : vector<1x32x64xf32> to vector<32x64xf32>
    %cst_288 = arith.constant dense<0.000000e+00> : vector<64x64xf32>
    %277 = tpu.matmul %274, %276, %cst_288 {dimension_numbers = #tpu.dot_dimension_numbers<[1], [0], [0], [1], [0, 0, 1, 1], [], []>} : vector<64x32xf32>, vector<32x64xf32>, vector<64x64xf32> -> vector<64x64xf32>
    %278 = arith.addf %271, %277 : vector<64x64xf32>
    %c0_289 = arith.constant 0 : index
    %c10_290 = arith.constant 10 : index
    %c1_291 = arith.constant 1 : index
    %c0_292 = arith.constant 0 : index
    %279 = vector.load %arg2[%c0_289, %c10_290, %c1_291, %c0_292] : memref<1x18x9x32xf32, #tpu.memory_space<vmem>>, vector<1x8x8x32xf32>
    %280 = vector.shape_cast %279 : vector<1x8x8x32xf32> to vector<8x8x32xf32>
    %281 = vector.shape_cast %280 : vector<8x8x32xf32> to vector<64x32xf32>
    %c8_293 = arith.constant 8 : index
    %c0_294 = arith.constant 0 : index
    %c0_295 = arith.constant 0 : index
    %282 = vector.load %arg3[%c8_293, %c0_294, %c0_295] : memref<9x32x64xf32, #tpu.memory_space<vmem>>, vector<1x32x64xf32>
    %283 = vector.shape_cast %282 : vector<1x32x64xf32> to vector<32x64xf32>
    %cst_296 = arith.constant dense<0.000000e+00> : vector<64x64xf32>
    %284 = tpu.matmul %281, %283, %cst_296 {dimension_numbers = #tpu.dot_dimension_numbers<[1], [0], [0], [1], [0, 0, 1, 1], [], []>} : vector<64x32xf32>, vector<32x64xf32>, vector<64x64xf32> -> vector<64x64xf32>
    %285 = arith.addf %278, %284 : vector<64x64xf32>
    %286 = vector.broadcast %0 : vector<1x64xf32> to vector<64x64xf32>
    %287 = arith.addf %285, %286 : vector<64x64xf32>
    %cst_297 = arith.constant 0.000000e+00 : f32
    %288 = vector.broadcast %cst_297 : f32 to vector<64x64xf32>
    %289 = arith.maximumf %287, %288 : vector<64x64xf32>
    %290 = arith.maximumf %223, %289 : vector<64x64xf32>
    %291 = vector.extract_strided_slice %290 {offsets = [0, 0], sizes = [8, 64], strides = [1, 1]} : vector<64x64xf32> to vector<8x64xf32>
    %292 = vector.extract_strided_slice %290 {offsets = [8, 0], sizes = [8, 64], strides = [1, 1]} : vector<64x64xf32> to vector<8x64xf32>
    %293 = arith.maximumf %291, %292 : vector<8x64xf32>
    %c0_298 = arith.constant 0 : index
    %c4_299 = arith.constant 4 : index
    %c0_300 = arith.constant 0 : index
    %c0_301 = arith.constant 0 : index
    %294 = vector.load %arg5[%c0_298, %c4_299, %c0_300, %c0_301] : memref<1x8x8x64xf32, #tpu.memory_space<vmem>>, vector<1x1x8x64xf32>
    %295 = vector.shape_cast %294 : vector<1x1x8x64xf32> to vector<8x64xf32>
    %296 = vector.shape_cast %293 : vector<8x64xf32> to vector<1x1x8x64xf32>
    tpu.vector_store %arg5[%c0_298, %c4_299, %c0_300, %c0_301], %296 {strides = array<i32>} : memref<1x8x8x64xf32, #tpu.memory_space<vmem>>, vector<1x1x8x64xf32>,
    %297 = vector.extract_strided_slice %290 {offsets = [16, 0], sizes = [8, 64], strides = [1, 1]} : vector<64x64xf32> to vector<8x64xf32>
    %298 = vector.extract_strided_slice %290 {offsets = [24, 0], sizes = [8, 64], strides = [1, 1]} : vector<64x64xf32> to vector<8x64xf32>
    %299 = arith.maximumf %297, %298 : vector<8x64xf32>
    %c0_302 = arith.constant 0 : index
    %c5_303 = arith.constant 5 : index
    %c0_304 = arith.constant 0 : index
    %c0_305 = arith.constant 0 : index
    %300 = vector.load %arg5[%c0_302, %c5_303, %c0_304, %c0_305] : memref<1x8x8x64xf32, #tpu.memory_space<vmem>>, vector<1x1x8x64xf32>
    %301 = vector.shape_cast %300 : vector<1x1x8x64xf32> to vector<8x64xf32>
    %302 = vector.shape_cast %299 : vector<8x64xf32> to vector<1x1x8x64xf32>
    tpu.vector_store %arg5[%c0_302, %c5_303, %c0_304, %c0_305], %302 {strides = array<i32>} : memref<1x8x8x64xf32, #tpu.memory_space<vmem>>, vector<1x1x8x64xf32>,
    %303 = vector.extract_strided_slice %290 {offsets = [32, 0], sizes = [8, 64], strides = [1, 1]} : vector<64x64xf32> to vector<8x64xf32>
    %304 = vector.extract_strided_slice %290 {offsets = [40, 0], sizes = [8, 64], strides = [1, 1]} : vector<64x64xf32> to vector<8x64xf32>
    %305 = arith.maximumf %303, %304 : vector<8x64xf32>
    %c0_306 = arith.constant 0 : index
    %c6_307 = arith.constant 6 : index
    %c0_308 = arith.constant 0 : index
    %c0_309 = arith.constant 0 : index
    %306 = vector.load %arg5[%c0_306, %c6_307, %c0_308, %c0_309] : memref<1x8x8x64xf32, #tpu.memory_space<vmem>>, vector<1x1x8x64xf32>
    %307 = vector.shape_cast %306 : vector<1x1x8x64xf32> to vector<8x64xf32>
    %308 = vector.shape_cast %305 : vector<8x64xf32> to vector<1x1x8x64xf32>
    tpu.vector_store %arg5[%c0_306, %c6_307, %c0_308, %c0_309], %308 {strides = array<i32>} : memref<1x8x8x64xf32, #tpu.memory_space<vmem>>, vector<1x1x8x64xf32>,
    %309 = vector.extract_strided_slice %290 {offsets = [48, 0], sizes = [8, 64], strides = [1, 1]} : vector<64x64xf32> to vector<8x64xf32>
    %310 = vector.extract_strided_slice %290 {offsets = [56, 0], sizes = [8, 64], strides = [1, 1]} : vector<64x64xf32> to vector<8x64xf32>
    %311 = arith.maximumf %309, %310 : vector<8x64xf32>
    %c0_310 = arith.constant 0 : index
    %c7_311 = arith.constant 7 : index
    %c0_312 = arith.constant 0 : index
    %c0_313 = arith.constant 0 : index
    %312 = vector.load %arg5[%c0_310, %c7_311, %c0_312, %c0_313] : memref<1x8x8x64xf32, #tpu.memory_space<vmem>>, vector<1x1x8x64xf32>
    %313 = vector.shape_cast %312 : vector<1x1x8x64xf32> to vector<8x64xf32>
    %314 = vector.shape_cast %311 : vector<8x64xf32> to vector<1x1x8x64xf32>
    tpu.vector_store %arg5[%c0_310, %c7_311, %c0_312, %c0_313], %314 {strides = array<i32>} : memref<1x8x8x64xf32, #tpu.memory_space<vmem>>, vector<1x1x8x64xf32>,
    return
  }
  func.func @transform_0(%arg0: i32) -> (i32, i32, i32, i32) {
    %c0_i32 = arith.constant 0 : i32
    %c0_i32_0 = arith.constant 0 : i32
    %c0_i32_1 = arith.constant 0 : i32
    %c0_i32_2 = arith.constant 0 : i32
    return %arg0, %c0_i32, %c0_i32_0, %c0_i32_1 : i32, i32, i32, i32
  }
  func.func @transform_1(%arg0: i32) -> (i32, i32, i32, i32) {
    %c0_i32 = arith.constant 0 : i32
    %c0_i32_0 = arith.constant 0 : i32
    %c0_i32_1 = arith.constant 0 : i32
    %c0_i32_2 = arith.constant 0 : i32
    return %arg0, %c0_i32, %c0_i32_0, %c0_i32_1 : i32, i32, i32, i32
  }
  func.func @transform_2(%arg0: i32) -> (i32, i32, i32) {
    %c0_i32 = arith.constant 0 : i32
    %c0_i32_0 = arith.constant 0 : i32
    %c0_i32_1 = arith.constant 0 : i32
    %c0_i32_2 = arith.constant 0 : i32
    return %c0_i32, %c0_i32_0, %c0_i32_1 : i32, i32, i32
  }
  func.func @transform_3(%arg0: i32) -> (i32, i32) {
    %c0_i32 = arith.constant 0 : i32
    %c0_i32_0 = arith.constant 0 : i32
    %c0_i32_1 = arith.constant 0 : i32
    return %c0_i32, %c0_i32_0 : i32, i32
  }
  func.func @transform_4(%arg0: i32) -> (i32, i32, i32, i32) {
    %c0_i32 = arith.constant 0 : i32
    %c0_i32_0 = arith.constant 0 : i32
    %c0_i32_1 = arith.constant 0 : i32
    %c0_i32_2 = arith.constant 0 : i32
    return %arg0, %c0_i32, %c0_i32_0, %c0_i32_1 : i32, i32, i32, i32
  }
}

module attributes {stable_mosaic.version = 11 : i64} {
  func.func @_conv3x3_relu_pool_kernel(%arg0: i32, %arg1: memref<1x34x17x3xf32, #tpu.memory_space<vmem>>, %arg2: memref<1x34x17x3xf32, #tpu.memory_space<vmem>>, %arg3: memref<9x3x32xf32, #tpu.memory_space<vmem>>, %arg4: memref<1x32xf32, #tpu.memory_space<vmem>>, %arg5: memref<1x16x16x32xf32, #tpu.memory_space<vmem>>) attributes {dimension_semantics = [#tpu.dimension_semantics<parallel>], iteration_bounds = array<i64: 2>, scalar_prefetch = 0 : i64, scratch_operands = 0 : i64, tpu.core_type = #tpu.core_type<tc>, window_params = [{transform_indices = @transform_0, window_bounds = array<i64: 1, 34, 17, 3>}, {transform_indices = @transform_1, window_bounds = array<i64: 1, 34, 17, 3>}, {pipeline_mode = #tpu.pipeline_mode<synchronous>, transform_indices = @transform_2, window_bounds = array<i64: 9, 3, 32>}, {pipeline_mode = #tpu.pipeline_mode<synchronous>, transform_indices = @transform_3, window_bounds = array<i64: 1, 32>}, {transform_indices = @transform_4, window_bounds = array<i64: 1, 16, 16, 32>}]} {
    %c0 = arith.constant 0 : index
    %c0_0 = arith.constant 0 : index
    %0 = vector.load %arg4[%c0, %c0_0] : memref<1x32xf32, #tpu.memory_space<vmem>>, vector<1x32xf32>
    %c0_1 = arith.constant 0 : index
    %c0_2 = arith.constant 0 : index
    %c0_3 = arith.constant 0 : index
    %c0_4 = arith.constant 0 : index
    %1 = vector.load %arg1[%c0_1, %c0_2, %c0_3, %c0_4] : memref<1x34x17x3xf32, #tpu.memory_space<vmem>>, vector<1x8x16x3xf32>
    %2 = vector.shape_cast %1 : vector<1x8x16x3xf32> to vector<8x16x3xf32>
    %3 = vector.shape_cast %2 : vector<8x16x3xf32> to vector<128x3xf32>
    %c0_5 = arith.constant 0 : index
    %c0_6 = arith.constant 0 : index
    %c0_7 = arith.constant 0 : index
    %4 = vector.load %arg3[%c0_5, %c0_6, %c0_7] : memref<9x3x32xf32, #tpu.memory_space<vmem>>, vector<1x3x32xf32>
    %5 = vector.shape_cast %4 : vector<1x3x32xf32> to vector<3x32xf32>
    %cst = arith.constant dense<0.000000e+00> : vector<128x32xf32>
    %6 = tpu.matmul %3, %5, %cst {dimension_numbers = #tpu.dot_dimension_numbers<[1], [0], [0], [1], [0, 0, 1, 1], [], []>} : vector<128x3xf32>, vector<3x32xf32>, vector<128x32xf32> -> vector<128x32xf32>
    %c0_8 = arith.constant 0 : index
    %c0_9 = arith.constant 0 : index
    %c0_10 = arith.constant 0 : index
    %c0_11 = arith.constant 0 : index
    %7 = vector.load %arg2[%c0_8, %c0_9, %c0_10, %c0_11] : memref<1x34x17x3xf32, #tpu.memory_space<vmem>>, vector<1x8x16x3xf32>
    %8 = vector.shape_cast %7 : vector<1x8x16x3xf32> to vector<8x16x3xf32>
    %9 = vector.shape_cast %8 : vector<8x16x3xf32> to vector<128x3xf32>
    %c1 = arith.constant 1 : index
    %c0_12 = arith.constant 0 : index
    %c0_13 = arith.constant 0 : index
    %10 = vector.load %arg3[%c1, %c0_12, %c0_13] : memref<9x3x32xf32, #tpu.memory_space<vmem>>, vector<1x3x32xf32>
    %11 = vector.shape_cast %10 : vector<1x3x32xf32> to vector<3x32xf32>
    %cst_14 = arith.constant dense<0.000000e+00> : vector<128x32xf32>
    %12 = tpu.matmul %9, %11, %cst_14 {dimension_numbers = #tpu.dot_dimension_numbers<[1], [0], [0], [1], [0, 0, 1, 1], [], []>} : vector<128x3xf32>, vector<3x32xf32>, vector<128x32xf32> -> vector<128x32xf32>
    %13 = arith.addf %6, %12 : vector<128x32xf32>
    %c0_15 = arith.constant 0 : index
    %c0_16 = arith.constant 0 : index
    %c1_17 = arith.constant 1 : index
    %c0_18 = arith.constant 0 : index
    %14 = vector.load %arg1[%c0_15, %c0_16, %c1_17, %c0_18] : memref<1x34x17x3xf32, #tpu.memory_space<vmem>>, vector<1x8x16x3xf32>
    %15 = vector.shape_cast %14 : vector<1x8x16x3xf32> to vector<8x16x3xf32>
    %16 = vector.shape_cast %15 : vector<8x16x3xf32> to vector<128x3xf32>
    %c2 = arith.constant 2 : index
    %c0_19 = arith.constant 0 : index
    %c0_20 = arith.constant 0 : index
    %17 = vector.load %arg3[%c2, %c0_19, %c0_20] : memref<9x3x32xf32, #tpu.memory_space<vmem>>, vector<1x3x32xf32>
    %18 = vector.shape_cast %17 : vector<1x3x32xf32> to vector<3x32xf32>
    %cst_21 = arith.constant dense<0.000000e+00> : vector<128x32xf32>
    %19 = tpu.matmul %16, %18, %cst_21 {dimension_numbers = #tpu.dot_dimension_numbers<[1], [0], [0], [1], [0, 0, 1, 1], [], []>} : vector<128x3xf32>, vector<3x32xf32>, vector<128x32xf32> -> vector<128x32xf32>
    %20 = arith.addf %13, %19 : vector<128x32xf32>
    %c0_22 = arith.constant 0 : index
    %c1_23 = arith.constant 1 : index
    %c0_24 = arith.constant 0 : index
    %c0_25 = arith.constant 0 : index
    %21 = vector.load %arg1[%c0_22, %c1_23, %c0_24, %c0_25] : memref<1x34x17x3xf32, #tpu.memory_space<vmem>>, vector<1x8x16x3xf32>
    %22 = vector.shape_cast %21 : vector<1x8x16x3xf32> to vector<8x16x3xf32>
    %23 = vector.shape_cast %22 : vector<8x16x3xf32> to vector<128x3xf32>
    %c3 = arith.constant 3 : index
    %c0_26 = arith.constant 0 : index
    %c0_27 = arith.constant 0 : index
    %24 = vector.load %arg3[%c3, %c0_26, %c0_27] : memref<9x3x32xf32, #tpu.memory_space<vmem>>, vector<1x3x32xf32>
    %25 = vector.shape_cast %24 : vector<1x3x32xf32> to vector<3x32xf32>
    %cst_28 = arith.constant dense<0.000000e+00> : vector<128x32xf32>
    %26 = tpu.matmul %23, %25, %cst_28 {dimension_numbers = #tpu.dot_dimension_numbers<[1], [0], [0], [1], [0, 0, 1, 1], [], []>} : vector<128x3xf32>, vector<3x32xf32>, vector<128x32xf32> -> vector<128x32xf32>
    %27 = arith.addf %20, %26 : vector<128x32xf32>
    %c0_29 = arith.constant 0 : index
    %c1_30 = arith.constant 1 : index
    %c0_31 = arith.constant 0 : index
    %c0_32 = arith.constant 0 : index
    %28 = vector.load %arg2[%c0_29, %c1_30, %c0_31, %c0_32] : memref<1x34x17x3xf32, #tpu.memory_space<vmem>>, vector<1x8x16x3xf32>
    %29 = vector.shape_cast %28 : vector<1x8x16x3xf32> to vector<8x16x3xf32>
    %30 = vector.shape_cast %29 : vector<8x16x3xf32> to vector<128x3xf32>
    %c4 = arith.constant 4 : index
    %c0_33 = arith.constant 0 : index
    %c0_34 = arith.constant 0 : index
    %31 = vector.load %arg3[%c4, %c0_33, %c0_34] : memref<9x3x32xf32, #tpu.memory_space<vmem>>, vector<1x3x32xf32>
    %32 = vector.shape_cast %31 : vector<1x3x32xf32> to vector<3x32xf32>
    %cst_35 = arith.constant dense<0.000000e+00> : vector<128x32xf32>
    %33 = tpu.matmul %30, %32, %cst_35 {dimension_numbers = #tpu.dot_dimension_numbers<[1], [0], [0], [1], [0, 0, 1, 1], [], []>} : vector<128x3xf32>, vector<3x32xf32>, vector<128x32xf32> -> vector<128x32xf32>
    %34 = arith.addf %27, %33 : vector<128x32xf32>
    %c0_36 = arith.constant 0 : index
    %c1_37 = arith.constant 1 : index
    %c1_38 = arith.constant 1 : index
    %c0_39 = arith.constant 0 : index
    %35 = vector.load %arg1[%c0_36, %c1_37, %c1_38, %c0_39] : memref<1x34x17x3xf32, #tpu.memory_space<vmem>>, vector<1x8x16x3xf32>
    %36 = vector.shape_cast %35 : vector<1x8x16x3xf32> to vector<8x16x3xf32>
    %37 = vector.shape_cast %36 : vector<8x16x3xf32> to vector<128x3xf32>
    %c5 = arith.constant 5 : index
    %c0_40 = arith.constant 0 : index
    %c0_41 = arith.constant 0 : index
    %38 = vector.load %arg3[%c5, %c0_40, %c0_41] : memref<9x3x32xf32, #tpu.memory_space<vmem>>, vector<1x3x32xf32>
    %39 = vector.shape_cast %38 : vector<1x3x32xf32> to vector<3x32xf32>
    %cst_42 = arith.constant dense<0.000000e+00> : vector<128x32xf32>
    %40 = tpu.matmul %37, %39, %cst_42 {dimension_numbers = #tpu.dot_dimension_numbers<[1], [0], [0], [1], [0, 0, 1, 1], [], []>} : vector<128x3xf32>, vector<3x32xf32>, vector<128x32xf32> -> vector<128x32xf32>
    %41 = arith.addf %34, %40 : vector<128x32xf32>
    %c0_43 = arith.constant 0 : index
    %c2_44 = arith.constant 2 : index
    %c0_45 = arith.constant 0 : index
    %c0_46 = arith.constant 0 : index
    %42 = vector.load %arg1[%c0_43, %c2_44, %c0_45, %c0_46] : memref<1x34x17x3xf32, #tpu.memory_space<vmem>>, vector<1x8x16x3xf32>
    %43 = vector.shape_cast %42 : vector<1x8x16x3xf32> to vector<8x16x3xf32>
    %44 = vector.shape_cast %43 : vector<8x16x3xf32> to vector<128x3xf32>
    %c6 = arith.constant 6 : index
    %c0_47 = arith.constant 0 : index
    %c0_48 = arith.constant 0 : index
    %45 = vector.load %arg3[%c6, %c0_47, %c0_48] : memref<9x3x32xf32, #tpu.memory_space<vmem>>, vector<1x3x32xf32>
    %46 = vector.shape_cast %45 : vector<1x3x32xf32> to vector<3x32xf32>
    %cst_49 = arith.constant dense<0.000000e+00> : vector<128x32xf32>
    %47 = tpu.matmul %44, %46, %cst_49 {dimension_numbers = #tpu.dot_dimension_numbers<[1], [0], [0], [1], [0, 0, 1, 1], [], []>} : vector<128x3xf32>, vector<3x32xf32>, vector<128x32xf32> -> vector<128x32xf32>
    %48 = arith.addf %41, %47 : vector<128x32xf32>
    %c0_50 = arith.constant 0 : index
    %c2_51 = arith.constant 2 : index
    %c0_52 = arith.constant 0 : index
    %c0_53 = arith.constant 0 : index
    %49 = vector.load %arg2[%c0_50, %c2_51, %c0_52, %c0_53] : memref<1x34x17x3xf32, #tpu.memory_space<vmem>>, vector<1x8x16x3xf32>
    %50 = vector.shape_cast %49 : vector<1x8x16x3xf32> to vector<8x16x3xf32>
    %51 = vector.shape_cast %50 : vector<8x16x3xf32> to vector<128x3xf32>
    %c7 = arith.constant 7 : index
    %c0_54 = arith.constant 0 : index
    %c0_55 = arith.constant 0 : index
    %52 = vector.load %arg3[%c7, %c0_54, %c0_55] : memref<9x3x32xf32, #tpu.memory_space<vmem>>, vector<1x3x32xf32>
    %53 = vector.shape_cast %52 : vector<1x3x32xf32> to vector<3x32xf32>
    %cst_56 = arith.constant dense<0.000000e+00> : vector<128x32xf32>
    %54 = tpu.matmul %51, %53, %cst_56 {dimension_numbers = #tpu.dot_dimension_numbers<[1], [0], [0], [1], [0, 0, 1, 1], [], []>} : vector<128x3xf32>, vector<3x32xf32>, vector<128x32xf32> -> vector<128x32xf32>
    %55 = arith.addf %48, %54 : vector<128x32xf32>
    %c0_57 = arith.constant 0 : index
    %c2_58 = arith.constant 2 : index
    %c1_59 = arith.constant 1 : index
    %c0_60 = arith.constant 0 : index
    %56 = vector.load %arg1[%c0_57, %c2_58, %c1_59, %c0_60] : memref<1x34x17x3xf32, #tpu.memory_space<vmem>>, vector<1x8x16x3xf32>
    %57 = vector.shape_cast %56 : vector<1x8x16x3xf32> to vector<8x16x3xf32>
    %58 = vector.shape_cast %57 : vector<8x16x3xf32> to vector<128x3xf32>
    %c8 = arith.constant 8 : index
    %c0_61 = arith.constant 0 : index
    %c0_62 = arith.constant 0 : index
    %59 = vector.load %arg3[%c8, %c0_61, %c0_62] : memref<9x3x32xf32, #tpu.memory_space<vmem>>, vector<1x3x32xf32>
    %60 = vector.shape_cast %59 : vector<1x3x32xf32> to vector<3x32xf32>
    %cst_63 = arith.constant dense<0.000000e+00> : vector<128x32xf32>
    %61 = tpu.matmul %58, %60, %cst_63 {dimension_numbers = #tpu.dot_dimension_numbers<[1], [0], [0], [1], [0, 0, 1, 1], [], []>} : vector<128x3xf32>, vector<3x32xf32>, vector<128x32xf32> -> vector<128x32xf32>
    %62 = arith.addf %55, %61 : vector<128x32xf32>
    %63 = vector.broadcast %0 : vector<1x32xf32> to vector<128x32xf32>
    %64 = arith.addf %62, %63 : vector<128x32xf32>
    %cst_64 = arith.constant 0.000000e+00 : f32
    %65 = vector.broadcast %cst_64 : f32 to vector<128x32xf32>
    %66 = arith.maximumf %64, %65 : vector<128x32xf32>
    %c0_65 = arith.constant 0 : index
    %c0_66 = arith.constant 0 : index
    %c0_67 = arith.constant 0 : index
    %c0_68 = arith.constant 0 : index
    %67 = vector.load %arg2[%c0_65, %c0_66, %c0_67, %c0_68] : memref<1x34x17x3xf32, #tpu.memory_space<vmem>>, vector<1x8x16x3xf32>
    %68 = vector.shape_cast %67 : vector<1x8x16x3xf32> to vector<8x16x3xf32>
    %69 = vector.shape_cast %68 : vector<8x16x3xf32> to vector<128x3xf32>
    %c0_69 = arith.constant 0 : index
    %c0_70 = arith.constant 0 : index
    %c0_71 = arith.constant 0 : index
    %70 = vector.load %arg3[%c0_69, %c0_70, %c0_71] : memref<9x3x32xf32, #tpu.memory_space<vmem>>, vector<1x3x32xf32>
    %71 = vector.shape_cast %70 : vector<1x3x32xf32> to vector<3x32xf32>
    %cst_72 = arith.constant dense<0.000000e+00> : vector<128x32xf32>
    %72 = tpu.matmul %69, %71, %cst_72 {dimension_numbers = #tpu.dot_dimension_numbers<[1], [0], [0], [1], [0, 0, 1, 1], [], []>} : vector<128x3xf32>, vector<3x32xf32>, vector<128x32xf32> -> vector<128x32xf32>
    %c0_73 = arith.constant 0 : index
    %c0_74 = arith.constant 0 : index
    %c1_75 = arith.constant 1 : index
    %c0_76 = arith.constant 0 : index
    %73 = vector.load %arg1[%c0_73, %c0_74, %c1_75, %c0_76] : memref<1x34x17x3xf32, #tpu.memory_space<vmem>>, vector<1x8x16x3xf32>
    %74 = vector.shape_cast %73 : vector<1x8x16x3xf32> to vector<8x16x3xf32>
    %75 = vector.shape_cast %74 : vector<8x16x3xf32> to vector<128x3xf32>
    %c1_77 = arith.constant 1 : index
    %c0_78 = arith.constant 0 : index
    %c0_79 = arith.constant 0 : index
    %76 = vector.load %arg3[%c1_77, %c0_78, %c0_79] : memref<9x3x32xf32, #tpu.memory_space<vmem>>, vector<1x3x32xf32>
    %77 = vector.shape_cast %76 : vector<1x3x32xf32> to vector<3x32xf32>
    %cst_80 = arith.constant dense<0.000000e+00> : vector<128x32xf32>
    %78 = tpu.matmul %75, %77, %cst_80 {dimension_numbers = #tpu.dot_dimension_numbers<[1], [0], [0], [1], [0, 0, 1, 1], [], []>} : vector<128x3xf32>, vector<3x32xf32>, vector<128x32xf32> -> vector<128x32xf32>
    %79 = arith.addf %72, %78 : vector<128x32xf32>
    %c0_81 = arith.constant 0 : index
    %c0_82 = arith.constant 0 : index
    %c1_83 = arith.constant 1 : index
    %c0_84 = arith.constant 0 : index
    %80 = vector.load %arg2[%c0_81, %c0_82, %c1_83, %c0_84] : memref<1x34x17x3xf32, #tpu.memory_space<vmem>>, vector<1x8x16x3xf32>
    %81 = vector.shape_cast %80 : vector<1x8x16x3xf32> to vector<8x16x3xf32>
    %82 = vector.shape_cast %81 : vector<8x16x3xf32> to vector<128x3xf32>
    %c2_85 = arith.constant 2 : index
    %c0_86 = arith.constant 0 : index
    %c0_87 = arith.constant 0 : index
    %83 = vector.load %arg3[%c2_85, %c0_86, %c0_87] : memref<9x3x32xf32, #tpu.memory_space<vmem>>, vector<1x3x32xf32>
    %84 = vector.shape_cast %83 : vector<1x3x32xf32> to vector<3x32xf32>
    %cst_88 = arith.constant dense<0.000000e+00> : vector<128x32xf32>
    %85 = tpu.matmul %82, %84, %cst_88 {dimension_numbers = #tpu.dot_dimension_numbers<[1], [0], [0], [1], [0, 0, 1, 1], [], []>} : vector<128x3xf32>, vector<3x32xf32>, vector<128x32xf32> -> vector<128x32xf32>
    %86 = arith.addf %79, %85 : vector<128x32xf32>
    %c0_89 = arith.constant 0 : index
    %c1_90 = arith.constant 1 : index
    %c0_91 = arith.constant 0 : index
    %c0_92 = arith.constant 0 : index
    %87 = vector.load %arg2[%c0_89, %c1_90, %c0_91, %c0_92] : memref<1x34x17x3xf32, #tpu.memory_space<vmem>>, vector<1x8x16x3xf32>
    %88 = vector.shape_cast %87 : vector<1x8x16x3xf32> to vector<8x16x3xf32>
    %89 = vector.shape_cast %88 : vector<8x16x3xf32> to vector<128x3xf32>
    %c3_93 = arith.constant 3 : index
    %c0_94 = arith.constant 0 : index
    %c0_95 = arith.constant 0 : index
    %90 = vector.load %arg3[%c3_93, %c0_94, %c0_95] : memref<9x3x32xf32, #tpu.memory_space<vmem>>, vector<1x3x32xf32>
    %91 = vector.shape_cast %90 : vector<1x3x32xf32> to vector<3x32xf32>
    %cst_96 = arith.constant dense<0.000000e+00> : vector<128x32xf32>
    %92 = tpu.matmul %89, %91, %cst_96 {dimension_numbers = #tpu.dot_dimension_numbers<[1], [0], [0], [1], [0, 0, 1, 1], [], []>} : vector<128x3xf32>, vector<3x32xf32>, vector<128x32xf32> -> vector<128x32xf32>
    %93 = arith.addf %86, %92 : vector<128x32xf32>
    %c0_97 = arith.constant 0 : index
    %c1_98 = arith.constant 1 : index
    %c1_99 = arith.constant 1 : index
    %c0_100 = arith.constant 0 : index
    %94 = vector.load %arg1[%c0_97, %c1_98, %c1_99, %c0_100] : memref<1x34x17x3xf32, #tpu.memory_space<vmem>>, vector<1x8x16x3xf32>
    %95 = vector.shape_cast %94 : vector<1x8x16x3xf32> to vector<8x16x3xf32>
    %96 = vector.shape_cast %95 : vector<8x16x3xf32> to vector<128x3xf32>
    %c4_101 = arith.constant 4 : index
    %c0_102 = arith.constant 0 : index
    %c0_103 = arith.constant 0 : index
    %97 = vector.load %arg3[%c4_101, %c0_102, %c0_103] : memref<9x3x32xf32, #tpu.memory_space<vmem>>, vector<1x3x32xf32>
    %98 = vector.shape_cast %97 : vector<1x3x32xf32> to vector<3x32xf32>
    %cst_104 = arith.constant dense<0.000000e+00> : vector<128x32xf32>
    %99 = tpu.matmul %96, %98, %cst_104 {dimension_numbers = #tpu.dot_dimension_numbers<[1], [0], [0], [1], [0, 0, 1, 1], [], []>} : vector<128x3xf32>, vector<3x32xf32>, vector<128x32xf32> -> vector<128x32xf32>
    %100 = arith.addf %93, %99 : vector<128x32xf32>
    %c0_105 = arith.constant 0 : index
    %c1_106 = arith.constant 1 : index
    %c1_107 = arith.constant 1 : index
    %c0_108 = arith.constant 0 : index
    %101 = vector.load %arg2[%c0_105, %c1_106, %c1_107, %c0_108] : memref<1x34x17x3xf32, #tpu.memory_space<vmem>>, vector<1x8x16x3xf32>
    %102 = vector.shape_cast %101 : vector<1x8x16x3xf32> to vector<8x16x3xf32>
    %103 = vector.shape_cast %102 : vector<8x16x3xf32> to vector<128x3xf32>
    %c5_109 = arith.constant 5 : index
    %c0_110 = arith.constant 0 : index
    %c0_111 = arith.constant 0 : index
    %104 = vector.load %arg3[%c5_109, %c0_110, %c0_111] : memref<9x3x32xf32, #tpu.memory_space<vmem>>, vector<1x3x32xf32>
    %105 = vector.shape_cast %104 : vector<1x3x32xf32> to vector<3x32xf32>
    %cst_112 = arith.constant dense<0.000000e+00> : vector<128x32xf32>
    %106 = tpu.matmul %103, %105, %cst_112 {dimension_numbers = #tpu.dot_dimension_numbers<[1], [0], [0], [1], [0, 0, 1, 1], [], []>} : vector<128x3xf32>, vector<3x32xf32>, vector<128x32xf32> -> vector<128x32xf32>
    %107 = arith.addf %100, %106 : vector<128x32xf32>
    %c0_113 = arith.constant 0 : index
    %c2_114 = arith.constant 2 : index
    %c0_115 = arith.constant 0 : index
    %c0_116 = arith.constant 0 : index
    %108 = vector.load %arg2[%c0_113, %c2_114, %c0_115, %c0_116] : memref<1x34x17x3xf32, #tpu.memory_space<vmem>>, vector<1x8x16x3xf32>
    %109 = vector.shape_cast %108 : vector<1x8x16x3xf32> to vector<8x16x3xf32>
    %110 = vector.shape_cast %109 : vector<8x16x3xf32> to vector<128x3xf32>
    %c6_117 = arith.constant 6 : index
    %c0_118 = arith.constant 0 : index
    %c0_119 = arith.constant 0 : index
    %111 = vector.load %arg3[%c6_117, %c0_118, %c0_119] : memref<9x3x32xf32, #tpu.memory_space<vmem>>, vector<1x3x32xf32>
    %112 = vector.shape_cast %111 : vector<1x3x32xf32> to vector<3x32xf32>
    %cst_120 = arith.constant dense<0.000000e+00> : vector<128x32xf32>
    %113 = tpu.matmul %110, %112, %cst_120 {dimension_numbers = #tpu.dot_dimension_numbers<[1], [0], [0], [1], [0, 0, 1, 1], [], []>} : vector<128x3xf32>, vector<3x32xf32>, vector<128x32xf32> -> vector<128x32xf32>
    %114 = arith.addf %107, %113 : vector<128x32xf32>
    %c0_121 = arith.constant 0 : index
    %c2_122 = arith.constant 2 : index
    %c1_123 = arith.constant 1 : index
    %c0_124 = arith.constant 0 : index
    %115 = vector.load %arg1[%c0_121, %c2_122, %c1_123, %c0_124] : memref<1x34x17x3xf32, #tpu.memory_space<vmem>>, vector<1x8x16x3xf32>
    %116 = vector.shape_cast %115 : vector<1x8x16x3xf32> to vector<8x16x3xf32>
    %117 = vector.shape_cast %116 : vector<8x16x3xf32> to vector<128x3xf32>
    %c7_125 = arith.constant 7 : index
    %c0_126 = arith.constant 0 : index
    %c0_127 = arith.constant 0 : index
    %118 = vector.load %arg3[%c7_125, %c0_126, %c0_127] : memref<9x3x32xf32, #tpu.memory_space<vmem>>, vector<1x3x32xf32>
    %119 = vector.shape_cast %118 : vector<1x3x32xf32> to vector<3x32xf32>
    %cst_128 = arith.constant dense<0.000000e+00> : vector<128x32xf32>
    %120 = tpu.matmul %117, %119, %cst_128 {dimension_numbers = #tpu.dot_dimension_numbers<[1], [0], [0], [1], [0, 0, 1, 1], [], []>} : vector<128x3xf32>, vector<3x32xf32>, vector<128x32xf32> -> vector<128x32xf32>
    %121 = arith.addf %114, %120 : vector<128x32xf32>
    %c0_129 = arith.constant 0 : index
    %c2_130 = arith.constant 2 : index
    %c1_131 = arith.constant 1 : index
    %c0_132 = arith.constant 0 : index
    %122 = vector.load %arg2[%c0_129, %c2_130, %c1_131, %c0_132] : memref<1x34x17x3xf32, #tpu.memory_space<vmem>>, vector<1x8x16x3xf32>
    %123 = vector.shape_cast %122 : vector<1x8x16x3xf32> to vector<8x16x3xf32>
    %124 = vector.shape_cast %123 : vector<8x16x3xf32> to vector<128x3xf32>
    %c8_133 = arith.constant 8 : index
    %c0_134 = arith.constant 0 : index
    %c0_135 = arith.constant 0 : index
    %125 = vector.load %arg3[%c8_133, %c0_134, %c0_135] : memref<9x3x32xf32, #tpu.memory_space<vmem>>, vector<1x3x32xf32>
    %126 = vector.shape_cast %125 : vector<1x3x32xf32> to vector<3x32xf32>
    %cst_136 = arith.constant dense<0.000000e+00> : vector<128x32xf32>
    %127 = tpu.matmul %124, %126, %cst_136 {dimension_numbers = #tpu.dot_dimension_numbers<[1], [0], [0], [1], [0, 0, 1, 1], [], []>} : vector<128x3xf32>, vector<3x32xf32>, vector<128x32xf32> -> vector<128x32xf32>
    %128 = arith.addf %121, %127 : vector<128x32xf32>
    %129 = vector.broadcast %0 : vector<1x32xf32> to vector<128x32xf32>
    %130 = arith.addf %128, %129 : vector<128x32xf32>
    %cst_137 = arith.constant 0.000000e+00 : f32
    %131 = vector.broadcast %cst_137 : f32 to vector<128x32xf32>
    %132 = arith.maximumf %130, %131 : vector<128x32xf32>
    %133 = arith.maximumf %66, %132 : vector<128x32xf32>
    %134 = vector.extract_strided_slice %133 {offsets = [0, 0], sizes = [16, 32], strides = [1, 1]} : vector<128x32xf32> to vector<16x32xf32>
    %135 = vector.extract_strided_slice %133 {offsets = [16, 0], sizes = [16, 32], strides = [1, 1]} : vector<128x32xf32> to vector<16x32xf32>
    %136 = arith.maximumf %134, %135 : vector<16x32xf32>
    %c0_138 = arith.constant 0 : index
    %c0_139 = arith.constant 0 : index
    %c0_140 = arith.constant 0 : index
    %c0_141 = arith.constant 0 : index
    %137 = vector.load %arg5[%c0_138, %c0_139, %c0_140, %c0_141] : memref<1x16x16x32xf32, #tpu.memory_space<vmem>>, vector<1x1x16x32xf32>
    %138 = vector.shape_cast %137 : vector<1x1x16x32xf32> to vector<16x32xf32>
    %139 = vector.shape_cast %136 : vector<16x32xf32> to vector<1x1x16x32xf32>
    tpu.vector_store %arg5[%c0_138, %c0_139, %c0_140, %c0_141], %139 {strides = array<i32>} : memref<1x16x16x32xf32, #tpu.memory_space<vmem>>, vector<1x1x16x32xf32>,
    %140 = vector.extract_strided_slice %133 {offsets = [32, 0], sizes = [16, 32], strides = [1, 1]} : vector<128x32xf32> to vector<16x32xf32>
    %141 = vector.extract_strided_slice %133 {offsets = [48, 0], sizes = [16, 32], strides = [1, 1]} : vector<128x32xf32> to vector<16x32xf32>
    %142 = arith.maximumf %140, %141 : vector<16x32xf32>
    %c0_142 = arith.constant 0 : index
    %c1_143 = arith.constant 1 : index
    %c0_144 = arith.constant 0 : index
    %c0_145 = arith.constant 0 : index
    %143 = vector.load %arg5[%c0_142, %c1_143, %c0_144, %c0_145] : memref<1x16x16x32xf32, #tpu.memory_space<vmem>>, vector<1x1x16x32xf32>
    %144 = vector.shape_cast %143 : vector<1x1x16x32xf32> to vector<16x32xf32>
    %145 = vector.shape_cast %142 : vector<16x32xf32> to vector<1x1x16x32xf32>
    tpu.vector_store %arg5[%c0_142, %c1_143, %c0_144, %c0_145], %145 {strides = array<i32>} : memref<1x16x16x32xf32, #tpu.memory_space<vmem>>, vector<1x1x16x32xf32>,
    %146 = vector.extract_strided_slice %133 {offsets = [64, 0], sizes = [16, 32], strides = [1, 1]} : vector<128x32xf32> to vector<16x32xf32>
    %147 = vector.extract_strided_slice %133 {offsets = [80, 0], sizes = [16, 32], strides = [1, 1]} : vector<128x32xf32> to vector<16x32xf32>
    %148 = arith.maximumf %146, %147 : vector<16x32xf32>
    %c0_146 = arith.constant 0 : index
    %c2_147 = arith.constant 2 : index
    %c0_148 = arith.constant 0 : index
    %c0_149 = arith.constant 0 : index
    %149 = vector.load %arg5[%c0_146, %c2_147, %c0_148, %c0_149] : memref<1x16x16x32xf32, #tpu.memory_space<vmem>>, vector<1x1x16x32xf32>
    %150 = vector.shape_cast %149 : vector<1x1x16x32xf32> to vector<16x32xf32>
    %151 = vector.shape_cast %148 : vector<16x32xf32> to vector<1x1x16x32xf32>
    tpu.vector_store %arg5[%c0_146, %c2_147, %c0_148, %c0_149], %151 {strides = array<i32>} : memref<1x16x16x32xf32, #tpu.memory_space<vmem>>, vector<1x1x16x32xf32>,
    %152 = vector.extract_strided_slice %133 {offsets = [96, 0], sizes = [16, 32], strides = [1, 1]} : vector<128x32xf32> to vector<16x32xf32>
    %153 = vector.extract_strided_slice %133 {offsets = [112, 0], sizes = [16, 32], strides = [1, 1]} : vector<128x32xf32> to vector<16x32xf32>
    %154 = arith.maximumf %152, %153 : vector<16x32xf32>
    %c0_150 = arith.constant 0 : index
    %c3_151 = arith.constant 3 : index
    %c0_152 = arith.constant 0 : index
    %c0_153 = arith.constant 0 : index
    %155 = vector.load %arg5[%c0_150, %c3_151, %c0_152, %c0_153] : memref<1x16x16x32xf32, #tpu.memory_space<vmem>>, vector<1x1x16x32xf32>
    %156 = vector.shape_cast %155 : vector<1x1x16x32xf32> to vector<16x32xf32>
    %157 = vector.shape_cast %154 : vector<16x32xf32> to vector<1x1x16x32xf32>
    tpu.vector_store %arg5[%c0_150, %c3_151, %c0_152, %c0_153], %157 {strides = array<i32>} : memref<1x16x16x32xf32, #tpu.memory_space<vmem>>, vector<1x1x16x32xf32>,
    %c0_154 = arith.constant 0 : index
    %c8_155 = arith.constant 8 : index
    %c0_156 = arith.constant 0 : index
    %c0_157 = arith.constant 0 : index
    %158 = vector.load %arg1[%c0_154, %c8_155, %c0_156, %c0_157] : memref<1x34x17x3xf32, #tpu.memory_space<vmem>>, vector<1x8x16x3xf32>
    %159 = vector.shape_cast %158 : vector<1x8x16x3xf32> to vector<8x16x3xf32>
    %160 = vector.shape_cast %159 : vector<8x16x3xf32> to vector<128x3xf32>
    %c0_158 = arith.constant 0 : index
    %c0_159 = arith.constant 0 : index
    %c0_160 = arith.constant 0 : index
    %161 = vector.load %arg3[%c0_158, %c0_159, %c0_160] : memref<9x3x32xf32, #tpu.memory_space<vmem>>, vector<1x3x32xf32>
    %162 = vector.shape_cast %161 : vector<1x3x32xf32> to vector<3x32xf32>
    %cst_161 = arith.constant dense<0.000000e+00> : vector<128x32xf32>
    %163 = tpu.matmul %160, %162, %cst_161 {dimension_numbers = #tpu.dot_dimension_numbers<[1], [0], [0], [1], [0, 0, 1, 1], [], []>} : vector<128x3xf32>, vector<3x32xf32>, vector<128x32xf32> -> vector<128x32xf32>
    %c0_162 = arith.constant 0 : index
    %c8_163 = arith.constant 8 : index
    %c0_164 = arith.constant 0 : index
    %c0_165 = arith.constant 0 : index
    %164 = vector.load %arg2[%c0_162, %c8_163, %c0_164, %c0_165] : memref<1x34x17x3xf32, #tpu.memory_space<vmem>>, vector<1x8x16x3xf32>
    %165 = vector.shape_cast %164 : vector<1x8x16x3xf32> to vector<8x16x3xf32>
    %166 = vector.shape_cast %165 : vector<8x16x3xf32> to vector<128x3xf32>
    %c1_166 = arith.constant 1 : index
    %c0_167 = arith.constant 0 : index
    %c0_168 = arith.constant 0 : index
    %167 = vector.load %arg3[%c1_166, %c0_167, %c0_168] : memref<9x3x32xf32, #tpu.memory_space<vmem>>, vector<1x3x32xf32>
    %168 = vector.shape_cast %167 : vector<1x3x32xf32> to vector<3x32xf32>
    %cst_169 = arith.constant dense<0.000000e+00> : vector<128x32xf32>
    %169 = tpu.matmul %166, %168, %cst_169 {dimension_numbers = #tpu.dot_dimension_numbers<[1], [0], [0], [1], [0, 0, 1, 1], [], []>} : vector<128x3xf32>, vector<3x32xf32>, vector<128x32xf32> -> vector<128x32xf32>
    %170 = arith.addf %163, %169 : vector<128x32xf32>
    %c0_170 = arith.constant 0 : index
    %c8_171 = arith.constant 8 : index
    %c1_172 = arith.constant 1 : index
    %c0_173 = arith.constant 0 : index
    %171 = vector.load %arg1[%c0_170, %c8_171, %c1_172, %c0_173] : memref<1x34x17x3xf32, #tpu.memory_space<vmem>>, vector<1x8x16x3xf32>
    %172 = vector.shape_cast %171 : vector<1x8x16x3xf32> to vector<8x16x3xf32>
    %173 = vector.shape_cast %172 : vector<8x16x3xf32> to vector<128x3xf32>
    %c2_174 = arith.constant 2 : index
    %c0_175 = arith.constant 0 : index
    %c0_176 = arith.constant 0 : index
    %174 = vector.load %arg3[%c2_174, %c0_175, %c0_176] : memref<9x3x32xf32, #tpu.memory_space<vmem>>, vector<1x3x32xf32>
    %175 = vector.shape_cast %174 : vector<1x3x32xf32> to vector<3x32xf32>
    %cst_177 = arith.constant dense<0.000000e+00> : vector<128x32xf32>
    %176 = tpu.matmul %173, %175, %cst_177 {dimension_numbers = #tpu.dot_dimension_numbers<[1], [0], [0], [1], [0, 0, 1, 1], [], []>} : vector<128x3xf32>, vector<3x32xf32>, vector<128x32xf32> -> vector<128x32xf32>
    %177 = arith.addf %170, %176 : vector<128x32xf32>
    %c0_178 = arith.constant 0 : index
    %c9 = arith.constant 9 : index
    %c0_179 = arith.constant 0 : index
    %c0_180 = arith.constant 0 : index
    %178 = vector.load %arg1[%c0_178, %c9, %c0_179, %c0_180] : memref<1x34x17x3xf32, #tpu.memory_space<vmem>>, vector<1x8x16x3xf32>
    %179 = vector.shape_cast %178 : vector<1x8x16x3xf32> to vector<8x16x3xf32>
    %180 = vector.shape_cast %179 : vector<8x16x3xf32> to vector<128x3xf32>
    %c3_181 = arith.constant 3 : index
    %c0_182 = arith.constant 0 : index
    %c0_183 = arith.constant 0 : index
    %181 = vector.load %arg3[%c3_181, %c0_182, %c0_183] : memref<9x3x32xf32, #tpu.memory_space<vmem>>, vector<1x3x32xf32>
    %182 = vector.shape_cast %181 : vector<1x3x32xf32> to vector<3x32xf32>
    %cst_184 = arith.constant dense<0.000000e+00> : vector<128x32xf32>
    %183 = tpu.matmul %180, %182, %cst_184 {dimension_numbers = #tpu.dot_dimension_numbers<[1], [0], [0], [1], [0, 0, 1, 1], [], []>} : vector<128x3xf32>, vector<3x32xf32>, vector<128x32xf32> -> vector<128x32xf32>
    %184 = arith.addf %177, %183 : vector<128x32xf32>
    %c0_185 = arith.constant 0 : index
    %c9_186 = arith.constant 9 : index
    %c0_187 = arith.constant 0 : index
    %c0_188 = arith.constant 0 : index
    %185 = vector.load %arg2[%c0_185, %c9_186, %c0_187, %c0_188] : memref<1x34x17x3xf32, #tpu.memory_space<vmem>>, vector<1x8x16x3xf32>
    %186 = vector.shape_cast %185 : vector<1x8x16x3xf32> to vector<8x16x3xf32>
    %187 = vector.shape_cast %186 : vector<8x16x3xf32> to vector<128x3xf32>
    %c4_189 = arith.constant 4 : index
    %c0_190 = arith.constant 0 : index
    %c0_191 = arith.constant 0 : index
    %188 = vector.load %arg3[%c4_189, %c0_190, %c0_191] : memref<9x3x32xf32, #tpu.memory_space<vmem>>, vector<1x3x32xf32>
    %189 = vector.shape_cast %188 : vector<1x3x32xf32> to vector<3x32xf32>
    %cst_192 = arith.constant dense<0.000000e+00> : vector<128x32xf32>
    %190 = tpu.matmul %187, %189, %cst_192 {dimension_numbers = #tpu.dot_dimension_numbers<[1], [0], [0], [1], [0, 0, 1, 1], [], []>} : vector<128x3xf32>, vector<3x32xf32>, vector<128x32xf32> -> vector<128x32xf32>
    %191 = arith.addf %184, %190 : vector<128x32xf32>
    %c0_193 = arith.constant 0 : index
    %c9_194 = arith.constant 9 : index
    %c1_195 = arith.constant 1 : index
    %c0_196 = arith.constant 0 : index
    %192 = vector.load %arg1[%c0_193, %c9_194, %c1_195, %c0_196] : memref<1x34x17x3xf32, #tpu.memory_space<vmem>>, vector<1x8x16x3xf32>
    %193 = vector.shape_cast %192 : vector<1x8x16x3xf32> to vector<8x16x3xf32>
    %194 = vector.shape_cast %193 : vector<8x16x3xf32> to vector<128x3xf32>
    %c5_197 = arith.constant 5 : index
    %c0_198 = arith.constant 0 : index
    %c0_199 = arith.constant 0 : index
    %195 = vector.load %arg3[%c5_197, %c0_198, %c0_199] : memref<9x3x32xf32, #tpu.memory_space<vmem>>, vector<1x3x32xf32>
    %196 = vector.shape_cast %195 : vector<1x3x32xf32> to vector<3x32xf32>
    %cst_200 = arith.constant dense<0.000000e+00> : vector<128x32xf32>
    %197 = tpu.matmul %194, %196, %cst_200 {dimension_numbers = #tpu.dot_dimension_numbers<[1], [0], [0], [1], [0, 0, 1, 1], [], []>} : vector<128x3xf32>, vector<3x32xf32>, vector<128x32xf32> -> vector<128x32xf32>
    %198 = arith.addf %191, %197 : vector<128x32xf32>
    %c0_201 = arith.constant 0 : index
    %c10 = arith.constant 10 : index
    %c0_202 = arith.constant 0 : index
    %c0_203 = arith.constant 0 : index
    %199 = vector.load %arg1[%c0_201, %c10, %c0_202, %c0_203] : memref<1x34x17x3xf32, #tpu.memory_space<vmem>>, vector<1x8x16x3xf32>
    %200 = vector.shape_cast %199 : vector<1x8x16x3xf32> to vector<8x16x3xf32>
    %201 = vector.shape_cast %200 : vector<8x16x3xf32> to vector<128x3xf32>
    %c6_204 = arith.constant 6 : index
    %c0_205 = arith.constant 0 : index
    %c0_206 = arith.constant 0 : index
    %202 = vector.load %arg3[%c6_204, %c0_205, %c0_206] : memref<9x3x32xf32, #tpu.memory_space<vmem>>, vector<1x3x32xf32>
    %203 = vector.shape_cast %202 : vector<1x3x32xf32> to vector<3x32xf32>
    %cst_207 = arith.constant dense<0.000000e+00> : vector<128x32xf32>
    %204 = tpu.matmul %201, %203, %cst_207 {dimension_numbers = #tpu.dot_dimension_numbers<[1], [0], [0], [1], [0, 0, 1, 1], [], []>} : vector<128x3xf32>, vector<3x32xf32>, vector<128x32xf32> -> vector<128x32xf32>
    %205 = arith.addf %198, %204 : vector<128x32xf32>
    %c0_208 = arith.constant 0 : index
    %c10_209 = arith.constant 10 : index
    %c0_210 = arith.constant 0 : index
    %c0_211 = arith.constant 0 : index
    %206 = vector.load %arg2[%c0_208, %c10_209, %c0_210, %c0_211] : memref<1x34x17x3xf32, #tpu.memory_space<vmem>>, vector<1x8x16x3xf32>
    %207 = vector.shape_cast %206 : vector<1x8x16x3xf32> to vector<8x16x3xf32>
    %208 = vector.shape_cast %207 : vector<8x16x3xf32> to vector<128x3xf32>
    %c7_212 = arith.constant 7 : index
    %c0_213 = arith.constant 0 : index
    %c0_214 = arith.constant 0 : index
    %209 = vector.load %arg3[%c7_212, %c0_213, %c0_214] : memref<9x3x32xf32, #tpu.memory_space<vmem>>, vector<1x3x32xf32>
    %210 = vector.shape_cast %209 : vector<1x3x32xf32> to vector<3x32xf32>
    %cst_215 = arith.constant dense<0.000000e+00> : vector<128x32xf32>
    %211 = tpu.matmul %208, %210, %cst_215 {dimension_numbers = #tpu.dot_dimension_numbers<[1], [0], [0], [1], [0, 0, 1, 1], [], []>} : vector<128x3xf32>, vector<3x32xf32>, vector<128x32xf32> -> vector<128x32xf32>
    %212 = arith.addf %205, %211 : vector<128x32xf32>
    %c0_216 = arith.constant 0 : index
    %c10_217 = arith.constant 10 : index
    %c1_218 = arith.constant 1 : index
    %c0_219 = arith.constant 0 : index
    %213 = vector.load %arg1[%c0_216, %c10_217, %c1_218, %c0_219] : memref<1x34x17x3xf32, #tpu.memory_space<vmem>>, vector<1x8x16x3xf32>
    %214 = vector.shape_cast %213 : vector<1x8x16x3xf32> to vector<8x16x3xf32>
    %215 = vector.shape_cast %214 : vector<8x16x3xf32> to vector<128x3xf32>
    %c8_220 = arith.constant 8 : index
    %c0_221 = arith.constant 0 : index
    %c0_222 = arith.constant 0 : index
    %216 = vector.load %arg3[%c8_220, %c0_221, %c0_222] : memref<9x3x32xf32, #tpu.memory_space<vmem>>, vector<1x3x32xf32>
    %217 = vector.shape_cast %216 : vector<1x3x32xf32> to vector<3x32xf32>
    %cst_223 = arith.constant dense<0.000000e+00> : vector<128x32xf32>
    %218 = tpu.matmul %215, %217, %cst_223 {dimension_numbers = #tpu.dot_dimension_numbers<[1], [0], [0], [1], [0, 0, 1, 1], [], []>} : vector<128x3xf32>, vector<3x32xf32>, vector<128x32xf32> -> vector<128x32xf32>
    %219 = arith.addf %212, %218 : vector<128x32xf32>
    %220 = vector.broadcast %0 : vector<1x32xf32> to vector<128x32xf32>
    %221 = arith.addf %219, %220 : vector<128x32xf32>
    %cst_224 = arith.constant 0.000000e+00 : f32
    %222 = vector.broadcast %cst_224 : f32 to vector<128x32xf32>
    %223 = arith.maximumf %221, %222 : vector<128x32xf32>
    %c0_225 = arith.constant 0 : index
    %c8_226 = arith.constant 8 : index
    %c0_227 = arith.constant 0 : index
    %c0_228 = arith.constant 0 : index
    %224 = vector.load %arg2[%c0_225, %c8_226, %c0_227, %c0_228] : memref<1x34x17x3xf32, #tpu.memory_space<vmem>>, vector<1x8x16x3xf32>
    %225 = vector.shape_cast %224 : vector<1x8x16x3xf32> to vector<8x16x3xf32>
    %226 = vector.shape_cast %225 : vector<8x16x3xf32> to vector<128x3xf32>
    %c0_229 = arith.constant 0 : index
    %c0_230 = arith.constant 0 : index
    %c0_231 = arith.constant 0 : index
    %227 = vector.load %arg3[%c0_229, %c0_230, %c0_231] : memref<9x3x32xf32, #tpu.memory_space<vmem>>, vector<1x3x32xf32>
    %228 = vector.shape_cast %227 : vector<1x3x32xf32> to vector<3x32xf32>
    %cst_232 = arith.constant dense<0.000000e+00> : vector<128x32xf32>
    %229 = tpu.matmul %226, %228, %cst_232 {dimension_numbers = #tpu.dot_dimension_numbers<[1], [0], [0], [1], [0, 0, 1, 1], [], []>} : vector<128x3xf32>, vector<3x32xf32>, vector<128x32xf32> -> vector<128x32xf32>
    %c0_233 = arith.constant 0 : index
    %c8_234 = arith.constant 8 : index
    %c1_235 = arith.constant 1 : index
    %c0_236 = arith.constant 0 : index
    %230 = vector.load %arg1[%c0_233, %c8_234, %c1_235, %c0_236] : memref<1x34x17x3xf32, #tpu.memory_space<vmem>>, vector<1x8x16x3xf32>
    %231 = vector.shape_cast %230 : vector<1x8x16x3xf32> to vector<8x16x3xf32>
    %232 = vector.shape_cast %231 : vector<8x16x3xf32> to vector<128x3xf32>
    %c1_237 = arith.constant 1 : index
    %c0_238 = arith.constant 0 : index
    %c0_239 = arith.constant 0 : index
    %233 = vector.load %arg3[%c1_237, %c0_238, %c0_239] : memref<9x3x32xf32, #tpu.memory_space<vmem>>, vector<1x3x32xf32>
    %234 = vector.shape_cast %233 : vector<1x3x32xf32> to vector<3x32xf32>
    %cst_240 = arith.constant dense<0.000000e+00> : vector<128x32xf32>
    %235 = tpu.matmul %232, %234, %cst_240 {dimension_numbers = #tpu.dot_dimension_numbers<[1], [0], [0], [1], [0, 0, 1, 1], [], []>} : vector<128x3xf32>, vector<3x32xf32>, vector<128x32xf32> -> vector<128x32xf32>
    %236 = arith.addf %229, %235 : vector<128x32xf32>
    %c0_241 = arith.constant 0 : index
    %c8_242 = arith.constant 8 : index
    %c1_243 = arith.constant 1 : index
    %c0_244 = arith.constant 0 : index
    %237 = vector.load %arg2[%c0_241, %c8_242, %c1_243, %c0_244] : memref<1x34x17x3xf32, #tpu.memory_space<vmem>>, vector<1x8x16x3xf32>
    %238 = vector.shape_cast %237 : vector<1x8x16x3xf32> to vector<8x16x3xf32>
    %239 = vector.shape_cast %238 : vector<8x16x3xf32> to vector<128x3xf32>
    %c2_245 = arith.constant 2 : index
    %c0_246 = arith.constant 0 : index
    %c0_247 = arith.constant 0 : index
    %240 = vector.load %arg3[%c2_245, %c0_246, %c0_247] : memref<9x3x32xf32, #tpu.memory_space<vmem>>, vector<1x3x32xf32>
    %241 = vector.shape_cast %240 : vector<1x3x32xf32> to vector<3x32xf32>
    %cst_248 = arith.constant dense<0.000000e+00> : vector<128x32xf32>
    %242 = tpu.matmul %239, %241, %cst_248 {dimension_numbers = #tpu.dot_dimension_numbers<[1], [0], [0], [1], [0, 0, 1, 1], [], []>} : vector<128x3xf32>, vector<3x32xf32>, vector<128x32xf32> -> vector<128x32xf32>
    %243 = arith.addf %236, %242 : vector<128x32xf32>
    %c0_249 = arith.constant 0 : index
    %c9_250 = arith.constant 9 : index
    %c0_251 = arith.constant 0 : index
    %c0_252 = arith.constant 0 : index
    %244 = vector.load %arg2[%c0_249, %c9_250, %c0_251, %c0_252] : memref<1x34x17x3xf32, #tpu.memory_space<vmem>>, vector<1x8x16x3xf32>
    %245 = vector.shape_cast %244 : vector<1x8x16x3xf32> to vector<8x16x3xf32>
    %246 = vector.shape_cast %245 : vector<8x16x3xf32> to vector<128x3xf32>
    %c3_253 = arith.constant 3 : index
    %c0_254 = arith.constant 0 : index
    %c0_255 = arith.constant 0 : index
    %247 = vector.load %arg3[%c3_253, %c0_254, %c0_255] : memref<9x3x32xf32, #tpu.memory_space<vmem>>, vector<1x3x32xf32>
    %248 = vector.shape_cast %247 : vector<1x3x32xf32> to vector<3x32xf32>
    %cst_256 = arith.constant dense<0.000000e+00> : vector<128x32xf32>
    %249 = tpu.matmul %246, %248, %cst_256 {dimension_numbers = #tpu.dot_dimension_numbers<[1], [0], [0], [1], [0, 0, 1, 1], [], []>} : vector<128x3xf32>, vector<3x32xf32>, vector<128x32xf32> -> vector<128x32xf32>
    %250 = arith.addf %243, %249 : vector<128x32xf32>
    %c0_257 = arith.constant 0 : index
    %c9_258 = arith.constant 9 : index
    %c1_259 = arith.constant 1 : index
    %c0_260 = arith.constant 0 : index
    %251 = vector.load %arg1[%c0_257, %c9_258, %c1_259, %c0_260] : memref<1x34x17x3xf32, #tpu.memory_space<vmem>>, vector<1x8x16x3xf32>
    %252 = vector.shape_cast %251 : vector<1x8x16x3xf32> to vector<8x16x3xf32>
    %253 = vector.shape_cast %252 : vector<8x16x3xf32> to vector<128x3xf32>
    %c4_261 = arith.constant 4 : index
    %c0_262 = arith.constant 0 : index
    %c0_263 = arith.constant 0 : index
    %254 = vector.load %arg3[%c4_261, %c0_262, %c0_263] : memref<9x3x32xf32, #tpu.memory_space<vmem>>, vector<1x3x32xf32>
    %255 = vector.shape_cast %254 : vector<1x3x32xf32> to vector<3x32xf32>
    %cst_264 = arith.constant dense<0.000000e+00> : vector<128x32xf32>
    %256 = tpu.matmul %253, %255, %cst_264 {dimension_numbers = #tpu.dot_dimension_numbers<[1], [0], [0], [1], [0, 0, 1, 1], [], []>} : vector<128x3xf32>, vector<3x32xf32>, vector<128x32xf32> -> vector<128x32xf32>
    %257 = arith.addf %250, %256 : vector<128x32xf32>
    %c0_265 = arith.constant 0 : index
    %c9_266 = arith.constant 9 : index
    %c1_267 = arith.constant 1 : index
    %c0_268 = arith.constant 0 : index
    %258 = vector.load %arg2[%c0_265, %c9_266, %c1_267, %c0_268] : memref<1x34x17x3xf32, #tpu.memory_space<vmem>>, vector<1x8x16x3xf32>
    %259 = vector.shape_cast %258 : vector<1x8x16x3xf32> to vector<8x16x3xf32>
    %260 = vector.shape_cast %259 : vector<8x16x3xf32> to vector<128x3xf32>
    %c5_269 = arith.constant 5 : index
    %c0_270 = arith.constant 0 : index
    %c0_271 = arith.constant 0 : index
    %261 = vector.load %arg3[%c5_269, %c0_270, %c0_271] : memref<9x3x32xf32, #tpu.memory_space<vmem>>, vector<1x3x32xf32>
    %262 = vector.shape_cast %261 : vector<1x3x32xf32> to vector<3x32xf32>
    %cst_272 = arith.constant dense<0.000000e+00> : vector<128x32xf32>
    %263 = tpu.matmul %260, %262, %cst_272 {dimension_numbers = #tpu.dot_dimension_numbers<[1], [0], [0], [1], [0, 0, 1, 1], [], []>} : vector<128x3xf32>, vector<3x32xf32>, vector<128x32xf32> -> vector<128x32xf32>
    %264 = arith.addf %257, %263 : vector<128x32xf32>
    %c0_273 = arith.constant 0 : index
    %c10_274 = arith.constant 10 : index
    %c0_275 = arith.constant 0 : index
    %c0_276 = arith.constant 0 : index
    %265 = vector.load %arg2[%c0_273, %c10_274, %c0_275, %c0_276] : memref<1x34x17x3xf32, #tpu.memory_space<vmem>>, vector<1x8x16x3xf32>
    %266 = vector.shape_cast %265 : vector<1x8x16x3xf32> to vector<8x16x3xf32>
    %267 = vector.shape_cast %266 : vector<8x16x3xf32> to vector<128x3xf32>
    %c6_277 = arith.constant 6 : index
    %c0_278 = arith.constant 0 : index
    %c0_279 = arith.constant 0 : index
    %268 = vector.load %arg3[%c6_277, %c0_278, %c0_279] : memref<9x3x32xf32, #tpu.memory_space<vmem>>, vector<1x3x32xf32>
    %269 = vector.shape_cast %268 : vector<1x3x32xf32> to vector<3x32xf32>
    %cst_280 = arith.constant dense<0.000000e+00> : vector<128x32xf32>
    %270 = tpu.matmul %267, %269, %cst_280 {dimension_numbers = #tpu.dot_dimension_numbers<[1], [0], [0], [1], [0, 0, 1, 1], [], []>} : vector<128x3xf32>, vector<3x32xf32>, vector<128x32xf32> -> vector<128x32xf32>
    %271 = arith.addf %264, %270 : vector<128x32xf32>
    %c0_281 = arith.constant 0 : index
    %c10_282 = arith.constant 10 : index
    %c1_283 = arith.constant 1 : index
    %c0_284 = arith.constant 0 : index
    %272 = vector.load %arg1[%c0_281, %c10_282, %c1_283, %c0_284] : memref<1x34x17x3xf32, #tpu.memory_space<vmem>>, vector<1x8x16x3xf32>
    %273 = vector.shape_cast %272 : vector<1x8x16x3xf32> to vector<8x16x3xf32>
    %274 = vector.shape_cast %273 : vector<8x16x3xf32> to vector<128x3xf32>
    %c7_285 = arith.constant 7 : index
    %c0_286 = arith.constant 0 : index
    %c0_287 = arith.constant 0 : index
    %275 = vector.load %arg3[%c7_285, %c0_286, %c0_287] : memref<9x3x32xf32, #tpu.memory_space<vmem>>, vector<1x3x32xf32>
    %276 = vector.shape_cast %275 : vector<1x3x32xf32> to vector<3x32xf32>
    %cst_288 = arith.constant dense<0.000000e+00> : vector<128x32xf32>
    %277 = tpu.matmul %274, %276, %cst_288 {dimension_numbers = #tpu.dot_dimension_numbers<[1], [0], [0], [1], [0, 0, 1, 1], [], []>} : vector<128x3xf32>, vector<3x32xf32>, vector<128x32xf32> -> vector<128x32xf32>
    %278 = arith.addf %271, %277 : vector<128x32xf32>
    %c0_289 = arith.constant 0 : index
    %c10_290 = arith.constant 10 : index
    %c1_291 = arith.constant 1 : index
    %c0_292 = arith.constant 0 : index
    %279 = vector.load %arg2[%c0_289, %c10_290, %c1_291, %c0_292] : memref<1x34x17x3xf32, #tpu.memory_space<vmem>>, vector<1x8x16x3xf32>
    %280 = vector.shape_cast %279 : vector<1x8x16x3xf32> to vector<8x16x3xf32>
    %281 = vector.shape_cast %280 : vector<8x16x3xf32> to vector<128x3xf32>
    %c8_293 = arith.constant 8 : index
    %c0_294 = arith.constant 0 : index
    %c0_295 = arith.constant 0 : index
    %282 = vector.load %arg3[%c8_293, %c0_294, %c0_295] : memref<9x3x32xf32, #tpu.memory_space<vmem>>, vector<1x3x32xf32>
    %283 = vector.shape_cast %282 : vector<1x3x32xf32> to vector<3x32xf32>
    %cst_296 = arith.constant dense<0.000000e+00> : vector<128x32xf32>
    %284 = tpu.matmul %281, %283, %cst_296 {dimension_numbers = #tpu.dot_dimension_numbers<[1], [0], [0], [1], [0, 0, 1, 1], [], []>} : vector<128x3xf32>, vector<3x32xf32>, vector<128x32xf32> -> vector<128x32xf32>
    %285 = arith.addf %278, %284 : vector<128x32xf32>
    %286 = vector.broadcast %0 : vector<1x32xf32> to vector<128x32xf32>
    %287 = arith.addf %285, %286 : vector<128x32xf32>
    %cst_297 = arith.constant 0.000000e+00 : f32
    %288 = vector.broadcast %cst_297 : f32 to vector<128x32xf32>
    %289 = arith.maximumf %287, %288 : vector<128x32xf32>
    %290 = arith.maximumf %223, %289 : vector<128x32xf32>
    %291 = vector.extract_strided_slice %290 {offsets = [0, 0], sizes = [16, 32], strides = [1, 1]} : vector<128x32xf32> to vector<16x32xf32>
    %292 = vector.extract_strided_slice %290 {offsets = [16, 0], sizes = [16, 32], strides = [1, 1]} : vector<128x32xf32> to vector<16x32xf32>
    %293 = arith.maximumf %291, %292 : vector<16x32xf32>
    %c0_298 = arith.constant 0 : index
    %c4_299 = arith.constant 4 : index
    %c0_300 = arith.constant 0 : index
    %c0_301 = arith.constant 0 : index
    %294 = vector.load %arg5[%c0_298, %c4_299, %c0_300, %c0_301] : memref<1x16x16x32xf32, #tpu.memory_space<vmem>>, vector<1x1x16x32xf32>
    %295 = vector.shape_cast %294 : vector<1x1x16x32xf32> to vector<16x32xf32>
    %296 = vector.shape_cast %293 : vector<16x32xf32> to vector<1x1x16x32xf32>
    tpu.vector_store %arg5[%c0_298, %c4_299, %c0_300, %c0_301], %296 {strides = array<i32>} : memref<1x16x16x32xf32, #tpu.memory_space<vmem>>, vector<1x1x16x32xf32>,
    %297 = vector.extract_strided_slice %290 {offsets = [32, 0], sizes = [16, 32], strides = [1, 1]} : vector<128x32xf32> to vector<16x32xf32>
    %298 = vector.extract_strided_slice %290 {offsets = [48, 0], sizes = [16, 32], strides = [1, 1]} : vector<128x32xf32> to vector<16x32xf32>
    %299 = arith.maximumf %297, %298 : vector<16x32xf32>
    %c0_302 = arith.constant 0 : index
    %c5_303 = arith.constant 5 : index
    %c0_304 = arith.constant 0 : index
    %c0_305 = arith.constant 0 : index
    %300 = vector.load %arg5[%c0_302, %c5_303, %c0_304, %c0_305] : memref<1x16x16x32xf32, #tpu.memory_space<vmem>>, vector<1x1x16x32xf32>
    %301 = vector.shape_cast %300 : vector<1x1x16x32xf32> to vector<16x32xf32>
    %302 = vector.shape_cast %299 : vector<16x32xf32> to vector<1x1x16x32xf32>
    tpu.vector_store %arg5[%c0_302, %c5_303, %c0_304, %c0_305], %302 {strides = array<i32>} : memref<1x16x16x32xf32, #tpu.memory_space<vmem>>, vector<1x1x16x32xf32>,
    %303 = vector.extract_strided_slice %290 {offsets = [64, 0], sizes = [16, 32], strides = [1, 1]} : vector<128x32xf32> to vector<16x32xf32>
    %304 = vector.extract_strided_slice %290 {offsets = [80, 0], sizes = [16, 32], strides = [1, 1]} : vector<128x32xf32> to vector<16x32xf32>
    %305 = arith.maximumf %303, %304 : vector<16x32xf32>
    %c0_306 = arith.constant 0 : index
    %c6_307 = arith.constant 6 : index
    %c0_308 = arith.constant 0 : index
    %c0_309 = arith.constant 0 : index
    %306 = vector.load %arg5[%c0_306, %c6_307, %c0_308, %c0_309] : memref<1x16x16x32xf32, #tpu.memory_space<vmem>>, vector<1x1x16x32xf32>
    %307 = vector.shape_cast %306 : vector<1x1x16x32xf32> to vector<16x32xf32>
    %308 = vector.shape_cast %305 : vector<16x32xf32> to vector<1x1x16x32xf32>
    tpu.vector_store %arg5[%c0_306, %c6_307, %c0_308, %c0_309], %308 {strides = array<i32>} : memref<1x16x16x32xf32, #tpu.memory_space<vmem>>, vector<1x1x16x32xf32>,
    %309 = vector.extract_strided_slice %290 {offsets = [96, 0], sizes = [16, 32], strides = [1, 1]} : vector<128x32xf32> to vector<16x32xf32>
    %310 = vector.extract_strided_slice %290 {offsets = [112, 0], sizes = [16, 32], strides = [1, 1]} : vector<128x32xf32> to vector<16x32xf32>
    %311 = arith.maximumf %309, %310 : vector<16x32xf32>
    %c0_310 = arith.constant 0 : index
    %c7_311 = arith.constant 7 : index
    %c0_312 = arith.constant 0 : index
    %c0_313 = arith.constant 0 : index
    %312 = vector.load %arg5[%c0_310, %c7_311, %c0_312, %c0_313] : memref<1x16x16x32xf32, #tpu.memory_space<vmem>>, vector<1x1x16x32xf32>
    %313 = vector.shape_cast %312 : vector<1x1x16x32xf32> to vector<16x32xf32>
    %314 = vector.shape_cast %311 : vector<16x32xf32> to vector<1x1x16x32xf32>
    tpu.vector_store %arg5[%c0_310, %c7_311, %c0_312, %c0_313], %314 {strides = array<i32>} : memref<1x16x16x32xf32, #tpu.memory_space<vmem>>, vector<1x1x16x32xf32>,
    %c0_314 = arith.constant 0 : index
    %c16 = arith.constant 16 : index
    %c0_315 = arith.constant 0 : index
    %c0_316 = arith.constant 0 : index
    %315 = vector.load %arg1[%c0_314, %c16, %c0_315, %c0_316] : memref<1x34x17x3xf32, #tpu.memory_space<vmem>>, vector<1x8x16x3xf32>
    %316 = vector.shape_cast %315 : vector<1x8x16x3xf32> to vector<8x16x3xf32>
    %317 = vector.shape_cast %316 : vector<8x16x3xf32> to vector<128x3xf32>
    %c0_317 = arith.constant 0 : index
    %c0_318 = arith.constant 0 : index
    %c0_319 = arith.constant 0 : index
    %318 = vector.load %arg3[%c0_317, %c0_318, %c0_319] : memref<9x3x32xf32, #tpu.memory_space<vmem>>, vector<1x3x32xf32>
    %319 = vector.shape_cast %318 : vector<1x3x32xf32> to vector<3x32xf32>
    %cst_320 = arith.constant dense<0.000000e+00> : vector<128x32xf32>
    %320 = tpu.matmul %317, %319, %cst_320 {dimension_numbers = #tpu.dot_dimension_numbers<[1], [0], [0], [1], [0, 0, 1, 1], [], []>} : vector<128x3xf32>, vector<3x32xf32>, vector<128x32xf32> -> vector<128x32xf32>
    %c0_321 = arith.constant 0 : index
    %c16_322 = arith.constant 16 : index
    %c0_323 = arith.constant 0 : index
    %c0_324 = arith.constant 0 : index
    %321 = vector.load %arg2[%c0_321, %c16_322, %c0_323, %c0_324] : memref<1x34x17x3xf32, #tpu.memory_space<vmem>>, vector<1x8x16x3xf32>
    %322 = vector.shape_cast %321 : vector<1x8x16x3xf32> to vector<8x16x3xf32>
    %323 = vector.shape_cast %322 : vector<8x16x3xf32> to vector<128x3xf32>
    %c1_325 = arith.constant 1 : index
    %c0_326 = arith.constant 0 : index
    %c0_327 = arith.constant 0 : index
    %324 = vector.load %arg3[%c1_325, %c0_326, %c0_327] : memref<9x3x32xf32, #tpu.memory_space<vmem>>, vector<1x3x32xf32>
    %325 = vector.shape_cast %324 : vector<1x3x32xf32> to vector<3x32xf32>
    %cst_328 = arith.constant dense<0.000000e+00> : vector<128x32xf32>
    %326 = tpu.matmul %323, %325, %cst_328 {dimension_numbers = #tpu.dot_dimension_numbers<[1], [0], [0], [1], [0, 0, 1, 1], [], []>} : vector<128x3xf32>, vector<3x32xf32>, vector<128x32xf32> -> vector<128x32xf32>
    %327 = arith.addf %320, %326 : vector<128x32xf32>
    %c0_329 = arith.constant 0 : index
    %c16_330 = arith.constant 16 : index
    %c1_331 = arith.constant 1 : index
    %c0_332 = arith.constant 0 : index
    %328 = vector.load %arg1[%c0_329, %c16_330, %c1_331, %c0_332] : memref<1x34x17x3xf32, #tpu.memory_space<vmem>>, vector<1x8x16x3xf32>
    %329 = vector.shape_cast %328 : vector<1x8x16x3xf32> to vector<8x16x3xf32>
    %330 = vector.shape_cast %329 : vector<8x16x3xf32> to vector<128x3xf32>
    %c2_333 = arith.constant 2 : index
    %c0_334 = arith.constant 0 : index
    %c0_335 = arith.constant 0 : index
    %331 = vector.load %arg3[%c2_333, %c0_334, %c0_335] : memref<9x3x32xf32, #tpu.memory_space<vmem>>, vector<1x3x32xf32>
    %332 = vector.shape_cast %331 : vector<1x3x32xf32> to vector<3x32xf32>
    %cst_336 = arith.constant dense<0.000000e+00> : vector<128x32xf32>
    %333 = tpu.matmul %330, %332, %cst_336 {dimension_numbers = #tpu.dot_dimension_numbers<[1], [0], [0], [1], [0, 0, 1, 1], [], []>} : vector<128x3xf32>, vector<3x32xf32>, vector<128x32xf32> -> vector<128x32xf32>
    %334 = arith.addf %327, %333 : vector<128x32xf32>
    %c0_337 = arith.constant 0 : index
    %c17 = arith.constant 17 : index
    %c0_338 = arith.constant 0 : index
    %c0_339 = arith.constant 0 : index
    %335 = vector.load %arg1[%c0_337, %c17, %c0_338, %c0_339] : memref<1x34x17x3xf32, #tpu.memory_space<vmem>>, vector<1x8x16x3xf32>
    %336 = vector.shape_cast %335 : vector<1x8x16x3xf32> to vector<8x16x3xf32>
    %337 = vector.shape_cast %336 : vector<8x16x3xf32> to vector<128x3xf32>
    %c3_340 = arith.constant 3 : index
    %c0_341 = arith.constant 0 : index
    %c0_342 = arith.constant 0 : index
    %338 = vector.load %arg3[%c3_340, %c0_341, %c0_342] : memref<9x3x32xf32, #tpu.memory_space<vmem>>, vector<1x3x32xf32>
    %339 = vector.shape_cast %338 : vector<1x3x32xf32> to vector<3x32xf32>
    %cst_343 = arith.constant dense<0.000000e+00> : vector<128x32xf32>
    %340 = tpu.matmul %337, %339, %cst_343 {dimension_numbers = #tpu.dot_dimension_numbers<[1], [0], [0], [1], [0, 0, 1, 1], [], []>} : vector<128x3xf32>, vector<3x32xf32>, vector<128x32xf32> -> vector<128x32xf32>
    %341 = arith.addf %334, %340 : vector<128x32xf32>
    %c0_344 = arith.constant 0 : index
    %c17_345 = arith.constant 17 : index
    %c0_346 = arith.constant 0 : index
    %c0_347 = arith.constant 0 : index
    %342 = vector.load %arg2[%c0_344, %c17_345, %c0_346, %c0_347] : memref<1x34x17x3xf32, #tpu.memory_space<vmem>>, vector<1x8x16x3xf32>
    %343 = vector.shape_cast %342 : vector<1x8x16x3xf32> to vector<8x16x3xf32>
    %344 = vector.shape_cast %343 : vector<8x16x3xf32> to vector<128x3xf32>
    %c4_348 = arith.constant 4 : index
    %c0_349 = arith.constant 0 : index
    %c0_350 = arith.constant 0 : index
    %345 = vector.load %arg3[%c4_348, %c0_349, %c0_350] : memref<9x3x32xf32, #tpu.memory_space<vmem>>, vector<1x3x32xf32>
    %346 = vector.shape_cast %345 : vector<1x3x32xf32> to vector<3x32xf32>
    %cst_351 = arith.constant dense<0.000000e+00> : vector<128x32xf32>
    %347 = tpu.matmul %344, %346, %cst_351 {dimension_numbers = #tpu.dot_dimension_numbers<[1], [0], [0], [1], [0, 0, 1, 1], [], []>} : vector<128x3xf32>, vector<3x32xf32>, vector<128x32xf32> -> vector<128x32xf32>
    %348 = arith.addf %341, %347 : vector<128x32xf32>
    %c0_352 = arith.constant 0 : index
    %c17_353 = arith.constant 17 : index
    %c1_354 = arith.constant 1 : index
    %c0_355 = arith.constant 0 : index
    %349 = vector.load %arg1[%c0_352, %c17_353, %c1_354, %c0_355] : memref<1x34x17x3xf32, #tpu.memory_space<vmem>>, vector<1x8x16x3xf32>
    %350 = vector.shape_cast %349 : vector<1x8x16x3xf32> to vector<8x16x3xf32>
    %351 = vector.shape_cast %350 : vector<8x16x3xf32> to vector<128x3xf32>
    %c5_356 = arith.constant 5 : index
    %c0_357 = arith.constant 0 : index
    %c0_358 = arith.constant 0 : index
    %352 = vector.load %arg3[%c5_356, %c0_357, %c0_358] : memref<9x3x32xf32, #tpu.memory_space<vmem>>, vector<1x3x32xf32>
    %353 = vector.shape_cast %352 : vector<1x3x32xf32> to vector<3x32xf32>
    %cst_359 = arith.constant dense<0.000000e+00> : vector<128x32xf32>
    %354 = tpu.matmul %351, %353, %cst_359 {dimension_numbers = #tpu.dot_dimension_numbers<[1], [0], [0], [1], [0, 0, 1, 1], [], []>} : vector<128x3xf32>, vector<3x32xf32>, vector<128x32xf32> -> vector<128x32xf32>
    %355 = arith.addf %348, %354 : vector<128x32xf32>
    %c0_360 = arith.constant 0 : index
    %c18 = arith.constant 18 : index
    %c0_361 = arith.constant 0 : index
    %c0_362 = arith.constant 0 : index
    %356 = vector.load %arg1[%c0_360, %c18, %c0_361, %c0_362] : memref<1x34x17x3xf32, #tpu.memory_space<vmem>>, vector<1x8x16x3xf32>
    %357 = vector.shape_cast %356 : vector<1x8x16x3xf32> to vector<8x16x3xf32>
    %358 = vector.shape_cast %357 : vector<8x16x3xf32> to vector<128x3xf32>
    %c6_363 = arith.constant 6 : index
    %c0_364 = arith.constant 0 : index
    %c0_365 = arith.constant 0 : index
    %359 = vector.load %arg3[%c6_363, %c0_364, %c0_365] : memref<9x3x32xf32, #tpu.memory_space<vmem>>, vector<1x3x32xf32>
    %360 = vector.shape_cast %359 : vector<1x3x32xf32> to vector<3x32xf32>
    %cst_366 = arith.constant dense<0.000000e+00> : vector<128x32xf32>
    %361 = tpu.matmul %358, %360, %cst_366 {dimension_numbers = #tpu.dot_dimension_numbers<[1], [0], [0], [1], [0, 0, 1, 1], [], []>} : vector<128x3xf32>, vector<3x32xf32>, vector<128x32xf32> -> vector<128x32xf32>
    %362 = arith.addf %355, %361 : vector<128x32xf32>
    %c0_367 = arith.constant 0 : index
    %c18_368 = arith.constant 18 : index
    %c0_369 = arith.constant 0 : index
    %c0_370 = arith.constant 0 : index
    %363 = vector.load %arg2[%c0_367, %c18_368, %c0_369, %c0_370] : memref<1x34x17x3xf32, #tpu.memory_space<vmem>>, vector<1x8x16x3xf32>
    %364 = vector.shape_cast %363 : vector<1x8x16x3xf32> to vector<8x16x3xf32>
    %365 = vector.shape_cast %364 : vector<8x16x3xf32> to vector<128x3xf32>
    %c7_371 = arith.constant 7 : index
    %c0_372 = arith.constant 0 : index
    %c0_373 = arith.constant 0 : index
    %366 = vector.load %arg3[%c7_371, %c0_372, %c0_373] : memref<9x3x32xf32, #tpu.memory_space<vmem>>, vector<1x3x32xf32>
    %367 = vector.shape_cast %366 : vector<1x3x32xf32> to vector<3x32xf32>
    %cst_374 = arith.constant dense<0.000000e+00> : vector<128x32xf32>
    %368 = tpu.matmul %365, %367, %cst_374 {dimension_numbers = #tpu.dot_dimension_numbers<[1], [0], [0], [1], [0, 0, 1, 1], [], []>} : vector<128x3xf32>, vector<3x32xf32>, vector<128x32xf32> -> vector<128x32xf32>
    %369 = arith.addf %362, %368 : vector<128x32xf32>
    %c0_375 = arith.constant 0 : index
    %c18_376 = arith.constant 18 : index
    %c1_377 = arith.constant 1 : index
    %c0_378 = arith.constant 0 : index
    %370 = vector.load %arg1[%c0_375, %c18_376, %c1_377, %c0_378] : memref<1x34x17x3xf32, #tpu.memory_space<vmem>>, vector<1x8x16x3xf32>
    %371 = vector.shape_cast %370 : vector<1x8x16x3xf32> to vector<8x16x3xf32>
    %372 = vector.shape_cast %371 : vector<8x16x3xf32> to vector<128x3xf32>
    %c8_379 = arith.constant 8 : index
    %c0_380 = arith.constant 0 : index
    %c0_381 = arith.constant 0 : index
    %373 = vector.load %arg3[%c8_379, %c0_380, %c0_381] : memref<9x3x32xf32, #tpu.memory_space<vmem>>, vector<1x3x32xf32>
    %374 = vector.shape_cast %373 : vector<1x3x32xf32> to vector<3x32xf32>
    %cst_382 = arith.constant dense<0.000000e+00> : vector<128x32xf32>
    %375 = tpu.matmul %372, %374, %cst_382 {dimension_numbers = #tpu.dot_dimension_numbers<[1], [0], [0], [1], [0, 0, 1, 1], [], []>} : vector<128x3xf32>, vector<3x32xf32>, vector<128x32xf32> -> vector<128x32xf32>
    %376 = arith.addf %369, %375 : vector<128x32xf32>
    %377 = vector.broadcast %0 : vector<1x32xf32> to vector<128x32xf32>
    %378 = arith.addf %376, %377 : vector<128x32xf32>
    %cst_383 = arith.constant 0.000000e+00 : f32
    %379 = vector.broadcast %cst_383 : f32 to vector<128x32xf32>
    %380 = arith.maximumf %378, %379 : vector<128x32xf32>
    %c0_384 = arith.constant 0 : index
    %c16_385 = arith.constant 16 : index
    %c0_386 = arith.constant 0 : index
    %c0_387 = arith.constant 0 : index
    %381 = vector.load %arg2[%c0_384, %c16_385, %c0_386, %c0_387] : memref<1x34x17x3xf32, #tpu.memory_space<vmem>>, vector<1x8x16x3xf32>
    %382 = vector.shape_cast %381 : vector<1x8x16x3xf32> to vector<8x16x3xf32>
    %383 = vector.shape_cast %382 : vector<8x16x3xf32> to vector<128x3xf32>
    %c0_388 = arith.constant 0 : index
    %c0_389 = arith.constant 0 : index
    %c0_390 = arith.constant 0 : index
    %384 = vector.load %arg3[%c0_388, %c0_389, %c0_390] : memref<9x3x32xf32, #tpu.memory_space<vmem>>, vector<1x3x32xf32>
    %385 = vector.shape_cast %384 : vector<1x3x32xf32> to vector<3x32xf32>
    %cst_391 = arith.constant dense<0.000000e+00> : vector<128x32xf32>
    %386 = tpu.matmul %383, %385, %cst_391 {dimension_numbers = #tpu.dot_dimension_numbers<[1], [0], [0], [1], [0, 0, 1, 1], [], []>} : vector<128x3xf32>, vector<3x32xf32>, vector<128x32xf32> -> vector<128x32xf32>
    %c0_392 = arith.constant 0 : index
    %c16_393 = arith.constant 16 : index
    %c1_394 = arith.constant 1 : index
    %c0_395 = arith.constant 0 : index
    %387 = vector.load %arg1[%c0_392, %c16_393, %c1_394, %c0_395] : memref<1x34x17x3xf32, #tpu.memory_space<vmem>>, vector<1x8x16x3xf32>
    %388 = vector.shape_cast %387 : vector<1x8x16x3xf32> to vector<8x16x3xf32>
    %389 = vector.shape_cast %388 : vector<8x16x3xf32> to vector<128x3xf32>
    %c1_396 = arith.constant 1 : index
    %c0_397 = arith.constant 0 : index
    %c0_398 = arith.constant 0 : index
    %390 = vector.load %arg3[%c1_396, %c0_397, %c0_398] : memref<9x3x32xf32, #tpu.memory_space<vmem>>, vector<1x3x32xf32>
    %391 = vector.shape_cast %390 : vector<1x3x32xf32> to vector<3x32xf32>
    %cst_399 = arith.constant dense<0.000000e+00> : vector<128x32xf32>
    %392 = tpu.matmul %389, %391, %cst_399 {dimension_numbers = #tpu.dot_dimension_numbers<[1], [0], [0], [1], [0, 0, 1, 1], [], []>} : vector<128x3xf32>, vector<3x32xf32>, vector<128x32xf32> -> vector<128x32xf32>
    %393 = arith.addf %386, %392 : vector<128x32xf32>
    %c0_400 = arith.constant 0 : index
    %c16_401 = arith.constant 16 : index
    %c1_402 = arith.constant 1 : index
    %c0_403 = arith.constant 0 : index
    %394 = vector.load %arg2[%c0_400, %c16_401, %c1_402, %c0_403] : memref<1x34x17x3xf32, #tpu.memory_space<vmem>>, vector<1x8x16x3xf32>
    %395 = vector.shape_cast %394 : vector<1x8x16x3xf32> to vector<8x16x3xf32>
    %396 = vector.shape_cast %395 : vector<8x16x3xf32> to vector<128x3xf32>
    %c2_404 = arith.constant 2 : index
    %c0_405 = arith.constant 0 : index
    %c0_406 = arith.constant 0 : index
    %397 = vector.load %arg3[%c2_404, %c0_405, %c0_406] : memref<9x3x32xf32, #tpu.memory_space<vmem>>, vector<1x3x32xf32>
    %398 = vector.shape_cast %397 : vector<1x3x32xf32> to vector<3x32xf32>
    %cst_407 = arith.constant dense<0.000000e+00> : vector<128x32xf32>
    %399 = tpu.matmul %396, %398, %cst_407 {dimension_numbers = #tpu.dot_dimension_numbers<[1], [0], [0], [1], [0, 0, 1, 1], [], []>} : vector<128x3xf32>, vector<3x32xf32>, vector<128x32xf32> -> vector<128x32xf32>
    %400 = arith.addf %393, %399 : vector<128x32xf32>
    %c0_408 = arith.constant 0 : index
    %c17_409 = arith.constant 17 : index
    %c0_410 = arith.constant 0 : index
    %c0_411 = arith.constant 0 : index
    %401 = vector.load %arg2[%c0_408, %c17_409, %c0_410, %c0_411] : memref<1x34x17x3xf32, #tpu.memory_space<vmem>>, vector<1x8x16x3xf32>
    %402 = vector.shape_cast %401 : vector<1x8x16x3xf32> to vector<8x16x3xf32>
    %403 = vector.shape_cast %402 : vector<8x16x3xf32> to vector<128x3xf32>
    %c3_412 = arith.constant 3 : index
    %c0_413 = arith.constant 0 : index
    %c0_414 = arith.constant 0 : index
    %404 = vector.load %arg3[%c3_412, %c0_413, %c0_414] : memref<9x3x32xf32, #tpu.memory_space<vmem>>, vector<1x3x32xf32>
    %405 = vector.shape_cast %404 : vector<1x3x32xf32> to vector<3x32xf32>
    %cst_415 = arith.constant dense<0.000000e+00> : vector<128x32xf32>
    %406 = tpu.matmul %403, %405, %cst_415 {dimension_numbers = #tpu.dot_dimension_numbers<[1], [0], [0], [1], [0, 0, 1, 1], [], []>} : vector<128x3xf32>, vector<3x32xf32>, vector<128x32xf32> -> vector<128x32xf32>
    %407 = arith.addf %400, %406 : vector<128x32xf32>
    %c0_416 = arith.constant 0 : index
    %c17_417 = arith.constant 17 : index
    %c1_418 = arith.constant 1 : index
    %c0_419 = arith.constant 0 : index
    %408 = vector.load %arg1[%c0_416, %c17_417, %c1_418, %c0_419] : memref<1x34x17x3xf32, #tpu.memory_space<vmem>>, vector<1x8x16x3xf32>
    %409 = vector.shape_cast %408 : vector<1x8x16x3xf32> to vector<8x16x3xf32>
    %410 = vector.shape_cast %409 : vector<8x16x3xf32> to vector<128x3xf32>
    %c4_420 = arith.constant 4 : index
    %c0_421 = arith.constant 0 : index
    %c0_422 = arith.constant 0 : index
    %411 = vector.load %arg3[%c4_420, %c0_421, %c0_422] : memref<9x3x32xf32, #tpu.memory_space<vmem>>, vector<1x3x32xf32>
    %412 = vector.shape_cast %411 : vector<1x3x32xf32> to vector<3x32xf32>
    %cst_423 = arith.constant dense<0.000000e+00> : vector<128x32xf32>
    %413 = tpu.matmul %410, %412, %cst_423 {dimension_numbers = #tpu.dot_dimension_numbers<[1], [0], [0], [1], [0, 0, 1, 1], [], []>} : vector<128x3xf32>, vector<3x32xf32>, vector<128x32xf32> -> vector<128x32xf32>
    %414 = arith.addf %407, %413 : vector<128x32xf32>
    %c0_424 = arith.constant 0 : index
    %c17_425 = arith.constant 17 : index
    %c1_426 = arith.constant 1 : index
    %c0_427 = arith.constant 0 : index
    %415 = vector.load %arg2[%c0_424, %c17_425, %c1_426, %c0_427] : memref<1x34x17x3xf32, #tpu.memory_space<vmem>>, vector<1x8x16x3xf32>
    %416 = vector.shape_cast %415 : vector<1x8x16x3xf32> to vector<8x16x3xf32>
    %417 = vector.shape_cast %416 : vector<8x16x3xf32> to vector<128x3xf32>
    %c5_428 = arith.constant 5 : index
    %c0_429 = arith.constant 0 : index
    %c0_430 = arith.constant 0 : index
    %418 = vector.load %arg3[%c5_428, %c0_429, %c0_430] : memref<9x3x32xf32, #tpu.memory_space<vmem>>, vector<1x3x32xf32>
    %419 = vector.shape_cast %418 : vector<1x3x32xf32> to vector<3x32xf32>
    %cst_431 = arith.constant dense<0.000000e+00> : vector<128x32xf32>
    %420 = tpu.matmul %417, %419, %cst_431 {dimension_numbers = #tpu.dot_dimension_numbers<[1], [0], [0], [1], [0, 0, 1, 1], [], []>} : vector<128x3xf32>, vector<3x32xf32>, vector<128x32xf32> -> vector<128x32xf32>
    %421 = arith.addf %414, %420 : vector<128x32xf32>
    %c0_432 = arith.constant 0 : index
    %c18_433 = arith.constant 18 : index
    %c0_434 = arith.constant 0 : index
    %c0_435 = arith.constant 0 : index
    %422 = vector.load %arg2[%c0_432, %c18_433, %c0_434, %c0_435] : memref<1x34x17x3xf32, #tpu.memory_space<vmem>>, vector<1x8x16x3xf32>
    %423 = vector.shape_cast %422 : vector<1x8x16x3xf32> to vector<8x16x3xf32>
    %424 = vector.shape_cast %423 : vector<8x16x3xf32> to vector<128x3xf32>
    %c6_436 = arith.constant 6 : index
    %c0_437 = arith.constant 0 : index
    %c0_438 = arith.constant 0 : index
    %425 = vector.load %arg3[%c6_436, %c0_437, %c0_438] : memref<9x3x32xf32, #tpu.memory_space<vmem>>, vector<1x3x32xf32>
    %426 = vector.shape_cast %425 : vector<1x3x32xf32> to vector<3x32xf32>
    %cst_439 = arith.constant dense<0.000000e+00> : vector<128x32xf32>
    %427 = tpu.matmul %424, %426, %cst_439 {dimension_numbers = #tpu.dot_dimension_numbers<[1], [0], [0], [1], [0, 0, 1, 1], [], []>} : vector<128x3xf32>, vector<3x32xf32>, vector<128x32xf32> -> vector<128x32xf32>
    %428 = arith.addf %421, %427 : vector<128x32xf32>
    %c0_440 = arith.constant 0 : index
    %c18_441 = arith.constant 18 : index
    %c1_442 = arith.constant 1 : index
    %c0_443 = arith.constant 0 : index
    %429 = vector.load %arg1[%c0_440, %c18_441, %c1_442, %c0_443] : memref<1x34x17x3xf32, #tpu.memory_space<vmem>>, vector<1x8x16x3xf32>
    %430 = vector.shape_cast %429 : vector<1x8x16x3xf32> to vector<8x16x3xf32>
    %431 = vector.shape_cast %430 : vector<8x16x3xf32> to vector<128x3xf32>
    %c7_444 = arith.constant 7 : index
    %c0_445 = arith.constant 0 : index
    %c0_446 = arith.constant 0 : index
    %432 = vector.load %arg3[%c7_444, %c0_445, %c0_446] : memref<9x3x32xf32, #tpu.memory_space<vmem>>, vector<1x3x32xf32>
    %433 = vector.shape_cast %432 : vector<1x3x32xf32> to vector<3x32xf32>
    %cst_447 = arith.constant dense<0.000000e+00> : vector<128x32xf32>
    %434 = tpu.matmul %431, %433, %cst_447 {dimension_numbers = #tpu.dot_dimension_numbers<[1], [0], [0], [1], [0, 0, 1, 1], [], []>} : vector<128x3xf32>, vector<3x32xf32>, vector<128x32xf32> -> vector<128x32xf32>
    %435 = arith.addf %428, %434 : vector<128x32xf32>
    %c0_448 = arith.constant 0 : index
    %c18_449 = arith.constant 18 : index
    %c1_450 = arith.constant 1 : index
    %c0_451 = arith.constant 0 : index
    %436 = vector.load %arg2[%c0_448, %c18_449, %c1_450, %c0_451] : memref<1x34x17x3xf32, #tpu.memory_space<vmem>>, vector<1x8x16x3xf32>
    %437 = vector.shape_cast %436 : vector<1x8x16x3xf32> to vector<8x16x3xf32>
    %438 = vector.shape_cast %437 : vector<8x16x3xf32> to vector<128x3xf32>
    %c8_452 = arith.constant 8 : index
    %c0_453 = arith.constant 0 : index
    %c0_454 = arith.constant 0 : index
    %439 = vector.load %arg3[%c8_452, %c0_453, %c0_454] : memref<9x3x32xf32, #tpu.memory_space<vmem>>, vector<1x3x32xf32>
    %440 = vector.shape_cast %439 : vector<1x3x32xf32> to vector<3x32xf32>
    %cst_455 = arith.constant dense<0.000000e+00> : vector<128x32xf32>
    %441 = tpu.matmul %438, %440, %cst_455 {dimension_numbers = #tpu.dot_dimension_numbers<[1], [0], [0], [1], [0, 0, 1, 1], [], []>} : vector<128x3xf32>, vector<3x32xf32>, vector<128x32xf32> -> vector<128x32xf32>
    %442 = arith.addf %435, %441 : vector<128x32xf32>
    %443 = vector.broadcast %0 : vector<1x32xf32> to vector<128x32xf32>
    %444 = arith.addf %442, %443 : vector<128x32xf32>
    %cst_456 = arith.constant 0.000000e+00 : f32
    %445 = vector.broadcast %cst_456 : f32 to vector<128x32xf32>
    %446 = arith.maximumf %444, %445 : vector<128x32xf32>
    %447 = arith.maximumf %380, %446 : vector<128x32xf32>
    %448 = vector.extract_strided_slice %447 {offsets = [0, 0], sizes = [16, 32], strides = [1, 1]} : vector<128x32xf32> to vector<16x32xf32>
    %449 = vector.extract_strided_slice %447 {offsets = [16, 0], sizes = [16, 32], strides = [1, 1]} : vector<128x32xf32> to vector<16x32xf32>
    %450 = arith.maximumf %448, %449 : vector<16x32xf32>
    %c0_457 = arith.constant 0 : index
    %c8_458 = arith.constant 8 : index
    %c0_459 = arith.constant 0 : index
    %c0_460 = arith.constant 0 : index
    %451 = vector.load %arg5[%c0_457, %c8_458, %c0_459, %c0_460] : memref<1x16x16x32xf32, #tpu.memory_space<vmem>>, vector<1x1x16x32xf32>
    %452 = vector.shape_cast %451 : vector<1x1x16x32xf32> to vector<16x32xf32>
    %453 = vector.shape_cast %450 : vector<16x32xf32> to vector<1x1x16x32xf32>
    tpu.vector_store %arg5[%c0_457, %c8_458, %c0_459, %c0_460], %453 {strides = array<i32>} : memref<1x16x16x32xf32, #tpu.memory_space<vmem>>, vector<1x1x16x32xf32>,
    %454 = vector.extract_strided_slice %447 {offsets = [32, 0], sizes = [16, 32], strides = [1, 1]} : vector<128x32xf32> to vector<16x32xf32>
    %455 = vector.extract_strided_slice %447 {offsets = [48, 0], sizes = [16, 32], strides = [1, 1]} : vector<128x32xf32> to vector<16x32xf32>
    %456 = arith.maximumf %454, %455 : vector<16x32xf32>
    %c0_461 = arith.constant 0 : index
    %c9_462 = arith.constant 9 : index
    %c0_463 = arith.constant 0 : index
    %c0_464 = arith.constant 0 : index
    %457 = vector.load %arg5[%c0_461, %c9_462, %c0_463, %c0_464] : memref<1x16x16x32xf32, #tpu.memory_space<vmem>>, vector<1x1x16x32xf32>
    %458 = vector.shape_cast %457 : vector<1x1x16x32xf32> to vector<16x32xf32>
    %459 = vector.shape_cast %456 : vector<16x32xf32> to vector<1x1x16x32xf32>
    tpu.vector_store %arg5[%c0_461, %c9_462, %c0_463, %c0_464], %459 {strides = array<i32>} : memref<1x16x16x32xf32, #tpu.memory_space<vmem>>, vector<1x1x16x32xf32>,
    %460 = vector.extract_strided_slice %447 {offsets = [64, 0], sizes = [16, 32], strides = [1, 1]} : vector<128x32xf32> to vector<16x32xf32>
    %461 = vector.extract_strided_slice %447 {offsets = [80, 0], sizes = [16, 32], strides = [1, 1]} : vector<128x32xf32> to vector<16x32xf32>
    %462 = arith.maximumf %460, %461 : vector<16x32xf32>
    %c0_465 = arith.constant 0 : index
    %c10_466 = arith.constant 10 : index
    %c0_467 = arith.constant 0 : index
    %c0_468 = arith.constant 0 : index
    %463 = vector.load %arg5[%c0_465, %c10_466, %c0_467, %c0_468] : memref<1x16x16x32xf32, #tpu.memory_space<vmem>>, vector<1x1x16x32xf32>
    %464 = vector.shape_cast %463 : vector<1x1x16x32xf32> to vector<16x32xf32>
    %465 = vector.shape_cast %462 : vector<16x32xf32> to vector<1x1x16x32xf32>
    tpu.vector_store %arg5[%c0_465, %c10_466, %c0_467, %c0_468], %465 {strides = array<i32>} : memref<1x16x16x32xf32, #tpu.memory_space<vmem>>, vector<1x1x16x32xf32>,
    %466 = vector.extract_strided_slice %447 {offsets = [96, 0], sizes = [16, 32], strides = [1, 1]} : vector<128x32xf32> to vector<16x32xf32>
    %467 = vector.extract_strided_slice %447 {offsets = [112, 0], sizes = [16, 32], strides = [1, 1]} : vector<128x32xf32> to vector<16x32xf32>
    %468 = arith.maximumf %466, %467 : vector<16x32xf32>
    %c0_469 = arith.constant 0 : index
    %c11 = arith.constant 11 : index
    %c0_470 = arith.constant 0 : index
    %c0_471 = arith.constant 0 : index
    %469 = vector.load %arg5[%c0_469, %c11, %c0_470, %c0_471] : memref<1x16x16x32xf32, #tpu.memory_space<vmem>>, vector<1x1x16x32xf32>
    %470 = vector.shape_cast %469 : vector<1x1x16x32xf32> to vector<16x32xf32>
    %471 = vector.shape_cast %468 : vector<16x32xf32> to vector<1x1x16x32xf32>
    tpu.vector_store %arg5[%c0_469, %c11, %c0_470, %c0_471], %471 {strides = array<i32>} : memref<1x16x16x32xf32, #tpu.memory_space<vmem>>, vector<1x1x16x32xf32>,
    %c0_472 = arith.constant 0 : index
    %c24 = arith.constant 24 : index
    %c0_473 = arith.constant 0 : index
    %c0_474 = arith.constant 0 : index
    %472 = vector.load %arg1[%c0_472, %c24, %c0_473, %c0_474] : memref<1x34x17x3xf32, #tpu.memory_space<vmem>>, vector<1x8x16x3xf32>
    %473 = vector.shape_cast %472 : vector<1x8x16x3xf32> to vector<8x16x3xf32>
    %474 = vector.shape_cast %473 : vector<8x16x3xf32> to vector<128x3xf32>
    %c0_475 = arith.constant 0 : index
    %c0_476 = arith.constant 0 : index
    %c0_477 = arith.constant 0 : index
    %475 = vector.load %arg3[%c0_475, %c0_476, %c0_477] : memref<9x3x32xf32, #tpu.memory_space<vmem>>, vector<1x3x32xf32>
    %476 = vector.shape_cast %475 : vector<1x3x32xf32> to vector<3x32xf32>
    %cst_478 = arith.constant dense<0.000000e+00> : vector<128x32xf32>
    %477 = tpu.matmul %474, %476, %cst_478 {dimension_numbers = #tpu.dot_dimension_numbers<[1], [0], [0], [1], [0, 0, 1, 1], [], []>} : vector<128x3xf32>, vector<3x32xf32>, vector<128x32xf32> -> vector<128x32xf32>
    %c0_479 = arith.constant 0 : index
    %c24_480 = arith.constant 24 : index
    %c0_481 = arith.constant 0 : index
    %c0_482 = arith.constant 0 : index
    %478 = vector.load %arg2[%c0_479, %c24_480, %c0_481, %c0_482] : memref<1x34x17x3xf32, #tpu.memory_space<vmem>>, vector<1x8x16x3xf32>
    %479 = vector.shape_cast %478 : vector<1x8x16x3xf32> to vector<8x16x3xf32>
    %480 = vector.shape_cast %479 : vector<8x16x3xf32> to vector<128x3xf32>
    %c1_483 = arith.constant 1 : index
    %c0_484 = arith.constant 0 : index
    %c0_485 = arith.constant 0 : index
    %481 = vector.load %arg3[%c1_483, %c0_484, %c0_485] : memref<9x3x32xf32, #tpu.memory_space<vmem>>, vector<1x3x32xf32>
    %482 = vector.shape_cast %481 : vector<1x3x32xf32> to vector<3x32xf32>
    %cst_486 = arith.constant dense<0.000000e+00> : vector<128x32xf32>
    %483 = tpu.matmul %480, %482, %cst_486 {dimension_numbers = #tpu.dot_dimension_numbers<[1], [0], [0], [1], [0, 0, 1, 1], [], []>} : vector<128x3xf32>, vector<3x32xf32>, vector<128x32xf32> -> vector<128x32xf32>
    %484 = arith.addf %477, %483 : vector<128x32xf32>
    %c0_487 = arith.constant 0 : index
    %c24_488 = arith.constant 24 : index
    %c1_489 = arith.constant 1 : index
    %c0_490 = arith.constant 0 : index
    %485 = vector.load %arg1[%c0_487, %c24_488, %c1_489, %c0_490] : memref<1x34x17x3xf32, #tpu.memory_space<vmem>>, vector<1x8x16x3xf32>
    %486 = vector.shape_cast %485 : vector<1x8x16x3xf32> to vector<8x16x3xf32>
    %487 = vector.shape_cast %486 : vector<8x16x3xf32> to vector<128x3xf32>
    %c2_491 = arith.constant 2 : index
    %c0_492 = arith.constant 0 : index
    %c0_493 = arith.constant 0 : index
    %488 = vector.load %arg3[%c2_491, %c0_492, %c0_493] : memref<9x3x32xf32, #tpu.memory_space<vmem>>, vector<1x3x32xf32>
    %489 = vector.shape_cast %488 : vector<1x3x32xf32> to vector<3x32xf32>
    %cst_494 = arith.constant dense<0.000000e+00> : vector<128x32xf32>
    %490 = tpu.matmul %487, %489, %cst_494 {dimension_numbers = #tpu.dot_dimension_numbers<[1], [0], [0], [1], [0, 0, 1, 1], [], []>} : vector<128x3xf32>, vector<3x32xf32>, vector<128x32xf32> -> vector<128x32xf32>
    %491 = arith.addf %484, %490 : vector<128x32xf32>
    %c0_495 = arith.constant 0 : index
    %c25 = arith.constant 25 : index
    %c0_496 = arith.constant 0 : index
    %c0_497 = arith.constant 0 : index
    %492 = vector.load %arg1[%c0_495, %c25, %c0_496, %c0_497] : memref<1x34x17x3xf32, #tpu.memory_space<vmem>>, vector<1x8x16x3xf32>
    %493 = vector.shape_cast %492 : vector<1x8x16x3xf32> to vector<8x16x3xf32>
    %494 = vector.shape_cast %493 : vector<8x16x3xf32> to vector<128x3xf32>
    %c3_498 = arith.constant 3 : index
    %c0_499 = arith.constant 0 : index
    %c0_500 = arith.constant 0 : index
    %495 = vector.load %arg3[%c3_498, %c0_499, %c0_500] : memref<9x3x32xf32, #tpu.memory_space<vmem>>, vector<1x3x32xf32>
    %496 = vector.shape_cast %495 : vector<1x3x32xf32> to vector<3x32xf32>
    %cst_501 = arith.constant dense<0.000000e+00> : vector<128x32xf32>
    %497 = tpu.matmul %494, %496, %cst_501 {dimension_numbers = #tpu.dot_dimension_numbers<[1], [0], [0], [1], [0, 0, 1, 1], [], []>} : vector<128x3xf32>, vector<3x32xf32>, vector<128x32xf32> -> vector<128x32xf32>
    %498 = arith.addf %491, %497 : vector<128x32xf32>
    %c0_502 = arith.constant 0 : index
    %c25_503 = arith.constant 25 : index
    %c0_504 = arith.constant 0 : index
    %c0_505 = arith.constant 0 : index
    %499 = vector.load %arg2[%c0_502, %c25_503, %c0_504, %c0_505] : memref<1x34x17x3xf32, #tpu.memory_space<vmem>>, vector<1x8x16x3xf32>
    %500 = vector.shape_cast %499 : vector<1x8x16x3xf32> to vector<8x16x3xf32>
    %501 = vector.shape_cast %500 : vector<8x16x3xf32> to vector<128x3xf32>
    %c4_506 = arith.constant 4 : index
    %c0_507 = arith.constant 0 : index
    %c0_508 = arith.constant 0 : index
    %502 = vector.load %arg3[%c4_506, %c0_507, %c0_508] : memref<9x3x32xf32, #tpu.memory_space<vmem>>, vector<1x3x32xf32>
    %503 = vector.shape_cast %502 : vector<1x3x32xf32> to vector<3x32xf32>
    %cst_509 = arith.constant dense<0.000000e+00> : vector<128x32xf32>
    %504 = tpu.matmul %501, %503, %cst_509 {dimension_numbers = #tpu.dot_dimension_numbers<[1], [0], [0], [1], [0, 0, 1, 1], [], []>} : vector<128x3xf32>, vector<3x32xf32>, vector<128x32xf32> -> vector<128x32xf32>
    %505 = arith.addf %498, %504 : vector<128x32xf32>
    %c0_510 = arith.constant 0 : index
    %c25_511 = arith.constant 25 : index
    %c1_512 = arith.constant 1 : index
    %c0_513 = arith.constant 0 : index
    %506 = vector.load %arg1[%c0_510, %c25_511, %c1_512, %c0_513] : memref<1x34x17x3xf32, #tpu.memory_space<vmem>>, vector<1x8x16x3xf32>
    %507 = vector.shape_cast %506 : vector<1x8x16x3xf32> to vector<8x16x3xf32>
    %508 = vector.shape_cast %507 : vector<8x16x3xf32> to vector<128x3xf32>
    %c5_514 = arith.constant 5 : index
    %c0_515 = arith.constant 0 : index
    %c0_516 = arith.constant 0 : index
    %509 = vector.load %arg3[%c5_514, %c0_515, %c0_516] : memref<9x3x32xf32, #tpu.memory_space<vmem>>, vector<1x3x32xf32>
    %510 = vector.shape_cast %509 : vector<1x3x32xf32> to vector<3x32xf32>
    %cst_517 = arith.constant dense<0.000000e+00> : vector<128x32xf32>
    %511 = tpu.matmul %508, %510, %cst_517 {dimension_numbers = #tpu.dot_dimension_numbers<[1], [0], [0], [1], [0, 0, 1, 1], [], []>} : vector<128x3xf32>, vector<3x32xf32>, vector<128x32xf32> -> vector<128x32xf32>
    %512 = arith.addf %505, %511 : vector<128x32xf32>
    %c0_518 = arith.constant 0 : index
    %c26 = arith.constant 26 : index
    %c0_519 = arith.constant 0 : index
    %c0_520 = arith.constant 0 : index
    %513 = vector.load %arg1[%c0_518, %c26, %c0_519, %c0_520] : memref<1x34x17x3xf32, #tpu.memory_space<vmem>>, vector<1x8x16x3xf32>
    %514 = vector.shape_cast %513 : vector<1x8x16x3xf32> to vector<8x16x3xf32>
    %515 = vector.shape_cast %514 : vector<8x16x3xf32> to vector<128x3xf32>
    %c6_521 = arith.constant 6 : index
    %c0_522 = arith.constant 0 : index
    %c0_523 = arith.constant 0 : index
    %516 = vector.load %arg3[%c6_521, %c0_522, %c0_523] : memref<9x3x32xf32, #tpu.memory_space<vmem>>, vector<1x3x32xf32>
    %517 = vector.shape_cast %516 : vector<1x3x32xf32> to vector<3x32xf32>
    %cst_524 = arith.constant dense<0.000000e+00> : vector<128x32xf32>
    %518 = tpu.matmul %515, %517, %cst_524 {dimension_numbers = #tpu.dot_dimension_numbers<[1], [0], [0], [1], [0, 0, 1, 1], [], []>} : vector<128x3xf32>, vector<3x32xf32>, vector<128x32xf32> -> vector<128x32xf32>
    %519 = arith.addf %512, %518 : vector<128x32xf32>
    %c0_525 = arith.constant 0 : index
    %c26_526 = arith.constant 26 : index
    %c0_527 = arith.constant 0 : index
    %c0_528 = arith.constant 0 : index
    %520 = vector.load %arg2[%c0_525, %c26_526, %c0_527, %c0_528] : memref<1x34x17x3xf32, #tpu.memory_space<vmem>>, vector<1x8x16x3xf32>
    %521 = vector.shape_cast %520 : vector<1x8x16x3xf32> to vector<8x16x3xf32>
    %522 = vector.shape_cast %521 : vector<8x16x3xf32> to vector<128x3xf32>
    %c7_529 = arith.constant 7 : index
    %c0_530 = arith.constant 0 : index
    %c0_531 = arith.constant 0 : index
    %523 = vector.load %arg3[%c7_529, %c0_530, %c0_531] : memref<9x3x32xf32, #tpu.memory_space<vmem>>, vector<1x3x32xf32>
    %524 = vector.shape_cast %523 : vector<1x3x32xf32> to vector<3x32xf32>
    %cst_532 = arith.constant dense<0.000000e+00> : vector<128x32xf32>
    %525 = tpu.matmul %522, %524, %cst_532 {dimension_numbers = #tpu.dot_dimension_numbers<[1], [0], [0], [1], [0, 0, 1, 1], [], []>} : vector<128x3xf32>, vector<3x32xf32>, vector<128x32xf32> -> vector<128x32xf32>
    %526 = arith.addf %519, %525 : vector<128x32xf32>
    %c0_533 = arith.constant 0 : index
    %c26_534 = arith.constant 26 : index
    %c1_535 = arith.constant 1 : index
    %c0_536 = arith.constant 0 : index
    %527 = vector.load %arg1[%c0_533, %c26_534, %c1_535, %c0_536] : memref<1x34x17x3xf32, #tpu.memory_space<vmem>>, vector<1x8x16x3xf32>
    %528 = vector.shape_cast %527 : vector<1x8x16x3xf32> to vector<8x16x3xf32>
    %529 = vector.shape_cast %528 : vector<8x16x3xf32> to vector<128x3xf32>
    %c8_537 = arith.constant 8 : index
    %c0_538 = arith.constant 0 : index
    %c0_539 = arith.constant 0 : index
    %530 = vector.load %arg3[%c8_537, %c0_538, %c0_539] : memref<9x3x32xf32, #tpu.memory_space<vmem>>, vector<1x3x32xf32>
    %531 = vector.shape_cast %530 : vector<1x3x32xf32> to vector<3x32xf32>
    %cst_540 = arith.constant dense<0.000000e+00> : vector<128x32xf32>
    %532 = tpu.matmul %529, %531, %cst_540 {dimension_numbers = #tpu.dot_dimension_numbers<[1], [0], [0], [1], [0, 0, 1, 1], [], []>} : vector<128x3xf32>, vector<3x32xf32>, vector<128x32xf32> -> vector<128x32xf32>
    %533 = arith.addf %526, %532 : vector<128x32xf32>
    %534 = vector.broadcast %0 : vector<1x32xf32> to vector<128x32xf32>
    %535 = arith.addf %533, %534 : vector<128x32xf32>
    %cst_541 = arith.constant 0.000000e+00 : f32
    %536 = vector.broadcast %cst_541 : f32 to vector<128x32xf32>
    %537 = arith.maximumf %535, %536 : vector<128x32xf32>
    %c0_542 = arith.constant 0 : index
    %c24_543 = arith.constant 24 : index
    %c0_544 = arith.constant 0 : index
    %c0_545 = arith.constant 0 : index
    %538 = vector.load %arg2[%c0_542, %c24_543, %c0_544, %c0_545] : memref<1x34x17x3xf32, #tpu.memory_space<vmem>>, vector<1x8x16x3xf32>
    %539 = vector.shape_cast %538 : vector<1x8x16x3xf32> to vector<8x16x3xf32>
    %540 = vector.shape_cast %539 : vector<8x16x3xf32> to vector<128x3xf32>
    %c0_546 = arith.constant 0 : index
    %c0_547 = arith.constant 0 : index
    %c0_548 = arith.constant 0 : index
    %541 = vector.load %arg3[%c0_546, %c0_547, %c0_548] : memref<9x3x32xf32, #tpu.memory_space<vmem>>, vector<1x3x32xf32>
    %542 = vector.shape_cast %541 : vector<1x3x32xf32> to vector<3x32xf32>
    %cst_549 = arith.constant dense<0.000000e+00> : vector<128x32xf32>
    %543 = tpu.matmul %540, %542, %cst_549 {dimension_numbers = #tpu.dot_dimension_numbers<[1], [0], [0], [1], [0, 0, 1, 1], [], []>} : vector<128x3xf32>, vector<3x32xf32>, vector<128x32xf32> -> vector<128x32xf32>
    %c0_550 = arith.constant 0 : index
    %c24_551 = arith.constant 24 : index
    %c1_552 = arith.constant 1 : index
    %c0_553 = arith.constant 0 : index
    %544 = vector.load %arg1[%c0_550, %c24_551, %c1_552, %c0_553] : memref<1x34x17x3xf32, #tpu.memory_space<vmem>>, vector<1x8x16x3xf32>
    %545 = vector.shape_cast %544 : vector<1x8x16x3xf32> to vector<8x16x3xf32>
    %546 = vector.shape_cast %545 : vector<8x16x3xf32> to vector<128x3xf32>
    %c1_554 = arith.constant 1 : index
    %c0_555 = arith.constant 0 : index
    %c0_556 = arith.constant 0 : index
    %547 = vector.load %arg3[%c1_554, %c0_555, %c0_556] : memref<9x3x32xf32, #tpu.memory_space<vmem>>, vector<1x3x32xf32>
    %548 = vector.shape_cast %547 : vector<1x3x32xf32> to vector<3x32xf32>
    %cst_557 = arith.constant dense<0.000000e+00> : vector<128x32xf32>
    %549 = tpu.matmul %546, %548, %cst_557 {dimension_numbers = #tpu.dot_dimension_numbers<[1], [0], [0], [1], [0, 0, 1, 1], [], []>} : vector<128x3xf32>, vector<3x32xf32>, vector<128x32xf32> -> vector<128x32xf32>
    %550 = arith.addf %543, %549 : vector<128x32xf32>
    %c0_558 = arith.constant 0 : index
    %c24_559 = arith.constant 24 : index
    %c1_560 = arith.constant 1 : index
    %c0_561 = arith.constant 0 : index
    %551 = vector.load %arg2[%c0_558, %c24_559, %c1_560, %c0_561] : memref<1x34x17x3xf32, #tpu.memory_space<vmem>>, vector<1x8x16x3xf32>
    %552 = vector.shape_cast %551 : vector<1x8x16x3xf32> to vector<8x16x3xf32>
    %553 = vector.shape_cast %552 : vector<8x16x3xf32> to vector<128x3xf32>
    %c2_562 = arith.constant 2 : index
    %c0_563 = arith.constant 0 : index
    %c0_564 = arith.constant 0 : index
    %554 = vector.load %arg3[%c2_562, %c0_563, %c0_564] : memref<9x3x32xf32, #tpu.memory_space<vmem>>, vector<1x3x32xf32>
    %555 = vector.shape_cast %554 : vector<1x3x32xf32> to vector<3x32xf32>
    %cst_565 = arith.constant dense<0.000000e+00> : vector<128x32xf32>
    %556 = tpu.matmul %553, %555, %cst_565 {dimension_numbers = #tpu.dot_dimension_numbers<[1], [0], [0], [1], [0, 0, 1, 1], [], []>} : vector<128x3xf32>, vector<3x32xf32>, vector<128x32xf32> -> vector<128x32xf32>
    %557 = arith.addf %550, %556 : vector<128x32xf32>
    %c0_566 = arith.constant 0 : index
    %c25_567 = arith.constant 25 : index
    %c0_568 = arith.constant 0 : index
    %c0_569 = arith.constant 0 : index
    %558 = vector.load %arg2[%c0_566, %c25_567, %c0_568, %c0_569] : memref<1x34x17x3xf32, #tpu.memory_space<vmem>>, vector<1x8x16x3xf32>
    %559 = vector.shape_cast %558 : vector<1x8x16x3xf32> to vector<8x16x3xf32>
    %560 = vector.shape_cast %559 : vector<8x16x3xf32> to vector<128x3xf32>
    %c3_570 = arith.constant 3 : index
    %c0_571 = arith.constant 0 : index
    %c0_572 = arith.constant 0 : index
    %561 = vector.load %arg3[%c3_570, %c0_571, %c0_572] : memref<9x3x32xf32, #tpu.memory_space<vmem>>, vector<1x3x32xf32>
    %562 = vector.shape_cast %561 : vector<1x3x32xf32> to vector<3x32xf32>
    %cst_573 = arith.constant dense<0.000000e+00> : vector<128x32xf32>
    %563 = tpu.matmul %560, %562, %cst_573 {dimension_numbers = #tpu.dot_dimension_numbers<[1], [0], [0], [1], [0, 0, 1, 1], [], []>} : vector<128x3xf32>, vector<3x32xf32>, vector<128x32xf32> -> vector<128x32xf32>
    %564 = arith.addf %557, %563 : vector<128x32xf32>
    %c0_574 = arith.constant 0 : index
    %c25_575 = arith.constant 25 : index
    %c1_576 = arith.constant 1 : index
    %c0_577 = arith.constant 0 : index
    %565 = vector.load %arg1[%c0_574, %c25_575, %c1_576, %c0_577] : memref<1x34x17x3xf32, #tpu.memory_space<vmem>>, vector<1x8x16x3xf32>
    %566 = vector.shape_cast %565 : vector<1x8x16x3xf32> to vector<8x16x3xf32>
    %567 = vector.shape_cast %566 : vector<8x16x3xf32> to vector<128x3xf32>
    %c4_578 = arith.constant 4 : index
    %c0_579 = arith.constant 0 : index
    %c0_580 = arith.constant 0 : index
    %568 = vector.load %arg3[%c4_578, %c0_579, %c0_580] : memref<9x3x32xf32, #tpu.memory_space<vmem>>, vector<1x3x32xf32>
    %569 = vector.shape_cast %568 : vector<1x3x32xf32> to vector<3x32xf32>
    %cst_581 = arith.constant dense<0.000000e+00> : vector<128x32xf32>
    %570 = tpu.matmul %567, %569, %cst_581 {dimension_numbers = #tpu.dot_dimension_numbers<[1], [0], [0], [1], [0, 0, 1, 1], [], []>} : vector<128x3xf32>, vector<3x32xf32>, vector<128x32xf32> -> vector<128x32xf32>
    %571 = arith.addf %564, %570 : vector<128x32xf32>
    %c0_582 = arith.constant 0 : index
    %c25_583 = arith.constant 25 : index
    %c1_584 = arith.constant 1 : index
    %c0_585 = arith.constant 0 : index
    %572 = vector.load %arg2[%c0_582, %c25_583, %c1_584, %c0_585] : memref<1x34x17x3xf32, #tpu.memory_space<vmem>>, vector<1x8x16x3xf32>
    %573 = vector.shape_cast %572 : vector<1x8x16x3xf32> to vector<8x16x3xf32>
    %574 = vector.shape_cast %573 : vector<8x16x3xf32> to vector<128x3xf32>
    %c5_586 = arith.constant 5 : index
    %c0_587 = arith.constant 0 : index
    %c0_588 = arith.constant 0 : index
    %575 = vector.load %arg3[%c5_586, %c0_587, %c0_588] : memref<9x3x32xf32, #tpu.memory_space<vmem>>, vector<1x3x32xf32>
    %576 = vector.shape_cast %575 : vector<1x3x32xf32> to vector<3x32xf32>
    %cst_589 = arith.constant dense<0.000000e+00> : vector<128x32xf32>
    %577 = tpu.matmul %574, %576, %cst_589 {dimension_numbers = #tpu.dot_dimension_numbers<[1], [0], [0], [1], [0, 0, 1, 1], [], []>} : vector<128x3xf32>, vector<3x32xf32>, vector<128x32xf32> -> vector<128x32xf32>
    %578 = arith.addf %571, %577 : vector<128x32xf32>
    %c0_590 = arith.constant 0 : index
    %c26_591 = arith.constant 26 : index
    %c0_592 = arith.constant 0 : index
    %c0_593 = arith.constant 0 : index
    %579 = vector.load %arg2[%c0_590, %c26_591, %c0_592, %c0_593] : memref<1x34x17x3xf32, #tpu.memory_space<vmem>>, vector<1x8x16x3xf32>
    %580 = vector.shape_cast %579 : vector<1x8x16x3xf32> to vector<8x16x3xf32>
    %581 = vector.shape_cast %580 : vector<8x16x3xf32> to vector<128x3xf32>
    %c6_594 = arith.constant 6 : index
    %c0_595 = arith.constant 0 : index
    %c0_596 = arith.constant 0 : index
    %582 = vector.load %arg3[%c6_594, %c0_595, %c0_596] : memref<9x3x32xf32, #tpu.memory_space<vmem>>, vector<1x3x32xf32>
    %583 = vector.shape_cast %582 : vector<1x3x32xf32> to vector<3x32xf32>
    %cst_597 = arith.constant dense<0.000000e+00> : vector<128x32xf32>
    %584 = tpu.matmul %581, %583, %cst_597 {dimension_numbers = #tpu.dot_dimension_numbers<[1], [0], [0], [1], [0, 0, 1, 1], [], []>} : vector<128x3xf32>, vector<3x32xf32>, vector<128x32xf32> -> vector<128x32xf32>
    %585 = arith.addf %578, %584 : vector<128x32xf32>
    %c0_598 = arith.constant 0 : index
    %c26_599 = arith.constant 26 : index
    %c1_600 = arith.constant 1 : index
    %c0_601 = arith.constant 0 : index
    %586 = vector.load %arg1[%c0_598, %c26_599, %c1_600, %c0_601] : memref<1x34x17x3xf32, #tpu.memory_space<vmem>>, vector<1x8x16x3xf32>
    %587 = vector.shape_cast %586 : vector<1x8x16x3xf32> to vector<8x16x3xf32>
    %588 = vector.shape_cast %587 : vector<8x16x3xf32> to vector<128x3xf32>
    %c7_602 = arith.constant 7 : index
    %c0_603 = arith.constant 0 : index
    %c0_604 = arith.constant 0 : index
    %589 = vector.load %arg3[%c7_602, %c0_603, %c0_604] : memref<9x3x32xf32, #tpu.memory_space<vmem>>, vector<1x3x32xf32>
    %590 = vector.shape_cast %589 : vector<1x3x32xf32> to vector<3x32xf32>
    %cst_605 = arith.constant dense<0.000000e+00> : vector<128x32xf32>
    %591 = tpu.matmul %588, %590, %cst_605 {dimension_numbers = #tpu.dot_dimension_numbers<[1], [0], [0], [1], [0, 0, 1, 1], [], []>} : vector<128x3xf32>, vector<3x32xf32>, vector<128x32xf32> -> vector<128x32xf32>
    %592 = arith.addf %585, %591 : vector<128x32xf32>
    %c0_606 = arith.constant 0 : index
    %c26_607 = arith.constant 26 : index
    %c1_608 = arith.constant 1 : index
    %c0_609 = arith.constant 0 : index
    %593 = vector.load %arg2[%c0_606, %c26_607, %c1_608, %c0_609] : memref<1x34x17x3xf32, #tpu.memory_space<vmem>>, vector<1x8x16x3xf32>
    %594 = vector.shape_cast %593 : vector<1x8x16x3xf32> to vector<8x16x3xf32>
    %595 = vector.shape_cast %594 : vector<8x16x3xf32> to vector<128x3xf32>
    %c8_610 = arith.constant 8 : index
    %c0_611 = arith.constant 0 : index
    %c0_612 = arith.constant 0 : index
    %596 = vector.load %arg3[%c8_610, %c0_611, %c0_612] : memref<9x3x32xf32, #tpu.memory_space<vmem>>, vector<1x3x32xf32>
    %597 = vector.shape_cast %596 : vector<1x3x32xf32> to vector<3x32xf32>
    %cst_613 = arith.constant dense<0.000000e+00> : vector<128x32xf32>
    %598 = tpu.matmul %595, %597, %cst_613 {dimension_numbers = #tpu.dot_dimension_numbers<[1], [0], [0], [1], [0, 0, 1, 1], [], []>} : vector<128x3xf32>, vector<3x32xf32>, vector<128x32xf32> -> vector<128x32xf32>
    %599 = arith.addf %592, %598 : vector<128x32xf32>
    %600 = vector.broadcast %0 : vector<1x32xf32> to vector<128x32xf32>
    %601 = arith.addf %599, %600 : vector<128x32xf32>
    %cst_614 = arith.constant 0.000000e+00 : f32
    %602 = vector.broadcast %cst_614 : f32 to vector<128x32xf32>
    %603 = arith.maximumf %601, %602 : vector<128x32xf32>
    %604 = arith.maximumf %537, %603 : vector<128x32xf32>
    %605 = vector.extract_strided_slice %604 {offsets = [0, 0], sizes = [16, 32], strides = [1, 1]} : vector<128x32xf32> to vector<16x32xf32>
    %606 = vector.extract_strided_slice %604 {offsets = [16, 0], sizes = [16, 32], strides = [1, 1]} : vector<128x32xf32> to vector<16x32xf32>
    %607 = arith.maximumf %605, %606 : vector<16x32xf32>
    %c0_615 = arith.constant 0 : index
    %c12 = arith.constant 12 : index
    %c0_616 = arith.constant 0 : index
    %c0_617 = arith.constant 0 : index
    %608 = vector.load %arg5[%c0_615, %c12, %c0_616, %c0_617] : memref<1x16x16x32xf32, #tpu.memory_space<vmem>>, vector<1x1x16x32xf32>
    %609 = vector.shape_cast %608 : vector<1x1x16x32xf32> to vector<16x32xf32>
    %610 = vector.shape_cast %607 : vector<16x32xf32> to vector<1x1x16x32xf32>
    tpu.vector_store %arg5[%c0_615, %c12, %c0_616, %c0_617], %610 {strides = array<i32>} : memref<1x16x16x32xf32, #tpu.memory_space<vmem>>, vector<1x1x16x32xf32>,
    %611 = vector.extract_strided_slice %604 {offsets = [32, 0], sizes = [16, 32], strides = [1, 1]} : vector<128x32xf32> to vector<16x32xf32>
    %612 = vector.extract_strided_slice %604 {offsets = [48, 0], sizes = [16, 32], strides = [1, 1]} : vector<128x32xf32> to vector<16x32xf32>
    %613 = arith.maximumf %611, %612 : vector<16x32xf32>
    %c0_618 = arith.constant 0 : index
    %c13 = arith.constant 13 : index
    %c0_619 = arith.constant 0 : index
    %c0_620 = arith.constant 0 : index
    %614 = vector.load %arg5[%c0_618, %c13, %c0_619, %c0_620] : memref<1x16x16x32xf32, #tpu.memory_space<vmem>>, vector<1x1x16x32xf32>
    %615 = vector.shape_cast %614 : vector<1x1x16x32xf32> to vector<16x32xf32>
    %616 = vector.shape_cast %613 : vector<16x32xf32> to vector<1x1x16x32xf32>
    tpu.vector_store %arg5[%c0_618, %c13, %c0_619, %c0_620], %616 {strides = array<i32>} : memref<1x16x16x32xf32, #tpu.memory_space<vmem>>, vector<1x1x16x32xf32>,
    %617 = vector.extract_strided_slice %604 {offsets = [64, 0], sizes = [16, 32], strides = [1, 1]} : vector<128x32xf32> to vector<16x32xf32>
    %618 = vector.extract_strided_slice %604 {offsets = [80, 0], sizes = [16, 32], strides = [1, 1]} : vector<128x32xf32> to vector<16x32xf32>
    %619 = arith.maximumf %617, %618 : vector<16x32xf32>
    %c0_621 = arith.constant 0 : index
    %c14 = arith.constant 14 : index
    %c0_622 = arith.constant 0 : index
    %c0_623 = arith.constant 0 : index
    %620 = vector.load %arg5[%c0_621, %c14, %c0_622, %c0_623] : memref<1x16x16x32xf32, #tpu.memory_space<vmem>>, vector<1x1x16x32xf32>
    %621 = vector.shape_cast %620 : vector<1x1x16x32xf32> to vector<16x32xf32>
    %622 = vector.shape_cast %619 : vector<16x32xf32> to vector<1x1x16x32xf32>
    tpu.vector_store %arg5[%c0_621, %c14, %c0_622, %c0_623], %622 {strides = array<i32>} : memref<1x16x16x32xf32, #tpu.memory_space<vmem>>, vector<1x1x16x32xf32>,
    %623 = vector.extract_strided_slice %604 {offsets = [96, 0], sizes = [16, 32], strides = [1, 1]} : vector<128x32xf32> to vector<16x32xf32>
    %624 = vector.extract_strided_slice %604 {offsets = [112, 0], sizes = [16, 32], strides = [1, 1]} : vector<128x32xf32> to vector<16x32xf32>
    %625 = arith.maximumf %623, %624 : vector<16x32xf32>
    %c0_624 = arith.constant 0 : index
    %c15 = arith.constant 15 : index
    %c0_625 = arith.constant 0 : index
    %c0_626 = arith.constant 0 : index
    %626 = vector.load %arg5[%c0_624, %c15, %c0_625, %c0_626] : memref<1x16x16x32xf32, #tpu.memory_space<vmem>>, vector<1x1x16x32xf32>
    %627 = vector.shape_cast %626 : vector<1x1x16x32xf32> to vector<16x32xf32>
    %628 = vector.shape_cast %625 : vector<16x32xf32> to vector<1x1x16x32xf32>
    tpu.vector_store %arg5[%c0_624, %c15, %c0_625, %c0_626], %628 {strides = array<i32>} : memref<1x16x16x32xf32, #tpu.memory_space<vmem>>, vector<1x1x16x32xf32>,
    return
  }
  func.func @transform_0(%arg0: i32) -> (i32, i32, i32, i32) {
    %c0_i32 = arith.constant 0 : i32
    %c0_i32_0 = arith.constant 0 : i32
    %c0_i32_1 = arith.constant 0 : i32
    %c0_i32_2 = arith.constant 0 : i32
    return %arg0, %c0_i32, %c0_i32_0, %c0_i32_1 : i32, i32, i32, i32
  }
  func.func @transform_1(%arg0: i32) -> (i32, i32, i32, i32) {
    %c0_i32 = arith.constant 0 : i32
    %c0_i32_0 = arith.constant 0 : i32
    %c0_i32_1 = arith.constant 0 : i32
    %c0_i32_2 = arith.constant 0 : i32
    return %arg0, %c0_i32, %c0_i32_0, %c0_i32_1 : i32, i32, i32, i32
  }
  func.func @transform_2(%arg0: i32) -> (i32, i32, i32) {
    %c0_i32 = arith.constant 0 : i32
    %c0_i32_0 = arith.constant 0 : i32
    %c0_i32_1 = arith.constant 0 : i32
    %c0_i32_2 = arith.constant 0 : i32
    return %c0_i32, %c0_i32_0, %c0_i32_1 : i32, i32, i32
  }
  func.func @transform_3(%arg0: i32) -> (i32, i32) {
    %c0_i32 = arith.constant 0 : i32
    %c0_i32_0 = arith.constant 0 : i32
    %c0_i32_1 = arith.constant 0 : i32
    return %c0_i32, %c0_i32_0 : i32, i32
  }
  func.func @transform_4(%arg0: i32) -> (i32, i32, i32, i32) {
    %c0_i32 = arith.constant 0 : i32
    %c0_i32_0 = arith.constant 0 : i32
    %c0_i32_1 = arith.constant 0 : i32
    %c0_i32_2 = arith.constant 0 : i32
    return %arg0, %c0_i32, %c0_i32_0, %c0_i32_1 : i32, i32, i32, i32
  }
}

module attributes {stable_mosaic.version = 11 : i64} {
  func.func @_fc1_relu_fc2_kernel(%arg0: i32, %arg1: memref<8x4096xf32, #tpu.memory_space<vmem>>, %arg2: memref<4096x128xf32, #tpu.memory_space<vmem>>, %arg3: memref<1x128xf32, #tpu.memory_space<vmem>>, %arg4: memref<128x10xf32, #tpu.memory_space<vmem>>, %arg5: memref<1x10xf32, #tpu.memory_space<vmem>>, %arg6: memref<8x10xf32, #tpu.memory_space<vmem>>) attributes {dimension_semantics = [#tpu.dimension_semantics<parallel>], iteration_bounds = array<i64: 1>, scalar_prefetch = 0 : i64, scratch_operands = 0 : i64, tpu.core_type = #tpu.core_type<tc>, window_params = [{transform_indices = @transform_0, window_bounds = array<i64: 8, 4096>}, {pipeline_mode = #tpu.pipeline_mode<synchronous>, transform_indices = @transform_1, window_bounds = array<i64: 4096, 128>}, {pipeline_mode = #tpu.pipeline_mode<synchronous>, transform_indices = @transform_2, window_bounds = array<i64: 1, 128>}, {pipeline_mode = #tpu.pipeline_mode<synchronous>, transform_indices = @transform_3, window_bounds = array<i64: 128, 10>}, {pipeline_mode = #tpu.pipeline_mode<synchronous>, transform_indices = @transform_4, window_bounds = array<i64: 1, 10>}, {transform_indices = @transform_5, window_bounds = array<i64: 8, 10>}]} {
    %c0 = arith.constant 0 : index
    %c0_0 = arith.constant 0 : index
    %0 = vector.load %arg1[%c0, %c0_0] : memref<8x4096xf32, #tpu.memory_space<vmem>>, vector<8x4096xf32>
    %c0_1 = arith.constant 0 : index
    %c0_2 = arith.constant 0 : index
    %1 = vector.load %arg2[%c0_1, %c0_2] : memref<4096x128xf32, #tpu.memory_space<vmem>>, vector<4096x128xf32>
    %cst = arith.constant dense<0.000000e+00> : vector<8x128xf32>
    %2 = tpu.matmul %0, %1, %cst {dimension_numbers = #tpu.dot_dimension_numbers<[1], [0], [0], [1], [0, 0, 1, 1], [], []>} : vector<8x4096xf32>, vector<4096x128xf32>, vector<8x128xf32> -> vector<8x128xf32>
    %c0_3 = arith.constant 0 : index
    %c0_4 = arith.constant 0 : index
    %3 = vector.load %arg3[%c0_3, %c0_4] : memref<1x128xf32, #tpu.memory_space<vmem>>, vector<1x128xf32>
    %4 = vector.broadcast %3 : vector<1x128xf32> to vector<8x128xf32>
    %5 = arith.addf %2, %4 : vector<8x128xf32>
    %cst_5 = arith.constant 0.000000e+00 : f32
    %6 = vector.broadcast %cst_5 : f32 to vector<8x128xf32>
    %7 = arith.maximumf %5, %6 : vector<8x128xf32>
    %c0_6 = arith.constant 0 : index
    %c0_7 = arith.constant 0 : index
    %8 = vector.load %arg4[%c0_6, %c0_7] : memref<128x10xf32, #tpu.memory_space<vmem>>, vector<128x10xf32>
    %cst_8 = arith.constant dense<0.000000e+00> : vector<8x10xf32>
    %9 = tpu.matmul %7, %8, %cst_8 {dimension_numbers = #tpu.dot_dimension_numbers<[1], [0], [0], [1], [0, 0, 1, 1], [], []>} : vector<8x128xf32>, vector<128x10xf32>, vector<8x10xf32> -> vector<8x10xf32>
    %c0_9 = arith.constant 0 : index
    %c0_10 = arith.constant 0 : index
    %10 = vector.load %arg5[%c0_9, %c0_10] : memref<1x10xf32, #tpu.memory_space<vmem>>, vector<1x10xf32>
    %11 = vector.broadcast %10 : vector<1x10xf32> to vector<8x10xf32>
    %12 = arith.addf %9, %11 : vector<8x10xf32>
    %c0_11 = arith.constant 0 : index
    %c0_12 = arith.constant 0 : index
    %13 = vector.load %arg6[%c0_11, %c0_12] : memref<8x10xf32, #tpu.memory_space<vmem>>, vector<8x10xf32>
    tpu.vector_store %arg6[%c0_11, %c0_12], %12 {strides = array<i32>} : memref<8x10xf32, #tpu.memory_space<vmem>>, vector<8x10xf32>,
    return
  }
  func.func @transform_0(%arg0: i32) -> (i32, i32) {
    %c0_i32 = arith.constant 0 : i32
    %c0_i32_0 = arith.constant 0 : i32
    return %arg0, %c0_i32 : i32, i32
  }
  func.func @transform_1(%arg0: i32) -> (i32, i32) {
    %c0_i32 = arith.constant 0 : i32
    %c0_i32_0 = arith.constant 0 : i32
    %c0_i32_1 = arith.constant 0 : i32
    return %c0_i32, %c0_i32_0 : i32, i32
  }
  func.func @transform_2(%arg0: i32) -> (i32, i32) {
    %c0_i32 = arith.constant 0 : i32
    %c0_i32_0 = arith.constant 0 : i32
    %c0_i32_1 = arith.constant 0 : i32
    return %c0_i32, %c0_i32_0 : i32, i32
  }
  func.func @transform_3(%arg0: i32) -> (i32, i32) {
    %c0_i32 = arith.constant 0 : i32
    %c0_i32_0 = arith.constant 0 : i32
    %c0_i32_1 = arith.constant 0 : i32
    return %c0_i32, %c0_i32_0 : i32, i32
  }
  func.func @transform_4(%arg0: i32) -> (i32, i32) {
    %c0_i32 = arith.constant 0 : i32
    %c0_i32_0 = arith.constant 0 : i32
    %c0_i32_1 = arith.constant 0 : i32
    return %c0_i32, %c0_i32_0 : i32, i32
  }
  func.func @transform_5(%arg0: i32) -> (i32, i32) {
    %c0_i32 = arith.constant 0 : i32
    %c0_i32_0 = arith.constant 0 : i32
    return %arg0, %c0_i32 : i32, i32
  }
}

</mosaic_0001>

<bundles_post_ra>
// kernel: forward.5
= control target key start
LH: loop header
LB: loop body
LE: loop exit
PB: predicated region body
PF: predicated region fallthrough
CT: control target
= control target key end

     0   :  { %vm2945_vm0 = vmmov 0   ;;  %vm1785_vm1 = vcmask 80896   ;;  %s4666_s1 = inlined_call_operand.vmem [shape: f32[4096,128], index: 1, kind: input, shape index: {}]   ;;  %s4667_s0 = inlined_call_operand.vmem [shape: f32[8,4096], index: 0, kind: input, shape index: {}]   ;;  %s4668_s2 = inlined_call_operand.vmem [shape: f32[1,128], index: 2, kind: input, shape index: {}]   ;;  %s4669_s3 = inlined_call_operand.vmem [shape: f32[128,10], index: 3, kind: input, shape index: {}]   ;;  %s4670_s4 = inlined_call_operand.vmem [shape: f32[1,10], index: 4, kind: input, shape index: {}]   ;;  %s4671_s5 = inlined_call_operand.vmem [shape: f32[8,10], index: 5, kind: output, shape index: {}]  }
   0x1   :  { %v68_v0 = vld [vmem:[%s4666_s1 + $0x80] sm:$0xff]  ;;  %v69_v1 = vld [vmem:[%s4666_s1 + $0x88] sm:$0xff]  ;;  %v70_v11 = vld [vmem:[%s4666_s1 + $0x90] sm:$0xff] }
   0x2   :  { %v52_v2 = vld [vmem:[%s4666_s1] sm:$0xff]  ;;  %v2405_v3 = vpack.c.bf16 %v69_v1, %v68_v0  ;;  %v53_v4 = vld [vmem:[%s4666_s1 + $0x8] sm:$0xff]  ;;  %v71_v13 = vld [vmem:[%s4666_s1 + $0x98] sm:$0xff] }
   0x3   :  { %v100_v5 = vld [vmem:[%s4666_s1 + $0x180] sm:$0xff]  ;;  %v101_v6 = vld [vmem:[%s4666_s1 + $0x188] sm:$0xff]  ;;  %v2407_v7 = vpack.c.bf16 %v53_v4, %v52_v2  ;;  %v54_v14 = vld [vmem:[%s4666_s1 + $0x10] sm:$0xff]  ;;  %v2409_v16 = vpack.c.bf16 %v71_v13, %v70_v11 }
   0x4   :  { %v2437_v8 = vpack.c.bf16 %v101_v6, %v100_v5  ;;  %v84_v9 = vld [vmem:[%s4666_s1 + $0x100] sm:$0xff]  ;;  %v85_v10 = vld [vmem:[%s4666_s1 + $0x108] sm:$0xff]  ;;  %2406 = vmatprep.subr.bf16.mxu0 %v2405_v3  ;;  %v55_v15 = vld [vmem:[%s4666_s1 + $0x18] sm:$0xff] }
   0x5   :  { %v2439_v12 = vpack.c.bf16 %v85_v10, %v84_v9  ;;  %2408 = vmatpush3.bf16.msra.mxu0 %v2407_v7  ;;  %v2411_v17 = vpack.c.bf16 %v55_v15, %v54_v14  ;;  %v102_v18 = vld [vmem:[%s4666_s1 + $0x190] sm:$0xff]  ;;  %v103_v19 = vld [vmem:[%s4666_s1 + $0x198] sm:$0xff]  ;;  %v72_v23 = vld [vmem:[%s4666_s1 + $0xa0] sm:$0xff] }
   0x6   :  { %2438 = vmatprep.subr.bf16.mxu1 %v2437_v8  ;;  %v86_v20 = vld [vmem:[%s4666_s1 + $0x110] sm:$0xff]  ;;  %v2441_v21 = vpack.c.bf16 %v103_v19, %v102_v18  ;;  %v87_v22 = vld [vmem:[%s4666_s1 + $0x118] sm:$0xff]  ;;  %v73_v24 = vld [vmem:[%s4666_s1 + $0xa8] sm:$0xff]  ;;  %2410 = vmatprep.subr.bf16.mxu0 %v2409_v16 }
   0x7   :  { %2440 = vmatpush3.bf16.msra.mxu1 %v2439_v12  ;;  %v2443_v25 = vpack.c.bf16 %v87_v22, %v86_v20  ;;  %v2413_v26 = vpack.c.bf16 %v73_v24, %v72_v23  ;;  %v56_v27 = vld [vmem:[%s4666_s1 + $0x20] sm:$0xff]  ;;  %v57_v28 = vld [vmem:[%s4666_s1 + $0x28] sm:$0xff]  ;;  %v74_v35 = vld [vmem:[%s4666_s1 + $0xb0] sm:$0xff] }
   0x8   :  { %v104_v29 = vld [vmem:[%s4666_s1 + $0x1a0] sm:$0xff]  ;;  %2442 = vmatprep.subr.bf16.mxu1 %v2441_v21  ;;  %v105_v30 = vld [vmem:[%s4666_s1 + $0x1a8] sm:$0xff]  ;;  %v2415_v33 = vpack.c.bf16 %v57_v28, %v56_v27  ;;  %v75_v36 = vld [vmem:[%s4666_s1 + $0xb8] sm:$0xff] }
   0x9   :  { %v88_v31 = vld [vmem:[%s4666_s1 + $0x120] sm:$0xff]  ;;  %v89_v32 = vld [vmem:[%s4666_s1 + $0x128] sm:$0xff]  ;;  %2412 = vmatpush3.bf16.msra.mxu0 %v2411_v17  ;;  %v2445_v34 = vpack.c.bf16 %v105_v30, %v104_v29  ;;  %v58_v37 = vld [vmem:[%s4666_s1 + $0x30] sm:$0xff]  ;;  %v2417_v39 = vpack.c.bf16 %v75_v36, %v74_v35 }
   0xa   :  { %2414 = vmatprep.subr.bf16.mxu0 %v2413_v26  ;;  %v2447_v38 = vpack.c.bf16 %v89_v32, %v88_v31  ;;  %v59_v40 = vld [vmem:[%s4666_s1 + $0x38] sm:$0xff]  ;;  %v106_v41 = vld [vmem:[%s4666_s1 + $0x1b0] sm:$0xff]  ;;  %v76_v46 = vld [vmem:[%s4666_s1 + $0xc0] sm:$0xff] }
   0xb   :  { %2444 = vmatpush3.bf16.msra.mxu1 %v2443_v25  ;;  %v107_v42 = vld [vmem:[%s4666_s1 + $0x1b8] sm:$0xff]  ;;  %v90_v44 = vld [vmem:[%s4666_s1 + $0x130] sm:$0xff]  ;;  %v77_v47 = vld [vmem:[%s4666_s1 + $0xc8] sm:$0xff]  ;;  %v2419_v48 = vpack.c.bf16 %v59_v40, %v58_v37 }
   0xc   :  { %2446 = vmatprep.subr.bf16.mxu1 %v2445_v34  ;;  %v2449_v43 = vpack.c.bf16 %v107_v42, %v106_v41  ;;  %v91_v45 = vld [vmem:[%s4666_s1 + $0x138] sm:$0xff]  ;;  %v108_v49 = vld [vmem:[%s4666_s1 + $0x1c0] sm:$0xff]  ;;  %v109_v50 = vld [vmem:[%s4666_s1 + $0x1c8] sm:$0xff]  ;;  %v2421_v52 = vpack.c.bf16 %v77_v47, %v76_v46 }
   0xd   :  { %2416 = vmatpush3.bf16.msra.mxu0 %v2415_v33  ;;  %v2451_v51 = vpack.c.bf16 %v91_v45, %v90_v44  ;;  %v60_v53 = vld [vmem:[%s4666_s1 + $0x40] sm:$0xff]  ;;  %v61_v54 = vld [vmem:[%s4666_s1 + $0x48] sm:$0xff]  ;;  %v2453_v56 = vpack.c.bf16 %v109_v50, %v108_v49  ;;  %v78_v58 = vld [vmem:[%s4666_s1 + $0xd0] sm:$0xff] }
   0xe   :  { %2418 = vmatprep.subr.bf16.mxu0 %v2417_v39  ;;  %v92_v55 = vld [vmem:[%s4666_s1 + $0x140] sm:$0xff]  ;;  %v93_v57 = vld [vmem:[%s4666_s1 + $0x148] sm:$0xff]  ;;  %v79_v59 = vld [vmem:[%s4666_s1 + $0xd8] sm:$0xff]  ;;  %v2423_v62 = vpack.c.bf16 %v61_v54, %v60_v53 }
   0xf   :  { %2448 = vmatpush3.bf16.msra.mxu1 %v2447_v38  ;;  %v110_v60 = vld [vmem:[%s4666_s1 + $0x1d0] sm:$0xff]  ;;  %v111_v61 = vld [vmem:[%s4666_s1 + $0x1d8] sm:$0xff]  ;;  %v2455_v63 = vpack.c.bf16 %v93_v57, %v92_v55  ;;  %v2425_v0 = vpack.c.bf16 %v79_v59, %v78_v58  ;;  %v80_v6 = vld [vmem:[%s4666_s1 + $0xe0] sm:$0xff] }
  0x10   :  { %2450 = vmatprep.subr.bf16.mxu1 %v2449_v43  ;;  %v62_v1 = vld [vmem:[%s4666_s1 + $0x50] sm:$0xff]  ;;  %v63_v2 = vld [vmem:[%s4666_s1 + $0x58] sm:$0xff]  ;;  %v2457_v4 = vpack.c.bf16 %v111_v61, %v110_v60  ;;  %v81_v7 = vld [vmem:[%s4666_s1 + $0xe8] sm:$0xff] }
  0x11   :  { %2420 = vmatpush3.bf16.msra.mxu0 %v2419_v48  ;;  %v94_v3 = vld [vmem:[%s4666_s1 + $0x150] sm:$0xff]  ;;  %v95_v5 = vld [vmem:[%s4666_s1 + $0x158] sm:$0xff]  ;;  %v112_v8 = vld [vmem:[%s4666_s1 + $0x1e0] sm:$0xff]  ;;  %v2427_v10 = vpack.c.bf16 %v63_v2, %v62_v1  ;;  %v2429_v14 = vpack.c.bf16 %v81_v7, %v80_v6 }
  0x12   :  { %2422 = vmatprep.subr.bf16.mxu0 %v2421_v52  ;;  %v113_v9 = vld [vmem:[%s4666_s1 + $0x1e8] sm:$0xff]  ;;  %v64_v11 = vld [vmem:[%s4666_s1 + $0x60] sm:$0xff]  ;;  %v2459_v13 = vpack.c.bf16 %v95_v5, %v94_v3  ;;  %v82_v19 = vld [vmem:[%s4666_s1 + $0xf0] sm:$0xff] }
  0x13   :  { %2452 = vmatpush3.bf16.msra.mxu1 %v2451_v51  ;;  %v65_v12 = vld [vmem:[%s4666_s1 + $0x68] sm:$0xff]  ;;  %v96_v15 = vld [vmem:[%s4666_s1 + $0x160] sm:$0xff]  ;;  %v2461_v18 = vpack.c.bf16 %v113_v9, %v112_v8  ;;  %v83_v20 = vld [vmem:[%s4666_s1 + $0xf8] sm:$0xff] }
  0x14   :  { %2454 = vmatprep.subr.bf16.mxu1 %v2453_v56  ;;  %v97_v16 = vld [vmem:[%s4666_s1 + $0x168] sm:$0xff]  ;;  %v23_v21 = vld [vmem:[%s4667_s0 + $0x18] sm:$0xff]  ;;  %v114_v22 = vld [vmem:[%s4666_s1 + $0x1f0] sm:$0xff]  ;;  %v2431_v24 = vpack.c.bf16 %v65_v12, %v64_v11  ;;  %v2433_v26 = vpack.c.bf16 %v83_v20, %v82_v19 }
  0x15   :  { %2424 = vmatpush3.bf16.msra.mxu0 %v2423_v62  ;;  %v21_v17 = vld [vmem:[%s4667_s0 + $0x8] sm:$0xff]  ;;  %v115_v23 = vld [vmem:[%s4666_s1 + $0x1f8] sm:$0xff]  ;;  %705 = vmatprep.mubr.f32.mxu1 %v23_v21  ;;  %v2463_v25 = vpack.c.bf16 %v97_v16, %v96_v15  ;;  %v66_v27 = vld [vmem:[%s4666_s1 + $0x70] sm:$0xff] }
  0x16   :  { %2426 = vmatprep.subr.bf16.mxu0 %v2425_v0  ;;  %635 = vmatprep.mubr.f32.mxu0 %v21_v17  ;;  %v67_v28 = vld [vmem:[%s4666_s1 + $0x78] sm:$0xff]  ;;  %v98_v29 = vld [vmem:[%s4666_s1 + $0x170] sm:$0xff]  ;;  %v2465_v30 = vpack.c.bf16 %v115_v23, %v114_v22  ;;  %v132_v32 = vld [vmem:[%s4666_s1 + $0x280] sm:$0xff] }
  0x17   :  { %2456 = vmatpush3.bf16.msra.mxu1 %v2455_v63  ;;  %v99_v31 = vld [vmem:[%s4666_s1 + $0x178] sm:$0xff]  ;;  %v133_v33 = vld [vmem:[%s4666_s1 + $0x288] sm:$0xff]  ;;  %v164_v34 = vld [vmem:[%s4666_s1 + $0x380] sm:$0xff]  ;;  %v2435_v36 = vpack.c.bf16 %v67_v28, %v66_v27 }
  0x18   :  { %2458 = vmatprep.subr.bf16.mxu1 %v2457_v4  ;;  %v165_v35 = vld [vmem:[%s4666_s1 + $0x388] sm:$0xff]  ;;  %v2467_v37 = vpack.c.bf16 %v99_v31, %v98_v29  ;;  %v2469_v38 = vpack.c.bf16 %v133_v33, %v132_v32  ;;  %v116_v39 = vld [vmem:[%s4666_s1 + $0x200] sm:$0xff]  ;;  %v134_v44 = vld [vmem:[%s4666_s1 + $0x290] sm:$0xff] }
  0x19   :  { %2428 = vmatpush3.bf16.msra.mxu0 %v2427_v10  ;;  %v117_v40 = vld [vmem:[%s4666_s1 + $0x208] sm:$0xff]  ;;  %v148_v41 = vld [vmem:[%s4666_s1 + $0x300] sm:$0xff]  ;;  %v2501_v42 = vpack.c.bf16 %v165_v35, %v164_v34  ;;  %v135_v45 = vld [vmem:[%s4666_s1 + $0x298] sm:$0xff] }
  0x1a   :  { %2430 = vmatprep.subr.bf16.mxu0 %v2429_v14  ;;  %v149_v43 = vld [vmem:[%s4666_s1 + $0x308] sm:$0xff]  ;;  %v166_v46 = vld [vmem:[%s4666_s1 + $0x390] sm:$0xff]  ;;  %v167_v47 = vld [vmem:[%s4666_s1 + $0x398] sm:$0xff]  ;;  %v2471_v49 = vpack.c.bf16 %v117_v40, %v116_v39  ;;  %v2473_v52 = vpack.c.bf16 %v135_v45, %v134_v44 }
  0x1b   :  { %2460 = vmatpush3.bf16.msra.mxu1 %v2459_v13  ;;  %v20_v48 = vld [vmem:[%s4667_s0] sm:$0xff]  ;;  %v22_v50 = vld [vmem:[%s4667_s0 + $0x10] sm:$0xff]  ;;  %v2503_v51 = vpack.c.bf16 %v149_v43, %v148_v41  ;;  %v119_v54 = vld [vmem:[%s4666_s1 + $0x218] sm:$0xff]  ;;  %v2505_v56 = vpack.c.bf16 %v167_v47, %v166_v46 }
  0x1c   :  { %2462 = vmatprep.subr.bf16.mxu1 %v2461_v18  ;;  %v118_v53 = vld [vmem:[%s4666_s1 + $0x210] sm:$0xff]  ;;  %v151_v57 = vld [vmem:[%s4666_s1 + $0x318] sm:$0xff]  ;;  %v136_v58 = vld [vmem:[%s4666_s1 + $0x2a0] sm:$0xff] }
  0x1d   :  { %2432 = vmatpush3.bf16.msra.mxu0 %v2431_v24  ;;  %v150_v55 = vld [vmem:[%s4666_s1 + $0x310] sm:$0xff]  ;;  %v137_v59 = vld [vmem:[%s4666_s1 + $0x2a8] sm:$0xff]  ;;  %v168_v60 = vld [vmem:[%s4666_s1 + $0x3a0] sm:$0xff]  ;;  %v2475_v62 = vpack.c.bf16 %v119_v54, %v118_v53 }
  0x1e   :  { %2434 = vmatprep.subr.bf16.mxu0 %v2433_v26  ;;  %v169_v61 = vld [vmem:[%s4666_s1 + $0x3a8] sm:$0xff]  ;;  %v2507_v63 = vpack.c.bf16 %v151_v57, %v150_v55  ;;  %v2477_v0 = vpack.c.bf16 %v137_v59, %v136_v58  ;;  %v120_v1 = vld [vmem:[%s4666_s1 + $0x220] sm:$0xff]  ;;  %v138_v6 = vld [vmem:[%s4666_s1 + $0x2b0] sm:$0xff] }
  0x1f   :  { %2464 = vmatpush3.bf16.msra.mxu1 %v2463_v25  ;;  %v121_v2 = vld [vmem:[%s4666_s1 + $0x228] sm:$0xff]  ;;  %v152_v3 = vld [vmem:[%s4666_s1 + $0x320] sm:$0xff]  ;;  %v2509_v4 = vpack.c.bf16 %v169_v61, %v168_v60  ;;  %v139_v7 = vld [vmem:[%s4666_s1 + $0x2b8] sm:$0xff] }
  0x20   :  { %2466 = vmatprep.subr.bf16.mxu1 %v2465_v30  ;;  %v153_v5 = vld [vmem:[%s4666_s1 + $0x328] sm:$0xff]  ;;  %v170_v8 = vld [vmem:[%s4666_s1 + $0x3b0] sm:$0xff]  ;;  %v171_v9 = vld [vmem:[%s4666_s1 + $0x3b8] sm:$0xff]  ;;  %v2479_v10 = vpack.c.bf16 %v121_v2, %v120_v1  ;;  %v2481_v12 = vpack.c.bf16 %v139_v7, %v138_v6 }
  0x21   :  { %2436 = vmatpush3.bf16.msra.mxu0 %v2435_v36  ;;  %v2511_v11 = vpack.c.bf16 %v153_v5, %v152_v3  ;;  %v122_v13 = vld [vmem:[%s4666_s1 + $0x230] sm:$0xff]  ;;  %v123_v14 = vld [vmem:[%s4666_s1 + $0x238] sm:$0xff]  ;;  %v2513_v16 = vpack.c.bf16 %v171_v9, %v170_v8  ;;  %v140_v18 = vld [vmem:[%s4666_s1 + $0x2c0] sm:$0xff] }
  0x22   :  { %2470 = vmatprep.subr.bf16.mxu0 %v2469_v38  ;;  %v154_v15 = vld [vmem:[%s4666_s1 + $0x330] sm:$0xff]  ;;  %v155_v17 = vld [vmem:[%s4666_s1 + $0x338] sm:$0xff]  ;;  %v141_v19 = vld [vmem:[%s4666_s1 + $0x2c8] sm:$0xff]  ;;  %v2483_v22 = vpack.c.bf16 %v123_v14, %v122_v13 }
  0x23   :  { %2468 = vmatpush3.bf16.msra.mxu1 %v2467_v37  ;;  %v172_v20 = vld [vmem:[%s4666_s1 + $0x3c0] sm:$0xff]  ;;  %v173_v21 = vld [vmem:[%s4666_s1 + $0x3c8] sm:$0xff]  ;;  %v2515_v25 = vpack.c.bf16 %v155_v17, %v154_v15  ;;  %v2485_v26 = vpack.c.bf16 %v141_v19, %v140_v18  ;;  %v27_v29 = vld [vmem:[%s4667_s0 + $0x38] sm:$0xff] }
  0x24   :  { %2502 = vmatprep.subr.bf16.mxu1 %v2501_v42  ;;  %636 = vmatmul.mubr.f32.vlgmr.msra.gmra.mrb[0].mxu0 %v20_v48  ;;  %v124_v23 = vld [vmem:[%s4666_s1 + $0x240] sm:$0xff]  ;;  %v25_v24 = vld [vmem:[%s4667_s0 + $0x28] sm:$0xff]  ;;  %v2517_v30 = vpack.c.bf16 %v173_v21, %v172_v20  ;;  %v142_v32 = vld [vmem:[%s4666_s1 + $0x2d0] sm:$0xff] }
  0x25   :  { %2472 = vmatpush3.bf16.msra.mxu0 %v2471_v49  ;;  %v125_v27 = vld [vmem:[%s4666_s1 + $0x248] sm:$0xff]  ;;  %v156_v28 = vld [vmem:[%s4666_s1 + $0x340] sm:$0xff]  ;;  %v143_v33 = vld [vmem:[%s4666_s1 + $0x2d8] sm:$0xff]  ;;  %775 = vmatprep.mubr.f32.mxu0 %v25_v24 }
  0x26   :  { %706 = vmatmul.mubr.f32.vlgmr.msra.gmra.mrb[0].mxu1 %v22_v50  ;;  %2474 = vmatprep.subr.bf16.mxu0 %v2473_v52  ;;  %v157_v31 = vld [vmem:[%s4666_s1 + $0x348] sm:$0xff]  ;;  %v174_v34 = vld [vmem:[%s4666_s1 + $0x3d0] sm:$0xff]  ;;  %v175_v35 = vld [vmem:[%s4666_s1 + $0x3d8] sm:$0xff]  ;;  %v2487_v36 = vpack.c.bf16 %v125_v27, %v124_v23  ;;  %v2489_v38 = vpack.c.bf16 %v143_v33, %v142_v32 }
  0x27   :  { %2504 = vmatpush3.bf16.msra.mxu1 %v2503_v51  ;;  %845 = vmatprep.mubr.f32.mxu1 %v27_v29  ;;  %v2519_v37 = vpack.c.bf16 %v157_v31, %v156_v28  ;;  %v126_v39 = vld [vmem:[%s4666_s1 + $0x250] sm:$0xff]  ;;  %v127_v40 = vld [vmem:[%s4666_s1 + $0x258] sm:$0xff]  ;;  %v2521_v42 = vpack.c.bf16 %v175_v35, %v174_v34  ;;  %v144_v44 = vld [vmem:[%s4666_s1 + $0x2e0] sm:$0xff] }
  0x28   :  { %2506 = vmatprep.subr.bf16.mxu1 %v2505_v56  ;;  %v158_v41 = vld [vmem:[%s4666_s1 + $0x350] sm:$0xff]  ;;  %v159_v43 = vld [vmem:[%s4666_s1 + $0x358] sm:$0xff]  ;;  %v145_v45 = vld [vmem:[%s4666_s1 + $0x2e8] sm:$0xff]  ;;  %v2491_v48 = vpack.c.bf16 %v127_v40, %v126_v39 }
  0x29   :  { %2476 = vmatpush3.bf16.msra.mxu0 %v2475_v62  ;;  %v176_v46 = vld [vmem:[%s4666_s1 + $0x3e0] sm:$0xff]  ;;  %v177_v47 = vld [vmem:[%s4666_s1 + $0x3e8] sm:$0xff]  ;;  %v2523_v49 = vpack.c.bf16 %v159_v43, %v158_v41  ;;  %v2493_v50 = vpack.c.bf16 %v145_v45, %v144_v44  ;;  %v146_v56 = vld [vmem:[%s4666_s1 + $0x2f0] sm:$0xff] }
  0x2a   :  { %2478 = vmatprep.subr.bf16.mxu0 %v2477_v0  ;;  %v128_v51 = vld [vmem:[%s4666_s1 + $0x260] sm:$0xff]  ;;  %v129_v52 = vld [vmem:[%s4666_s1 + $0x268] sm:$0xff]  ;;  %v2525_v54 = vpack.c.bf16 %v177_v47, %v176_v46  ;;  %v147_v57 = vld [vmem:[%s4666_s1 + $0x2f8] sm:$0xff] }
  0x2b   :  { %2508 = vmatpush3.bf16.msra.mxu1 %v2507_v63  ;;  %v160_v53 = vld [vmem:[%s4666_s1 + $0x360] sm:$0xff]  ;;  %v161_v55 = vld [vmem:[%s4666_s1 + $0x368] sm:$0xff]  ;;  %v178_v58 = vld [vmem:[%s4666_s1 + $0x3f0] sm:$0xff]  ;;  %v2495_v60 = vpack.c.bf16 %v129_v52, %v128_v51  ;;  %v2497_v62 = vpack.c.bf16 %v147_v57, %v146_v56 }
  0x2c   :  { %2510 = vmatprep.subr.bf16.mxu1 %v2509_v4  ;;  %v179_v59 = vld [vmem:[%s4666_s1 + $0x3f8] sm:$0xff]  ;;  %v2527_v61 = vpack.c.bf16 %v161_v55, %v160_v53  ;;  %v130_v63 = vld [vmem:[%s4666_s1 + $0x270] sm:$0xff]  ;;  %v196_v4 = vld [vmem:[%s4666_s1 + $0x480] sm:$0xff] }
  0x2d   :  { %2480 = vmatpush3.bf16.msra.mxu0 %v2479_v10  ;;  %v131_v0 = vld [vmem:[%s4666_s1 + $0x278] sm:$0xff]  ;;  %v162_v1 = vld [vmem:[%s4666_s1 + $0x370] sm:$0xff]  ;;  %v2529_v2 = vpack.c.bf16 %v179_v59, %v178_v58  ;;  %v197_v5 = vld [vmem:[%s4666_s1 + $0x488] sm:$0xff] }
  0x2e   :  { %2482 = vmatprep.subr.bf16.mxu0 %v2481_v12  ;;  %v163_v3 = vld [vmem:[%s4666_s1 + $0x378] sm:$0xff]  ;;  %v228_v6 = vld [vmem:[%s4666_s1 + $0x580] sm:$0xff]  ;;  %v229_v7 = vld [vmem:[%s4666_s1 + $0x588] sm:$0xff]  ;;  %v2499_v8 = vpack.c.bf16 %v131_v0, %v130_v63  ;;  %v2533_v10 = vpack.c.bf16 %v197_v5, %v196_v4 }
  0x2f   :  { %2512 = vmatpush3.bf16.msra.mxu1 %v2511_v11  ;;  %v2531_v9 = vpack.c.bf16 %v163_v3, %v162_v1  ;;  %v180_v11 = vld [vmem:[%s4666_s1 + $0x400] sm:$0xff]  ;;  %v181_v12 = vld [vmem:[%s4666_s1 + $0x408] sm:$0xff]  ;;  %v2565_v14 = vpack.c.bf16 %v229_v7, %v228_v6  ;;  %v199_v17 = vld [vmem:[%s4666_s1 + $0x498] sm:$0xff] }
  0x30   :  { %2514 = vmatprep.subr.bf16.mxu1 %v2513_v16  ;;  %v212_v13 = vld [vmem:[%s4666_s1 + $0x500] sm:$0xff]  ;;  %v213_v15 = vld [vmem:[%s4666_s1 + $0x508] sm:$0xff]  ;;  %v198_v16 = vld [vmem:[%s4666_s1 + $0x490] sm:$0xff]  ;;  %v2535_v21 = vpack.c.bf16 %v181_v12, %v180_v11 }
  0x31   :  { %2484 = vmatpush3.bf16.msra.mxu0 %v2483_v22  ;;  %v230_v18 = vld [vmem:[%s4666_s1 + $0x590] sm:$0xff]  ;;  %v231_v19 = vld [vmem:[%s4666_s1 + $0x598] sm:$0xff]  ;;  %v24_v20 = vld [vmem:[%s4667_s0 + $0x20] sm:$0xff]  ;;  %v2567_v23 = vpack.c.bf16 %v213_v15, %v212_v13  ;;  %v2537_v24 = vpack.c.bf16 %v199_v17, %v198_v16 }
  0x32   :  { %2486 = vmatprep.subr.bf16.mxu0 %v2485_v26  ;;  %v26_v22 = vld [vmem:[%s4667_s0 + $0x30] sm:$0xff]  ;;  %v183_v26 = vld [vmem:[%s4666_s1 + $0x418] sm:$0xff]  ;;  %v2569_v28 = vpack.c.bf16 %v231_v19, %v230_v18  ;;  %v201_v31 = vld [vmem:[%s4666_s1 + $0x4a8] sm:$0xff] }
  0x33   :  { %2516 = vmatpush3.bf16.msra.mxu1 %v2515_v25  ;;  %v182_v25 = vld [vmem:[%s4666_s1 + $0x410] sm:$0xff]  ;;  %v215_v29 = vld [vmem:[%s4666_s1 + $0x518] sm:$0xff]  ;;  %v232_v32 = vld [vmem:[%s4666_s1 + $0x5a0] sm:$0xff] }
  0x34   :  { %2518 = vmatprep.subr.bf16.mxu1 %v2517_v30  ;;  %v214_v27 = vld [vmem:[%s4666_s1 + $0x510] sm:$0xff]  ;;  %v200_v30 = vld [vmem:[%s4666_s1 + $0x4a0] sm:$0xff]  ;;  %v233_v33 = vld [vmem:[%s4666_s1 + $0x5a8] sm:$0xff]  ;;  %v2539_v35 = vpack.c.bf16 %v183_v26, %v182_v25 }
  0x35   :  { %2488 = vmatpush3.bf16.msra.mxu0 %v2487_v36  ;;  %v29_v34 = vld [vmem:[%s4667_s0 + $0x48] sm:$0xff]  ;;  %v31_v36 = vld [vmem:[%s4667_s0 + $0x58] sm:$0xff]  ;;  %v184_v39 = vld [vmem:[%s4666_s1 + $0x420] sm:$0xff] }
  0x36   :  { %2490 = vmatprep.subr.bf16.mxu0 %v2489_v38  ;;  %v2541_v38 = vpack.c.bf16 %v201_v31, %v200_v30  ;;  %v185_v40 = vld [vmem:[%s4666_s1 + $0x428] sm:$0xff]  ;;  %v216_v41 = vld [vmem:[%s4666_s1 + $0x520] sm:$0xff]  ;;  %v202_v44 = vld [vmem:[%s4666_s1 + $0x4b0] sm:$0xff] }
  0x37   :  { %2520 = vmatpush3.bf16.msra.mxu1 %v2519_v37  ;;  %v2571_v37 = vpack.c.bf16 %v215_v29, %v214_v27  ;;  %v217_v43 = vld [vmem:[%s4666_s1 + $0x528] sm:$0xff]  ;;  %v203_v45 = vld [vmem:[%s4666_s1 + $0x4b8] sm:$0xff]  ;;  %v234_v46 = vld [vmem:[%s4666_s1 + $0x5b0] sm:$0xff] }
  0x38   :  { %2522 = vmatprep.subr.bf16.mxu1 %v2521_v42  ;;  %v2573_v42 = vpack.c.bf16 %v233_v33, %v232_v32  ;;  %v235_v47 = vld [vmem:[%s4666_s1 + $0x5b8] sm:$0xff]  ;;  %v186_v51 = vld [vmem:[%s4666_s1 + $0x430] sm:$0xff]  ;;  %v204_v56 = vld [vmem:[%s4666_s1 + $0x4c0] sm:$0xff] }
  0x39   :  { %2492 = vmatpush3.bf16.msra.mxu0 %v2491_v48  ;;  %v2543_v48 = vpack.c.bf16 %v185_v40, %v184_v39  ;;  %v187_v52 = vld [vmem:[%s4666_s1 + $0x438] sm:$0xff]  ;;  %v218_v53 = vld [vmem:[%s4666_s1 + $0x530] sm:$0xff]  ;;  %v205_v57 = vld [vmem:[%s4666_s1 + $0x4c8] sm:$0xff] }
  0x3a   :  { %2494 = vmatprep.subr.bf16.mxu0 %v2493_v50  ;;  %v2545_v50 = vpack.c.bf16 %v203_v45, %v202_v44  ;;  %v219_v55 = vld [vmem:[%s4666_s1 + $0x538] sm:$0xff]  ;;  %v236_v58 = vld [vmem:[%s4666_s1 + $0x5c0] sm:$0xff]  ;;  %v237_v59 = vld [vmem:[%s4666_s1 + $0x5c8] sm:$0xff] }
  0x3b   :  { %2524 = vmatpush3.bf16.msra.mxu1 %v2523_v49  ;;  %v2575_v49 = vpack.c.bf16 %v217_v43, %v216_v41  ;;  %v188_v63 = vld [vmem:[%s4666_s1 + $0x440] sm:$0xff]  ;;  %v189_v0 = vld [vmem:[%s4666_s1 + $0x448] sm:$0xff]  ;;  %v206_v4 = vld [vmem:[%s4666_s1 + $0x4d0] sm:$0xff] }
  0x3c   :  { %2526 = vmatprep.subr.bf16.mxu1 %v2525_v54  ;;  %v2577_v54 = vpack.c.bf16 %v235_v47, %v234_v46  ;;  %v220_v1 = vld [vmem:[%s4666_s1 + $0x540] sm:$0xff]  ;;  %v221_v3 = vld [vmem:[%s4666_s1 + $0x548] sm:$0xff]  ;;  %v207_v5 = vld [vmem:[%s4666_s1 + $0x4d8] sm:$0xff] }
  0x3d   :  { %2496 = vmatpush3.bf16.msra.mxu0 %v2495_v60  ;;  %v2547_v60 = vpack.c.bf16 %v187_v52, %v186_v51  ;;  %v238_v6 = vld [vmem:[%s4666_s1 + $0x5d0] sm:$0xff]  ;;  %v239_v7 = vld [vmem:[%s4666_s1 + $0x5d8] sm:$0xff]  ;;  %v208_v16 = vld [vmem:[%s4666_s1 + $0x4e0] sm:$0xff] }
  0x3e   :  { %2498 = vmatprep.subr.bf16.mxu0 %v2497_v62  ;;  %v2549_v62 = vpack.c.bf16 %v205_v57, %v204_v56  ;;  %v190_v11 = vld [vmem:[%s4666_s1 + $0x450] sm:$0xff]  ;;  %v191_v12 = vld [vmem:[%s4666_s1 + $0x458] sm:$0xff]  ;;  %v209_v17 = vld [vmem:[%s4666_s1 + $0x4e8] sm:$0xff] }
  0x3f   :  { %2528 = vmatpush3.bf16.msra.mxu1 %v2527_v61  ;;  %v2579_v61 = vpack.c.bf16 %v219_v55, %v218_v53  ;;  %v222_v13 = vld [vmem:[%s4666_s1 + $0x550] sm:$0xff]  ;;  %v223_v15 = vld [vmem:[%s4666_s1 + $0x558] sm:$0xff]  ;;  %v240_v18 = vld [vmem:[%s4666_s1 + $0x5e0] sm:$0xff] }
  0x40   :  { %2530 = vmatprep.subr.bf16.mxu1 %v2529_v2  ;;  %v2581_v2 = vpack.c.bf16 %v237_v59, %v236_v58  ;;  %v241_v19 = vld [vmem:[%s4666_s1 + $0x5e8] sm:$0xff]  ;;  %v224_v25 = vld [vmem:[%s4666_s1 + $0x560] sm:$0xff]  ;;  %v211_v29 = vld [vmem:[%s4666_s1 + $0x4f8] sm:$0xff] }
  0x41   :  { %2500 = vmatpush3.bf16.msra.mxu0 %v2499_v8  ;;  %v2551_v8 = vpack.c.bf16 %v189_v0, %v188_v63  ;;  %v2589_v26 = vpack.c.bf16 %v241_v19, %v240_v18  ;;  %v225_v27 = vld [vmem:[%s4666_s1 + $0x568] sm:$0xff]  ;;  %v242_v30 = vld [vmem:[%s4666_s1 + $0x5f0] sm:$0xff]  ;;  %v243_v31 = vld [vmem:[%s4666_s1 + $0x5f8] sm:$0xff] }
  0x42   :  { %2534 = vmatprep.subr.bf16.mxu0 %v2533_v10  ;;  %v2553_v10 = vpack.c.bf16 %v207_v5, %v206_v4  ;;  %v2591_v33 = vpack.c.bf16 %v225_v27, %v224_v25  ;;  %v227_v39 = vld [vmem:[%s4666_s1 + $0x578] sm:$0xff]  ;;  %v260_v40 = vld [vmem:[%s4666_s1 + $0x680] sm:$0xff]  ;;  %v261_v41 = vld [vmem:[%s4666_s1 + $0x688] sm:$0xff] }
  0x43   :  { %2532 = vmatpush3.bf16.msra.mxu1 %v2531_v9  ;;  %v2583_v9 = vpack.c.bf16 %v221_v3, %v220_v1  ;;  %v293_v43 = vld [vmem:[%s4666_s1 + $0x788] sm:$0xff]  ;;  %v2597_v46 = vpack.c.bf16 %v261_v41, %v260_v40  ;;  %v244_v47 = vld [vmem:[%s4666_s1 + $0x600] sm:$0xff]  ;;  %v262_v52 = vld [vmem:[%s4666_s1 + $0x690] sm:$0xff] }
  0x44   :  { %2566 = vmatprep.subr.bf16.mxu1 %v2565_v14  ;;  %776 = vmatmul.mubr.f32.vlgmr.msra.gmra.mrb[2].mxu0 %v24_v20  ;;  %v2585_v14 = vpack.c.bf16 %v239_v7, %v238_v6  ;;  %v2555_v20 = vpack.c.bf16 %v191_v12, %v190_v11  ;;  %v277_v51 = vld [vmem:[%s4666_s1 + $0x708] sm:$0xff]  ;;  %v263_v53 = vld [vmem:[%s4666_s1 + $0x698] sm:$0xff]  ;;  %v28_v56 = vld [vmem:[%s4667_s0 + $0x40] sm:$0xff] }
  0x45   :  { %2536 = vmatpush3.bf16.msra.mxu0 %v2535_v21  ;;  %915 = vmatprep.mubr.f32.mxu0 %v29_v34  ;;  %v2587_v21 = vpack.c.bf16 %v223_v15, %v222_v13  ;;  %v295_v55 = vld [vmem:[%s4666_s1 + $0x798] sm:$0xff]  ;;  %v30_v58 = vld [vmem:[%s4667_s0 + $0x50] sm:$0xff]  ;;  %v265_v3 = vld [vmem:[%s4666_s1 + $0x6a8] sm:$0xff] }
  0x46   :  { %846 = vmatmul.mubr.f32.vlgmr.msra.gmra.mrb[2].mxu1 %v26_v22  ;;  %2538 = vmatprep.subr.bf16.mxu0 %v2537_v24  ;;  %v2557_v22 = vpack.c.bf16 %v209_v17, %v208_v16  ;;  %v193_v24 = vld [vmem:[%s4666_s1 + $0x468] sm:$0xff]  ;;  %v278_v63 = vld [vmem:[%s4666_s1 + $0x710] sm:$0xff]  ;;  %v279_v1 = vld [vmem:[%s4666_s1 + $0x718] sm:$0xff] }
  0x47   :  { %2568 = vmatpush3.bf16.msra.mxu1 %v2567_v23  ;;  %985 = vmatprep.mubr.f32.mxu1 %v31_v36  ;;  %v192_v23 = vld [vmem:[%s4666_s1 + $0x460] sm:$0xff]  ;;  %v195_v36 = vld [vmem:[%s4666_s1 + $0x478] sm:$0xff]  ;;  %v297_v5 = vld [vmem:[%s4666_s1 + $0x7a8] sm:$0xff] }
  0x48   :  { %2570 = vmatprep.subr.bf16.mxu1 %v2569_v28  ;;  %v210_v28 = vld [vmem:[%s4666_s1 + $0x4f0] sm:$0xff]  ;;  %v2559_v32 = vpack.c.bf16 %v193_v24, %v192_v23  ;;  %v296_v4 = vld [vmem:[%s4666_s1 + $0x7a0] sm:$0xff]  ;;  %v33_v6 = vld [vmem:[%s4667_s0 + $0x68] sm:$0xff] }
  0x49   :  { %2540 = vmatpush3.bf16.msra.mxu0 %v2539_v35  ;;  %v2561_v34 = vpack.c.bf16 %v211_v29, %v210_v28  ;;  %v194_v35 = vld [vmem:[%s4666_s1 + $0x470] sm:$0xff]  ;;  %v248_v11 = vld [vmem:[%s4666_s1 + $0x620] sm:$0xff]  ;;  %v249_v12 = vld [vmem:[%s4666_s1 + $0x628] sm:$0xff] }
  0x4a   :  { %2542 = vmatprep.subr.bf16.mxu0 %v2541_v38  ;;  %v2593_v38 = vpack.c.bf16 %v243_v31, %v242_v30  ;;  %v2563_v44 = vpack.c.bf16 %v195_v36, %v194_v35  ;;  %v280_v13 = vld [vmem:[%s4666_s1 + $0x720] sm:$0xff]  ;;  %v281_v15 = vld [vmem:[%s4666_s1 + $0x728] sm:$0xff]  ;;  %v266_v16 = vld [vmem:[%s4666_s1 + $0x6b0] sm:$0xff] }
  0x4b   :  { %2572 = vmatpush3.bf16.msra.mxu1 %v2571_v37  ;;  %v226_v37 = vld [vmem:[%s4666_s1 + $0x570] sm:$0xff]  ;;  %v267_v17 = vld [vmem:[%s4666_s1 + $0x6b8] sm:$0xff]  ;;  %v268_v28 = vld [vmem:[%s4666_s1 + $0x6c0] sm:$0xff] }
  0x4c   :  { %2574 = vmatprep.subr.bf16.mxu1 %v2573_v42  ;;  %v292_v42 = vld [vmem:[%s4666_s1 + $0x780] sm:$0xff]  ;;  %v2595_v45 = vpack.c.bf16 %v227_v39, %v226_v37  ;;  %v298_v18 = vld [vmem:[%s4666_s1 + $0x7b0] sm:$0xff]  ;;  %v299_v19 = vld [vmem:[%s4666_s1 + $0x7b8] sm:$0xff] }
  0x4d   :  { %2544 = vmatpush3.bf16.msra.mxu0 %v2543_v48  ;;  %v245_v48 = vld [vmem:[%s4666_s1 + $0x608] sm:$0xff]  ;;  %v250_v23 = vld [vmem:[%s4666_s1 + $0x630] sm:$0xff]  ;;  %v251_v24 = vld [vmem:[%s4666_s1 + $0x638] sm:$0xff] }
  0x4e   :  { %2546 = vmatprep.subr.bf16.mxu0 %v2545_v50  ;;  %v2629_v50 = vpack.c.bf16 %v293_v43, %v292_v42  ;;  %v2599_v57 = vpack.c.bf16 %v245_v48, %v244_v47  ;;  %v282_v25 = vld [vmem:[%s4666_s1 + $0x730] sm:$0xff]  ;;  %v283_v27 = vld [vmem:[%s4666_s1 + $0x738] sm:$0xff]  ;;  %v269_v29 = vld [vmem:[%s4666_s1 + $0x6c8] sm:$0xff] }
  0x4f   :  { %2576 = vmatpush3.bf16.msra.mxu1 %v2575_v49  ;;  %v276_v49 = vld [vmem:[%s4666_s1 + $0x700] sm:$0xff]  ;;  %v301_v31 = vld [vmem:[%s4666_s1 + $0x7c8] sm:$0xff]  ;;  %v270_v40 = vld [vmem:[%s4666_s1 + $0x6d0] sm:$0xff] }
  0x50   :  { %2578 = vmatprep.subr.bf16.mxu1 %v2577_v54  ;;  %v294_v54 = vld [vmem:[%s4666_s1 + $0x790] sm:$0xff]  ;;  %v2631_v59 = vpack.c.bf16 %v277_v51, %v276_v49  ;;  %v300_v30 = vld [vmem:[%s4666_s1 + $0x7c0] sm:$0xff]  ;;  %v253_v36 = vld [vmem:[%s4666_s1 + $0x648] sm:$0xff] }
  0x51   :  { %2548 = vmatpush3.bf16.msra.mxu0 %v2547_v60  ;;  %v2601_v60 = vpack.c.bf16 %v263_v53, %v262_v52  ;;  %v2633_v0 = vpack.c.bf16 %v295_v55, %v294_v54  ;;  %v252_v35 = vld [vmem:[%s4666_s1 + $0x640] sm:$0xff]  ;;  %v285_v39 = vld [vmem:[%s4666_s1 + $0x748] sm:$0xff]  ;;  %v271_v41 = vld [vmem:[%s4666_s1 + $0x6d8] sm:$0xff] }
  0x52   :  { %2550 = vmatprep.subr.bf16.mxu0 %v2549_v62  ;;  %v247_v62 = vld [vmem:[%s4666_s1 + $0x618] sm:$0xff]  ;;  %v284_v37 = vld [vmem:[%s4666_s1 + $0x740] sm:$0xff]  ;;  %v302_v42 = vld [vmem:[%s4666_s1 + $0x7d0] sm:$0xff] }
  0x53   :  { %2580 = vmatpush3.bf16.msra.mxu1 %v2579_v61  ;;  %v246_v61 = vld [vmem:[%s4666_s1 + $0x610] sm:$0xff]  ;;  %v303_v43 = vld [vmem:[%s4666_s1 + $0x7d8] sm:$0xff]  ;;  %v272_v52 = vld [vmem:[%s4666_s1 + $0x6e0] sm:$0xff] }
  0x54   :  { %2582 = vmatprep.subr.bf16.mxu1 %v2581_v2  ;;  %v264_v2 = vld [vmem:[%s4666_s1 + $0x6a0] sm:$0xff]  ;;  %v2603_v7 = vpack.c.bf16 %v247_v62, %v246_v61  ;;  %v254_v47 = vld [vmem:[%s4666_s1 + $0x650] sm:$0xff]  ;;  %v255_v48 = vld [vmem:[%s4666_s1 + $0x658] sm:$0xff] }
  0x55   :  { %2552 = vmatpush3.bf16.msra.mxu0 %v2551_v8  ;;  %v35_v8 = vld [vmem:[%s4667_s0 + $0x78] sm:$0xff]  ;;  %v286_v49 = vld [vmem:[%s4666_s1 + $0x750] sm:$0xff]  ;;  %v273_v53 = vld [vmem:[%s4666_s1 + $0x6e8] sm:$0xff] }
  0x56   :  { %2554 = vmatprep.subr.bf16.mxu0 %v2553_v10  ;;  %v2605_v10 = vpack.c.bf16 %v265_v3, %v264_v2  ;;  %v287_v51 = vld [vmem:[%s4666_s1 + $0x758] sm:$0xff]  ;;  %v304_v54 = vld [vmem:[%s4666_s1 + $0x7e0] sm:$0xff]  ;;  %v305_v55 = vld [vmem:[%s4666_s1 + $0x7e8] sm:$0xff] }
  0x57   :  { %2584 = vmatpush3.bf16.msra.mxu1 %v2583_v9  ;;  %v2635_v9 = vpack.c.bf16 %v279_v1, %v278_v63  ;;  %v288_v61 = vld [vmem:[%s4666_s1 + $0x760] sm:$0xff]  ;;  %v2653_v62 = vpack.c.bf16 %v305_v55, %v304_v54  ;;  %v289_v63 = vld [vmem:[%s4666_s1 + $0x768] sm:$0xff]  ;;  %v275_v1 = vld [vmem:[%s4666_s1 + $0x6f8] sm:$0xff] }
  0x58   :  { %2586 = vmatprep.subr.bf16.mxu1 %v2585_v14  ;;  %v2637_v14 = vpack.c.bf16 %v297_v5, %v296_v4  ;;  %v306_v2 = vld [vmem:[%s4666_s1 + $0x7f0] sm:$0xff]  ;;  %v307_v3 = vld [vmem:[%s4666_s1 + $0x7f8] sm:$0xff]  ;;  %v2655_v5 = vpack.c.bf16 %v289_v63, %v288_v61 }
  0x59   :  { %2556 = vmatpush3.bf16.msra.mxu0 %v2555_v20  ;;  %v2607_v20 = vpack.c.bf16 %v249_v12, %v248_v11  ;;  %v291_v11 = vld [vmem:[%s4666_s1 + $0x778] sm:$0xff]  ;;  %v324_v12 = vld [vmem:[%s4666_s1 + $0x880] sm:$0xff]  ;;  %v362_v54 = vld [vmem:[%s4666_s1 + $0x9b0] sm:$0xff] }
  0x5a   :  { %2558 = vmatprep.subr.bf16.mxu0 %v2557_v22  ;;  %v2609_v22 = vpack.c.bf16 %v267_v17, %v266_v16  ;;  %v363_v55 = vld [vmem:[%s4666_s1 + $0x9b8] sm:$0xff]  ;;  %v346_v61 = vld [vmem:[%s4666_s1 + $0x930] sm:$0xff] }
  0x5b   :  { %2588 = vmatpush3.bf16.msra.mxu1 %v2587_v21  ;;  %v2639_v21 = vpack.c.bf16 %v281_v15, %v280_v13  ;;  %v325_v13 = vld [vmem:[%s4666_s1 + $0x888] sm:$0xff]  ;;  %v347_v63 = vld [vmem:[%s4666_s1 + $0x938] sm:$0xff] }
  0x5c   :  { %2590 = vmatprep.subr.bf16.mxu1 %v2589_v26  ;;  %v2641_v26 = vpack.c.bf16 %v299_v19, %v298_v18  ;;  %v357_v15 = vld [vmem:[%s4666_s1 + $0x988] sm:$0xff]  ;;  %v2661_v18 = vpack.c.bf16 %v325_v13, %v324_v12  ;;  %v308_v19 = vld [vmem:[%s4666_s1 + $0x800] sm:$0xff]  ;;  %v334_v12 = vld [vmem:[%s4666_s1 + $0x8d0] sm:$0xff] }
  0x5d   :  { %2560 = vmatpush3.bf16.msra.mxu0 %v2559_v32  ;;  %v2611_v32 = vpack.c.bf16 %v251_v24, %v250_v23  ;;  %v341_v23 = vld [vmem:[%s4666_s1 + $0x908] sm:$0xff]  ;;  %v326_v24 = vld [vmem:[%s4666_s1 + $0x890] sm:$0xff]  ;;  %v335_v13 = vld [vmem:[%s4666_s1 + $0x8d8] sm:$0xff] }
  0x5e   :  { %2562 = vmatprep.subr.bf16.mxu0 %v2561_v34  ;;  %v2613_v34 = vpack.c.bf16 %v269_v29, %v268_v28  ;;  %v32_v28 = vld [vmem:[%s4667_s0 + $0x60] sm:$0xff] }
  0x5f   :  { %2592 = vmatpush3.bf16.msra.mxu1 %v2591_v33  ;;  %v2643_v33 = vpack.c.bf16 %v283_v27, %v282_v25  ;;  %v327_v25 = vld [vmem:[%s4666_s1 + $0x898] sm:$0xff] }
  0x60   :  { %2594 = vmatprep.subr.bf16.mxu1 %v2593_v38  ;;  %v2645_v38 = vpack.c.bf16 %v301_v31, %v300_v30  ;;  %v359_v27 = vld [vmem:[%s4666_s1 + $0x998] sm:$0xff]  ;;  %v34_v30 = vld [vmem:[%s4667_s0 + $0x70] sm:$0xff] }
  0x61   :  { %2564 = vmatpush3.bf16.msra.mxu0 %v2563_v44  ;;  %v2615_v44 = vpack.c.bf16 %v253_v36, %v252_v35  ;;  %v342_v35 = vld [vmem:[%s4666_s1 + $0x910] sm:$0xff] }
  0x62   :  { %2598 = vmatprep.subr.bf16.mxu0 %v2597_v46  ;;  %v2617_v46 = vpack.c.bf16 %v271_v41, %v270_v40  ;;  %v360_v40 = vld [vmem:[%s4666_s1 + $0x9a0] sm:$0xff]  ;;  %v361_v41 = vld [vmem:[%s4666_s1 + $0x9a8] sm:$0xff] }
  0x63   :  { %2596 = vmatpush3.bf16.msra.mxu1 %v2595_v45  ;;  %v2647_v45 = vpack.c.bf16 %v285_v39, %v284_v37  ;;  %v343_v37 = vld [vmem:[%s4666_s1 + $0x918] sm:$0xff]  ;;  %v329_v39 = vld [vmem:[%s4666_s1 + $0x8a8] sm:$0xff] }
  0x64   :  { %2630 = vmatprep.subr.bf16.mxu1 %v2629_v50  ;;  %916 = vmatmul.mubr.f32.vlgmr.msra.gmra.mrb[4].mxu0 %v28_v56  ;;  %v2649_v50 = vpack.c.bf16 %v303_v43, %v302_v42  ;;  %v2619_v56 = vpack.c.bf16 %v255_v48, %v254_v47  ;;  %v37_v42 = vld [vmem:[%s4667_s0 + $0x88] sm:$0xff]  ;;  %v312_v47 = vld [vmem:[%s4666_s1 + $0x820] sm:$0xff] }
  0x65   :  { %2600 = vmatpush3.bf16.msra.mxu0 %v2599_v57  ;;  %1055 = vmatprep.mubr.f32.mxu0 %v33_v6  ;;  %v2651_v57 = vpack.c.bf16 %v287_v51, %v286_v49  ;;  %v313_v48 = vld [vmem:[%s4666_s1 + $0x828] sm:$0xff]  ;;  %v344_v49 = vld [vmem:[%s4666_s1 + $0x920] sm:$0xff] }
  0x66   :  { %986 = vmatmul.mubr.f32.vlgmr.msra.gmra.mrb[4].mxu1 %v30_v58  ;;  %2602 = vmatprep.subr.bf16.mxu0 %v2601_v60  ;;  %v2621_v58 = vpack.c.bf16 %v273_v53, %v272_v52  ;;  %v257_v60 = vld [vmem:[%s4666_s1 + $0x668] sm:$0xff]  ;;  %v330_v52 = vld [vmem:[%s4666_s1 + $0x8b0] sm:$0xff]  ;;  %v331_v53 = vld [vmem:[%s4666_s1 + $0x8b8] sm:$0xff] }
  0x67   :  { %2632 = vmatpush3.bf16.msra.mxu1 %v2631_v59  ;;  %1125 = vmatprep.mubr.f32.mxu1 %v35_v8  ;;  %v256_v59 = vld [vmem:[%s4666_s1 + $0x660] sm:$0xff]  ;;  %v259_v8 = vld [vmem:[%s4666_s1 + $0x678] sm:$0xff]  ;;  %v345_v51 = vld [vmem:[%s4666_s1 + $0x928] sm:$0xff] }
  0x68   :  { %2634 = vmatprep.subr.bf16.mxu1 %v2633_v0  ;;  %v274_v0 = vld [vmem:[%s4666_s1 + $0x6f0] sm:$0xff]  ;;  %v2623_v4 = vpack.c.bf16 %v257_v60, %v256_v59  ;;  %v315_v60 = vld [vmem:[%s4666_s1 + $0x838] sm:$0xff] }
  0x69   :  { %2604 = vmatpush3.bf16.msra.mxu0 %v2603_v7  ;;  %v2625_v6 = vpack.c.bf16 %v275_v1, %v274_v0  ;;  %v258_v7 = vld [vmem:[%s4666_s1 + $0x670] sm:$0xff]  ;;  %v332_v0 = vld [vmem:[%s4666_s1 + $0x8c0] sm:$0xff]  ;;  %v333_v1 = vld [vmem:[%s4666_s1 + $0x8c8] sm:$0xff] }
  0x6a   :  { %2606 = vmatprep.subr.bf16.mxu0 %v2605_v10  ;;  %v2657_v10 = vpack.c.bf16 %v307_v3, %v306_v2  ;;  %v2627_v16 = vpack.c.bf16 %v259_v8, %v258_v7  ;;  %v314_v59 = vld [vmem:[%s4666_s1 + $0x830] sm:$0xff]  ;;  %v364_v2 = vld [vmem:[%s4666_s1 + $0x9c0] sm:$0xff]  ;;  %v365_v3 = vld [vmem:[%s4666_s1 + $0x9c8] sm:$0xff] }
  0x6b   :  { %2636 = vmatpush3.bf16.msra.mxu1 %v2635_v9  ;;  %v290_v9 = vld [vmem:[%s4666_s1 + $0x770] sm:$0xff]  ;;  %v316_v7 = vld [vmem:[%s4666_s1 + $0x840] sm:$0xff]  ;;  %v317_v8 = vld [vmem:[%s4666_s1 + $0x848] sm:$0xff] }
  0x6c   :  { %2638 = vmatprep.subr.bf16.mxu1 %v2637_v14  ;;  %v356_v14 = vld [vmem:[%s4666_s1 + $0x980] sm:$0xff]  ;;  %v2659_v17 = vpack.c.bf16 %v291_v11, %v290_v9  ;;  %v349_v11 = vld [vmem:[%s4666_s1 + $0x948] sm:$0xff] }
  0x6d   :  { %2608 = vmatpush3.bf16.msra.mxu0 %v2607_v20  ;;  %v309_v20 = vld [vmem:[%s4666_s1 + $0x808] sm:$0xff]  ;;  %v348_v9 = vld [vmem:[%s4666_s1 + $0x940] sm:$0xff] }
  0x6e   :  { %2610 = vmatprep.subr.bf16.mxu0 %v2609_v22  ;;  %v2693_v22 = vpack.c.bf16 %v357_v15, %v356_v14  ;;  %v2663_v29 = vpack.c.bf16 %v309_v20, %v308_v19  ;;  %v366_v14 = vld [vmem:[%s4666_s1 + $0x9d0] sm:$0xff]  ;;  %v367_v15 = vld [vmem:[%s4666_s1 + $0x9d8] sm:$0xff] }
  0x6f   :  { %2640 = vmatpush3.bf16.msra.mxu1 %v2639_v21  ;;  %v340_v21 = vld [vmem:[%s4666_s1 + $0x900] sm:$0xff]  ;;  %v318_v19 = vld [vmem:[%s4666_s1 + $0x850] sm:$0xff]  ;;  %v319_v20 = vld [vmem:[%s4666_s1 + $0x858] sm:$0xff] }
  0x70   :  { %2642 = vmatprep.subr.bf16.mxu1 %v2641_v26  ;;  %v358_v26 = vld [vmem:[%s4666_s1 + $0x990] sm:$0xff]  ;;  %v2695_v31 = vpack.c.bf16 %v341_v23, %v340_v21  ;;  %v351_v23 = vld [vmem:[%s4666_s1 + $0x958] sm:$0xff] }
  0x71   :  { %2612 = vmatpush3.bf16.msra.mxu0 %v2611_v32  ;;  %v2665_v32 = vpack.c.bf16 %v327_v25, %v326_v24  ;;  %v2697_v36 = vpack.c.bf16 %v359_v27, %v358_v26  ;;  %v350_v21 = vld [vmem:[%s4666_s1 + $0x950] sm:$0xff]  ;;  %v336_v24 = vld [vmem:[%s4666_s1 + $0x8e0] sm:$0xff]  ;;  %v337_v25 = vld [vmem:[%s4666_s1 + $0x8e8] sm:$0xff] }
  0x72   :  { %2614 = vmatprep.subr.bf16.mxu0 %v2613_v34  ;;  %v311_v34 = vld [vmem:[%s4666_s1 + $0x818] sm:$0xff]  ;;  %v368_v26 = vld [vmem:[%s4666_s1 + $0x9e0] sm:$0xff]  ;;  %v369_v27 = vld [vmem:[%s4666_s1 + $0x9e8] sm:$0xff] }
  0x73   :  { %2644 = vmatpush3.bf16.msra.mxu1 %v2643_v33  ;;  %v310_v33 = vld [vmem:[%s4666_s1 + $0x810] sm:$0xff] }
  0x74   :  { %2646 = vmatprep.subr.bf16.mxu1 %v2645_v38  ;;  %v328_v38 = vld [vmem:[%s4666_s1 + $0x8a0] sm:$0xff]  ;;  %v2667_v43 = vpack.c.bf16 %v311_v34, %v310_v33  ;;  %v2717_v34 = vpack.c.bf16 %v369_v27, %v368_v26  ;;  %v426_v26 = vld [vmem:[%s4666_s1 + $0xbb0] sm:$0xff]  ;;  %v427_v27 = vld [vmem:[%s4666_s1 + $0xbb8] sm:$0xff] }
  0x75   :  { %2616 = vmatpush3.bf16.msra.mxu0 %v2615_v44  ;;  %v39_v44 = vld [vmem:[%s4667_s0 + $0x98] sm:$0xff]  ;;  %v352_v33 = vld [vmem:[%s4666_s1 + $0x960] sm:$0xff] }
  0x76   :  { %2618 = vmatprep.subr.bf16.mxu0 %v2617_v46  ;;  %v2669_v46 = vpack.c.bf16 %v329_v39, %v328_v38  ;;  %v370_v38 = vld [vmem:[%s4666_s1 + $0x9f0] sm:$0xff]  ;;  %v371_v39 = vld [vmem:[%s4666_s1 + $0x9f8] sm:$0xff] }
  0x77   :  { %2648 = vmatpush3.bf16.msra.mxu1 %v2647_v45  ;;  %v2699_v45 = vpack.c.bf16 %v343_v37, %v342_v35  ;;  %v353_v35 = vld [vmem:[%s4666_s1 + $0x968] sm:$0xff]  ;;  %v339_v37 = vld [vmem:[%s4666_s1 + $0x8f8] sm:$0xff] }
  0x78   :  { %2650 = vmatprep.subr.bf16.mxu1 %v2649_v50  ;;  %v2701_v50 = vpack.c.bf16 %v361_v41, %v360_v40  ;;  %v2719_v41 = vpack.c.bf16 %v353_v35, %v352_v33  ;;  %v410_v33 = vld [vmem:[%s4666_s1 + $0xb30] sm:$0xff]  ;;  %v411_v35 = vld [vmem:[%s4666_s1 + $0xb38] sm:$0xff] }
  0x79   :  { %2620 = vmatpush3.bf16.msra.mxu0 %v2619_v56  ;;  %v2671_v56 = vpack.c.bf16 %v313_v48, %v312_v47  ;;  %v355_v47 = vld [vmem:[%s4666_s1 + $0x978] sm:$0xff]  ;;  %v388_v48 = vld [vmem:[%s4666_s1 + $0xa80] sm:$0xff] }
  0x7a   :  { %2622 = vmatprep.subr.bf16.mxu0 %v2621_v58  ;;  %v2673_v58 = vpack.c.bf16 %v331_v53, %v330_v52 }
  0x7b   :  { %2652 = vmatpush3.bf16.msra.mxu1 %v2651_v57  ;;  %v2703_v57 = vpack.c.bf16 %v345_v51, %v344_v49  ;;  %v389_v49 = vld [vmem:[%s4666_s1 + $0xa88] sm:$0xff] }
  0x7c   :  { %2654 = vmatprep.subr.bf16.mxu1 %v2653_v62  ;;  %v2705_v62 = vpack.c.bf16 %v363_v55, %v362_v54  ;;  %v421_v51 = vld [vmem:[%s4666_s1 + $0xb88] sm:$0xff]  ;;  %v2725_v54 = vpack.c.bf16 %v389_v49, %v388_v48  ;;  %v372_v55 = vld [vmem:[%s4666_s1 + $0xa00] sm:$0xff]  ;;  %v398_v48 = vld [vmem:[%s4666_s1 + $0xad0] sm:$0xff] }
  0x7d   :  { %2624 = vmatpush3.bf16.msra.mxu0 %v2623_v4  ;;  %v2675_v4 = vpack.c.bf16 %v315_v60, %v314_v59  ;;  %v405_v59 = vld [vmem:[%s4666_s1 + $0xb08] sm:$0xff]  ;;  %v390_v60 = vld [vmem:[%s4666_s1 + $0xa90] sm:$0xff]  ;;  %v399_v49 = vld [vmem:[%s4666_s1 + $0xad8] sm:$0xff] }
  0x7e   :  { %2626 = vmatprep.subr.bf16.mxu0 %v2625_v6  ;;  %v2677_v6 = vpack.c.bf16 %v333_v1, %v332_v0  ;;  %v36_v0 = vld [vmem:[%s4667_s0 + $0x80] sm:$0xff] }
  0x7f   :  { %2656 = vmatpush3.bf16.msra.mxu1 %v2655_v5  ;;  %v2707_v5 = vpack.c.bf16 %v347_v63, %v346_v61  ;;  %v391_v61 = vld [vmem:[%s4666_s1 + $0xa98] sm:$0xff] }
  0x80   :  { %2658 = vmatprep.subr.bf16.mxu1 %v2657_v10  ;;  %v2709_v10 = vpack.c.bf16 %v365_v3, %v364_v2  ;;  %v423_v63 = vld [vmem:[%s4666_s1 + $0xb98] sm:$0xff]  ;;  %v38_v2 = vld [vmem:[%s4667_s0 + $0x90] sm:$0xff] }
  0x81   :  { %2628 = vmatpush3.bf16.msra.mxu0 %v2627_v16  ;;  %v2679_v16 = vpack.c.bf16 %v317_v8, %v316_v7  ;;  %v406_v7 = vld [vmem:[%s4666_s1 + $0xb10] sm:$0xff] }
  0x82   :  { %2662 = vmatprep.subr.bf16.mxu0 %v2661_v18  ;;  %v2681_v18 = vpack.c.bf16 %v335_v13, %v334_v12  ;;  %v424_v12 = vld [vmem:[%s4666_s1 + $0xba0] sm:$0xff]  ;;  %v425_v13 = vld [vmem:[%s4666_s1 + $0xba8] sm:$0xff] }
  0x83   :  { %2660 = vmatpush3.bf16.msra.mxu1 %v2659_v17  ;;  %v2711_v17 = vpack.c.bf16 %v349_v11, %v348_v9  ;;  %v407_v9 = vld [vmem:[%s4666_s1 + $0xb18] sm:$0xff]  ;;  %v393_v11 = vld [vmem:[%s4666_s1 + $0xaa8] sm:$0xff] }
  0x84   :  { %2694 = vmatprep.subr.bf16.mxu1 %v2693_v22  ;;  %1056 = vmatmul.mubr.f32.vlgmr.msra.gmra.mrb[6].mxu0 %v32_v28  ;;  %v2713_v22 = vpack.c.bf16 %v367_v15, %v366_v14  ;;  %v2683_v28 = vpack.c.bf16 %v319_v20, %v318_v19  ;;  %v41_v14 = vld [vmem:[%s4667_s0 + $0xa8] sm:$0xff]  ;;  %v376_v19 = vld [vmem:[%s4666_s1 + $0xa20] sm:$0xff] }
  0x85   :  { %2664 = vmatpush3.bf16.msra.mxu0 %v2663_v29  ;;  %1195 = vmatprep.mubr.f32.mxu0 %v37_v42  ;;  %v2715_v29 = vpack.c.bf16 %v351_v23, %v350_v21  ;;  %v377_v20 = vld [vmem:[%s4666_s1 + $0xa28] sm:$0xff]  ;;  %v408_v21 = vld [vmem:[%s4666_s1 + $0xb20] sm:$0xff] }
  0x86   :  { %1126 = vmatmul.mubr.f32.vlgmr.msra.gmra.mrb[6].mxu1 %v34_v30  ;;  %2666 = vmatprep.subr.bf16.mxu0 %v2665_v32  ;;  %v2685_v30 = vpack.c.bf16 %v337_v25, %v336_v24  ;;  %v321_v32 = vld [vmem:[%s4666_s1 + $0x868] sm:$0xff]  ;;  %v394_v24 = vld [vmem:[%s4666_s1 + $0xab0] sm:$0xff]  ;;  %v395_v25 = vld [vmem:[%s4666_s1 + $0xab8] sm:$0xff] }
  0x87   :  { %2696 = vmatpush3.bf16.msra.mxu1 %v2695_v31  ;;  %1265 = vmatprep.mubr.f32.mxu1 %v39_v44  ;;  %v320_v31 = vld [vmem:[%s4666_s1 + $0x860] sm:$0xff]  ;;  %v323_v44 = vld [vmem:[%s4666_s1 + $0x878] sm:$0xff]  ;;  %v409_v23 = vld [vmem:[%s4666_s1 + $0xb28] sm:$0xff] }
  0x88   :  { %2698 = vmatprep.subr.bf16.mxu1 %v2697_v36  ;;  %v338_v36 = vld [vmem:[%s4666_s1 + $0x8f0] sm:$0xff]  ;;  %v2687_v40 = vpack.c.bf16 %v321_v32, %v320_v31  ;;  %v379_v32 = vld [vmem:[%s4666_s1 + $0xa38] sm:$0xff] }
  0x89   :  { %2668 = vmatpush3.bf16.msra.mxu0 %v2667_v43  ;;  %v2689_v42 = vpack.c.bf16 %v339_v37, %v338_v36  ;;  %v322_v43 = vld [vmem:[%s4666_s1 + $0x870] sm:$0xff]  ;;  %v396_v36 = vld [vmem:[%s4666_s1 + $0xac0] sm:$0xff]  ;;  %v397_v37 = vld [vmem:[%s4666_s1 + $0xac8] sm:$0xff] }
  0x8a   :  { %2670 = vmatprep.subr.bf16.mxu0 %v2669_v46  ;;  %v2721_v46 = vpack.c.bf16 %v371_v39, %v370_v38  ;;  %v2691_v52 = vpack.c.bf16 %v323_v44, %v322_v43  ;;  %v378_v31 = vld [vmem:[%s4666_s1 + $0xa30] sm:$0xff]  ;;  %v428_v38 = vld [vmem:[%s4666_s1 + $0xbc0] sm:$0xff]  ;;  %v429_v39 = vld [vmem:[%s4666_s1 + $0xbc8] sm:$0xff] }
  0x8b   :  { %2700 = vmatpush3.bf16.msra.mxu1 %v2699_v45  ;;  %v354_v45 = vld [vmem:[%s4666_s1 + $0x970] sm:$0xff]  ;;  %v380_v43 = vld [vmem:[%s4666_s1 + $0xa40] sm:$0xff]  ;;  %v381_v44 = vld [vmem:[%s4666_s1 + $0xa48] sm:$0xff] }
  0x8c   :  { %2702 = vmatprep.subr.bf16.mxu1 %v2701_v50  ;;  %v420_v50 = vld [vmem:[%s4666_s1 + $0xb80] sm:$0xff]  ;;  %v2723_v53 = vpack.c.bf16 %v355_v47, %v354_v45  ;;  %v413_v47 = vld [vmem:[%s4666_s1 + $0xb48] sm:$0xff] }
  0x8d   :  { %2672 = vmatpush3.bf16.msra.mxu0 %v2671_v56  ;;  %v373_v56 = vld [vmem:[%s4666_s1 + $0xa08] sm:$0xff]  ;;  %v412_v45 = vld [vmem:[%s4666_s1 + $0xb40] sm:$0xff] }
  0x8e   :  { %2674 = vmatprep.subr.bf16.mxu0 %v2673_v58  ;;  %v2757_v58 = vpack.c.bf16 %v421_v51, %v420_v50  ;;  %v2727_v1 = vpack.c.bf16 %v373_v56, %v372_v55  ;;  %v430_v50 = vld [vmem:[%s4666_s1 + $0xbd0] sm:$0xff]  ;;  %v431_v51 = vld [vmem:[%s4666_s1 + $0xbd8] sm:$0xff] }
  0x8f   :  { %2704 = vmatpush3.bf16.msra.mxu1 %v2703_v57  ;;  %v404_v57 = vld [vmem:[%s4666_s1 + $0xb00] sm:$0xff]  ;;  %v382_v55 = vld [vmem:[%s4666_s1 + $0xa50] sm:$0xff]  ;;  %v383_v56 = vld [vmem:[%s4666_s1 + $0xa58] sm:$0xff] }
  0x90   :  { %2706 = vmatprep.subr.bf16.mxu1 %v2705_v62  ;;  %v422_v62 = vld [vmem:[%s4666_s1 + $0xb90] sm:$0xff]  ;;  %v2759_v3 = vpack.c.bf16 %v405_v59, %v404_v57  ;;  %v415_v59 = vld [vmem:[%s4666_s1 + $0xb58] sm:$0xff] }
  0x91   :  { %2676 = vmatpush3.bf16.msra.mxu0 %v2675_v4  ;;  %v2729_v4 = vpack.c.bf16 %v391_v61, %v390_v60  ;;  %v2761_v8 = vpack.c.bf16 %v423_v63, %v422_v62  ;;  %v414_v57 = vld [vmem:[%s4666_s1 + $0xb50] sm:$0xff]  ;;  %v400_v60 = vld [vmem:[%s4666_s1 + $0xae0] sm:$0xff]  ;;  %v401_v61 = vld [vmem:[%s4666_s1 + $0xae8] sm:$0xff] }
  0x92   :  { %2678 = vmatprep.subr.bf16.mxu0 %v2677_v6  ;;  %v375_v6 = vld [vmem:[%s4666_s1 + $0xa18] sm:$0xff]  ;;  %v432_v62 = vld [vmem:[%s4666_s1 + $0xbe0] sm:$0xff]  ;;  %v433_v63 = vld [vmem:[%s4666_s1 + $0xbe8] sm:$0xff] }
  0x93   :  { %2708 = vmatpush3.bf16.msra.mxu1 %v2707_v5  ;;  %v374_v5 = vld [vmem:[%s4666_s1 + $0xa10] sm:$0xff] }
  0x94   :  { %2710 = vmatprep.subr.bf16.mxu1 %v2709_v10  ;;  %v392_v10 = vld [vmem:[%s4666_s1 + $0xaa0] sm:$0xff]  ;;  %v2731_v15 = vpack.c.bf16 %v375_v6, %v374_v5  ;;  %v2781_v6 = vpack.c.bf16 %v433_v63, %v432_v62  ;;  %v490_v62 = vld [vmem:[%s4666_s1 + $0xdb0] sm:$0xff]  ;;  %v491_v63 = vld [vmem:[%s4666_s1 + $0xdb8] sm:$0xff] }
  0x95   :  { %2680 = vmatpush3.bf16.msra.mxu0 %v2679_v16  ;;  %v43_v16 = vld [vmem:[%s4667_s0 + $0xb8] sm:$0xff]  ;;  %v416_v5 = vld [vmem:[%s4666_s1 + $0xb60] sm:$0xff] }
  0x96   :  { %2682 = vmatprep.subr.bf16.mxu0 %v2681_v18  ;;  %v2733_v18 = vpack.c.bf16 %v393_v11, %v392_v10  ;;  %v434_v10 = vld [vmem:[%s4666_s1 + $0xbf0] sm:$0xff]  ;;  %v435_v11 = vld [vmem:[%s4666_s1 + $0xbf8] sm:$0xff] }
  0x97   :  { %2712 = vmatpush3.bf16.msra.mxu1 %v2711_v17  ;;  %v2763_v17 = vpack.c.bf16 %v407_v9, %v406_v7  ;;  %v417_v7 = vld [vmem:[%s4666_s1 + $0xb68] sm:$0xff]  ;;  %v403_v9 = vld [vmem:[%s4666_s1 + $0xaf8] sm:$0xff] }
  0x98   :  { %2714 = vmatprep.subr.bf16.mxu1 %v2713_v22  ;;  %v2765_v22 = vpack.c.bf16 %v425_v13, %v424_v12  ;;  %v2783_v13 = vpack.c.bf16 %v417_v7, %v416_v5  ;;  %v474_v5 = vld [vmem:[%s4666_s1 + $0xd30] sm:$0xff]  ;;  %v475_v7 = vld [vmem:[%s4666_s1 + $0xd38] sm:$0xff] }
  0x99   :  { %2684 = vmatpush3.bf16.msra.mxu0 %v2683_v28  ;;  %v2735_v28 = vpack.c.bf16 %v377_v20, %v376_v19  ;;  %v419_v19 = vld [vmem:[%s4666_s1 + $0xb78] sm:$0xff]  ;;  %v452_v20 = vld [vmem:[%s4666_s1 + $0xc80] sm:$0xff] }
  0x9a   :  { %2686 = vmatprep.subr.bf16.mxu0 %v2685_v30  ;;  %v2737_v30 = vpack.c.bf16 %v395_v25, %v394_v24 }
  0x9b   :  { %2716 = vmatpush3.bf16.msra.mxu1 %v2715_v29  ;;  %v2767_v29 = vpack.c.bf16 %v409_v23, %v408_v21  ;;  %v453_v21 = vld [vmem:[%s4666_s1 + $0xc88] sm:$0xff] }
  0x9c   :  { %2718 = vmatprep.subr.bf16.mxu1 %v2717_v34  ;;  %v2769_v34 = vpack.c.bf16 %v427_v27, %v426_v26  ;;  %v485_v23 = vld [vmem:[%s4666_s1 + $0xd88] sm:$0xff]  ;;  %v2789_v26 = vpack.c.bf16 %v453_v21, %v452_v20  ;;  %v436_v27 = vld [vmem:[%s4666_s1 + $0xc00] sm:$0xff]  ;;  %v462_v20 = vld [vmem:[%s4666_s1 + $0xcd0] sm:$0xff] }
  0x9d   :  { %2688 = vmatpush3.bf16.msra.mxu0 %v2687_v40  ;;  %v2739_v40 = vpack.c.bf16 %v379_v32, %v378_v31  ;;  %v469_v31 = vld [vmem:[%s4666_s1 + $0xd08] sm:$0xff]  ;;  %v454_v32 = vld [vmem:[%s4666_s1 + $0xc90] sm:$0xff]  ;;  %v463_v21 = vld [vmem:[%s4666_s1 + $0xcd8] sm:$0xff] }
  0x9e   :  { %2690 = vmatprep.subr.bf16.mxu0 %v2689_v42  ;;  %v2741_v42 = vpack.c.bf16 %v397_v37, %v396_v36  ;;  %v40_v36 = vld [vmem:[%s4667_s0 + $0xa0] sm:$0xff] }
  0x9f   :  { %2720 = vmatpush3.bf16.msra.mxu1 %v2719_v41  ;;  %v2771_v41 = vpack.c.bf16 %v411_v35, %v410_v33  ;;  %v455_v33 = vld [vmem:[%s4666_s1 + $0xc98] sm:$0xff] }
  0xa0   :  { %2722 = vmatprep.subr.bf16.mxu1 %v2721_v46  ;;  %v2773_v46 = vpack.c.bf16 %v429_v39, %v428_v38  ;;  %v487_v35 = vld [vmem:[%s4666_s1 + $0xd98] sm:$0xff]  ;;  %v42_v38 = vld [vmem:[%s4667_s0 + $0xb0] sm:$0xff] }
  0xa1   :  { %2692 = vmatpush3.bf16.msra.mxu0 %v2691_v52  ;;  %v2743_v52 = vpack.c.bf16 %v381_v44, %v380_v43  ;;  %v470_v43 = vld [vmem:[%s4666_s1 + $0xd10] sm:$0xff] }
  0xa2   :  { %2726 = vmatprep.subr.bf16.mxu0 %v2725_v54  ;;  %v2745_v54 = vpack.c.bf16 %v399_v49, %v398_v48  ;;  %v488_v48 = vld [vmem:[%s4666_s1 + $0xda0] sm:$0xff]  ;;  %v489_v49 = vld [vmem:[%s4666_s1 + $0xda8] sm:$0xff] }
  0xa3   :  { %2724 = vmatpush3.bf16.msra.mxu1 %v2723_v53  ;;  %v2775_v53 = vpack.c.bf16 %v413_v47, %v412_v45  ;;  %v471_v45 = vld [vmem:[%s4666_s1 + $0xd18] sm:$0xff]  ;;  %v457_v47 = vld [vmem:[%s4666_s1 + $0xca8] sm:$0xff] }
  0xa4   :  { %2758 = vmatprep.subr.bf16.mxu1 %v2757_v58  ;;  %1196 = vmatmul.mubr.f32.vlgmr.msra.gmra.mrb[8].mxu0 %v36_v0  ;;  %v2777_v58 = vpack.c.bf16 %v431_v51, %v430_v50  ;;  %v2747_v0 = vpack.c.bf16 %v383_v56, %v382_v55  ;;  %v45_v50 = vld [vmem:[%s4667_s0 + $0xc8] sm:$0xff]  ;;  %v440_v55 = vld [vmem:[%s4666_s1 + $0xc20] sm:$0xff] }
  0xa5   :  { %2728 = vmatpush3.bf16.msra.mxu0 %v2727_v1  ;;  %1335 = vmatprep.mubr.f32.mxu0 %v41_v14  ;;  %v2779_v1 = vpack.c.bf16 %v415_v59, %v414_v57  ;;  %v441_v56 = vld [vmem:[%s4666_s1 + $0xc28] sm:$0xff]  ;;  %v472_v57 = vld [vmem:[%s4666_s1 + $0xd20] sm:$0xff] }
  0xa6   :  { %1266 = vmatmul.mubr.f32.vlgmr.msra.gmra.mrb[8].mxu1 %v38_v2  ;;  %2730 = vmatprep.subr.bf16.mxu0 %v2729_v4  ;;  %v2749_v2 = vpack.c.bf16 %v401_v61, %v400_v60  ;;  %v385_v4 = vld [vmem:[%s4666_s1 + $0xa68] sm:$0xff]  ;;  %v458_v60 = vld [vmem:[%s4666_s1 + $0xcb0] sm:$0xff]  ;;  %v459_v61 = vld [vmem:[%s4666_s1 + $0xcb8] sm:$0xff] }
  0xa7   :  { %2760 = vmatpush3.bf16.msra.mxu1 %v2759_v3  ;;  %1405 = vmatprep.mubr.f32.mxu1 %v43_v16  ;;  %v384_v3 = vld [vmem:[%s4666_s1 + $0xa60] sm:$0xff]  ;;  %v387_v16 = vld [vmem:[%s4666_s1 + $0xa78] sm:$0xff]  ;;  %v473_v59 = vld [vmem:[%s4666_s1 + $0xd28] sm:$0xff] }
  0xa8   :  { %2762 = vmatprep.subr.bf16.mxu1 %v2761_v8  ;;  %v402_v8 = vld [vmem:[%s4666_s1 + $0xaf0] sm:$0xff]  ;;  %v2751_v12 = vpack.c.bf16 %v385_v4, %v384_v3  ;;  %v443_v4 = vld [vmem:[%s4666_s1 + $0xc38] sm:$0xff] }
  0xa9   :  { %2732 = vmatpush3.bf16.msra.mxu0 %v2731_v15  ;;  %v2753_v14 = vpack.c.bf16 %v403_v9, %v402_v8  ;;  %v386_v15 = vld [vmem:[%s4666_s1 + $0xa70] sm:$0xff]  ;;  %v460_v8 = vld [vmem:[%s4666_s1 + $0xcc0] sm:$0xff]  ;;  %v461_v9 = vld [vmem:[%s4666_s1 + $0xcc8] sm:$0xff] }
  0xaa   :  { %2734 = vmatprep.subr.bf16.mxu0 %v2733_v18  ;;  %v2785_v18 = vpack.c.bf16 %v435_v11, %v434_v10  ;;  %v2755_v24 = vpack.c.bf16 %v387_v16, %v386_v15  ;;  %v442_v3 = vld [vmem:[%s4666_s1 + $0xc30] sm:$0xff]  ;;  %v492_v10 = vld [vmem:[%s4666_s1 + $0xdc0] sm:$0xff]  ;;  %v493_v11 = vld [vmem:[%s4666_s1 + $0xdc8] sm:$0xff] }
  0xab   :  { %2764 = vmatpush3.bf16.msra.mxu1 %v2763_v17  ;;  %v418_v17 = vld [vmem:[%s4666_s1 + $0xb70] sm:$0xff]  ;;  %v444_v15 = vld [vmem:[%s4666_s1 + $0xc40] sm:$0xff]  ;;  %v445_v16 = vld [vmem:[%s4666_s1 + $0xc48] sm:$0xff] }
  0xac   :  { %2766 = vmatprep.subr.bf16.mxu1 %v2765_v22  ;;  %v484_v22 = vld [vmem:[%s4666_s1 + $0xd80] sm:$0xff]  ;;  %v2787_v25 = vpack.c.bf16 %v419_v19, %v418_v17  ;;  %v477_v19 = vld [vmem:[%s4666_s1 + $0xd48] sm:$0xff] }
  0xad   :  { %2736 = vmatpush3.bf16.msra.mxu0 %v2735_v28  ;;  %v437_v28 = vld [vmem:[%s4666_s1 + $0xc08] sm:$0xff]  ;;  %v476_v17 = vld [vmem:[%s4666_s1 + $0xd40] sm:$0xff] }
  0xae   :  { %2738 = vmatprep.subr.bf16.mxu0 %v2737_v30  ;;  %v2821_v30 = vpack.c.bf16 %v485_v23, %v484_v22  ;;  %v2791_v37 = vpack.c.bf16 %v437_v28, %v436_v27  ;;  %v494_v22 = vld [vmem:[%s4666_s1 + $0xdd0] sm:$0xff]  ;;  %v495_v23 = vld [vmem:[%s4666_s1 + $0xdd8] sm:$0xff] }
  0xaf   :  { %2768 = vmatpush3.bf16.msra.mxu1 %v2767_v29  ;;  %v468_v29 = vld [vmem:[%s4666_s1 + $0xd00] sm:$0xff]  ;;  %v446_v27 = vld [vmem:[%s4666_s1 + $0xc50] sm:$0xff]  ;;  %v447_v28 = vld [vmem:[%s4666_s1 + $0xc58] sm:$0xff] }
  0xb0   :  { %2770 = vmatprep.subr.bf16.mxu1 %v2769_v34  ;;  %v486_v34 = vld [vmem:[%s4666_s1 + $0xd90] sm:$0xff]  ;;  %v2823_v39 = vpack.c.bf16 %v469_v31, %v468_v29  ;;  %v479_v31 = vld [vmem:[%s4666_s1 + $0xd58] sm:$0xff] }
  0xb1   :  { %2740 = vmatpush3.bf16.msra.mxu0 %v2739_v40  ;;  %v2793_v40 = vpack.c.bf16 %v455_v33, %v454_v32  ;;  %v2825_v44 = vpack.c.bf16 %v487_v35, %v486_v34  ;;  %v478_v29 = vld [vmem:[%s4666_s1 + $0xd50] sm:$0xff]  ;;  %v464_v32 = vld [vmem:[%s4666_s1 + $0xce0] sm:$0xff]  ;;  %v465_v33 = vld [vmem:[%s4666_s1 + $0xce8] sm:$0xff] }
  0xb2   :  { %2742 = vmatprep.subr.bf16.mxu0 %v2741_v42  ;;  %v439_v42 = vld [vmem:[%s4666_s1 + $0xc18] sm:$0xff]  ;;  %v496_v34 = vld [vmem:[%s4666_s1 + $0xde0] sm:$0xff]  ;;  %v497_v35 = vld [vmem:[%s4666_s1 + $0xde8] sm:$0xff] }
  0xb3   :  { %2772 = vmatpush3.bf16.msra.mxu1 %v2771_v41  ;;  %v438_v41 = vld [vmem:[%s4666_s1 + $0xc10] sm:$0xff] }
  0xb4   :  { %2774 = vmatprep.subr.bf16.mxu1 %v2773_v46  ;;  %v456_v46 = vld [vmem:[%s4666_s1 + $0xca0] sm:$0xff]  ;;  %v2795_v51 = vpack.c.bf16 %v439_v42, %v438_v41  ;;  %v2845_v42 = vpack.c.bf16 %v497_v35, %v496_v34  ;;  %v554_v34 = vld [vmem:[%s4666_s1 + $0xfb0] sm:$0xff]  ;;  %v555_v35 = vld [vmem:[%s4666_s1 + $0xfb8] sm:$0xff] }
  0xb5   :  { %2744 = vmatpush3.bf16.msra.mxu0 %v2743_v52  ;;  %v47_v52 = vld [vmem:[%s4667_s0 + $0xd8] sm:$0xff]  ;;  %v480_v41 = vld [vmem:[%s4666_s1 + $0xd60] sm:$0xff] }
  0xb6   :  { %2746 = vmatprep.subr.bf16.mxu0 %v2745_v54  ;;  %v2797_v54 = vpack.c.bf16 %v457_v47, %v456_v46  ;;  %v498_v46 = vld [vmem:[%s4666_s1 + $0xdf0] sm:$0xff]  ;;  %v499_v47 = vld [vmem:[%s4666_s1 + $0xdf8] sm:$0xff] }
  0xb7   :  { %2776 = vmatpush3.bf16.msra.mxu1 %v2775_v53  ;;  %v2827_v53 = vpack.c.bf16 %v471_v45, %v470_v43  ;;  %v481_v43 = vld [vmem:[%s4666_s1 + $0xd68] sm:$0xff]  ;;  %v467_v45 = vld [vmem:[%s4666_s1 + $0xcf8] sm:$0xff] }
  0xb8   :  { %2778 = vmatprep.subr.bf16.mxu1 %v2777_v58  ;;  %v2829_v58 = vpack.c.bf16 %v489_v49, %v488_v48  ;;  %v2847_v49 = vpack.c.bf16 %v481_v43, %v480_v41  ;;  %v538_v41 = vld [vmem:[%s4666_s1 + $0xf30] sm:$0xff]  ;;  %v539_v43 = vld [vmem:[%s4666_s1 + $0xf38] sm:$0xff] }
  0xb9   :  { %2748 = vmatpush3.bf16.msra.mxu0 %v2747_v0  ;;  %v2799_v0 = vpack.c.bf16 %v441_v56, %v440_v55  ;;  %v483_v55 = vld [vmem:[%s4666_s1 + $0xd78] sm:$0xff]  ;;  %v516_v56 = vld [vmem:[%s4666_s1 + $0xe80] sm:$0xff] }
  0xba   :  { %2750 = vmatprep.subr.bf16.mxu0 %v2749_v2  ;;  %v2801_v2 = vpack.c.bf16 %v459_v61, %v458_v60 }
  0xbb   :  { %2780 = vmatpush3.bf16.msra.mxu1 %v2779_v1  ;;  %v2831_v1 = vpack.c.bf16 %v473_v59, %v472_v57  ;;  %v517_v57 = vld [vmem:[%s4666_s1 + $0xe88] sm:$0xff] }
  0xbc   :  { %2782 = vmatprep.subr.bf16.mxu1 %v2781_v6  ;;  %v2833_v6 = vpack.c.bf16 %v491_v63, %v490_v62  ;;  %v549_v59 = vld [vmem:[%s4666_s1 + $0xf88] sm:$0xff]  ;;  %v2853_v62 = vpack.c.bf16 %v517_v57, %v516_v56  ;;  %v500_v63 = vld [vmem:[%s4666_s1 + $0xe00] sm:$0xff]  ;;  %v526_v56 = vld [vmem:[%s4666_s1 + $0xed0] sm:$0xff] }
  0xbd   :  { %2752 = vmatpush3.bf16.msra.mxu0 %v2751_v12  ;;  %v2803_v12 = vpack.c.bf16 %v443_v4, %v442_v3  ;;  %v533_v3 = vld [vmem:[%s4666_s1 + $0xf08] sm:$0xff]  ;;  %v518_v4 = vld [vmem:[%s4666_s1 + $0xe90] sm:$0xff]  ;;  %v527_v57 = vld [vmem:[%s4666_s1 + $0xed8] sm:$0xff] }
  0xbe   :  { %2754 = vmatprep.subr.bf16.mxu0 %v2753_v14  ;;  %v2805_v14 = vpack.c.bf16 %v461_v9, %v460_v8  ;;  %v44_v8 = vld [vmem:[%s4667_s0 + $0xc0] sm:$0xff] }
  0xbf   :  { %2784 = vmatpush3.bf16.msra.mxu1 %v2783_v13  ;;  %v2835_v13 = vpack.c.bf16 %v475_v7, %v474_v5  ;;  %v519_v5 = vld [vmem:[%s4666_s1 + $0xe98] sm:$0xff] }
  0xc0   :  { %2786 = vmatprep.subr.bf16.mxu1 %v2785_v18  ;;  %v2837_v18 = vpack.c.bf16 %v493_v11, %v492_v10  ;;  %v551_v7 = vld [vmem:[%s4666_s1 + $0xf98] sm:$0xff]  ;;  %v46_v10 = vld [vmem:[%s4667_s0 + $0xd0] sm:$0xff] }
  0xc1   :  { %2756 = vmatpush3.bf16.msra.mxu0 %v2755_v24  ;;  %v2807_v24 = vpack.c.bf16 %v445_v16, %v444_v15  ;;  %v534_v15 = vld [vmem:[%s4666_s1 + $0xf10] sm:$0xff] }
  0xc2   :  { %2790 = vmatprep.subr.bf16.mxu0 %v2789_v26  ;;  %v2809_v26 = vpack.c.bf16 %v463_v21, %v462_v20  ;;  %v552_v20 = vld [vmem:[%s4666_s1 + $0xfa0] sm:$0xff]  ;;  %v553_v21 = vld [vmem:[%s4666_s1 + $0xfa8] sm:$0xff] }
  0xc3   :  { %2788 = vmatpush3.bf16.msra.mxu1 %v2787_v25  ;;  %v2839_v25 = vpack.c.bf16 %v477_v19, %v476_v17  ;;  %v535_v17 = vld [vmem:[%s4666_s1 + $0xf18] sm:$0xff]  ;;  %v521_v19 = vld [vmem:[%s4666_s1 + $0xea8] sm:$0xff] }
  0xc4   :  { %2822 = vmatprep.subr.bf16.mxu1 %v2821_v30  ;;  %1336 = vmatmul.mubr.f32.vlgmr.msra.gmra.mrb[10].mxu0 %v40_v36  ;;  %v2841_v30 = vpack.c.bf16 %v495_v23, %v494_v22  ;;  %v2811_v36 = vpack.c.bf16 %v447_v28, %v446_v27  ;;  %v49_v22 = vld [vmem:[%s4667_s0 + $0xe8] sm:$0xff]  ;;  %v504_v27 = vld [vmem:[%s4666_s1 + $0xe20] sm:$0xff] }
  0xc5   :  { %2792 = vmatpush3.bf16.msra.mxu0 %v2791_v37  ;;  %1475 = vmatprep.mubr.f32.mxu0 %v45_v50  ;;  %v2843_v37 = vpack.c.bf16 %v479_v31, %v478_v29  ;;  %v505_v28 = vld [vmem:[%s4666_s1 + $0xe28] sm:$0xff]  ;;  %v536_v29 = vld [vmem:[%s4666_s1 + $0xf20] sm:$0xff] }
  0xc6   :  { %1406 = vmatmul.mubr.f32.vlgmr.msra.gmra.mrb[10].mxu1 %v42_v38  ;;  %2794 = vmatprep.subr.bf16.mxu0 %v2793_v40  ;;  %v2813_v38 = vpack.c.bf16 %v465_v33, %v464_v32  ;;  %v449_v40 = vld [vmem:[%s4666_s1 + $0xc68] sm:$0xff]  ;;  %v522_v32 = vld [vmem:[%s4666_s1 + $0xeb0] sm:$0xff]  ;;  %v523_v33 = vld [vmem:[%s4666_s1 + $0xeb8] sm:$0xff] }
  0xc7   :  { %2824 = vmatpush3.bf16.msra.mxu1 %v2823_v39  ;;  %1545 = vmatprep.mubr.f32.mxu1 %v47_v52  ;;  %v448_v39 = vld [vmem:[%s4666_s1 + $0xc60] sm:$0xff]  ;;  %v451_v52 = vld [vmem:[%s4666_s1 + $0xc78] sm:$0xff]  ;;  %v537_v31 = vld [vmem:[%s4666_s1 + $0xf28] sm:$0xff] }
  0xc8   :  { %2826 = vmatprep.subr.bf16.mxu1 %v2825_v44  ;;  %v466_v44 = vld [vmem:[%s4666_s1 + $0xcf0] sm:$0xff]  ;;  %v2815_v48 = vpack.c.bf16 %v449_v40, %v448_v39  ;;  %v507_v40 = vld [vmem:[%s4666_s1 + $0xe38] sm:$0xff] }
  0xc9   :  { %2796 = vmatpush3.bf16.msra.mxu0 %v2795_v51  ;;  %v2817_v50 = vpack.c.bf16 %v467_v45, %v466_v44  ;;  %v450_v51 = vld [vmem:[%s4666_s1 + $0xc70] sm:$0xff]  ;;  %v524_v44 = vld [vmem:[%s4666_s1 + $0xec0] sm:$0xff]  ;;  %v525_v45 = vld [vmem:[%s4666_s1 + $0xec8] sm:$0xff] }
  0xca   :  { %2798 = vmatprep.subr.bf16.mxu0 %v2797_v54  ;;  %v2849_v54 = vpack.c.bf16 %v499_v47, %v498_v46  ;;  %v2819_v60 = vpack.c.bf16 %v451_v52, %v450_v51  ;;  %v506_v39 = vld [vmem:[%s4666_s1 + $0xe30] sm:$0xff]  ;;  %v556_v46 = vld [vmem:[%s4666_s1 + $0xfc0] sm:$0xff]  ;;  %v557_v47 = vld [vmem:[%s4666_s1 + $0xfc8] sm:$0xff] }
  0xcb   :  { %2828 = vmatpush3.bf16.msra.mxu1 %v2827_v53  ;;  %v482_v53 = vld [vmem:[%s4666_s1 + $0xd70] sm:$0xff]  ;;  %v508_v51 = vld [vmem:[%s4666_s1 + $0xe40] sm:$0xff]  ;;  %v509_v52 = vld [vmem:[%s4666_s1 + $0xe48] sm:$0xff] }
  0xcc   :  { %2830 = vmatprep.subr.bf16.mxu1 %v2829_v58  ;;  %v548_v58 = vld [vmem:[%s4666_s1 + $0xf80] sm:$0xff]  ;;  %v2851_v61 = vpack.c.bf16 %v483_v55, %v482_v53  ;;  %v541_v55 = vld [vmem:[%s4666_s1 + $0xf48] sm:$0xff] }
  0xcd   :  { %2800 = vmatpush3.bf16.msra.mxu0 %v2799_v0  ;;  %v501_v0 = vld [vmem:[%s4666_s1 + $0xe08] sm:$0xff]  ;;  %v540_v53 = vld [vmem:[%s4666_s1 + $0xf40] sm:$0xff] }
  0xce   :  { %2802 = vmatprep.subr.bf16.mxu0 %v2801_v2  ;;  %v2885_v2 = vpack.c.bf16 %v549_v59, %v548_v58  ;;  %v2855_v9 = vpack.c.bf16 %v501_v0, %v500_v63  ;;  %v558_v58 = vld [vmem:[%s4666_s1 + $0xfd0] sm:$0xff]  ;;  %v559_v59 = vld [vmem:[%s4666_s1 + $0xfd8] sm:$0xff] }
  0xcf   :  { %2832 = vmatpush3.bf16.msra.mxu1 %v2831_v1  ;;  %v532_v1 = vld [vmem:[%s4666_s1 + $0xf00] sm:$0xff]  ;;  %v510_v63 = vld [vmem:[%s4666_s1 + $0xe50] sm:$0xff]  ;;  %v511_v0 = vld [vmem:[%s4666_s1 + $0xe58] sm:$0xff] }
  0xd0   :  { %2834 = vmatprep.subr.bf16.mxu1 %v2833_v6  ;;  %v550_v6 = vld [vmem:[%s4666_s1 + $0xf90] sm:$0xff]  ;;  %v2887_v11 = vpack.c.bf16 %v533_v3, %v532_v1  ;;  %v543_v3 = vld [vmem:[%s4666_s1 + $0xf58] sm:$0xff] }
  0xd1   :  { %2804 = vmatpush3.bf16.msra.mxu0 %v2803_v12  ;;  %v2857_v12 = vpack.c.bf16 %v519_v5, %v518_v4  ;;  %v2889_v16 = vpack.c.bf16 %v551_v7, %v550_v6  ;;  %v542_v1 = vld [vmem:[%s4666_s1 + $0xf50] sm:$0xff]  ;;  %v528_v4 = vld [vmem:[%s4666_s1 + $0xee0] sm:$0xff]  ;;  %v529_v5 = vld [vmem:[%s4666_s1 + $0xee8] sm:$0xff] }
  0xd2   :  { %2806 = vmatprep.subr.bf16.mxu0 %v2805_v14  ;;  %v503_v14 = vld [vmem:[%s4666_s1 + $0xe18] sm:$0xff]  ;;  %v560_v6 = vld [vmem:[%s4666_s1 + $0xfe0] sm:$0xff]  ;;  %v561_v7 = vld [vmem:[%s4666_s1 + $0xfe8] sm:$0xff] }
  0xd3   :  { %2836 = vmatpush3.bf16.msra.mxu1 %v2835_v13  ;;  %v502_v13 = vld [vmem:[%s4666_s1 + $0xe10] sm:$0xff] }
  0xd4   :  { %2838 = vmatprep.subr.bf16.mxu1 %v2837_v18  ;;  %v520_v18 = vld [vmem:[%s4666_s1 + $0xea0] sm:$0xff]  ;;  %v2859_v23 = vpack.c.bf16 %v503_v14, %v502_v13 }
  0xd5   :  { %2808 = vmatpush3.bf16.msra.mxu0 %v2807_v24  ;;  %v51_v24 = vld [vmem:[%s4667_s0 + $0xf8] sm:$0xff]  ;;  %v544_v13 = vld [vmem:[%s4666_s1 + $0xf60] sm:$0xff] }
  0xd6   :  { %2810 = vmatprep.subr.bf16.mxu0 %v2809_v26  ;;  %v2861_v26 = vpack.c.bf16 %v521_v19, %v520_v18  ;;  %v531_v18 = vld [vmem:[%s4666_s1 + $0xef8] sm:$0xff]  ;;  %v1791_v19 = vld [vmem:[%s4668_s2] ss:$0 sm:$0xff] }
  0xd7   :  { %2840 = vmatpush3.bf16.msra.mxu1 %v2839_v25  ;;  %v2891_v25 = vpack.c.bf16 %v535_v17, %v534_v15  ;;  %v2909_v15 = vpack.c.bf16 %v561_v7, %v560_v6  ;;  %v530_v17 = vld [vmem:[%s4666_s1 + $0xef0] sm:$0xff]  ;;  %v1700_v6 = vld [vmem:[%s4669_s3 + $0x40] sm:$0xff]  ;;  %v1701_v7 = vld [vmem:[%s4669_s3 + $0x48] sm:$0xff] }
  0xd8   :  { %2842 = vmatprep.subr.bf16.mxu1 %v2841_v30  ;;  %v2893_v30 = vpack.c.bf16 %v553_v21, %v552_v20 }
  0xd9   :  { %2812 = vmatpush3.bf16.msra.mxu0 %v2811_v36  ;;  %v2863_v36 = vpack.c.bf16 %v505_v28, %v504_v27 }
  0xda   :  { %2814 = vmatprep.subr.bf16.mxu0 %v2813_v38  ;;  %v2865_v38 = vpack.c.bf16 %v523_v33, %v522_v32 }
  0xdb   :  { %2844 = vmatpush3.bf16.msra.mxu1 %v2843_v37  ;;  %v2895_v37 = vpack.c.bf16 %v537_v31, %v536_v29  ;;  %v2881_v29 = vpack.c.bf16 %v531_v18, %v530_v17  ;;  %v515_v31 = vld [vmem:[%s4666_s1 + $0xe78] sm:$0xff] }
  0xdc   :  { %2846 = vmatprep.subr.bf16.mxu1 %v2845_v42  ;;  %v2897_v42 = vpack.c.bf16 %v555_v35, %v554_v34  ;;  %v546_v34 = vld [vmem:[%s4666_s1 + $0xf70] sm:$0xff]  ;;  %v547_v35 = vld [vmem:[%s4666_s1 + $0xf78] sm:$0xff] }
  0xdd   :  { %2816 = vmatpush3.bf16.msra.mxu0 %v2815_v48  ;;  %v2867_v48 = vpack.c.bf16 %v507_v40, %v506_v39  ;;  %v48_v39 = vld [vmem:[%s4667_s0 + $0xe0] sm:$0xff]  ;;  %v50_v40 = vld [vmem:[%s4667_s0 + $0xf0] sm:$0xff] }
  0xde   :  { %2818 = vmatprep.subr.bf16.mxu0 %v2817_v50  ;;  %v2869_v50 = vpack.c.bf16 %v525_v45, %v524_v44 }
  0xdf   :  { %2848 = vmatpush3.bf16.msra.mxu1 %v2847_v49  ;;  %v2899_v49 = vpack.c.bf16 %v539_v43, %v538_v41 }
  0xe0   :  { %2850 = vmatprep.subr.bf16.mxu1 %v2849_v54  ;;  %v2901_v54 = vpack.c.bf16 %v557_v47, %v556_v46 }
  0xe1   :  { %2820 = vmatpush3.bf16.msra.mxu0 %v2819_v60  ;;  %v2871_v60 = vpack.c.bf16 %v509_v52, %v508_v51 }
  0xe2   :  { %2854 = vmatprep.subr.bf16.mxu0 %v2853_v62  ;;  %v2873_v62 = vpack.c.bf16 %v527_v57, %v526_v56  ;;  %v2944_v57 = vmov 0.0|0.0  }
  0xe3   :  { %2852 = vmatpush3.bf16.msra.mxu1 %v2851_v61  ;;  %v2903_v61 = vpack.c.bf16 %v541_v55, %v540_v53 }
  0xe4   :  { %2886 = vmatprep.subr.bf16.mxu1 %v2885_v2  ;;  %1476 = vmatmul.mubr.f32.vlgmr.msra.gmra.mrb[12].mxu0 %v44_v8  ;;  %v2905_v2 = vpack.c.bf16 %v559_v59, %v558_v58  ;;  %v2875_v8 = vpack.c.bf16 %v511_v0, %v510_v63  ;;  %v1692_v58 = vld [vmem:[%s4669_s3] sm:$0xff]  ;;  %v1693_v59 = vld [vmem:[%s4669_s3 + $0x8] sm:$0xff] }
  0xe5   :  { %2856 = vmatpush3.bf16.msra.mxu0 %v2855_v9  ;;  %1615 = vmatprep.mubr.f32.mxu0 %v49_v22  ;;  %v2907_v9 = vpack.c.bf16 %v543_v3, %v542_v1  ;;  %v562_v22 = vld [vmem:[%s4666_s1 + $0xff0] sm:$0xff]  ;;  %v1696_v0 = vld [vmem:[%s4669_s3 + $0x20] sm:$0xff]  ;;  %v1697_v1 = vld [vmem:[%s4669_s3 + $0x28] sm:$0xff] }
  0xe6   :  { %1546 = vmatmul.mubr.f32.vlgmr.msra.gmra.mrb[12].mxu1 %v46_v10  ;;  %2858 = vmatprep.subr.bf16.mxu0 %v2857_v12  ;;  %v2877_v10 = vpack.c.bf16 %v529_v5, %v528_v4  ;;  %v513_v12 = vld [vmem:[%s4666_s1 + $0xe68] sm:$0xff]  ;;  %v1698_v3 = vld [vmem:[%s4669_s3 + $0x30] sm:$0xff]  ;;  %v1699_v4 = vld [vmem:[%s4669_s3 + $0x38] sm:$0xff] }
  0xe7   :  { %2888 = vmatpush3.bf16.msra.mxu1 %v2887_v11  ;;  %1685 = vmatprep.mubr.f32.mxu1 %v51_v24  ;;  %v512_v11 = vld [vmem:[%s4666_s1 + $0xe60] sm:$0xff]  ;;  %v2927_v5 = vpack.c.bf16 %v1699_v4, %v1698_v3 }
  0xe8   :  { %2890 = vmatprep.subr.bf16.mxu1 %v2889_v16  ;;  %v545_v16 = vld [vmem:[%s4666_s1 + $0xf68] sm:$0xff] }
  0xe9   :  { %2860 = vmatpush3.bf16.msra.mxu0 %v2859_v23  ;;  %v563_v23 = vld [vmem:[%s4666_s1 + $0xff8] sm:$0xff]  ;;  %v2911_v28 = vpack.c.bf16 %v545_v16, %v544_v13  ;;  %v1704_v13 = vld [vmem:[%s4669_s3 + $0x60] sm:$0xff] }
  0xea   :  { %2862 = vmatprep.subr.bf16.mxu0 %v2861_v26  ;;  %v2879_v26 = vpack.c.bf16 %v513_v12, %v512_v11  ;;  %v2913_v33 = vpack.c.bf16 %v563_v23, %v562_v22  ;;  %v1706_v22 = vld [vmem:[%s4669_s3 + $0x70] sm:$0xff]  ;;  %v1707_v23 = vld [vmem:[%s4669_s3 + $0x78] sm:$0xff] }
  0xeb   :  { %2892 = vmatpush3.bf16.msra.mxu1 %v2891_v25 }
  0xec   :  { %2894 = vmatprep.subr.bf16.mxu1 %v2893_v30  ;;  %v514_v30 = vld [vmem:[%s4666_s1 + $0xe70] sm:$0xff] }
  0xed   :  { %2864 = vmatpush3.bf16.msra.mxu0 %v2863_v36 }
  0xee   :  { %2866 = vmatprep.subr.bf16.mxu0 %v2865_v38  ;;  %v2915_v38 = vpack.c.bf16 %v547_v35, %v546_v34 }
  0xef   :  { %2896 = vmatpush3.bf16.msra.mxu1 %v2895_v37  ;;  %v2883_v37 = vpack.c.bf16 %v515_v31, %v514_v30 }
  0xf0   :  { %2898 = vmatprep.subr.bf16.mxu1 %v2897_v42 }
  0xf1   :  { %2868 = vmatpush3.bf16.msra.mxu0 %v2867_v48 }
  0xf2   :  { %2870 = vmatprep.subr.bf16.mxu0 %v2869_v50 }
  0xf3   :  { %2900 = vmatpush3.bf16.msra.mxu1 %v2899_v49 }
  0xf4   :  { %2902 = vmatprep.subr.bf16.mxu1 %v2901_v54 }
  0xf5   :  { %2872 = vmatpush3.bf16.msra.mxu0 %v2871_v60  ;;  %v1694_v60 = vld [vmem:[%s4669_s3 + $0x10] sm:$0xff] }
  0xf6   :  { %2874 = vmatprep.subr.bf16.mxu0 %v2873_v62  ;;  %v1695_v62 = vld [vmem:[%s4669_s3 + $0x18] sm:$0xff] }
  0xf7   :  { %2904 = vmatpush3.bf16.msra.mxu1 %v2903_v61  ;;  %v1825_v14 = vpop.f32.mrb[0].mxu0  ;;  %v2918_v61 = vpack.c.bf16 %v1693_v59, %v1692_v58  ;;  %v2921_v63 = vpack.c.bf16 %v1695_v62, %v1694_v60  ;;  %v1792_v60 = vld [vmem:[%s4670_s4] ss:$0 sm:$0xff] }
  0xf8   :  { %2906 = vmatprep.subr.bf16.mxu1 %v2905_v2  ;;  %v1826_v20 = vpop.f32.mrb[1].mxu0  ;;  %v2924_v2 = vpack.c.bf16 %v1697_v1, %v1696_v0 }
  0xf9   :  { %v1860_v21 = vpop.f32.mrb[0].mxu1  ;;  %v1827_v24 = vadd.f32 %v1826_v20, %v1825_v14  ;;  %2876 = vmatpush3.bf16.msra.mxu0 %v2875_v8  ;;  %v2930_v8 = vpack.c.bf16 %v1701_v7, %v1700_v6  ;;  %v1705_v14 = vld [vmem:[%s4669_s3 + $0x68] sm:$0xff] }
  0xfa   :  { %v1861_v25 = vpop.f32.mrb[1].mxu1  ;;  %2878 = vmatprep.subr.bf16.mxu0 %v2877_v10  ;;  %v1703_v10 = vld [vmem:[%s4669_s3 + $0x58] sm:$0xff]  ;;  %v2936_v17 = vpack.c.bf16 %v1705_v14, %v1704_v13 }
  0xfb   :  { %v1862_v27 = vadd.f32 %v1861_v25, %v1860_v21  ;;  %2908 = vmatpush3.bf16.msra.mxu1 %v2907_v9  ;;  %v638_v32 = vadd.f32 %v1827_v24, %v1791_v19  ;;  %v1702_v9 = vld [vmem:[%s4669_s3 + $0x50] sm:$0xff]  ;;  %v2939_v24 = vpack.c.bf16 %v1707_v23, %v1706_v22 }
  0xfc   :  { %2910 = vmatprep.subr.bf16.mxu1 %v2909_v15  ;;  %v2933_v11 = vpack.c.bf16 %v1703_v10, %v1702_v9 }
  0xfd   :  { %v708_v36 = vadd.f32 %v1862_v27, %v638_v32  ;;  %2880 = vmatpush3.bf16.msra.mxu0 %v2879_v26  ;;  %v2946_v26 = vmov 0.0  }
  0xfe   :  { %2882 = vmatprep.subr.bf16.mxu0 %v2881_v29 }
  0xff   :  { %2912 = vmatpush3.bf16.msra.mxu1 %v2911_v28 }
 0x100   :  { %2914 = vmatprep.subr.bf16.mxu1 %v2913_v33 }
 0x101   :  { %2884 = vmatpush3.bf16.msra.mxu0 %v2883_v37 }
 0x102   :  { %2917 = vmatprep.subr.bf16.mxu0 %v2944_v57 }
 0x103   :  { %2916 = vmatpush3.bf16.msra.mxu1 %v2915_v38 }
 0x104   :  { %1616 = vmatmul.mubr.f32.vlgmr.msra.gmra.mrb[14].mxu0 %v48_v39 }
 0x105   :  { %2919 = vmatpush3.bf16.msra.mxu0 %v2918_v61  ;;  %2402 = vmatprep.mubr.msk.f32.mxu0 %vm2945_vm0, %v2946_v26 }
 0x106   :  { %1686 = vmatmul.mubr.f32.vlgmr.msra.gmra.mrb[14].mxu1 %v50_v40  ;;  %2920 = vmatprep.subr.bf16.mxu0 %v2944_v57 }
 0x109   :  { %2922 = vmatpush3.bf16.msra.mxu0 %v2921_v63 }
 0x10a   :  { %2923 = vmatprep.subr.bf16.mxu0 %v2944_v57 }
 0x10d   :  { %2925 = vmatpush3.bf16.msra.mxu0 %v2924_v2 }
 0x10e   :  { %2926 = vmatprep.subr.bf16.mxu0 %v2944_v57 }
 0x111   :  { %2928 = vmatpush3.bf16.msra.mxu0 %v2927_v5 }
 0x112   :  { %2929 = vmatprep.subr.bf16.mxu0 %v2944_v57 }
 0x115   :  { %2931 = vmatpush3.bf16.msra.mxu0 %v2930_v8 }
 0x116   :  { %2932 = vmatprep.subr.bf16.mxu0 %v2944_v57 }
 0x117   :  { %v1895_v41 = vpop.f32.mrb[2].mxu0 }
 0x118   :  { %v1896_v42 = vpop.f32.mrb[3].mxu0 }
 0x119   :  { %v1930_v43 = vpop.f32.mrb[2].mxu1  ;;  %v1897_v44 = vadd.f32 %v1896_v42, %v1895_v41  ;;  %2934 = vmatpush3.bf16.msra.mxu0 %v2933_v11 }
 0x11a   :  { %v1931_v45 = vpop.f32.mrb[3].mxu1  ;;  %2935 = vmatprep.subr.bf16.mxu0 %v2944_v57 }
 0x11b   :  { %v1932_v46 = vadd.f32 %v1931_v45, %v1930_v43  ;;  %v778_v47 = vadd.f32 %v1897_v44, %v708_v36 }
 0x11d   :  { %v848_v48 = vadd.f32 %v1932_v46, %v778_v47  ;;  %2937 = vmatpush3.bf16.msra.mxu0 %v2936_v17 }
 0x11e   :  { %2938 = vmatprep.subr.bf16.mxu0 %v2944_v57 }
 0x121   :  { %2940 = vmatpush3.bf16.msra.mxu0 %v2939_v24 }
 0x137   :  { %v1965_v49 = vpop.f32.mrb[4].mxu0 }
 0x138   :  { %v1966_v50 = vpop.f32.mrb[5].mxu0 }
 0x139   :  { %v2000_v51 = vpop.f32.mrb[4].mxu1  ;;  %v1967_v52 = vadd.f32 %v1966_v50, %v1965_v49 }
 0x13a   :  { %v2001_v53 = vpop.f32.mrb[5].mxu1 }
 0x13b   :  { %v2002_v54 = vadd.f32 %v2001_v53, %v2000_v51  ;;  %v918_v55 = vadd.f32 %v1967_v52, %v848_v48 }
 0x13d   :  { %v988_v56 = vadd.f32 %v2002_v54, %v918_v55 }
 0x157   :  { %v2035_v12 = vpop.f32.mrb[6].mxu0 }
 0x158   :  { %v2036_v15 = vpop.f32.mrb[7].mxu0 }
 0x159   :  { %v2070_v16 = vpop.f32.mrb[6].mxu1  ;;  %v2037_v18 = vadd.f32 %v2036_v15, %v2035_v12 }
 0x15a   :  { %v2071_v19 = vpop.f32.mrb[7].mxu1 }
 0x15b   :  { %v2072_v20 = vadd.f32 %v2071_v19, %v2070_v16  ;;  %v1058_v21 = vadd.f32 %v2037_v18, %v988_v56 }
 0x15d   :  { %v1128_v25 = vadd.f32 %v2072_v20, %v1058_v21 }
 0x177   :  { %v2105_v27 = vpop.f32.mrb[8].mxu0 }
 0x178   :  { %v2106_v28 = vpop.f32.mrb[9].mxu0 }
 0x179   :  { %v2140_v29 = vpop.f32.mrb[8].mxu1  ;;  %v2107_v30 = vadd.f32 %v2106_v28, %v2105_v27 }
 0x17a   :  { %v2141_v31 = vpop.f32.mrb[9].mxu1 }
 0x17b   :  { %v2142_v32 = vadd.f32 %v2141_v31, %v2140_v29  ;;  %v1198_v33 = vadd.f32 %v2107_v30, %v1128_v25 }
 0x17d   :  { %v1268_v34 = vadd.f32 %v2142_v32, %v1198_v33 }
 0x197   :  { %v2175_v35 = vpop.f32.mrb[10].mxu0 }
 0x198   :  { %v2176_v36 = vpop.f32.mrb[11].mxu0 }
 0x199   :  { %v2210_v37 = vpop.f32.mrb[10].mxu1  ;;  %v2177_v38 = vadd.f32 %v2176_v36, %v2175_v35 }
 0x19a   :  { %v2211_v39 = vpop.f32.mrb[11].mxu1 }
 0x19b   :  { %v2212_v40 = vadd.f32 %v2211_v39, %v2210_v37  ;;  %v1338_v41 = vadd.f32 %v2177_v38, %v1268_v34 }
 0x19d   :  { %v1408_v42 = vadd.f32 %v2212_v40, %v1338_v41 }
 0x1b7   :  { %v2245_v43 = vpop.f32.mrb[12].mxu0 }
 0x1b8   :  { %v2246_v44 = vpop.f32.mrb[13].mxu0 }
 0x1b9   :  { %v2280_v45 = vpop.f32.mrb[12].mxu1  ;;  %v2247_v46 = vadd.f32 %v2246_v44, %v2245_v43 }
 0x1ba   :  { %v2281_v47 = vpop.f32.mrb[13].mxu1 }
 0x1bb   :  { %v2282_v48 = vadd.f32 %v2281_v47, %v2280_v45  ;;  %v1478_v49 = vadd.f32 %v2247_v46, %v1408_v42 }
 0x1bd   :  { %v1548_v50 = vadd.f32 %v2282_v48, %v1478_v49 }
 0x1d7   :  { %v2315_v51 = vpop.f32.mrb[14].mxu0 }
 0x1d8   :  { %v2316_v52 = vpop.f32.mrb[15].mxu0 }
 0x1d9   :  { %v2350_v53 = vpop.f32.mrb[14].mxu1  ;;  %v2317_v54 = vadd.f32 %v2316_v52, %v2315_v51 }
 0x1da   :  { %v2351_v55 = vpop.f32.mrb[15].mxu1 }
 0x1db   :  { %v2352_v56 = vadd.f32 %v2351_v55, %v2350_v53  ;;  %v1618_v57 = vadd.f32 %v2317_v54, %v1548_v50 }
 0x1dd   :  { %v1688_v58 = vadd.f32 %v2352_v56, %v1618_v57 }
 0x1df   :  { %v1691_v59 = vmax.f32 %v1688_v58, 0.0 }
 0x1e1   :  { %2403 = vmatmul.mubr.f32.vlgmr.msra.gmra.mrb[16].mxu0 %v1691_v59 }
 0x2b4   :  { %v1781_v61 = vpop.f32.mrb[16].mxu0 }
 0x2b5   :  { %v1782_v62 = vadd.f32 %v1792_v60, %v1781_v61  ;;  %v2404_v63 = vpop.f32.mrb[17].mxu0 }
 0x2b7   :  { %1786 = vst.msk [vmem:[%s4671_s5] sm:$0xff] %vm1785_vm1, %v1782_v62 }

// kernel: forward.4
= control target key start
LH: loop header
LB: loop body
LE: loop exit
PB: predicated region body
PF: predicated region fallthrough
CT: control target
= control target key end

     0   :  { %s7529_s15 = smov 0   ;;  %s8668_s0 = inlined_call_operand.vmem [shape: f32[2,18,9,32], index: 0, kind: input, shape index: {}]   ;;  %s8669_s1 = inlined_call_operand.vmem [shape: f32[2,18,9,32], index: 1, kind: input, shape index: {}]   ;;  %s8670_s2 = inlined_call_operand.vmem [shape: f32[9,32,64], index: 2, kind: input, shape index: {}]   ;;  %s8671_s3 = inlined_call_operand.vmem [shape: f32[1,64], index: 3, kind: input, shape index: {}]   ;;  %s8672_s4 = inlined_call_operand.vmem [shape: f32[2,8,8,64], index: 4, kind: output, shape index: {}]  }
   0x1 LB: > { %s5259_s16 = sadd.s32 4294967295, %s7502_s15   ;;  %p5263_p0 = scmp.ge.s32.totalorder %s7502_s15, 1  ;;  %s7502_s15 = sphi %s7529_s15, %s14_s15  }
   0x2   : > { %p172_p1 = scmp.lt.s32.totalorder %s7502_s15, 3 }
   0x4   : > { %p173_p2 = pnand %p5263_p0, %p172_p1 }
   0x5   : > { %v5268_v0 = vld [vmem:[%s8670_s2 + $0x20] sm:$0xff] (!%p173_p2)  ;;  %v5269_v1 = vld [vmem:[%s8670_s2 + $0x28] sm:$0xff] (!%p173_p2)  ;;  %v5270_v2 = vld [vmem:[%s8670_s2 + $0x30] sm:$0xff] (!%p173_p2)  ;;  %p203_p3 = scmp.lt.s32.totalorder (!%p173_p2), %s5259_s16, 1  ;;  %vm244_vm0 = vcmask (!%p173_p2), 261120   ;;  %vm2701_vm1 = vcmask (!%p173_p2), 523264  }
   0x6   : > { %176 = sbr.rel (%p173_p2) target bundleno = 526 (0x20e), region = 36  ;;  %v7546_v3 = vpack.c.bf16 (!%p173_p2), %v5269_v1, %v5268_v0  ;;  %v5271_v4 = vld [vmem:[%s8670_s2 + $0x38] sm:$0xff] (!%p173_p2)  ;;  %v227_v6 = vld [vmem:[%s8670_s2] sm:$0xff] (!%p173_p2)  ;;  %v228_v7 = vld [vmem:[%s8670_s2 + $0x8] sm:$0xff] (!%p173_p2) }
   0x7   : > { %v7551_v5 = vpack.c.bf16 (!%p173_p2), %v5271_v4, %v5270_v2  ;;  %v7578_v8 = vpack.c.bf16 (!%p173_p2), %v228_v7, %v227_v6  ;;  %v229_v9 = vld [vmem:[%s8670_s2 + $0x10] sm:$0xff] (!%p173_p2)  ;;  %v230_v12 = vld [vmem:[%s8670_s2 + $0x18] sm:$0xff] (!%p173_p2)  ;;  %v5288_v18 = vld [vmem:[%s8670_s2 + $0x40] sm:$0xff] (!%p173_p2) }
   0x8   : > { %6944 = vmatprep.subr.bf16.mxu0 (!%p173_p2), %v7546_v3  ;;  %7016 = vmatprep.subr.bf16.mxu1 (!%p173_p2), %v7546_v3  ;;  %v7609_v17 = vpack.c.bf16 (!%p173_p2), %v230_v12, %v229_v9  ;;  %v5289_v19 = vld [vmem:[%s8670_s2 + $0x48] sm:$0xff] (!%p173_p2)  ;;  %v5290_v32 = vld [vmem:[%s8670_s2 + $0x50] sm:$0xff] (!%p173_p2)  ;;  %v5291_v33 = vld [vmem:[%s8670_s2 + $0x58] sm:$0xff] (!%p173_p2) }
   0x9   : > { %6946 = vmatpush3.bf16.msra.mxu0 (!%p173_p2), %v7546_v3  ;;  %7018 = vmatpush3.bf16.msra.mxu1 (!%p173_p2), %v7546_v3  ;;  %v7641_v24 = vpack.c.bf16 (!%p173_p2), %v5289_v19, %v5288_v18  ;;  %v7700_v36 = vpack.c.bf16 (!%p173_p2), %v5291_v33, %v5290_v32  ;;  %v5308_v37 = vld [vmem:[%s8670_s2 + $0x60] sm:$0xff] (!%p173_p2)  ;;  %v5309_v38 = vld [vmem:[%s8670_s2 + $0x68] sm:$0xff] (!%p173_p2)  ;;  %v5310_v46 = vld [vmem:[%s8670_s2 + $0x70] sm:$0xff] (!%p173_p2) }
   0xa   : > { %6948 = vmatprep.subr.bf16.mxu0 (!%p173_p2), %v7551_v5  ;;  %7020 = vmatprep.subr.bf16.mxu1 (!%p173_p2), %v7551_v5  ;;  %v7726_v41 = vpack.c.bf16 (!%p173_p2), %v5309_v38, %v5308_v37  ;;  %v5311_v47 = vld [vmem:[%s8670_s2 + $0x78] sm:$0xff] (!%p173_p2)  ;;  %v5328_v51 = vld [vmem:[%s8670_s2 + $0x80] sm:$0xff] (!%p173_p2)  ;;  %v5329_v52 = vld [vmem:[%s8670_s2 + $0x88] sm:$0xff] (!%p173_p2) }
   0xb   : > { %v7777_v50 = vpack.c.bf16 (!%p173_p2), %v5311_v47, %v5310_v46  ;;  %v7803_v55 = vpack.c.bf16 (!%p173_p2), %v5329_v52, %v5328_v51  ;;  %v5330_v59 = vld [vmem:[%s8670_s2 + $0x90] sm:$0xff] (!%p173_p2)  ;;  %v5331_v60 = vld [vmem:[%s8670_s2 + $0x98] sm:$0xff] (!%p173_p2)  ;;  %v5348_v62 = vld [vmem:[%s8670_s2 + $0xa0] sm:$0xff] (!%p173_p2) }
   0xc   : > { %v7848_v61 = vpack.c.bf16 (!%p173_p2), %v5331_v60, %v5330_v59  ;;  %v5349_v63 = vld [vmem:[%s8670_s2 + $0xa8] sm:$0xff] (!%p173_p2)  ;;  %v5350_v4 = vld [vmem:[%s8670_s2 + $0xb0] sm:$0xff] (!%p173_p2)  ;;  %v5351_v6 = vld [vmem:[%s8670_s2 + $0xb8] sm:$0xff] (!%p173_p2) }
   0xd   : > { %s8674_s16 = smov (!%p203_p3, %s5259_s16), 1  ;;  %6950 = vmatpush3.bf16.msra.mxu0 %v7551_v5  ;;  %7022 = vmatpush3.bf16.msra.mxu1 %v7551_v5  ;;  %v7868_v0 = vpack.c.bf16 %v5349_v63, %v5348_v62  ;;  %v7910_v7 = vpack.c.bf16 %v5351_v6, %v5350_v4  ;;  %v5368_v9 = vld [vmem:[%s8670_s2 + $0xc0] sm:$0xff]  ;;  %v5371_v18 = vld [vmem:[%s8670_s2 + $0xd8] sm:$0xff]  ;;  %v5389_v32 = vld [vmem:[%s8670_s2 + $0xe8] sm:$0xff] }
   0xe   : > { %s7487_s29 = smul.u32 288, %s8674_s16  ;;  %6952 = vmatprep.subr.bf16.mxu0 %v7578_v8  ;;  %7024 = vmatprep.subr.bf16.mxu1 %v7578_v8  ;;  %v5391_v37 = vld [vmem:[%s8670_s2 + $0xf8] sm:$0xff]  ;;  %v5409_v46 = vld [vmem:[%s8670_s2 + $0x108] sm:$0xff]  ;;  %v8609_v62 = vld [vmem:[%s8671_s3] ss:$0 sm:$0xff] }
  0x10   : > { %s7571_s6 = scalar_lea.vmem %s8669_s1, %s7487_s29  ;;  %s7576_s9 = scalar_lea.vmem %s8668_s0, %s7487_s29 }
  0x11   : > { %v231_v10 = vld [vmem:[%s7571_s6] sm:$0xff]  ;;  %v7593_v13 = vld [vmem:[%s7571_s6 + $0x10] sm:$0xff] }
  0x12   : > { %v7585_v11 = vld [vmem:[%s7576_s9 + $0x1] sm:$0xff]  ;;  %v7596_v14 = vld [vmem:[%s7576_s9 + $0x11] sm:$0xff]  ;;  %6231 = vmatprep.mubr.msk.f32.mxu0 %vm244_vm0, %v231_v10 }
  0x13   : > { %6411 = vmatprep.mubr.msk.f32.mxu1 %vm244_vm0, %v7585_v11  ;;  %v7604_v15 = vld [vmem:[%s7571_s6 + $0x20] sm:$0xff]  ;;  %6232 = vmatmul.mubr.msk.f32.vlgmr.msra.gmra.mrb[0].mxu0 %vm244_vm0, %v7593_v13  ;;  %v7624_v20 = vld [vmem:[%s7571_s6 + $0x30] sm:$0xff] }
  0x14   : > { %v7607_v16 = vld [vmem:[%s7576_s9 + $0x21] sm:$0xff]  ;;  %6412 = vmatmul.mubr.msk.f32.vlgmr.msra.gmra.mrb[0].mxu1 %vm244_vm0, %v7596_v14  ;;  %6954 = vmatpush3.bf16.msra.mxu0 %v7578_v8  ;;  %v7627_v21 = vld [vmem:[%s7576_s9 + $0x31] sm:$0xff] }
  0x15   : > { %7026 = vmatpush3.bf16.msra.mxu1 %v7578_v8  ;;  %6234 = vmatprep.mubr.msk.f32.mxu0 %vm244_vm0, %v7604_v15  ;;  %v7634_v22 = vld [vmem:[%s7571_s6 + $0x40] sm:$0xff]  ;;  %v7652_v25 = vld [vmem:[%s7571_s6 + $0x50] sm:$0xff] }
  0x16   : > { %6414 = vmatprep.mubr.msk.f32.mxu1 %vm244_vm0, %v7607_v16  ;;  %v7637_v23 = vld [vmem:[%s7576_s9 + $0x41] sm:$0xff]  ;;  %6956 = vmatprep.subr.bf16.mxu0 %v7609_v17  ;;  %v7655_v26 = vld [vmem:[%s7576_s9 + $0x51] sm:$0xff] }
  0x17   : > { %7028 = vmatprep.subr.bf16.mxu1 %v7609_v17  ;;  %6235 = vmatmul.mubr.msk.f32.gmra.mrb[2].mxu0 %vm244_vm0, %v7624_v20  ;;  %v7660_v27 = vld [vmem:[%s7571_s6 + $0x60] sm:$0xff]  ;;  %v7676_v29 = vld [vmem:[%s7571_s6 + $0x70] sm:$0xff] }
  0x18   : > { %6415 = vmatmul.mubr.msk.f32.gmra.mrb[2].mxu1 %vm244_vm0, %v7627_v21  ;;  %6237 = vmatprep.mubr.msk.f32.mxu0 %vm244_vm0, %v7634_v22  ;;  %v7663_v28 = vld [vmem:[%s7576_s9 + $0x61] sm:$0xff]  ;;  %v7679_v30 = vld [vmem:[%s7576_s9 + $0x71] sm:$0xff] }
  0x19   : > { %6417 = vmatprep.mubr.msk.f32.mxu1 %vm244_vm0, %v7637_v23  ;;  %6958 = vmatpush3.bf16.msra.mxu0 %v7609_v17  ;;  %v219_v31 = vld [vmem:[%s7576_s9] sm:$0xff]  ;;  %v7695_v34 = vld [vmem:[%s7576_s9 + $0x10] sm:$0xff] }
  0x1a   : > { %7030 = vmatpush3.bf16.msra.mxu1 %v7609_v17  ;;  %6960 = vmatprep.subr.bf16.mxu0 %v7641_v24  ;;  %v7698_v35 = vld [vmem:[%s7576_s9 + $0x20] sm:$0xff]  ;;  %v7715_v39 = vld [vmem:[%s7576_s9 + $0x30] sm:$0xff] }
  0x1b   : > { %7032 = vmatprep.subr.bf16.mxu1 %v7641_v24  ;;  %6238 = vmatmul.mubr.msk.f32.gmra.mrb[4].mxu0 %vm244_vm0, %v7652_v25  ;;  %v7722_v40 = vld [vmem:[%s7576_s9 + $0x40] sm:$0xff]  ;;  %v7737_v42 = vld [vmem:[%s7576_s9 + $0x50] sm:$0xff] }
  0x1c   : > { %6418 = vmatmul.mubr.msk.f32.gmra.mrb[4].mxu1 %vm244_vm0, %v7655_v26  ;;  %6240 = vmatprep.mubr.msk.f32.mxu0 %vm244_vm0, %v7660_v27  ;;  %v7742_v43 = vld [vmem:[%s7576_s9 + $0x60] sm:$0xff]  ;;  %v7755_v44 = vld [vmem:[%s7576_s9 + $0x70] sm:$0xff] }
  0x1d   : > { %6420 = vmatprep.mubr.msk.f32.mxu1 %vm244_vm0, %v7663_v28  ;;  %v1789_v45 = vld [vmem:[%s7571_s6 + $0x1] sm:$0xff]  ;;  %v7772_v48 = vld [vmem:[%s7571_s6 + $0x11] sm:$0xff] }
  0x1e   : > { %v7775_v49 = vld [vmem:[%s7571_s6 + $0x21] sm:$0xff]  ;;  %v7792_v53 = vld [vmem:[%s7571_s6 + $0x31] sm:$0xff] }
  0x1f   : > { %6241 = vmatmul.mubr.msk.f32.gmra.mrb[6].mxu0 %vm244_vm0, %v7676_v29  ;;  %v7799_v54 = vld [vmem:[%s7571_s6 + $0x41] sm:$0xff]  ;;  %v7814_v56 = vld [vmem:[%s7571_s6 + $0x51] sm:$0xff] }
  0x20   : > { %6421 = vmatmul.mubr.msk.f32.gmra.mrb[6].mxu1 %vm244_vm0, %v7679_v30  ;;  %6251 = vmatprep.mubr.msk.f32.mxu0 %vm244_vm0, %v219_v31  ;;  %v7819_v57 = vld [vmem:[%s7571_s6 + $0x61] sm:$0xff]  ;;  %v7832_v58 = vld [vmem:[%s7571_s6 + $0x71] sm:$0xff] }
  0x21   : > { %6431 = vmatprep.mubr.msk.f32.mxu1 %vm244_vm0, %v231_v10  ;;  %v7891_v1 = vld [vmem:[%s7576_s9 + $0x80] sm:$0xff]  ;;  %v5369_v10 = vld [vmem:[%s8670_s2 + $0xc8] sm:$0xff]  ;;  %v8322_v51 = vld [vmem:[%s7571_s6 + $0xb1] sm:$0xff] }
  0x22   : > { %v7894_v2 = vld [vmem:[%s7571_s6 + $0x80] sm:$0xff]  ;;  %v5655_v59 = vld [vmem:[%s7571_s6 + $0x110] sm:$0xff] }
  0x23   : > { %6252 = vmatmul.mubr.msk.f32.vlgmr.msra.gmra.mrb[0].mxu0 %vm244_vm0, %v7695_v34  ;;  %v7953_v12 = vld [vmem:[%s7576_s9 + $0x81] sm:$0xff]  ;;  %v5675_v60 = vld [vmem:[%s7576_s9 + $0x111] sm:$0xff] }
  0x24   : > { %6432 = vmatmul.mubr.msk.f32.vlgmr.msra.gmra.mrb[0].mxu1 %vm244_vm0, %v7593_v13  ;;  %6962 = vmatpush3.bf16.msra.mxu0 %v7641_v24  ;;  %v5388_v31 = vld [vmem:[%s8670_s2 + $0xe0] sm:$0xff] }
  0x25   : > { %7034 = vmatpush3.bf16.msra.mxu1 %v7641_v24  ;;  %6254 = vmatprep.mubr.msk.f32.mxu0 %vm244_vm0, %v7698_v35  ;;  %v8012_v33 = vld [vmem:[%s7571_s6 + $0x81] sm:$0xff] }
  0x26   : > { %6434 = vmatprep.mubr.msk.f32.mxu1 %vm244_vm0, %v7604_v15  ;;  %6964 = vmatprep.subr.bf16.mxu0 %v7700_v36  ;;  %v8271_v47 = vld [vmem:[%s7576_s9 + $0xc0] sm:$0xff] }
  0x27   : > { %7036 = vmatprep.subr.bf16.mxu1 %v7700_v36  ;;  %6255 = vmatmul.mubr.msk.f32.gmra.mrb[2].mxu0 %vm244_vm0, %v7715_v39  ;;  %v8329_v52 = vld [vmem:[%s7571_s6 + $0xc1] sm:$0xff] }
  0x28   : > { %6435 = vmatmul.mubr.msk.f32.gmra.mrb[2].mxu1 %vm244_vm0, %v7624_v20  ;;  %6257 = vmatprep.mubr.msk.f32.mxu0 %vm244_vm0, %v7722_v40 }
  0x29   : > { %6437 = vmatprep.mubr.msk.f32.mxu1 %vm244_vm0, %v7634_v22  ;;  %6966 = vmatpush3.bf16.msra.mxu0 %v7700_v36 }
  0x2a   : > { %7038 = vmatpush3.bf16.msra.mxu1 %v7700_v36  ;;  %6968 = vmatprep.subr.bf16.mxu0 %v7726_v41 }
  0x2b   : > { %7040 = vmatprep.subr.bf16.mxu1 %v7726_v41  ;;  %6258 = vmatmul.mubr.msk.f32.gmra.mrb[4].mxu0 %vm244_vm0, %v7737_v42 }
  0x2c   : > { %6438 = vmatmul.mubr.msk.f32.gmra.mrb[4].mxu1 %vm244_vm0, %v7652_v25  ;;  %6260 = vmatprep.mubr.msk.f32.mxu0 %vm244_vm0, %v7742_v43 }
  0x2d   : > { %6440 = vmatprep.mubr.msk.f32.mxu1 %vm244_vm0, %v7660_v27 }
  0x2f   : > { %6261 = vmatmul.mubr.msk.f32.gmra.mrb[6].mxu0 %vm244_vm0, %v7755_v44 }
  0x30   : > { %6441 = vmatmul.mubr.msk.f32.gmra.mrb[6].mxu1 %vm244_vm0, %v7676_v29  ;;  %6271 = vmatprep.mubr.msk.f32.mxu0 %vm244_vm0, %v7585_v11  ;;  %v7930_v11 = vpack.c.bf16 %v5369_v10, %v5368_v9 }
  0x31   : > { %6451 = vmatprep.mubr.msk.f32.mxu1 %vm244_vm0, %v1789_v45  ;;  %v5408_v45 = vld [vmem:[%s8670_s2 + $0x100] sm:$0xff] }
  0x33   : > { %6272 = vmatmul.mubr.msk.f32.vlgmr.msra.gmra.mrb[0].mxu0 %vm244_vm0, %v7596_v14 }
  0x34   : > { %6452 = vmatmul.mubr.msk.f32.vlgmr.msra.gmra.mrb[0].mxu1 %vm244_vm0, %v7772_v48  ;;  %6970 = vmatpush3.bf16.msra.mxu0 %v7726_v41 }
  0x35   : > { %7042 = vmatpush3.bf16.msra.mxu1 %v7726_v41  ;;  %6274 = vmatprep.mubr.msk.f32.mxu0 %vm244_vm0, %v7607_v16 }
  0x36   : > { %6454 = vmatprep.mubr.msk.f32.mxu1 %vm244_vm0, %v7775_v49  ;;  %6972 = vmatprep.subr.bf16.mxu0 %v7777_v50 }
  0x37   : > { %7044 = vmatprep.subr.bf16.mxu1 %v7777_v50  ;;  %6275 = vmatmul.mubr.msk.f32.gmra.mrb[2].mxu0 %vm244_vm0, %v7627_v21 }
  0x38   : > { %6455 = vmatmul.mubr.msk.f32.gmra.mrb[2].mxu1 %vm244_vm0, %v7792_v53  ;;  %6277 = vmatprep.mubr.msk.f32.mxu0 %vm244_vm0, %v7637_v23 }
  0x39   : > { %6457 = vmatprep.mubr.msk.f32.mxu1 %vm244_vm0, %v7799_v54  ;;  %6974 = vmatpush3.bf16.msra.mxu0 %v7777_v50 }
  0x3a   : > { %7046 = vmatpush3.bf16.msra.mxu1 %v7777_v50  ;;  %6976 = vmatprep.subr.bf16.mxu0 %v7803_v55 }
  0x3b   : > { %7048 = vmatprep.subr.bf16.mxu1 %v7803_v55  ;;  %6278 = vmatmul.mubr.msk.f32.gmra.mrb[4].mxu0 %vm244_vm0, %v7655_v26 }
  0x3c   : > { %6458 = vmatmul.mubr.msk.f32.gmra.mrb[4].mxu1 %vm244_vm0, %v7814_v56  ;;  %6280 = vmatprep.mubr.msk.f32.mxu0 %vm244_vm0, %v7663_v28 }
  0x3d   : > { %6460 = vmatprep.mubr.msk.f32.mxu1 %vm244_vm0, %v7819_v57 }
  0x3f   : > { %6281 = vmatmul.mubr.msk.f32.gmra.mrb[6].mxu0 %vm244_vm0, %v7679_v30 }
  0x40   : > { %6461 = vmatmul.mubr.msk.f32.gmra.mrb[6].mxu1 %vm244_vm0, %v7832_v58  ;;  %6291 = vmatprep.mubr.msk.f32.mxu0 %vm244_vm0, %v7695_v34  ;;  %v5390_v34 = vld [vmem:[%s8670_s2 + $0xf0] sm:$0xff] }
  0x41   : > { %6471 = vmatprep.mubr.msk.f32.mxu1 %vm244_vm0, %v7593_v13  ;;  %v8028_v38 = vpack.c.bf16 %v5391_v37, %v5390_v34 }
  0x43   : > { %6292 = vmatmul.mubr.msk.f32.vlgmr.msra.gmra.mrb[0].mxu0 %vm244_vm0, %v7698_v35 }
  0x44   : > { %6472 = vmatmul.mubr.msk.f32.vlgmr.msra.gmra.mrb[0].mxu1 %vm244_vm0, %v7604_v15  ;;  %6978 = vmatpush3.bf16.msra.mxu0 %v7803_v55 }
  0x45   : > { %7050 = vmatpush3.bf16.msra.mxu1 %v7803_v55  ;;  %6294 = vmatprep.mubr.msk.f32.mxu0 %vm244_vm0, %v7715_v39 }
  0x46   : > { %6474 = vmatprep.mubr.msk.f32.mxu1 %vm244_vm0, %v7624_v20  ;;  %6980 = vmatprep.subr.bf16.mxu0 %v7848_v61 }
  0x47   : > { %7052 = vmatprep.subr.bf16.mxu1 %v7848_v61  ;;  %6295 = vmatmul.mubr.msk.f32.gmra.mrb[2].mxu0 %vm244_vm0, %v7722_v40 }
  0x48   : > { %6475 = vmatmul.mubr.msk.f32.gmra.mrb[2].mxu1 %vm244_vm0, %v7634_v22  ;;  %6297 = vmatprep.mubr.msk.f32.mxu0 %vm244_vm0, %v7737_v42 }
  0x49   : > { %6477 = vmatprep.mubr.msk.f32.mxu1 %vm244_vm0, %v7652_v25  ;;  %6982 = vmatpush3.bf16.msra.mxu0 %v7848_v61 }
  0x4a   : > { %7054 = vmatpush3.bf16.msra.mxu1 %v7848_v61  ;;  %6984 = vmatprep.subr.bf16.mxu0 %v7868_v0 }
  0x4b   : > { %7056 = vmatprep.subr.bf16.mxu1 %v7868_v0  ;;  %6298 = vmatmul.mubr.msk.f32.gmra.mrb[4].mxu0 %vm244_vm0, %v7742_v43 }
  0x4c   : > { %6478 = vmatmul.mubr.msk.f32.gmra.mrb[4].mxu1 %vm244_vm0, %v7660_v27  ;;  %6300 = vmatprep.mubr.msk.f32.mxu0 %vm244_vm0, %v7755_v44 }
  0x4d   : > { %6480 = vmatprep.mubr.msk.f32.mxu1 %vm244_vm0, %v7676_v29 }
  0x4f   : > { %6301 = vmatmul.mubr.msk.f32.gmra.mrb[6].mxu0 %vm244_vm0, %v7891_v1 }
  0x50   : > { %6481 = vmatmul.mubr.msk.f32.gmra.mrb[6].mxu1 %vm244_vm0, %v7894_v2  ;;  %6311 = vmatprep.mubr.msk.f32.mxu0 %vm244_vm0, %v7593_v13  ;;  %v5370_v13 = vld [vmem:[%s8670_s2 + $0xd0] sm:$0xff] }
  0x51   : > { %6491 = vmatprep.mubr.msk.f32.mxu1 %vm244_vm0, %v7596_v14  ;;  %v7969_v19 = vpack.c.bf16 %v5371_v18, %v5370_v13 }
  0x53   : > { %6312 = vmatmul.mubr.msk.f32.vlgmr.msra.gmra.mrb[0].mxu0 %vm244_vm0, %v7604_v15 }
  0x54   : > { %6492 = vmatmul.mubr.msk.f32.vlgmr.msra.gmra.mrb[0].mxu1 %vm244_vm0, %v7607_v16  ;;  %6986 = vmatpush3.bf16.msra.mxu0 %v7868_v0 }
  0x55   : > { %7058 = vmatpush3.bf16.msra.mxu1 %v7868_v0  ;;  %6314 = vmatprep.mubr.msk.f32.mxu0 %vm244_vm0, %v7624_v20 }
  0x56   : > { %6494 = vmatprep.mubr.msk.f32.mxu1 %vm244_vm0, %v7627_v21  ;;  %6988 = vmatprep.subr.bf16.mxu0 %v7910_v7 }
  0x57   : > { %7060 = vmatprep.subr.bf16.mxu1 %v7910_v7  ;;  %6315 = vmatmul.mubr.msk.f32.gmra.mrb[2].mxu0 %vm244_vm0, %v7634_v22 }
  0x58   : > { %6495 = vmatmul.mubr.msk.f32.gmra.mrb[2].mxu1 %vm244_vm0, %v7637_v23  ;;  %6317 = vmatprep.mubr.msk.f32.mxu0 %vm244_vm0, %v7652_v25 }
  0x59   : > { %6497 = vmatprep.mubr.msk.f32.mxu1 %vm244_vm0, %v7655_v26  ;;  %6990 = vmatpush3.bf16.msra.mxu0 %v7910_v7 }
  0x5a   : > { %7062 = vmatpush3.bf16.msra.mxu1 %v7910_v7  ;;  %6992 = vmatprep.subr.bf16.mxu0 %v7930_v11 }
  0x5b   : > { %7064 = vmatprep.subr.bf16.mxu1 %v7930_v11  ;;  %6318 = vmatmul.mubr.msk.f32.gmra.mrb[4].mxu0 %vm244_vm0, %v7660_v27 }
  0x5c   : > { %6498 = vmatmul.mubr.msk.f32.gmra.mrb[4].mxu1 %vm244_vm0, %v7663_v28  ;;  %6320 = vmatprep.mubr.msk.f32.mxu0 %vm244_vm0, %v7676_v29 }
  0x5d   : > { %6500 = vmatprep.mubr.msk.f32.mxu1 %vm244_vm0, %v7679_v30 }
  0x5f   : > { %6321 = vmatmul.mubr.msk.f32.gmra.mrb[6].mxu0 %vm244_vm0, %v7894_v2 }
  0x60   : > { %6501 = vmatmul.mubr.msk.f32.gmra.mrb[6].mxu1 %vm244_vm0, %v7953_v12  ;;  %6331 = vmatprep.mubr.msk.f32.mxu0 %vm244_vm0, %v7596_v14  ;;  %v7989_v14 = vpack.c.bf16 %v5389_v32, %v5388_v31 }
  0x61   : > { %6511 = vmatprep.mubr.msk.f32.mxu1 %vm244_vm0, %v7772_v48  ;;  %v8289_v48 = vld [vmem:[%s7576_s9 + $0xe0] sm:$0xff] }
  0x63   : > { %6332 = vmatmul.mubr.msk.f32.vlgmr.msra.gmra.mrb[0].mxu0 %vm244_vm0, %v7607_v16 }
  0x64   : > { %6512 = vmatmul.mubr.msk.f32.vlgmr.msra.gmra.mrb[0].mxu1 %vm244_vm0, %v7775_v49  ;;  %6994 = vmatpush3.bf16.msra.mxu0 %v7930_v11 }
  0x65   : > { %7066 = vmatpush3.bf16.msra.mxu1 %v7930_v11  ;;  %6334 = vmatprep.mubr.msk.f32.mxu0 %vm244_vm0, %v7627_v21 }
  0x66   : > { %6514 = vmatprep.mubr.msk.f32.mxu1 %vm244_vm0, %v7792_v53  ;;  %6996 = vmatprep.subr.bf16.mxu0 %v7969_v19 }
  0x67   : > { %7068 = vmatprep.subr.bf16.mxu1 %v7969_v19  ;;  %6335 = vmatmul.mubr.msk.f32.gmra.mrb[2].mxu0 %vm244_vm0, %v7637_v23 }
  0x68   : > { %6515 = vmatmul.mubr.msk.f32.gmra.mrb[2].mxu1 %vm244_vm0, %v7799_v54  ;;  %6337 = vmatprep.mubr.msk.f32.mxu0 %vm244_vm0, %v7655_v26 }
  0x69   : > { %6517 = vmatprep.mubr.msk.f32.mxu1 %vm244_vm0, %v7814_v56  ;;  %6998 = vmatpush3.bf16.msra.mxu0 %v7969_v19 }
  0x6a   : > { %7070 = vmatpush3.bf16.msra.mxu1 %v7969_v19  ;;  %7000 = vmatprep.subr.bf16.mxu0 %v7989_v14 }
  0x6b   : > { %7072 = vmatprep.subr.bf16.mxu1 %v7989_v14  ;;  %6338 = vmatmul.mubr.msk.f32.gmra.mrb[4].mxu0 %vm244_vm0, %v7663_v28 }
  0x6c   : > { %6518 = vmatmul.mubr.msk.f32.gmra.mrb[4].mxu1 %vm244_vm0, %v7819_v57  ;;  %6340 = vmatprep.mubr.msk.f32.mxu0 %vm244_vm0, %v7679_v30 }
  0x6d   : > { %6520 = vmatprep.mubr.msk.f32.mxu1 %vm244_vm0, %v7832_v58 }
  0x6f   : > { %6341 = vmatmul.mubr.msk.f32.gmra.mrb[6].mxu0 %vm244_vm0, %v7953_v12 }
  0x70   : > { %6521 = vmatmul.mubr.msk.f32.gmra.mrb[6].mxu1 %vm244_vm0, %v8012_v33  ;;  %6351 = vmatprep.mubr.msk.f32.mxu0 %vm244_vm0, %v7698_v35  ;;  %v8048_v35 = vpack.c.bf16 %v5409_v46, %v5408_v45 }
  0x71   : > { %6531 = vmatprep.mubr.msk.f32.mxu1 %vm244_vm0, %v7604_v15 }
  0x73   : > { %6352 = vmatmul.mubr.msk.f32.vlgmr.msra.gmra.mrb[0].mxu0 %vm244_vm0, %v7715_v39  ;;  %v8071_v39 = vld [vmem:[%s7576_s9 + $0x90] sm:$0xff] }
  0x74   : > { %6532 = vmatmul.mubr.msk.f32.vlgmr.msra.gmra.mrb[0].mxu1 %vm244_vm0, %v7624_v20  ;;  %7002 = vmatpush3.bf16.msra.mxu0 %v7989_v14 }
  0x75   : > { %7074 = vmatpush3.bf16.msra.mxu1 %v7989_v14  ;;  %6354 = vmatprep.mubr.msk.f32.mxu0 %vm244_vm0, %v7722_v40  ;;  %v8074_v40 = vld [vmem:[%s7571_s6 + $0x90] sm:$0xff] }
  0x76   : > { %6534 = vmatprep.mubr.msk.f32.mxu1 %vm244_vm0, %v7634_v22  ;;  %7004 = vmatprep.subr.bf16.mxu0 %v8028_v38 }
  0x77   : > { %7076 = vmatprep.subr.bf16.mxu1 %v8028_v38  ;;  %6355 = vmatmul.mubr.msk.f32.gmra.mrb[2].mxu0 %vm244_vm0, %v7737_v42  ;;  %v5410_v42 = vld [vmem:[%s8670_s2 + $0x110] sm:$0xff] }
  0x78   : > { %6535 = vmatmul.mubr.msk.f32.gmra.mrb[2].mxu1 %vm244_vm0, %v7652_v25  ;;  %6357 = vmatprep.mubr.msk.f32.mxu0 %vm244_vm0, %v7742_v43  ;;  %v5411_v43 = vld [vmem:[%s8670_s2 + $0x118] sm:$0xff] }
  0x79   : > { %6537 = vmatprep.mubr.msk.f32.mxu1 %vm244_vm0, %v7660_v27  ;;  %7006 = vmatpush3.bf16.msra.mxu0 %v8028_v38 }
  0x7a   : > { %7078 = vmatpush3.bf16.msra.mxu1 %v8028_v38  ;;  %7008 = vmatprep.subr.bf16.mxu0 %v8048_v35 }
  0x7b   : > { %7080 = vmatprep.subr.bf16.mxu1 %v8048_v35  ;;  %6358 = vmatmul.mubr.msk.f32.gmra.mrb[4].mxu0 %vm244_vm0, %v7755_v44  ;;  %v8090_v44 = vpack.c.bf16 %v5411_v43, %v5410_v42 }
  0x7c   : > { %6538 = vmatmul.mubr.msk.f32.gmra.mrb[4].mxu1 %vm244_vm0, %v7676_v29  ;;  %6360 = vmatprep.mubr.msk.f32.mxu0 %vm244_vm0, %v7891_v1 }
  0x7d   : > { %6540 = vmatprep.mubr.msk.f32.mxu1 %vm244_vm0, %v7894_v2 }
  0x7f   : > { %6361 = vmatmul.mubr.msk.f32.gmra.mrb[6].mxu0 %vm244_vm0, %v8071_v39 }
  0x80   : > { %6541 = vmatmul.mubr.msk.f32.gmra.mrb[6].mxu1 %vm244_vm0, %v8074_v40  ;;  %6371 = vmatprep.mubr.msk.f32.mxu0 %vm244_vm0, %v7604_v15  ;;  %v8125_v15 = vld [vmem:[%s7576_s9 + $0x91] sm:$0xff] }
  0x81   : > { %6551 = vmatprep.mubr.msk.f32.mxu1 %vm244_vm0, %v7607_v16 }
  0x83   : > { %6372 = vmatmul.mubr.msk.f32.vlgmr.msra.gmra.mrb[0].mxu0 %vm244_vm0, %v7624_v20  ;;  %v8191_v20 = vld [vmem:[%s7571_s6 + $0xb0] sm:$0xff] }
  0x84   : > { %6552 = vmatmul.mubr.msk.f32.vlgmr.msra.gmra.mrb[0].mxu1 %vm244_vm0, %v7627_v21  ;;  %7010 = vmatpush3.bf16.msra.mxu0 %v8048_v35 }
  0x85   : > { %7082 = vmatpush3.bf16.msra.mxu1 %v8048_v35  ;;  %6374 = vmatprep.mubr.msk.f32.mxu0 %vm244_vm0, %v7634_v22  ;;  %v8201_v22 = vld [vmem:[%s7571_s6 + $0xc0] sm:$0xff] }
  0x86   : > { %6554 = vmatprep.mubr.msk.f32.mxu1 %vm244_vm0, %v7637_v23  ;;  %7012 = vmatprep.subr.bf16.mxu0 %v8090_v44 }
  0x87   : > { %7084 = vmatprep.subr.bf16.mxu1 %v8090_v44  ;;  %6375 = vmatmul.mubr.msk.f32.gmra.mrb[2].mxu0 %vm244_vm0, %v7652_v25  ;;  %v8220_v25 = vld [vmem:[%s7576_s9 + $0xd1] sm:$0xff] }
  0x88   : > { %6555 = vmatmul.mubr.msk.f32.gmra.mrb[2].mxu1 %vm244_vm0, %v7655_v26  ;;  %6377 = vmatprep.mubr.msk.f32.mxu0 %vm244_vm0, %v7660_v27  ;;  %v8228_v27 = vld [vmem:[%s7576_s9 + $0xe1] sm:$0xff] }
  0x89   : > { %6557 = vmatprep.mubr.msk.f32.mxu1 %vm244_vm0, %v7663_v28  ;;  %7014 = vmatpush3.bf16.msra.mxu0 %v8090_v44 }
  0x8a   : > { %7086 = vmatpush3.bf16.msra.mxu1 %v8090_v44  ;;  %7088 = vmatprep.subr.bf16.mxu0 %v7546_v3 }
  0x8b   : > { %7160 = vmatprep.subr.bf16.mxu1 %v7546_v3  ;;  %6378 = vmatmul.mubr.msk.f32.gmra.mrb[4].mxu0 %vm244_vm0, %v7676_v29  ;;  %v8255_v29 = vld [vmem:[%s7576_s9 + $0xa0] sm:$0xff] }
  0x8c   : > { %6558 = vmatmul.mubr.msk.f32.gmra.mrb[4].mxu1 %vm244_vm0, %v7679_v30  ;;  %6380 = vmatprep.mubr.msk.f32.mxu0 %vm244_vm0, %v7894_v2 }
  0x8d   : > { %6560 = vmatprep.mubr.msk.f32.mxu1 %vm244_vm0, %v7953_v12 }
  0x8f   : > { %6381 = vmatmul.mubr.msk.f32.gmra.mrb[6].mxu0 %vm244_vm0, %v8074_v40 }
  0x90   : > { %6561 = vmatmul.mubr.msk.f32.gmra.mrb[6].mxu1 %vm244_vm0, %v8125_v15  ;;  %6391 = vmatprep.mubr.msk.f32.mxu0 %vm244_vm0, %v7607_v16  ;;  %v8182_v16 = vld [vmem:[%s7576_s9 + $0xa1] sm:$0xff] }
  0x91   : > { %6571 = vmatprep.mubr.msk.f32.mxu1 %vm244_vm0, %v7775_v49  ;;  %v8313_v49 = vld [vmem:[%s7571_s6 + $0xa1] sm:$0xff] }
  0x93   : > { %6392 = vmatmul.mubr.msk.f32.vlgmr.msra.gmra.mrb[0].mxu0 %vm244_vm0, %v7627_v21  ;;  %v8194_v21 = vld [vmem:[%s7576_s9 + $0xb1] sm:$0xff] }
  0x94   : > { %6572 = vmatmul.mubr.msk.f32.vlgmr.msra.gmra.mrb[0].mxu1 %vm244_vm0, %v7792_v53  ;;  %7090 = vmatpush3.bf16.msra.mxu0 %v7546_v3  ;;  %v8347_v53 = vld [vmem:[%s7571_s6 + $0xe1] sm:$0xff] }
  0x95   : > { %7162 = vmatpush3.bf16.msra.mxu1 %v7546_v3  ;;  %6394 = vmatprep.mubr.msk.f32.mxu0 %vm244_vm0, %v7637_v23  ;;  %v8168_v3 = vld [vmem:[%s7571_s6 + $0x91] sm:$0xff]  ;;  %v8204_v23 = vld [vmem:[%s7576_s9 + $0xc1] sm:$0xff] }
  0x96   : > { %6574 = vmatprep.mubr.msk.f32.mxu1 %vm244_vm0, %v7799_v54  ;;  %7092 = vmatprep.subr.bf16.mxu0 %v7551_v5  ;;  %v8360_v54 = vld [vmem:[%s7571_s6 + $0xf1] sm:$0xff] }
  0x97   : > { %7164 = vmatprep.subr.bf16.mxu1 %v7551_v5  ;;  %6395 = vmatmul.mubr.msk.f32.gmra.mrb[2].mxu0 %vm244_vm0, %v7655_v26  ;;  %v8225_v26 = vld [vmem:[%s7571_s6 + $0xe0] sm:$0xff] }
  0x98   : > { %6575 = vmatmul.mubr.msk.f32.gmra.mrb[2].mxu1 %vm244_vm0, %v7814_v56  ;;  %6397 = vmatprep.mubr.msk.f32.mxu0 %vm244_vm0, %v7663_v28  ;;  %v8244_v28 = vld [vmem:[%s7576_s9 + $0xf1] sm:$0xff]  ;;  %v8449_v56 = vld [vmem:[%s7576_s9 + $0x101] sm:$0xff] }
  0x99   : > { %6577 = vmatprep.mubr.msk.f32.mxu1 %vm244_vm0, %v7819_v57  ;;  %7094 = vmatpush3.bf16.msra.mxu0 %v7551_v5  ;;  %v8492_v57 = vld [vmem:[%s7571_s6 + $0x101] sm:$0xff] }
  0x9a   : > { %7166 = vmatpush3.bf16.msra.mxu1 %v7551_v5  ;;  %7096 = vmatprep.subr.bf16.mxu0 %v7578_v8  ;;  %v8179_v5 = vld [vmem:[%s7571_s6 + $0xa0] sm:$0xff] }
  0x9b   : > { %7168 = vmatprep.subr.bf16.mxu1 %v7578_v8  ;;  %6398 = vmatmul.mubr.msk.f32.gmra.mrb[4].mxu0 %vm244_vm0, %v7679_v30  ;;  %v8264_v30 = vld [vmem:[%s7576_s9 + $0xb0] sm:$0xff] }
  0x9c   : > { %6578 = vmatmul.mubr.msk.f32.gmra.mrb[4].mxu1 %vm244_vm0, %v7832_v58  ;;  %6400 = vmatprep.mubr.msk.f32.mxu0 %vm244_vm0, %v7953_v12  ;;  %v5635_v58 = vld [vmem:[%s7576_s9 + $0x110] sm:$0xff] }
  0x9d   : > { %6580 = vmatprep.mubr.msk.f32.mxu1 %vm244_vm0, %v8012_v33 }
  0x9f   : > { %6401 = vmatmul.mubr.msk.f32.gmra.mrb[6].mxu0 %vm244_vm0, %v8125_v15 }
  0xa0   : > { %6581 = vmatmul.mubr.msk.f32.gmra.mrb[6].mxu1 %vm244_vm0, %v8168_v3  ;;  %6591 = vmatprep.mubr.msk.f32.mxu0 %vm244_vm0, %v7894_v2 }
  0xa1   : > { %6771 = vmatprep.mubr.msk.f32.mxu1 %vm244_vm0, %v7953_v12 }
  0xa3   : > { %6592 = vmatmul.mubr.msk.f32.vlgmr.msra.gmra.mrb[8].mxu0 %vm244_vm0, %v8074_v40 }
  0xa4   : > { %6772 = vmatmul.mubr.msk.f32.vlgmr.msra.gmra.mrb[8].mxu1 %vm244_vm0, %v8125_v15  ;;  %7098 = vmatpush3.bf16.msra.mxu0 %v7578_v8 }
  0xa5   : > { %7170 = vmatpush3.bf16.msra.mxu1 %v7578_v8  ;;  %6594 = vmatprep.mubr.msk.f32.mxu0 %vm244_vm0, %v8179_v5  ;;  %v8217_v8 = vld [vmem:[%s7571_s6 + $0xd0] sm:$0xff] }
  0xa6   : > { %6774 = vmatprep.mubr.msk.f32.mxu1 %vm244_vm0, %v8182_v16  ;;  %7100 = vmatprep.subr.bf16.mxu0 %v7609_v17 }
  0xa7   : > { %7172 = vmatprep.subr.bf16.mxu1 %v7609_v17  ;;  %6595 = vmatmul.mubr.msk.f32.gmra.mrb[10].mxu0 %vm244_vm0, %v8191_v20 }
  0xa8   : > { %6775 = vmatmul.mubr.msk.f32.gmra.mrb[10].mxu1 %vm244_vm0, %v8194_v21  ;;  %6597 = vmatprep.mubr.msk.f32.mxu0 %vm244_vm0, %v8201_v22 }
  0xa9   : > { %6777 = vmatprep.mubr.msk.f32.mxu1 %vm244_vm0, %v8204_v23  ;;  %7102 = vmatpush3.bf16.msra.mxu0 %v7609_v17 }
  0xaa   : > { %7174 = vmatpush3.bf16.msra.mxu1 %v7609_v17  ;;  %7104 = vmatprep.subr.bf16.mxu0 %v7641_v24  ;;  %v8241_v17 = vld [vmem:[%s7571_s6 + $0xf0] sm:$0xff] }
  0xab   : > { %7176 = vmatprep.subr.bf16.mxu1 %v7641_v24  ;;  %6598 = vmatmul.mubr.msk.f32.gmra.mrb[12].mxu0 %vm244_vm0, %v8217_v8 }
  0xac   : > { %6778 = vmatmul.mubr.msk.f32.gmra.mrb[12].mxu1 %vm244_vm0, %v8220_v25  ;;  %6600 = vmatprep.mubr.msk.f32.mxu0 %vm244_vm0, %v8225_v26 }
  0xad   : > { %6780 = vmatprep.mubr.msk.f32.mxu1 %vm244_vm0, %v8228_v27 }
  0xaf   : > { %6601 = vmatmul.mubr.msk.f32.gmra.mrb[14].mxu0 %vm244_vm0, %v8241_v17 }
  0xb0   : > { %6781 = vmatmul.mubr.msk.f32.gmra.mrb[14].mxu1 %vm244_vm0, %v8244_v28  ;;  %6611 = vmatprep.mubr.msk.f32.mxu0 %vm244_vm0, %v7891_v1 }
  0xb1   : > { %6791 = vmatprep.mubr.msk.f32.mxu1 %vm244_vm0, %v7894_v2 }
  0xb3   : > { %6612 = vmatmul.mubr.msk.f32.vlgmr.msra.gmra.mrb[8].mxu0 %vm244_vm0, %v8071_v39 }
  0xb4   : > { %6792 = vmatmul.mubr.msk.f32.vlgmr.msra.gmra.mrb[8].mxu1 %vm244_vm0, %v8074_v40  ;;  %7106 = vmatpush3.bf16.msra.mxu0 %v7641_v24 }
  0xb5   : > { %7178 = vmatpush3.bf16.msra.mxu1 %v7641_v24  ;;  %6614 = vmatprep.mubr.msk.f32.mxu0 %vm244_vm0, %v8255_v29  ;;  %v8284_v24 = vld [vmem:[%s7576_s9 + $0xd0] sm:$0xff] }
  0xb6   : > { %6794 = vmatprep.mubr.msk.f32.mxu1 %vm244_vm0, %v8179_v5  ;;  %7108 = vmatprep.subr.bf16.mxu0 %v7700_v36 }
  0xb7   : > { %7180 = vmatprep.subr.bf16.mxu1 %v7700_v36  ;;  %6615 = vmatmul.mubr.msk.f32.gmra.mrb[10].mxu0 %vm244_vm0, %v8264_v30 }
  0xb8   : > { %6795 = vmatmul.mubr.msk.f32.gmra.mrb[10].mxu1 %vm244_vm0, %v8191_v20  ;;  %6617 = vmatprep.mubr.msk.f32.mxu0 %vm244_vm0, %v8271_v47 }
  0xb9   : > { %6797 = vmatprep.mubr.msk.f32.mxu1 %vm244_vm0, %v8201_v22  ;;  %7110 = vmatpush3.bf16.msra.mxu0 %v7700_v36 }
  0xba   : > { %7182 = vmatpush3.bf16.msra.mxu1 %v7700_v36  ;;  %7112 = vmatprep.subr.bf16.mxu0 %v7726_v41  ;;  %v8302_v36 = vld [vmem:[%s7576_s9 + $0xf0] sm:$0xff] }
  0xbb   : > { %7184 = vmatprep.subr.bf16.mxu1 %v7726_v41  ;;  %6618 = vmatmul.mubr.msk.f32.gmra.mrb[12].mxu0 %vm244_vm0, %v8284_v24 }
  0xbc   : > { %6798 = vmatmul.mubr.msk.f32.gmra.mrb[12].mxu1 %vm244_vm0, %v8217_v8  ;;  %6620 = vmatprep.mubr.msk.f32.mxu0 %vm244_vm0, %v8289_v48 }
  0xbd   : > { %6800 = vmatprep.mubr.msk.f32.mxu1 %vm244_vm0, %v8225_v26 }
  0xbf   : > { %6621 = vmatmul.mubr.msk.f32.gmra.mrb[14].mxu0 %vm244_vm0, %v8302_v36 }
  0xc0   : > { %6801 = vmatmul.mubr.msk.f32.gmra.mrb[14].mxu1 %vm244_vm0, %v8241_v17  ;;  %6631 = vmatprep.mubr.msk.f32.mxu0 %vm244_vm0, %v7953_v12 }
  0xc1   : > { %6811 = vmatprep.mubr.msk.f32.mxu1 %vm244_vm0, %v8012_v33 }
  0xc3   : > { %6632 = vmatmul.mubr.msk.f32.vlgmr.msra.gmra.mrb[8].mxu0 %vm244_vm0, %v8125_v15 }
  0xc4   : > { %6812 = vmatmul.mubr.msk.f32.vlgmr.msra.gmra.mrb[8].mxu1 %vm244_vm0, %v8168_v3  ;;  %7114 = vmatpush3.bf16.msra.mxu0 %v7726_v41 }
  0xc5   : > { %7186 = vmatpush3.bf16.msra.mxu1 %v7726_v41  ;;  %6634 = vmatprep.mubr.msk.f32.mxu0 %vm244_vm0, %v8182_v16  ;;  %v8342_v41 = vld [vmem:[%s7571_s6 + $0xd1] sm:$0xff] }
  0xc6   : > { %6814 = vmatprep.mubr.msk.f32.mxu1 %vm244_vm0, %v8313_v49  ;;  %7116 = vmatprep.subr.bf16.mxu0 %v7777_v50 }
  0xc7   : > { %7188 = vmatprep.subr.bf16.mxu1 %v7777_v50  ;;  %6635 = vmatmul.mubr.msk.f32.gmra.mrb[10].mxu0 %vm244_vm0, %v8194_v21 }
  0xc8   : > { %6815 = vmatmul.mubr.msk.f32.gmra.mrb[10].mxu1 %vm244_vm0, %v8322_v51  ;;  %6637 = vmatprep.mubr.msk.f32.mxu0 %vm244_vm0, %v8204_v23 }
  0xc9   : > { %6817 = vmatprep.mubr.msk.f32.mxu1 %vm244_vm0, %v8329_v52  ;;  %7118 = vmatpush3.bf16.msra.mxu0 %v7777_v50 }
  0xca   : > { %7190 = vmatpush3.bf16.msra.mxu1 %v7777_v50  ;;  %7120 = vmatprep.subr.bf16.mxu0 %v7803_v55  ;;  %v8403_v50 = vld [vmem:[%s7576_s9 + $0x100] sm:$0xff] }
  0xcb   : > { %7192 = vmatprep.subr.bf16.mxu1 %v7803_v55  ;;  %6638 = vmatmul.mubr.msk.f32.gmra.mrb[12].mxu0 %vm244_vm0, %v8220_v25 }
  0xcc   : > { %6818 = vmatmul.mubr.msk.f32.gmra.mrb[12].mxu1 %vm244_vm0, %v8342_v41  ;;  %6640 = vmatprep.mubr.msk.f32.mxu0 %vm244_vm0, %v8228_v27 }
  0xcd   : > { %6820 = vmatprep.mubr.msk.f32.mxu1 %vm244_vm0, %v8347_v53 }
  0xcf   : > { %6641 = vmatmul.mubr.msk.f32.gmra.mrb[14].mxu0 %vm244_vm0, %v8244_v28 }
  0xd0   : > { %6821 = vmatmul.mubr.msk.f32.gmra.mrb[14].mxu1 %vm244_vm0, %v8360_v54  ;;  %6651 = vmatprep.mubr.msk.f32.mxu0 %vm244_vm0, %v8071_v39 }
  0xd1   : > { %6831 = vmatprep.mubr.msk.f32.mxu1 %vm244_vm0, %v8074_v40 }
  0xd3   : > { %6652 = vmatmul.mubr.msk.f32.vlgmr.msra.gmra.mrb[8].mxu0 %vm244_vm0, %v8255_v29 }
  0xd4   : > { %6832 = vmatmul.mubr.msk.f32.vlgmr.msra.gmra.mrb[8].mxu1 %vm244_vm0, %v8179_v5  ;;  %7122 = vmatpush3.bf16.msra.mxu0 %v7803_v55 }
  0xd5   : > { %7194 = vmatpush3.bf16.msra.mxu1 %v7803_v55  ;;  %6654 = vmatprep.mubr.msk.f32.mxu0 %vm244_vm0, %v8264_v30  ;;  %v8406_v55 = vld [vmem:[%s7571_s6 + $0x100] sm:$0xff] }
  0xd6   : > { %6834 = vmatprep.mubr.msk.f32.mxu1 %vm244_vm0, %v8191_v20  ;;  %7124 = vmatprep.subr.bf16.mxu0 %v7848_v61 }
  0xd7   : > { %7196 = vmatprep.subr.bf16.mxu1 %v7848_v61  ;;  %6655 = vmatmul.mubr.msk.f32.gmra.mrb[10].mxu0 %vm244_vm0, %v8271_v47 }
  0xd8   : > { %6835 = vmatmul.mubr.msk.f32.gmra.mrb[10].mxu1 %vm244_vm0, %v8201_v22  ;;  %6657 = vmatprep.mubr.msk.f32.mxu0 %vm244_vm0, %v8284_v24 }
  0xd9   : > { %6837 = vmatprep.mubr.msk.f32.mxu1 %vm244_vm0, %v8217_v8  ;;  %7126 = vmatpush3.bf16.msra.mxu0 %v7848_v61 }
  0xda   : > { %7198 = vmatpush3.bf16.msra.mxu1 %v7848_v61  ;;  %7128 = vmatprep.subr.bf16.mxu0 %v7868_v0  ;;  %v5775_v61 = vld [vmem:[%s7571_s6 + $0x111] sm:$0xff]  ;;  %s5790_s6 = sshll.u32 %s8674_s16, 6 }
  0xdb   : > { %7200 = vmatprep.subr.bf16.mxu1 %v7868_v0  ;;  %6658 = vmatmul.mubr.msk.f32.gmra.mrb[12].mxu0 %vm244_vm0, %v8289_v48  ;;  %s8623_s5 = scalar_lea.vmem %s8672_s4, %s5790_s6 }
  0xdc   : > { %6838 = vmatmul.mubr.msk.f32.gmra.mrb[12].mxu1 %vm244_vm0, %v8225_v26  ;;  %6660 = vmatprep.mubr.msk.f32.mxu0 %vm244_vm0, %v8302_v36 }
  0xdd   : > { %6840 = vmatprep.mubr.msk.f32.mxu1 %vm244_vm0, %v8241_v17 }
  0xdf   : > { %6661 = vmatmul.mubr.msk.f32.gmra.mrb[14].mxu0 %vm244_vm0, %v8403_v50 }
  0xe0   : > { %6841 = vmatmul.mubr.msk.f32.gmra.mrb[14].mxu1 %vm244_vm0, %v8406_v55  ;;  %6671 = vmatprep.mubr.msk.f32.mxu0 %vm244_vm0, %v8074_v40 }
  0xe1   : > { %6851 = vmatprep.mubr.msk.f32.mxu1 %vm244_vm0, %v8125_v15 }
  0xe3   : > { %6672 = vmatmul.mubr.msk.f32.vlgmr.msra.gmra.mrb[8].mxu0 %vm244_vm0, %v8179_v5 }
  0xe4   : > { %6852 = vmatmul.mubr.msk.f32.vlgmr.msra.gmra.mrb[8].mxu1 %vm244_vm0, %v8182_v16  ;;  %7130 = vmatpush3.bf16.msra.mxu0 %v7868_v0 }
  0xe5   : > { %7202 = vmatpush3.bf16.msra.mxu1 %v7868_v0  ;;  %6674 = vmatprep.mubr.msk.f32.mxu0 %vm244_vm0, %v8191_v20 }
  0xe6   : > { %6854 = vmatprep.mubr.msk.f32.mxu1 %vm244_vm0, %v8194_v21  ;;  %7132 = vmatprep.subr.bf16.mxu0 %v7910_v7 }
  0xe7   : > { %7204 = vmatprep.subr.bf16.mxu1 %v7910_v7  ;;  %6675 = vmatmul.mubr.msk.f32.gmra.mrb[10].mxu0 %vm244_vm0, %v8201_v22 }
  0xe8   : > { %6855 = vmatmul.mubr.msk.f32.gmra.mrb[10].mxu1 %vm244_vm0, %v8204_v23  ;;  %6677 = vmatprep.mubr.msk.f32.mxu0 %vm244_vm0, %v8217_v8 }
  0xe9   : > { %6857 = vmatprep.mubr.msk.f32.mxu1 %vm244_vm0, %v8220_v25  ;;  %7134 = vmatpush3.bf16.msra.mxu0 %v7910_v7 }
  0xea   : > { %7206 = vmatpush3.bf16.msra.mxu1 %v7910_v7  ;;  %7136 = vmatprep.subr.bf16.mxu0 %v7930_v11 }
  0xeb   : > { %7208 = vmatprep.subr.bf16.mxu1 %v7930_v11  ;;  %6678 = vmatmul.mubr.msk.f32.gmra.mrb[12].mxu0 %vm244_vm0, %v8225_v26 }
  0xec   : > { %6858 = vmatmul.mubr.msk.f32.gmra.mrb[12].mxu1 %vm244_vm0, %v8228_v27  ;;  %6680 = vmatprep.mubr.msk.f32.mxu0 %vm244_vm0, %v8241_v17 }
  0xed   : > { %6860 = vmatprep.mubr.msk.f32.mxu1 %vm244_vm0, %v8244_v28 }
  0xef   : > { %6681 = vmatmul.mubr.msk.f32.gmra.mrb[14].mxu0 %vm244_vm0, %v8406_v55 }
  0xf0   : > { %6861 = vmatmul.mubr.msk.f32.gmra.mrb[14].mxu1 %vm244_vm0, %v8449_v56  ;;  %6691 = vmatprep.mubr.msk.f32.mxu0 %vm244_vm0, %v8125_v15 }
  0xf1   : > { %6871 = vmatprep.mubr.msk.f32.mxu1 %vm244_vm0, %v8168_v3 }
  0xf3   : > { %6692 = vmatmul.mubr.msk.f32.vlgmr.msra.gmra.mrb[8].mxu0 %vm244_vm0, %v8182_v16 }
  0xf4   : > { %6872 = vmatmul.mubr.msk.f32.vlgmr.msra.gmra.mrb[8].mxu1 %vm244_vm0, %v8313_v49  ;;  %7138 = vmatpush3.bf16.msra.mxu0 %v7930_v11 }
  0xf5   : > { %7210 = vmatpush3.bf16.msra.mxu1 %v7930_v11  ;;  %6694 = vmatprep.mubr.msk.f32.mxu0 %vm244_vm0, %v8194_v21 }
  0xf6   : > { %6874 = vmatprep.mubr.msk.f32.mxu1 %vm244_vm0, %v8322_v51  ;;  %7140 = vmatprep.subr.bf16.mxu0 %v7969_v19 }
  0xf7   : > { %7212 = vmatprep.subr.bf16.mxu1 %v7969_v19  ;;  %6695 = vmatmul.mubr.msk.f32.gmra.mrb[10].mxu0 %vm244_vm0, %v8204_v23 }
  0xf8   : > { %6875 = vmatmul.mubr.msk.f32.gmra.mrb[10].mxu1 %vm244_vm0, %v8329_v52  ;;  %6697 = vmatprep.mubr.msk.f32.mxu0 %vm244_vm0, %v8220_v25 }
  0xf9   : > { %6877 = vmatprep.mubr.msk.f32.mxu1 %vm244_vm0, %v8342_v41  ;;  %7142 = vmatpush3.bf16.msra.mxu0 %v7969_v19 }
  0xfa   : > { %7214 = vmatpush3.bf16.msra.mxu1 %v7969_v19  ;;  %7144 = vmatprep.subr.bf16.mxu0 %v7989_v14 }
  0xfb   : > { %7216 = vmatprep.subr.bf16.mxu1 %v7989_v14  ;;  %6698 = vmatmul.mubr.msk.f32.gmra.mrb[12].mxu0 %vm244_vm0, %v8228_v27 }
  0xfc   : > { %6878 = vmatmul.mubr.msk.f32.gmra.mrb[12].mxu1 %vm244_vm0, %v8347_v53  ;;  %6700 = vmatprep.mubr.msk.f32.mxu0 %vm244_vm0, %v8244_v28 }
  0xfd   : > { %6880 = vmatprep.mubr.msk.f32.mxu1 %vm244_vm0, %v8360_v54 }
  0xff   : > { %6701 = vmatmul.mubr.msk.f32.gmra.mrb[14].mxu0 %vm244_vm0, %v8449_v56 }
 0x100   : > { %6881 = vmatmul.mubr.msk.f32.gmra.mrb[14].mxu1 %vm244_vm0, %v8492_v57  ;;  %6711 = vmatprep.mubr.msk.f32.mxu0 %vm244_vm0, %v8255_v29 }
 0x101   : > { %6891 = vmatprep.mubr.msk.f32.mxu1 %vm244_vm0, %v8179_v5 }
 0x103   : > { %6712 = vmatmul.mubr.msk.f32.vlgmr.msra.gmra.mrb[8].mxu0 %vm244_vm0, %v8264_v30 }
 0x104   : > { %6892 = vmatmul.mubr.msk.f32.vlgmr.msra.gmra.mrb[8].mxu1 %vm244_vm0, %v8191_v20  ;;  %7146 = vmatpush3.bf16.msra.mxu0 %v7989_v14 }
 0x105   : > { %7218 = vmatpush3.bf16.msra.mxu1 %v7989_v14  ;;  %6714 = vmatprep.mubr.msk.f32.mxu0 %vm244_vm0, %v8271_v47 }
 0x106   : > { %6894 = vmatprep.mubr.msk.f32.mxu1 %vm244_vm0, %v8201_v22  ;;  %7148 = vmatprep.subr.bf16.mxu0 %v8028_v38 }
 0x107   : > { %7220 = vmatprep.subr.bf16.mxu1 %v8028_v38  ;;  %6715 = vmatmul.mubr.msk.f32.gmra.mrb[10].mxu0 %vm244_vm0, %v8284_v24 }
 0x108   : > { %6895 = vmatmul.mubr.msk.f32.gmra.mrb[10].mxu1 %vm244_vm0, %v8217_v8  ;;  %6717 = vmatprep.mubr.msk.f32.mxu0 %vm244_vm0, %v8289_v48 }
 0x109   : > { %6897 = vmatprep.mubr.msk.f32.mxu1 %vm244_vm0, %v8225_v26  ;;  %7150 = vmatpush3.bf16.msra.mxu0 %v8028_v38 }
 0x10a   : > { %7222 = vmatpush3.bf16.msra.mxu1 %v8028_v38  ;;  %7152 = vmatprep.subr.bf16.mxu0 %v8048_v35 }
 0x10b   : > { %7224 = vmatprep.subr.bf16.mxu1 %v8048_v35  ;;  %6718 = vmatmul.mubr.msk.f32.gmra.mrb[12].mxu0 %vm244_vm0, %v8302_v36 }
 0x10c   : > { %6898 = vmatmul.mubr.msk.f32.gmra.mrb[12].mxu1 %vm244_vm0, %v8241_v17  ;;  %6720 = vmatprep.mubr.msk.f32.mxu0 %vm244_vm0, %v8403_v50 }
 0x10d   : > { %6900 = vmatprep.mubr.msk.f32.mxu1 %vm244_vm0, %v8406_v55 }
 0x10f   : > { %6721 = vmatmul.mubr.msk.f32.gmra.mrb[14].mxu0 %vm244_vm0, %v5635_v58 }
 0x110   : > { %6901 = vmatmul.mubr.msk.f32.gmra.mrb[14].mxu1 %vm244_vm0, %v5655_v59  ;;  %6731 = vmatprep.mubr.msk.f32.mxu0 %vm244_vm0, %v8179_v5 }
 0x111   : > { %6911 = vmatprep.mubr.msk.f32.mxu1 %vm244_vm0, %v8182_v16 }
 0x113   : > { %6732 = vmatmul.mubr.msk.f32.vlgmr.msra.gmra.mrb[8].mxu0 %vm244_vm0, %v8191_v20 }
 0x114   : > { %6912 = vmatmul.mubr.msk.f32.vlgmr.msra.gmra.mrb[8].mxu1 %vm244_vm0, %v8194_v21  ;;  %7154 = vmatpush3.bf16.msra.mxu0 %v8048_v35 }
 0x115   : > { %7226 = vmatpush3.bf16.msra.mxu1 %v8048_v35  ;;  %6734 = vmatprep.mubr.msk.f32.mxu0 %vm244_vm0, %v8201_v22 }
 0x116   : > { %6914 = vmatprep.mubr.msk.f32.mxu1 %vm244_vm0, %v8204_v23  ;;  %7156 = vmatprep.subr.bf16.mxu0 %v8090_v44 }
 0x117   : > { %7228 = vmatprep.subr.bf16.mxu1 %v8090_v44  ;;  %6735 = vmatmul.mubr.msk.f32.gmra.mrb[10].mxu0 %vm244_vm0, %v8217_v8 }
 0x118   : > { %6915 = vmatmul.mubr.msk.f32.gmra.mrb[10].mxu1 %vm244_vm0, %v8220_v25  ;;  %6737 = vmatprep.mubr.msk.f32.mxu0 %vm244_vm0, %v8225_v26 }
 0x119   : > { %6917 = vmatprep.mubr.msk.f32.mxu1 %vm244_vm0, %v8228_v27  ;;  %7158 = vmatpush3.bf16.msra.mxu0 %v8090_v44 }
 0x11a   : > { %7230 = vmatpush3.bf16.msra.mxu1 %v8090_v44 }
 0x11b   : > { %6738 = vmatmul.mubr.msk.f32.gmra.mrb[12].mxu0 %vm244_vm0, %v8241_v17 }
 0x11c   : > { %6918 = vmatmul.mubr.msk.f32.gmra.mrb[12].mxu1 %vm244_vm0, %v8244_v28  ;;  %6740 = vmatprep.mubr.msk.f32.mxu0 %vm244_vm0, %v8406_v55 }
 0x11d   : > { %6920 = vmatprep.mubr.msk.f32.mxu1 %vm244_vm0, %v8449_v56 }
 0x11f   : > { %6741 = vmatmul.mubr.msk.f32.gmra.mrb[14].mxu0 %vm244_vm0, %v5655_v59 }
 0x120   : > { %6921 = vmatmul.mubr.msk.f32.gmra.mrb[14].mxu1 %vm244_vm0, %v5675_v60  ;;  %6751 = vmatprep.mubr.msk.f32.mxu0 %vm244_vm0, %v8182_v16 }
 0x121   : > { %6931 = vmatprep.mubr.msk.f32.mxu1 %vm244_vm0, %v8313_v49 }
 0x123   : > { %6752 = vmatmul.mubr.msk.f32.vlgmr.msra.gmra.mrb[8].mxu0 %vm244_vm0, %v8194_v21 }
 0x124   : > { %6932 = vmatmul.mubr.msk.f32.vlgmr.msra.gmra.mrb[8].mxu1 %vm244_vm0, %v8322_v51  ;;  %6754 = vmatprep.mubr.msk.f32.mxu0 %vm244_vm0, %v8204_v23 }
 0x125   : > { %6934 = vmatprep.mubr.msk.f32.mxu1 %vm244_vm0, %v8329_v52 }
 0x127   : > { %6755 = vmatmul.mubr.msk.f32.gmra.mrb[10].mxu0 %vm244_vm0, %v8220_v25 }
 0x128   : > { %6935 = vmatmul.mubr.msk.f32.gmra.mrb[10].mxu1 %vm244_vm0, %v8342_v41  ;;  %6757 = vmatprep.mubr.msk.f32.mxu0 %vm244_vm0, %v8228_v27 }
 0x129   : > { %6937 = vmatprep.mubr.msk.f32.mxu1 %vm244_vm0, %v8347_v53 }
 0x12b   : > { %6758 = vmatmul.mubr.msk.f32.gmra.mrb[12].mxu0 %vm244_vm0, %v8244_v28 }
 0x12c   : > { %6938 = vmatmul.mubr.msk.f32.gmra.mrb[12].mxu1 %vm244_vm0, %v8360_v54  ;;  %6760 = vmatprep.mubr.msk.f32.mxu0 %vm244_vm0, %v8449_v56 }
 0x12d   : > { %6940 = vmatprep.mubr.msk.f32.mxu1 %vm244_vm0, %v8492_v57 }
 0x12f   : > { %6761 = vmatmul.mubr.msk.f32.gmra.mrb[14].mxu0 %vm244_vm0, %v5675_v60 }
 0x130   : > { %6941 = vmatmul.mubr.msk.f32.gmra.mrb[14].mxu1 %vm244_vm0, %v5775_v61 }
 0x166   : > { %v6393_v63 = vpop.f32.mrb[0].mxu0 }
 0x167   : > { %v6573_v0 = vpop.f32.mrb[0].mxu1  ;;  %v1564_v1 = vadd.f32 %v6393_v63, %v8609_v62  ;;  %v1510_v4 = vpop.f32.mrb[1].mxu0 }
 0x168   : > { %v2677_v2 = vadd.f32 %v6573_v0, %v8609_v62  ;;  %v2629_v6 = vpop.f32.mrb[1].mxu1  ;;  %v1563_v7 = vadd.f32 %v8609_v62, %v1510_v4 }
 0x169   : > { %v2676_v9 = vadd.f32 %v8609_v62, %v2629_v6  ;;  %v1572_v10 = vmax.f32 %v1564_v1, 0.0 }
 0x16a   : > { %v2685_v11 = vmax.f32 %v2677_v2, 0.0  ;;  %v1571_v12 = vmax.f32 %v1563_v7, 0.0  ;;  %v6396_v18 = vpop.f32.mrb[2].mxu0 }
 0x16b   : > { %v2684_v13 = vmax.f32 %v2676_v9, 0.0  ;;  %v6576_v19 = vpop.f32.mrb[2].mxu1  ;;  %v1566_v32 = vadd.f32 %v6396_v18, %v8609_v62  ;;  %v1520_v33 = vpop.f32.mrb[3].mxu0 }
 0x16c   : > { %v2693_v31 = vmax.f32 %v1572_v10, %v2685_v11  ;;  %v2679_v14 = vadd.f32 %v6576_v19, %v8609_v62  ;;  %v2639_v34 = vpop.f32.mrb[3].mxu1  ;;  %v1565_v38 = vadd.f32 %v8609_v62, %v1520_v33 }
 0x16d   : > { %v2692_v37 = vmax.f32 %v1571_v12, %v2684_v13  ;;  %v2678_v45 = vadd.f32 %v8609_v62, %v2639_v34  ;;  %v1574_v46 = vmax.f32 %v1566_v32, 0.0 }
 0x16e   : > { %v2687_v35 = vmax.f32 %v2679_v14, 0.0  ;;  %v1573_v40 = vmax.f32 %v1565_v38, 0.0  ;;  %v6399_v43 = vpop.f32.mrb[4].mxu0 }
 0x16f   : > { %v2700_v39 = vmax.f32 %v2692_v37, %v2693_v31  ;;  %v2686_v42 = vmax.f32 %v2678_v45, 0.0  ;;  %v6579_v44 = vpop.f32.mrb[4].mxu1  ;;  %v1568_v3 = vadd.f32 %v6399_v43, %v8609_v62  ;;  %v1530_v16 = vpop.f32.mrb[5].mxu0 }
 0x170   : > { %v2695_v15 = vmax.f32 %v1574_v46, %v2687_v35  ;;  %v2681_v5 = vadd.f32 %v6579_v44, %v8609_v62  ;;  %v2649_v20 = vpop.f32.mrb[5].mxu1  ;;  %v1567_v22 = vadd.f32 %v8609_v62, %v1530_v16 }
 0x171   : > { %2702 = vst.msk [vmem:[%s8623_s5] sm:$0xff] %vm2701_vm1, %v2700_v39  ;;  %v2694_v21 = vmax.f32 %v1573_v40, %v2686_v42  ;;  %v2680_v23 = vadd.f32 %v8609_v62, %v2649_v20  ;;  %v1576_v8 = vmax.f32 %v1568_v3, 0.0 }
 0x172   : > { %v2689_v25 = vmax.f32 %v2681_v5, 0.0  ;;  %v1575_v27 = vmax.f32 %v1567_v22, 0.0  ;;  %v6402_v28 = vpop.f32.mrb[6].mxu0 }
 0x173   : > { %v2703_v26 = vmax.f32 %v2694_v21, %v2695_v15  ;;  %v2688_v17 = vmax.f32 %v2680_v23, 0.0  ;;  %v6582_v29 = vpop.f32.mrb[6].mxu1  ;;  %v1570_v47 = vadd.f32 %v6402_v28, %v8609_v62  ;;  %v1540_v48 = vpop.f32.mrb[7].mxu0 }
 0x174   : > { %v2697_v30 = vmax.f32 %v1576_v8, %v2689_v25  ;;  %v2683_v24 = vadd.f32 %v6582_v29, %v8609_v62  ;;  %v2659_v36 = vpop.f32.mrb[7].mxu1  ;;  %v1569_v51 = vadd.f32 %v8609_v62, %v1540_v48 }
 0x175   : > { %5509 = vst.msk [vmem:[%s8623_s5 + $0x8] sm:$0xff] %vm2701_vm1, %v2703_v26  ;;  %v2696_v49 = vmax.f32 %v1575_v27, %v2688_v17  ;;  %v2682_v52 = vadd.f32 %v8609_v62, %v2659_v36  ;;  %v1578_v41 = vmax.f32 %v1570_v47, 0.0 }
 0x176   : > { %v2691_v53 = vmax.f32 %v2683_v24, 0.0  ;;  %v1577_v50 = vmax.f32 %v1569_v51, 0.0 }
 0x177   : > { %v2706_v54 = vmax.f32 %v2696_v49, %v2697_v30  ;;  %v2690_v55 = vmax.f32 %v2682_v52, 0.0 }
 0x178   : > { %v2699_v56 = vmax.f32 %v1578_v41, %v2691_v53 }
 0x179   : > { %5510 = vst.msk [vmem:[%s8623_s5 + $0x10] sm:$0xff] %vm2701_vm1, %v2706_v54  ;;  %v2698_v57 = vmax.f32 %v1577_v50, %v2690_v55 }
 0x17b   : > { %v2709_v58 = vmax.f32 %v2698_v57, %v2699_v56 }
 0x17d   : > { %5511 = vst.msk [vmem:[%s8623_s5 + $0x18] sm:$0xff] %vm2701_vm1, %v2709_v58 }
 0x1f6   : > { %v6753_v59 = vpop.f32.mrb[8].mxu0 }
 0x1f7   : > { %v6933_v60 = vpop.f32.mrb[8].mxu1  ;;  %v4044_v61 = vadd.f32 %v6753_v59, %v8609_v62  ;;  %v3996_v0 = vpop.f32.mrb[9].mxu0 }
 0x1f8   : > { %v5157_v63 = vadd.f32 %v6933_v60, %v8609_v62  ;;  %v5109_v1 = vpop.f32.mrb[9].mxu1  ;;  %v4043_v2 = vadd.f32 %v8609_v62, %v3996_v0 }
 0x1f9   : > { %v5156_v4 = vadd.f32 %v8609_v62, %v5109_v1  ;;  %v4052_v6 = vmax.f32 %v4044_v61, 0.0 }
 0x1fa   : > { %v5165_v7 = vmax.f32 %v5157_v63, 0.0  ;;  %v4051_v9 = vmax.f32 %v4043_v2, 0.0  ;;  %v6756_v11 = vpop.f32.mrb[10].mxu0 }
 0x1fb   : > { %v5164_v10 = vmax.f32 %v5156_v4, 0.0  ;;  %v6936_v12 = vpop.f32.mrb[10].mxu1  ;;  %v4046_v18 = vadd.f32 %v6756_v11, %v8609_v62  ;;  %v4006_v31 = vpop.f32.mrb[11].mxu0 }
 0x1fc   : > { %v5173_v13 = vmax.f32 %v4052_v6, %v5165_v7  ;;  %v5159_v19 = vadd.f32 %v6936_v12, %v8609_v62  ;;  %v5119_v32 = vpop.f32.mrb[11].mxu1  ;;  %v4045_v33 = vadd.f32 %v8609_v62, %v4006_v31 }
 0x1fd   : > { %v5172_v14 = vmax.f32 %v4051_v9, %v5164_v10  ;;  %v5158_v34 = vadd.f32 %v8609_v62, %v5119_v32  ;;  %v4054_v37 = vmax.f32 %v4046_v18, 0.0 }
 0x1fe   : > { %v5167_v38 = vmax.f32 %v5159_v19, 0.0  ;;  %v4053_v46 = vmax.f32 %v4045_v33, 0.0  ;;  %v6759_v39 = vpop.f32.mrb[12].mxu0 }
 0x1ff   : > { %v5180_v45 = vmax.f32 %v5172_v14, %v5173_v13  ;;  %v5166_v35 = vmax.f32 %v5158_v34, 0.0  ;;  %v6939_v40 = vpop.f32.mrb[12].mxu1  ;;  %v4048_v43 = vadd.f32 %v6759_v39, %v8609_v62  ;;  %v4016_v15 = vpop.f32.mrb[13].mxu0 }
 0x200   : > { %v5175_v42 = vmax.f32 %v4054_v37, %v5167_v38  ;;  %v5161_v44 = vadd.f32 %v6939_v40, %v8609_v62  ;;  %v5129_v3 = vpop.f32.mrb[13].mxu1  ;;  %v4047_v16 = vadd.f32 %v8609_v62, %v4016_v15 }
 0x201   : > { %5784 = vst.msk [vmem:[%s8623_s5 + $0x20] sm:$0xff] %vm2701_vm1, %v5180_v45  ;;  %v5174_v5 = vmax.f32 %v4053_v46, %v5166_v35  ;;  %v5160_v20 = vadd.f32 %v8609_v62, %v5129_v3  ;;  %v4056_v21 = vmax.f32 %v4048_v43, 0.0 }
 0x202   : > { %v5169_v22 = vmax.f32 %v5161_v44, 0.0  ;;  %v4055_v8 = vmax.f32 %v4047_v16, 0.0  ;;  %v6762_v26 = vpop.f32.mrb[14].mxu0 }
 0x203   : > { %v5183_v23 = vmax.f32 %v5174_v5, %v5175_v42  ;;  %v5168_v25 = vmax.f32 %v5160_v20, 0.0  ;;  %v6942_v27 = vpop.f32.mrb[14].mxu1  ;;  %v4050_v28 = vadd.f32 %v6762_v26, %v8609_v62  ;;  %v4026_v30 = vpop.f32.mrb[15].mxu0 }
 0x204   : > { %v5177_v17 = vmax.f32 %v4056_v21, %v5169_v22  ;;  %v5163_v29 = vadd.f32 %v6942_v27, %v8609_v62  ;;  %v5139_v47 = vpop.f32.mrb[15].mxu1  ;;  %v4049_v48 = vadd.f32 %v8609_v62, %v4026_v30 }
 0x205   : > { %5785 = vst.msk [vmem:[%s8623_s5 + $0x28] sm:$0xff] %vm2701_vm1, %v5183_v23  ;;  %v5176_v24 = vmax.f32 %v4055_v8, %v5168_v25  ;;  %v5162_v36 = vadd.f32 %v8609_v62, %v5139_v47  ;;  %v4058_v49 = vmax.f32 %v4050_v28, 0.0 }
 0x206   : > { %v5171_v51 = vmax.f32 %v5163_v29, 0.0  ;;  %v4057_v41 = vmax.f32 %v4049_v48, 0.0 }
 0x207   : > { %v5186_v52 = vmax.f32 %v5176_v24, %v5177_v17  ;;  %v5170_v53 = vmax.f32 %v5162_v36, 0.0 }
 0x208   : > { %v5179_v54 = vmax.f32 %v4058_v49, %v5171_v51 }
 0x209   : > { %5786 = vst.msk [vmem:[%s8623_s5 + $0x30] sm:$0xff] %vm2701_vm1, %v5186_v52  ;;  %v5178_v50 = vmax.f32 %v4057_v41, %v5170_v53 }
 0x20b   : > { %v5189_v55 = vmax.f32 %v5178_v50, %v5179_v54 }
 0x20d   : > { %5787 = vst.msk [vmem:[%s8623_s5 + $0x38] sm:$0xff] %vm2701_vm1, %v5189_v55 }
 0x20e PF: > { %s14_s15 = sadd.s32 1, %s7502_s15  }
 0x20f   : > { %p11_p4 = scmp.ge.s32.totalorder %s14_s15, 4  }
 0x211   :  { %13 = sbr.rel (!%p11_p4) target bundleno = 1 (0x1), region = 94 }

// kernel: forward.3
= control target key start
LH: loop header
LB: loop body
LE: loop exit
PB: predicated region body
PF: predicated region fallthrough
CT: control target
= control target key end

     0   :  { %s21443_s15 = smov 0   ;;  %s25036_s0 = inlined_call_operand.vmem [shape: f32[2,34,17,3], index: 0, kind: input, shape index: {}]   ;;  %s25037_s1 = inlined_call_operand.vmem [shape: f32[2,34,17,3], index: 1, kind: input, shape index: {}]   ;;  %s25038_s2 = inlined_call_operand.vmem [shape: f32[9,3,32], index: 2, kind: input, shape index: {}]   ;;  %s25039_s3 = inlined_call_operand.vmem [shape: f32[1,32], index: 3, kind: input, shape index: {}]   ;;  %s25040_s4 = inlined_call_operand.vmem [shape: f32[2,16,16,32], index: 4, kind: output, shape index: {}]  }
   0x1 LB: > { %s15276_s16 = sadd.s32 4294967295, %s21416_s15   ;;  %p15280_p0 = scmp.ge.s32.totalorder %s21416_s15, 1  ;;  %s21416_s15 = sphi %s21443_s15, %s14_s15  }
   0x2   : > { %p172_p1 = scmp.lt.s32.totalorder %s21416_s15, 3 }
   0x4   : > { %p173_p2 = pnand %p15280_p0, %p172_p1 }
   0x6   : > { %176 = sbr.rel (%p173_p2) target bundleno = 1394 (0x572), region = 36 }
   0xd   : > { %v15285_v0 = vld [vmem:[%s25038_s2 + $0x4] sm:$0x7]  ;;  %vm303_vm0 = vcmask 1042432   ;;  %p203_p3 = scmp.lt.s32.totalorder %s15276_s16, 1  ;;  %v235_v1 = vld [vmem:[%s25038_s2] sm:$0x7] }
   0xe   : > { %18503 = vmatprep.subr.msk.mxu0 %vm303_vm0, %v15285_v0  ;;  %18737 = vmatprep.subr.msk.mxu1 %vm303_vm0, %v15285_v0  ;;  %vm254_vm1 = vcmask 23552   ;;  %v21505_v8 = vld [vmem:[%s25038_s2 + $0x8] sm:$0x7]  ;;  %v15354_v38 = vld [vmem:[%s25038_s2 + $0xc] sm:$0x7]  ;;  %vm3959_vm2 = vcmask 261120  }
   0xf   : > { %18504 = vmatpush3.msk.msra.mxu0 %vm303_vm0, %v15285_v0  ;;  %18738 = vmatpush3.msk.msra.mxu1 %vm303_vm0, %v15285_v0  ;;  %s25064_s16 = smov (!%p203_p3, %s15276_s16), 1  ;;  %v15388_v55 = vld [vmem:[%s25038_s2 + $0x10] sm:$0x7] }
  0x10   : > { %18529 = vmatprep.subr.msk.mxu0 %vm303_vm0, %v235_v1  ;;  %18763 = vmatprep.subr.msk.mxu1 %vm303_vm0, %v235_v1  ;;  %s21399_s21 = smul.u32 816, %s25064_s16  ;;  %s17278_s12 = sshll.u32 %s25064_s16, 8 }
  0x11   : > { %s22972_s14 = scalar_lea.vmem %s25040_s4, %s17278_s12 }
  0x12   : > { %s21469_s24 = scalar_lea.vmem %s25037_s1, %s21399_s21  ;;  %s21474_s27 = scalar_lea.vmem %s25036_s0, %s21399_s21 }
  0x13   : > { %v21477_v2 = vld [vmem:[%s21469_s24] sm:$0xff]  ;;  %v21483_v4 = vld [vmem:[%s21469_s24 + $0x8] sm:$0xff]  ;;  %v21493_v6 = vld [vmem:[%s21469_s24 + $0x18] sm:$0xff] }
  0x14   : > { %v21480_v3 = vld [vmem:[%s21474_s27 + $0x1] sm:$0xff]  ;;  %18505 = vmatprep.mubr.msk.f32.mxu0 %vm254_vm1, %v21477_v2  ;;  %v21490_v5 = vld [vmem:[%s21474_s27 + $0x9] sm:$0xff]  ;;  %v21496_v7 = vld [vmem:[%s21474_s27 + $0x19] sm:$0xff] }
  0x15   : > { %18739 = vmatprep.mubr.msk.f32.mxu1 %vm254_vm1, %v21480_v3  ;;  %18506 = vmatmul.mubr.msk.f32.vlgmr.msra.gmra.mrb[0].mxu0 %vm254_vm1, %v21483_v4  ;;  %v21510_v9 = vld [vmem:[%s21469_s24 + $0x20] sm:$0xff]  ;;  %v21520_v11 = vld [vmem:[%s21469_s24 + $0x30] sm:$0xff]  ;;  %v21538_v13 = vld [vmem:[%s21469_s24 + $0x38] sm:$0xff] }
  0x16   : > { %18740 = vmatmul.mubr.msk.f32.vlgmr.msra.gmra.mrb[0].mxu1 %vm254_vm1, %v21490_v5  ;;  %18530 = vmatpush3.msk.msra.mxu0 %vm303_vm0, %v235_v1  ;;  %v21513_v10 = vld [vmem:[%s21474_s27 + $0x21] sm:$0xff]  ;;  %v21523_v12 = vld [vmem:[%s21474_s27 + $0x31] sm:$0xff]  ;;  %v21541_v14 = vld [vmem:[%s21474_s27 + $0x39] sm:$0xff] }
  0x17   : > { %18764 = vmatpush3.msk.msra.mxu1 %vm303_vm0, %v235_v1  ;;  %18508 = vmatprep.mubr.msk.f32.mxu0 %vm254_vm1, %v21493_v6  ;;  %v21544_v15 = vld [vmem:[%s21469_s24 + $0x48] sm:$0xff]  ;;  %v21558_v17 = vld [vmem:[%s21469_s24 + $0x50] sm:$0xff]  ;;  %v21564_v19 = vld [vmem:[%s21469_s24 + $0x60] sm:$0xff] }
  0x18   : > { %18742 = vmatprep.mubr.msk.f32.mxu1 %vm254_vm1, %v21496_v7  ;;  %18555 = vmatprep.subr.msk.mxu0 %vm303_vm0, %v21505_v8  ;;  %v21547_v16 = vld [vmem:[%s21474_s27 + $0x49] sm:$0xff]  ;;  %v21561_v18 = vld [vmem:[%s21474_s27 + $0x51] sm:$0xff]  ;;  %v21567_v20 = vld [vmem:[%s21474_s27 + $0x61] sm:$0xff] }
  0x19   : > { %18789 = vmatprep.subr.msk.mxu1 %vm303_vm0, %v21505_v8  ;;  %18509 = vmatmul.mubr.msk.f32.gmra.mrb[2].mxu0 %vm254_vm1, %v21510_v9  ;;  %v21578_v21 = vld [vmem:[%s21469_s24 + $0x68] sm:$0xff]  ;;  %v21584_v23 = vld [vmem:[%s21469_s24 + $0x78] sm:$0xff]  ;;  %v21598_v25 = vld [vmem:[%s21469_s24 + $0x80] sm:$0xff] }
  0x1a   : > { %18743 = vmatmul.mubr.msk.f32.gmra.mrb[2].mxu1 %vm254_vm1, %v21513_v10  ;;  %18511 = vmatprep.mubr.msk.f32.mxu0 %vm254_vm1, %v21520_v11  ;;  %v21581_v22 = vld [vmem:[%s21474_s27 + $0x69] sm:$0xff]  ;;  %v21587_v24 = vld [vmem:[%s21474_s27 + $0x79] sm:$0xff]  ;;  %v21601_v26 = vld [vmem:[%s21474_s27 + $0x81] sm:$0xff] }
  0x1b   : > { %18745 = vmatprep.mubr.msk.f32.mxu1 %vm254_vm1, %v21523_v12  ;;  %v21604_v27 = vld [vmem:[%s21469_s24 + $0x90] sm:$0xff]  ;;  %v21618_v29 = vld [vmem:[%s21469_s24 + $0x98] sm:$0xff]  ;;  %v21624_v31 = vld [vmem:[%s21469_s24 + $0xa8] sm:$0xff] }
  0x1c   : > { %v21607_v28 = vld [vmem:[%s21474_s27 + $0x91] sm:$0xff]  ;;  %v21621_v30 = vld [vmem:[%s21474_s27 + $0x99] sm:$0xff]  ;;  %v21627_v32 = vld [vmem:[%s21474_s27 + $0xa9] sm:$0xff] }
  0x1d   : > { %18512 = vmatmul.mubr.msk.f32.gmra.mrb[4].mxu0 %vm254_vm1, %v21538_v13  ;;  %v21638_v33 = vld [vmem:[%s21469_s24 + $0xb0] sm:$0xff]  ;;  %v219_v35 = vld [vmem:[%s21474_s27] sm:$0xff]  ;;  %v220_v36 = vld [vmem:[%s21474_s27 + $0x8] sm:$0xff] }
  0x1e   : > { %18746 = vmatmul.mubr.msk.f32.gmra.mrb[4].mxu1 %vm254_vm1, %v21541_v14  ;;  %18514 = vmatprep.mubr.msk.f32.mxu0 %vm254_vm1, %v21544_v15  ;;  %v21641_v34 = vld [vmem:[%s21474_s27 + $0xb1] sm:$0xff]  ;;  %v21666_v39 = vld [vmem:[%s21474_s27 + $0x20] sm:$0xff]  ;;  %v21689_v42 = vld [vmem:[%s21474_s27 + $0x48] sm:$0xff] }
  0x1f   : > { %18748 = vmatprep.mubr.msk.f32.mxu1 %vm254_vm1, %v21547_v16  ;;  %v21653_v37 = vld [vmem:[%s21474_s27 + $0x18] sm:$0xff]  ;;  %v21673_v40 = vld [vmem:[%s21474_s27 + $0x30] sm:$0xff]  ;;  %v21703_v44 = vld [vmem:[%s21474_s27 + $0x60] sm:$0xff] }
  0x20   : > { %v21686_v41 = vld [vmem:[%s21474_s27 + $0x38] sm:$0xff]  ;;  %v21700_v43 = vld [vmem:[%s21474_s27 + $0x50] sm:$0xff]  ;;  %v21714_v45 = vld [vmem:[%s21474_s27 + $0x68] sm:$0xff] }
  0x21   : > { %18515 = vmatmul.mubr.msk.f32.gmra.mrb[6].mxu0 %vm254_vm1, %v21558_v17  ;;  %v21717_v46 = vld [vmem:[%s21474_s27 + $0x78] sm:$0xff]  ;;  %v21728_v47 = vld [vmem:[%s21474_s27 + $0x80] sm:$0xff]  ;;  %v21731_v48 = vld [vmem:[%s21474_s27 + $0x90] sm:$0xff] }
  0x22   : > { %18749 = vmatmul.mubr.msk.f32.gmra.mrb[6].mxu1 %vm254_vm1, %v21561_v18  ;;  %18517 = vmatprep.mubr.msk.f32.mxu0 %vm254_vm1, %v21564_v19  ;;  %v21742_v49 = vld [vmem:[%s21474_s27 + $0x98] sm:$0xff]  ;;  %v21745_v50 = vld [vmem:[%s21474_s27 + $0xa8] sm:$0xff]  ;;  %v21756_v51 = vld [vmem:[%s21474_s27 + $0xb0] sm:$0xff] }
  0x23   : > { %18751 = vmatprep.mubr.msk.f32.mxu1 %vm254_vm1, %v21567_v20  ;;  %v2590_v52 = vld [vmem:[%s21469_s24 + $0x1] sm:$0xff]  ;;  %v2591_v53 = vld [vmem:[%s21469_s24 + $0x9] sm:$0xff]  ;;  %v21768_v54 = vld [vmem:[%s21469_s24 + $0x19] sm:$0xff] }
  0x24   : > { %v21779_v56 = vld [vmem:[%s21469_s24 + $0x21] sm:$0xff]  ;;  %v21786_v57 = vld [vmem:[%s21469_s24 + $0x31] sm:$0xff]  ;;  %v21799_v58 = vld [vmem:[%s21469_s24 + $0x39] sm:$0xff] }
  0x25   : > { %18518 = vmatmul.mubr.msk.f32.gmra.mrb[8].mxu0 %vm254_vm1, %v21578_v21  ;;  %v21802_v59 = vld [vmem:[%s21469_s24 + $0x49] sm:$0xff]  ;;  %v21813_v60 = vld [vmem:[%s21469_s24 + $0x51] sm:$0xff]  ;;  %v21816_v61 = vld [vmem:[%s21469_s24 + $0x61] sm:$0xff] }
  0x26   : > { %18752 = vmatmul.mubr.msk.f32.gmra.mrb[8].mxu1 %vm254_vm1, %v21581_v22  ;;  %18520 = vmatprep.mubr.msk.f32.mxu0 %vm254_vm1, %v21584_v23  ;;  %v21827_v62 = vld [vmem:[%s21469_s24 + $0x69] sm:$0xff]  ;;  %v21830_v63 = vld [vmem:[%s21469_s24 + $0x79] sm:$0xff]  ;;  %v21841_v0 = vld [vmem:[%s21469_s24 + $0x81] sm:$0xff] }
  0x27   : > { %18754 = vmatprep.mubr.msk.f32.mxu1 %vm254_vm1, %v21587_v24  ;;  %v21844_v1 = vld [vmem:[%s21469_s24 + $0x91] sm:$0xff] }
  0x29   : > { %18521 = vmatmul.mubr.msk.f32.gmra.mrb[10].mxu0 %vm254_vm1, %v21598_v25 }
  0x2a   : > { %18755 = vmatmul.mubr.msk.f32.gmra.mrb[10].mxu1 %vm254_vm1, %v21601_v26  ;;  %18523 = vmatprep.mubr.msk.f32.mxu0 %vm254_vm1, %v21604_v27 }
  0x2b   : > { %18757 = vmatprep.mubr.msk.f32.mxu1 %vm254_vm1, %v21607_v28 }
  0x2d   : > { %18524 = vmatmul.mubr.msk.f32.gmra.mrb[12].mxu0 %vm254_vm1, %v21618_v29 }
  0x2e   : > { %18758 = vmatmul.mubr.msk.f32.gmra.mrb[12].mxu1 %vm254_vm1, %v21621_v30  ;;  %18526 = vmatprep.mubr.msk.f32.mxu0 %vm254_vm1, %v21624_v31 }
  0x2f   : > { %18760 = vmatprep.mubr.msk.f32.mxu1 %vm254_vm1, %v21627_v32 }
  0x31   : > { %18527 = vmatmul.mubr.msk.f32.gmra.mrb[14].mxu0 %vm254_vm1, %v21638_v33 }
  0x32   : > { %18761 = vmatmul.mubr.msk.f32.gmra.mrb[14].mxu1 %vm254_vm1, %v21641_v34  ;;  %18531 = vmatprep.mubr.msk.f32.mxu0 %vm254_vm1, %v219_v35  ;;  %v21938_v35 = vld [vmem:[%s21469_s24 + $0xc0] sm:$0xff] }
  0x33   : > { %18765 = vmatprep.mubr.msk.f32.mxu1 %vm254_vm1, %v21477_v2  ;;  %v21855_v2 = vld [vmem:[%s21469_s24 + $0x99] sm:$0xff] }
  0x35   : > { %18532 = vmatmul.mubr.msk.f32.vlgmr.msra.gmra.mrb[0].mxu0 %vm254_vm1, %v220_v36  ;;  %v21949_v36 = vld [vmem:[%s21474_s27 + $0xc8] sm:$0xff] }
  0x36   : > { %18766 = vmatmul.mubr.msk.f32.vlgmr.msra.gmra.mrb[0].mxu1 %vm254_vm1, %v21483_v4  ;;  %18556 = vmatpush3.msk.msra.mxu0 %vm303_vm0, %v21505_v8  ;;  %v21869_v4 = vld [vmem:[%s21469_s24 + $0xb1] sm:$0xff] }
  0x37   : > { %18790 = vmatpush3.msk.msra.mxu1 %vm303_vm0, %v21505_v8  ;;  %18534 = vmatprep.mubr.msk.f32.mxu0 %vm254_vm1, %v21653_v37  ;;  %v21935_v8 = vld [vmem:[%s21474_s27 + $0xc0] sm:$0xff] }
  0x38   : > { %18768 = vmatprep.mubr.msk.f32.mxu1 %vm254_vm1, %v21493_v6  ;;  %18581 = vmatprep.subr.msk.mxu0 %vm303_vm0, %v15354_v38 }
  0x39   : > { %18815 = vmatprep.subr.msk.mxu1 %vm303_vm0, %v15354_v38  ;;  %18535 = vmatmul.mubr.msk.f32.gmra.mrb[2].mxu0 %vm254_vm1, %v21666_v39 }
  0x3a   : > { %18769 = vmatmul.mubr.msk.f32.gmra.mrb[2].mxu1 %vm254_vm1, %v21510_v9  ;;  %18537 = vmatprep.mubr.msk.f32.mxu0 %vm254_vm1, %v21673_v40 }
  0x3b   : > { %18771 = vmatprep.mubr.msk.f32.mxu1 %vm254_vm1, %v21520_v11 }
  0x3d   : > { %18538 = vmatmul.mubr.msk.f32.gmra.mrb[4].mxu0 %vm254_vm1, %v21686_v41 }
  0x3e   : > { %18772 = vmatmul.mubr.msk.f32.gmra.mrb[4].mxu1 %vm254_vm1, %v21538_v13  ;;  %18540 = vmatprep.mubr.msk.f32.mxu0 %vm254_vm1, %v21689_v42 }
  0x3f   : > { %18774 = vmatprep.mubr.msk.f32.mxu1 %vm254_vm1, %v21544_v15 }
  0x41   : > { %18541 = vmatmul.mubr.msk.f32.gmra.mrb[6].mxu0 %vm254_vm1, %v21700_v43 }
  0x42   : > { %18775 = vmatmul.mubr.msk.f32.gmra.mrb[6].mxu1 %vm254_vm1, %v21558_v17  ;;  %18543 = vmatprep.mubr.msk.f32.mxu0 %vm254_vm1, %v21703_v44 }
  0x43   : > { %18777 = vmatprep.mubr.msk.f32.mxu1 %vm254_vm1, %v21564_v19 }
  0x45   : > { %18544 = vmatmul.mubr.msk.f32.gmra.mrb[8].mxu0 %vm254_vm1, %v21714_v45 }
  0x46   : > { %18778 = vmatmul.mubr.msk.f32.gmra.mrb[8].mxu1 %vm254_vm1, %v21578_v21  ;;  %18546 = vmatprep.mubr.msk.f32.mxu0 %vm254_vm1, %v21717_v46 }
  0x47   : > { %18780 = vmatprep.mubr.msk.f32.mxu1 %vm254_vm1, %v21584_v23 }
  0x49   : > { %18547 = vmatmul.mubr.msk.f32.gmra.mrb[10].mxu0 %vm254_vm1, %v21728_v47 }
  0x4a   : > { %18781 = vmatmul.mubr.msk.f32.gmra.mrb[10].mxu1 %vm254_vm1, %v21598_v25  ;;  %18549 = vmatprep.mubr.msk.f32.mxu0 %vm254_vm1, %v21731_v48 }
  0x4b   : > { %18783 = vmatprep.mubr.msk.f32.mxu1 %vm254_vm1, %v21604_v27 }
  0x4d   : > { %18550 = vmatmul.mubr.msk.f32.gmra.mrb[12].mxu0 %vm254_vm1, %v21742_v49 }
  0x4e   : > { %18784 = vmatmul.mubr.msk.f32.gmra.mrb[12].mxu1 %vm254_vm1, %v21618_v29  ;;  %18552 = vmatprep.mubr.msk.f32.mxu0 %vm254_vm1, %v21745_v50 }
  0x4f   : > { %18786 = vmatprep.mubr.msk.f32.mxu1 %vm254_vm1, %v21624_v31 }
  0x51   : > { %18553 = vmatmul.mubr.msk.f32.gmra.mrb[14].mxu0 %vm254_vm1, %v21756_v51 }
  0x52   : > { %18787 = vmatmul.mubr.msk.f32.gmra.mrb[14].mxu1 %vm254_vm1, %v21638_v33  ;;  %18557 = vmatprep.mubr.msk.f32.mxu0 %vm254_vm1, %v21480_v3  ;;  %v21858_v3 = vld [vmem:[%s21469_s24 + $0xa9] sm:$0xff] }
  0x53   : > { %18791 = vmatprep.mubr.msk.f32.mxu1 %vm254_vm1, %v2590_v52  ;;  %v15524_v52 = vld [vmem:[%s25038_s2 + $0x20] sm:$0x7] }
  0x55   : > { %18558 = vmatmul.mubr.msk.f32.vlgmr.msra.gmra.mrb[0].mxu0 %vm254_vm1, %v21490_v5  ;;  %v15422_v5 = vld [vmem:[%s25038_s2 + $0x14] sm:$0x7] }
  0x56   : > { %18792 = vmatmul.mubr.msk.f32.vlgmr.msra.gmra.mrb[0].mxu1 %vm254_vm1, %v2591_v53  ;;  %18582 = vmatpush3.msk.msra.mxu0 %vm303_vm0, %v15354_v38  ;;  %v22516_v53 = vld [vmem:[%s21474_s27 + $0xf0] sm:$0xff] }
  0x57   : > { %18816 = vmatpush3.msk.msra.mxu1 %vm303_vm0, %v15354_v38  ;;  %18560 = vmatprep.mubr.msk.f32.mxu0 %vm254_vm1, %v21496_v7  ;;  %v15456_v38 = vld [vmem:[%s25038_s2 + $0x18] sm:$0x7] }
  0x58   : > { %18794 = vmatprep.mubr.msk.f32.mxu1 %vm254_vm1, %v21768_v54  ;;  %18607 = vmatprep.subr.msk.mxu0 %vm303_vm0, %v15388_v55 }
  0x59   : > { %18841 = vmatprep.subr.msk.mxu1 %vm303_vm0, %v15388_v55  ;;  %18561 = vmatmul.mubr.msk.f32.gmra.mrb[2].mxu0 %vm254_vm1, %v21513_v10 }
  0x5a   : > { %18795 = vmatmul.mubr.msk.f32.gmra.mrb[2].mxu1 %vm254_vm1, %v21779_v56  ;;  %18563 = vmatprep.mubr.msk.f32.mxu0 %vm254_vm1, %v21523_v12 }
  0x5b   : > { %18797 = vmatprep.mubr.msk.f32.mxu1 %vm254_vm1, %v21786_v57 }
  0x5d   : > { %18564 = vmatmul.mubr.msk.f32.gmra.mrb[4].mxu0 %vm254_vm1, %v21541_v14 }
  0x5e   : > { %18798 = vmatmul.mubr.msk.f32.gmra.mrb[4].mxu1 %vm254_vm1, %v21799_v58  ;;  %18566 = vmatprep.mubr.msk.f32.mxu0 %vm254_vm1, %v21547_v16 }
  0x5f   : > { %18800 = vmatprep.mubr.msk.f32.mxu1 %vm254_vm1, %v21802_v59 }
  0x61   : > { %18567 = vmatmul.mubr.msk.f32.gmra.mrb[6].mxu0 %vm254_vm1, %v21561_v18 }
  0x62   : > { %18801 = vmatmul.mubr.msk.f32.gmra.mrb[6].mxu1 %vm254_vm1, %v21813_v60  ;;  %18569 = vmatprep.mubr.msk.f32.mxu0 %vm254_vm1, %v21567_v20 }
  0x63   : > { %18803 = vmatprep.mubr.msk.f32.mxu1 %vm254_vm1, %v21816_v61 }
  0x65   : > { %18570 = vmatmul.mubr.msk.f32.gmra.mrb[8].mxu0 %vm254_vm1, %v21581_v22 }
  0x66   : > { %18804 = vmatmul.mubr.msk.f32.gmra.mrb[8].mxu1 %vm254_vm1, %v21827_v62  ;;  %18572 = vmatprep.mubr.msk.f32.mxu0 %vm254_vm1, %v21587_v24 }
  0x67   : > { %18806 = vmatprep.mubr.msk.f32.mxu1 %vm254_vm1, %v21830_v63 }
  0x69   : > { %18573 = vmatmul.mubr.msk.f32.gmra.mrb[10].mxu0 %vm254_vm1, %v21601_v26 }
  0x6a   : > { %18807 = vmatmul.mubr.msk.f32.gmra.mrb[10].mxu1 %vm254_vm1, %v21841_v0  ;;  %18575 = vmatprep.mubr.msk.f32.mxu0 %vm254_vm1, %v21607_v28 }
  0x6b   : > { %18809 = vmatprep.mubr.msk.f32.mxu1 %vm254_vm1, %v21844_v1 }
  0x6d   : > { %18576 = vmatmul.mubr.msk.f32.gmra.mrb[12].mxu0 %vm254_vm1, %v21621_v30 }
  0x6e   : > { %18810 = vmatmul.mubr.msk.f32.gmra.mrb[12].mxu1 %vm254_vm1, %v21855_v2  ;;  %18578 = vmatprep.mubr.msk.f32.mxu0 %vm254_vm1, %v21627_v32 }
  0x6f   : > { %18812 = vmatprep.mubr.msk.f32.mxu1 %vm254_vm1, %v21858_v3 }
  0x71   : > { %18579 = vmatmul.mubr.msk.f32.gmra.mrb[14].mxu0 %vm254_vm1, %v21641_v34 }
  0x72   : > { %18813 = vmatmul.mubr.msk.f32.gmra.mrb[14].mxu1 %vm254_vm1, %v21869_v4  ;;  %18583 = vmatprep.mubr.msk.f32.mxu0 %vm254_vm1, %v21653_v37  ;;  %v21952_v37 = vld [vmem:[%s21469_s24 + $0xc8] sm:$0xff] }
  0x73   : > { %18817 = vmatprep.mubr.msk.f32.mxu1 %vm254_vm1, %v21493_v6 }
  0x75   : > { %18584 = vmatmul.mubr.msk.f32.vlgmr.msra.gmra.mrb[0].mxu0 %vm254_vm1, %v21666_v39  ;;  %v15490_v39 = vld [vmem:[%s25038_s2 + $0x1c] sm:$0x7] }
  0x76   : > { %18818 = vmatmul.mubr.msk.f32.vlgmr.msra.gmra.mrb[0].mxu1 %vm254_vm1, %v21510_v9  ;;  %18608 = vmatpush3.msk.msra.mxu0 %vm303_vm0, %v15388_v55 }
  0x77   : > { %18842 = vmatpush3.msk.msra.mxu1 %vm303_vm0, %v15388_v55  ;;  %18586 = vmatprep.mubr.msk.f32.mxu0 %vm254_vm1, %v21673_v40  ;;  %v22532_v55 = vld [vmem:[%s21474_s27 + $0x108] sm:$0xff] }
  0x78   : > { %18820 = vmatprep.mubr.msk.f32.mxu1 %vm254_vm1, %v21520_v11  ;;  %18633 = vmatprep.subr.msk.mxu0 %vm303_vm0, %v15422_v5 }
  0x79   : > { %18867 = vmatprep.subr.msk.mxu1 %vm303_vm0, %v15422_v5  ;;  %18587 = vmatmul.mubr.msk.f32.gmra.mrb[2].mxu0 %vm254_vm1, %v21686_v41 }
  0x7a   : > { %18821 = vmatmul.mubr.msk.f32.gmra.mrb[2].mxu1 %vm254_vm1, %v21538_v13  ;;  %18589 = vmatprep.mubr.msk.f32.mxu0 %vm254_vm1, %v21689_v42 }
  0x7b   : > { %18823 = vmatprep.mubr.msk.f32.mxu1 %vm254_vm1, %v21544_v15 }
  0x7d   : > { %18590 = vmatmul.mubr.msk.f32.gmra.mrb[4].mxu0 %vm254_vm1, %v21700_v43 }
  0x7e   : > { %18824 = vmatmul.mubr.msk.f32.gmra.mrb[4].mxu1 %vm254_vm1, %v21558_v17  ;;  %18592 = vmatprep.mubr.msk.f32.mxu0 %vm254_vm1, %v21703_v44 }
  0x7f   : > { %18826 = vmatprep.mubr.msk.f32.mxu1 %vm254_vm1, %v21564_v19 }
  0x81   : > { %18593 = vmatmul.mubr.msk.f32.gmra.mrb[6].mxu0 %vm254_vm1, %v21714_v45 }
  0x82   : > { %18827 = vmatmul.mubr.msk.f32.gmra.mrb[6].mxu1 %vm254_vm1, %v21578_v21  ;;  %18595 = vmatprep.mubr.msk.f32.mxu0 %vm254_vm1, %v21717_v46 }
  0x83   : > { %18829 = vmatprep.mubr.msk.f32.mxu1 %vm254_vm1, %v21584_v23 }
  0x85   : > { %18596 = vmatmul.mubr.msk.f32.gmra.mrb[8].mxu0 %vm254_vm1, %v21728_v47 }
  0x86   : > { %18830 = vmatmul.mubr.msk.f32.gmra.mrb[8].mxu1 %vm254_vm1, %v21598_v25  ;;  %18598 = vmatprep.mubr.msk.f32.mxu0 %vm254_vm1, %v21731_v48 }
  0x87   : > { %18832 = vmatprep.mubr.msk.f32.mxu1 %vm254_vm1, %v21604_v27 }
  0x89   : > { %18599 = vmatmul.mubr.msk.f32.gmra.mrb[10].mxu0 %vm254_vm1, %v21742_v49 }
  0x8a   : > { %18833 = vmatmul.mubr.msk.f32.gmra.mrb[10].mxu1 %vm254_vm1, %v21618_v29  ;;  %18601 = vmatprep.mubr.msk.f32.mxu0 %vm254_vm1, %v21745_v50 }
  0x8b   : > { %18835 = vmatprep.mubr.msk.f32.mxu1 %vm254_vm1, %v21624_v31 }
  0x8d   : > { %18602 = vmatmul.mubr.msk.f32.gmra.mrb[12].mxu0 %vm254_vm1, %v21756_v51 }
  0x8e   : > { %18836 = vmatmul.mubr.msk.f32.gmra.mrb[12].mxu1 %vm254_vm1, %v21638_v33  ;;  %18604 = vmatprep.mubr.msk.f32.mxu0 %vm254_vm1, %v21935_v8 }
  0x8f   : > { %18838 = vmatprep.mubr.msk.f32.mxu1 %vm254_vm1, %v21938_v35 }
  0x91   : > { %18605 = vmatmul.mubr.msk.f32.gmra.mrb[14].mxu0 %vm254_vm1, %v21949_v36 }
  0x92   : > { %18839 = vmatmul.mubr.msk.f32.gmra.mrb[14].mxu1 %vm254_vm1, %v21952_v37  ;;  %18609 = vmatprep.mubr.msk.f32.mxu0 %vm254_vm1, %v21493_v6  ;;  %v22018_v6 = vld [vmem:[%s21474_s27 + $0xc1] sm:$0xff] }
  0x93   : > { %18843 = vmatprep.mubr.msk.f32.mxu1 %vm254_vm1, %v21496_v7 }
  0x95   : > { %18610 = vmatmul.mubr.msk.f32.vlgmr.msra.gmra.mrb[0].mxu0 %vm254_vm1, %v21510_v9  ;;  %v22029_v9 = vld [vmem:[%s21474_s27 + $0xc9] sm:$0xff] }
  0x96   : > { %18844 = vmatmul.mubr.msk.f32.vlgmr.msra.gmra.mrb[0].mxu1 %vm254_vm1, %v21513_v10  ;;  %18634 = vmatpush3.msk.msra.mxu0 %vm303_vm0, %v15422_v5 }
  0x97   : > { %18868 = vmatpush3.msk.msra.mxu1 %vm303_vm0, %v15422_v5  ;;  %18612 = vmatprep.mubr.msk.f32.mxu0 %vm254_vm1, %v21520_v11  ;;  %v22650_v5 = vld [vmem:[%s21469_s24 + $0x111] sm:$0xff] }
  0x98   : > { %18846 = vmatprep.mubr.msk.f32.mxu1 %vm254_vm1, %v21523_v12  ;;  %18659 = vmatprep.subr.msk.mxu0 %vm303_vm0, %v15456_v38 }
  0x99   : > { %18893 = vmatprep.subr.msk.mxu1 %vm303_vm0, %v15456_v38  ;;  %18613 = vmatmul.mubr.msk.f32.gmra.mrb[2].mxu0 %vm254_vm1, %v21538_v13 }
  0x9a   : > { %18847 = vmatmul.mubr.msk.f32.gmra.mrb[2].mxu1 %vm254_vm1, %v21541_v14  ;;  %18615 = vmatprep.mubr.msk.f32.mxu0 %vm254_vm1, %v21544_v15 }
  0x9b   : > { %18849 = vmatprep.mubr.msk.f32.mxu1 %vm254_vm1, %v21547_v16 }
  0x9d   : > { %18616 = vmatmul.mubr.msk.f32.gmra.mrb[4].mxu0 %vm254_vm1, %v21558_v17 }
  0x9e   : > { %18850 = vmatmul.mubr.msk.f32.gmra.mrb[4].mxu1 %vm254_vm1, %v21561_v18  ;;  %18618 = vmatprep.mubr.msk.f32.mxu0 %vm254_vm1, %v21564_v19 }
  0x9f   : > { %18852 = vmatprep.mubr.msk.f32.mxu1 %vm254_vm1, %v21567_v20 }
  0xa1   : > { %18619 = vmatmul.mubr.msk.f32.gmra.mrb[6].mxu0 %vm254_vm1, %v21578_v21 }
  0xa2   : > { %18853 = vmatmul.mubr.msk.f32.gmra.mrb[6].mxu1 %vm254_vm1, %v21581_v22  ;;  %18621 = vmatprep.mubr.msk.f32.mxu0 %vm254_vm1, %v21584_v23 }
  0xa3   : > { %18855 = vmatprep.mubr.msk.f32.mxu1 %vm254_vm1, %v21587_v24 }
  0xa5   : > { %18622 = vmatmul.mubr.msk.f32.gmra.mrb[8].mxu0 %vm254_vm1, %v21598_v25 }
  0xa6   : > { %18856 = vmatmul.mubr.msk.f32.gmra.mrb[8].mxu1 %vm254_vm1, %v21601_v26  ;;  %18624 = vmatprep.mubr.msk.f32.mxu0 %vm254_vm1, %v21604_v27 }
  0xa7   : > { %18858 = vmatprep.mubr.msk.f32.mxu1 %vm254_vm1, %v21607_v28 }
  0xa9   : > { %18625 = vmatmul.mubr.msk.f32.gmra.mrb[10].mxu0 %vm254_vm1, %v21618_v29 }
  0xaa   : > { %18859 = vmatmul.mubr.msk.f32.gmra.mrb[10].mxu1 %vm254_vm1, %v21621_v30  ;;  %18627 = vmatprep.mubr.msk.f32.mxu0 %vm254_vm1, %v21624_v31 }
  0xab   : > { %18861 = vmatprep.mubr.msk.f32.mxu1 %vm254_vm1, %v21627_v32 }
  0xad   : > { %18628 = vmatmul.mubr.msk.f32.gmra.mrb[12].mxu0 %vm254_vm1, %v21638_v33 }
  0xae   : > { %18862 = vmatmul.mubr.msk.f32.gmra.mrb[12].mxu1 %vm254_vm1, %v21641_v34  ;;  %18630 = vmatprep.mubr.msk.f32.mxu0 %vm254_vm1, %v21938_v35 }
  0xaf   : > { %18864 = vmatprep.mubr.msk.f32.mxu1 %vm254_vm1, %v22018_v6 }
  0xb1   : > { %18631 = vmatmul.mubr.msk.f32.gmra.mrb[14].mxu0 %vm254_vm1, %v21952_v37 }
  0xb2   : > { %18865 = vmatmul.mubr.msk.f32.gmra.mrb[14].mxu1 %vm254_vm1, %v22029_v9  ;;  %18635 = vmatprep.mubr.msk.f32.mxu0 %vm254_vm1, %v21496_v7  ;;  %v22095_v7 = vld [vmem:[%s21469_s24 + $0xc1] sm:$0xff] }
  0xb3   : > { %18869 = vmatprep.mubr.msk.f32.mxu1 %vm254_vm1, %v21768_v54  ;;  %v22529_v54 = vld [vmem:[%s21474_s27 + $0xf8] sm:$0xff] }
  0xb5   : > { %18636 = vmatmul.mubr.msk.f32.vlgmr.msra.gmra.mrb[0].mxu0 %vm254_vm1, %v21513_v10  ;;  %v22106_v10 = vld [vmem:[%s21469_s24 + $0xc9] sm:$0xff] }
  0xb6   : > { %18870 = vmatmul.mubr.msk.f32.vlgmr.msra.gmra.mrb[0].mxu1 %vm254_vm1, %v21779_v56  ;;  %18660 = vmatpush3.msk.msra.mxu0 %vm303_vm0, %v15456_v38  ;;  %v22543_v56 = vld [vmem:[%s21474_s27 + $0x110] sm:$0xff] }
  0xb7   : > { %18894 = vmatpush3.msk.msra.mxu1 %vm303_vm0, %v15456_v38  ;;  %18638 = vmatprep.mubr.msk.f32.mxu0 %vm254_vm1, %v21523_v12  ;;  %v22681_v38 = vld [vmem:[%s21469_s24 + $0x151] sm:$0xff] }
  0xb8   : > { %18872 = vmatprep.mubr.msk.f32.mxu1 %vm254_vm1, %v21786_v57  ;;  %18685 = vmatprep.subr.msk.mxu0 %vm303_vm0, %v15490_v39 }
  0xb9   : > { %18919 = vmatprep.subr.msk.mxu1 %vm303_vm0, %v15490_v39  ;;  %18639 = vmatmul.mubr.msk.f32.gmra.mrb[2].mxu0 %vm254_vm1, %v21541_v14 }
  0xba   : > { %18873 = vmatmul.mubr.msk.f32.gmra.mrb[2].mxu1 %vm254_vm1, %v21799_v58  ;;  %18641 = vmatprep.mubr.msk.f32.mxu0 %vm254_vm1, %v21547_v16 }
  0xbb   : > { %18875 = vmatprep.mubr.msk.f32.mxu1 %vm254_vm1, %v21802_v59 }
  0xbd   : > { %18642 = vmatmul.mubr.msk.f32.gmra.mrb[4].mxu0 %vm254_vm1, %v21561_v18 }
  0xbe   : > { %18876 = vmatmul.mubr.msk.f32.gmra.mrb[4].mxu1 %vm254_vm1, %v21813_v60  ;;  %18644 = vmatprep.mubr.msk.f32.mxu0 %vm254_vm1, %v21567_v20 }
  0xbf   : > { %18878 = vmatprep.mubr.msk.f32.mxu1 %vm254_vm1, %v21816_v61 }
  0xc1   : > { %18645 = vmatmul.mubr.msk.f32.gmra.mrb[6].mxu0 %vm254_vm1, %v21581_v22 }
  0xc2   : > { %18879 = vmatmul.mubr.msk.f32.gmra.mrb[6].mxu1 %vm254_vm1, %v21827_v62  ;;  %18647 = vmatprep.mubr.msk.f32.mxu0 %vm254_vm1, %v21587_v24 }
  0xc3   : > { %18881 = vmatprep.mubr.msk.f32.mxu1 %vm254_vm1, %v21830_v63 }
  0xc5   : > { %18648 = vmatmul.mubr.msk.f32.gmra.mrb[8].mxu0 %vm254_vm1, %v21601_v26 }
  0xc6   : > { %18882 = vmatmul.mubr.msk.f32.gmra.mrb[8].mxu1 %vm254_vm1, %v21841_v0  ;;  %18650 = vmatprep.mubr.msk.f32.mxu0 %vm254_vm1, %v21607_v28 }
  0xc7   : > { %18884 = vmatprep.mubr.msk.f32.mxu1 %vm254_vm1, %v21844_v1 }
  0xc9   : > { %18651 = vmatmul.mubr.msk.f32.gmra.mrb[10].mxu0 %vm254_vm1, %v21621_v30 }
  0xca   : > { %18885 = vmatmul.mubr.msk.f32.gmra.mrb[10].mxu1 %vm254_vm1, %v21855_v2  ;;  %18653 = vmatprep.mubr.msk.f32.mxu0 %vm254_vm1, %v21627_v32 }
  0xcb   : > { %18887 = vmatprep.mubr.msk.f32.mxu1 %vm254_vm1, %v21858_v3 }
  0xcd   : > { %18654 = vmatmul.mubr.msk.f32.gmra.mrb[12].mxu0 %vm254_vm1, %v21641_v34 }
  0xce   : > { %18888 = vmatmul.mubr.msk.f32.gmra.mrb[12].mxu1 %vm254_vm1, %v21869_v4  ;;  %18656 = vmatprep.mubr.msk.f32.mxu0 %vm254_vm1, %v22018_v6 }
  0xcf   : > { %18890 = vmatprep.mubr.msk.f32.mxu1 %vm254_vm1, %v22095_v7 }
  0xd1   : > { %18657 = vmatmul.mubr.msk.f32.gmra.mrb[14].mxu0 %vm254_vm1, %v22029_v9 }
  0xd2   : > { %18891 = vmatmul.mubr.msk.f32.gmra.mrb[14].mxu1 %vm254_vm1, %v22106_v10  ;;  %18661 = vmatprep.mubr.msk.f32.mxu0 %vm254_vm1, %v21673_v40  ;;  %v22172_v40 = vld [vmem:[%s21474_s27 + $0xd8] sm:$0xff] }
  0xd3   : > { %18895 = vmatprep.mubr.msk.f32.mxu1 %vm254_vm1, %v21520_v11 }
  0xd5   : > { %18662 = vmatmul.mubr.msk.f32.vlgmr.msra.gmra.mrb[0].mxu0 %vm254_vm1, %v21686_v41  ;;  %v22175_v41 = vld [vmem:[%s21469_s24 + $0xd8] sm:$0xff] }
  0xd6   : > { %18896 = vmatmul.mubr.msk.f32.vlgmr.msra.gmra.mrb[0].mxu1 %vm254_vm1, %v21538_v13  ;;  %18686 = vmatpush3.msk.msra.mxu0 %vm303_vm0, %v15490_v39 }
  0xd7   : > { %18920 = vmatpush3.msk.msra.mxu1 %vm303_vm0, %v15490_v39  ;;  %18664 = vmatprep.mubr.msk.f32.mxu0 %vm254_vm1, %v21689_v42  ;;  %v22186_v42 = vld [vmem:[%s21474_s27 + $0xe0] sm:$0xff]  ;;  %v22706_v39 = vld [vmem:[%s21469_s24 + $0x171] sm:$0xff] }
  0xd8   : > { %18898 = vmatprep.mubr.msk.f32.mxu1 %vm254_vm1, %v21544_v15  ;;  %18711 = vmatprep.subr.msk.mxu0 %vm303_vm0, %v15524_v52 }
  0xd9   : > { %18945 = vmatprep.subr.msk.mxu1 %vm303_vm0, %v15524_v52  ;;  %18665 = vmatmul.mubr.msk.f32.gmra.mrb[2].mxu0 %vm254_vm1, %v21700_v43  ;;  %v22189_v43 = vld [vmem:[%s21469_s24 + $0xe0] sm:$0xff] }
  0xda   : > { %18899 = vmatmul.mubr.msk.f32.gmra.mrb[2].mxu1 %vm254_vm1, %v21558_v17  ;;  %18667 = vmatprep.mubr.msk.f32.mxu0 %vm254_vm1, %v21703_v44  ;;  %v15766_v44 = vld [vmem:[%s25038_s2 + $0x4] sm:$0x7] }
  0xdb   : > { %18901 = vmatprep.mubr.msk.f32.mxu1 %vm254_vm1, %v21564_v19 }
  0xdd   : > { %18668 = vmatmul.mubr.msk.f32.gmra.mrb[4].mxu0 %vm254_vm1, %v21714_v45  ;;  %v22467_v45 = vld [vmem:[%s21469_s24 + $0x158] sm:$0xff] }
  0xde   : > { %18902 = vmatmul.mubr.msk.f32.gmra.mrb[4].mxu1 %vm254_vm1, %v21578_v21  ;;  %18670 = vmatprep.mubr.msk.f32.mxu0 %vm254_vm1, %v21717_v46  ;;  %v22470_v46 = vld [vmem:[%s21474_s27 + $0x159] sm:$0xff] }
  0xdf   : > { %18904 = vmatprep.mubr.msk.f32.mxu1 %vm254_vm1, %v21584_v23 }
  0xe1   : > { %18671 = vmatmul.mubr.msk.f32.gmra.mrb[6].mxu0 %vm254_vm1, %v21728_v47  ;;  %v22473_v47 = vld [vmem:[%s21469_s24 + $0x168] sm:$0xff] }
  0xe2   : > { %18905 = vmatmul.mubr.msk.f32.gmra.mrb[6].mxu1 %vm254_vm1, %v21598_v25  ;;  %18673 = vmatprep.mubr.msk.f32.mxu0 %vm254_vm1, %v21731_v48  ;;  %v22476_v48 = vld [vmem:[%s21474_s27 + $0x169] sm:$0xff] }
  0xe3   : > { %18907 = vmatprep.mubr.msk.f32.mxu1 %vm254_vm1, %v21604_v27 }
  0xe5   : > { %18674 = vmatmul.mubr.msk.f32.gmra.mrb[8].mxu0 %vm254_vm1, %v21742_v49  ;;  %v22487_v49 = vld [vmem:[%s21469_s24 + $0x170] sm:$0xff] }
  0xe6   : > { %18908 = vmatmul.mubr.msk.f32.gmra.mrb[8].mxu1 %vm254_vm1, %v21618_v29  ;;  %18676 = vmatprep.mubr.msk.f32.mxu0 %vm254_vm1, %v21745_v50  ;;  %v22490_v50 = vld [vmem:[%s21474_s27 + $0x171] sm:$0xff] }
  0xe7   : > { %18910 = vmatprep.mubr.msk.f32.mxu1 %vm254_vm1, %v21624_v31 }
  0xe9   : > { %18677 = vmatmul.mubr.msk.f32.gmra.mrb[10].mxu0 %vm254_vm1, %v21756_v51  ;;  %v15851_v51 = vld [vmem:[%s25038_s2 + $0xc] sm:$0x7] }
  0xea   : > { %18911 = vmatmul.mubr.msk.f32.gmra.mrb[10].mxu1 %vm254_vm1, %v21638_v33  ;;  %18679 = vmatprep.mubr.msk.f32.mxu0 %vm254_vm1, %v21935_v8 }
  0xeb   : > { %18913 = vmatprep.mubr.msk.f32.mxu1 %vm254_vm1, %v21938_v35 }
  0xed   : > { %18680 = vmatmul.mubr.msk.f32.gmra.mrb[12].mxu0 %vm254_vm1, %v21949_v36 }
  0xee   : > { %18914 = vmatmul.mubr.msk.f32.gmra.mrb[12].mxu1 %vm254_vm1, %v21952_v37  ;;  %18682 = vmatprep.mubr.msk.f32.mxu0 %vm254_vm1, %v22172_v40 }
  0xef   : > { %18916 = vmatprep.mubr.msk.f32.mxu1 %vm254_vm1, %v22175_v41 }
  0xf1   : > { %18683 = vmatmul.mubr.msk.f32.gmra.mrb[14].mxu0 %vm254_vm1, %v22186_v42 }
  0xf2   : > { %18917 = vmatmul.mubr.msk.f32.gmra.mrb[14].mxu1 %vm254_vm1, %v22189_v43  ;;  %18687 = vmatprep.mubr.msk.f32.mxu0 %vm254_vm1, %v21520_v11  ;;  %v22255_v11 = vld [vmem:[%s21474_s27 + $0xd9] sm:$0xff] }
  0xf3   : > { %18921 = vmatprep.mubr.msk.f32.mxu1 %vm254_vm1, %v21523_v12 }
  0xf5   : > { %18688 = vmatmul.mubr.msk.f32.vlgmr.msra.gmra.mrb[0].mxu0 %vm254_vm1, %v21538_v13  ;;  %v22266_v13 = vld [vmem:[%s21474_s27 + $0xe1] sm:$0xff] }
  0xf6   : > { %18922 = vmatmul.mubr.msk.f32.vlgmr.msra.gmra.mrb[0].mxu1 %vm254_vm1, %v21541_v14  ;;  %18712 = vmatpush3.msk.msra.mxu0 %vm303_vm0, %v15524_v52 }
  0xf7   : > { %18946 = vmatpush3.msk.msra.mxu1 %vm303_vm0, %v15524_v52  ;;  %18690 = vmatprep.mubr.msk.f32.mxu0 %vm254_vm1, %v21544_v15  ;;  %v3994_v15 = vld [vmem:[%s25038_s2] sm:$0x7] }
  0xf8   : > { %18924 = vmatprep.mubr.msk.f32.mxu1 %vm254_vm1, %v21547_v16  ;;  %18971 = vmatprep.subr.msk.mxu0 %vm303_vm0, %v15766_v44  ;;  %v22775_v52 = vld [vmem:[%s21469_s24 + $0x180] sm:$0xff] }
  0xf9   : > { %19205 = vmatprep.subr.msk.mxu1 %vm303_vm0, %v15766_v44  ;;  %18691 = vmatmul.mubr.msk.f32.gmra.mrb[2].mxu0 %vm254_vm1, %v21558_v17  ;;  %v22369_v17 = vld [vmem:[%s21469_s24 + $0xf0] sm:$0xff] }
  0xfa   : > { %18925 = vmatmul.mubr.msk.f32.gmra.mrb[2].mxu1 %vm254_vm1, %v21561_v18  ;;  %18693 = vmatprep.mubr.msk.f32.mxu0 %vm254_vm1, %v21564_v19  ;;  %v22387_v19 = vld [vmem:[%s21469_s24 + $0xf8] sm:$0xff] }
  0xfb   : > { %18927 = vmatprep.mubr.msk.f32.mxu1 %vm254_vm1, %v21567_v20 }
  0xfd   : > { %18694 = vmatmul.mubr.msk.f32.gmra.mrb[4].mxu0 %vm254_vm1, %v21578_v21  ;;  %v22393_v21 = vld [vmem:[%s21469_s24 + $0x108] sm:$0xff] }
  0xfe   : > { %18928 = vmatmul.mubr.msk.f32.gmra.mrb[4].mxu1 %vm254_vm1, %v21581_v22  ;;  %18696 = vmatprep.mubr.msk.f32.mxu0 %vm254_vm1, %v21584_v23  ;;  %v22407_v23 = vld [vmem:[%s21469_s24 + $0x110] sm:$0xff] }
  0xff   : > { %18930 = vmatprep.mubr.msk.f32.mxu1 %vm254_vm1, %v21587_v24 }
 0x101   : > { %18697 = vmatmul.mubr.msk.f32.gmra.mrb[6].mxu0 %vm254_vm1, %v21598_v25  ;;  %v22413_v25 = vld [vmem:[%s21469_s24 + $0x120] sm:$0xff] }
 0x102   : > { %18931 = vmatmul.mubr.msk.f32.gmra.mrb[6].mxu1 %vm254_vm1, %v21601_v26  ;;  %18699 = vmatprep.mubr.msk.f32.mxu0 %vm254_vm1, %v21604_v27  ;;  %v22427_v27 = vld [vmem:[%s21469_s24 + $0x128] sm:$0xff] }
 0x103   : > { %18933 = vmatprep.mubr.msk.f32.mxu1 %vm254_vm1, %v21607_v28 }
 0x105   : > { %18700 = vmatmul.mubr.msk.f32.gmra.mrb[8].mxu0 %vm254_vm1, %v21618_v29  ;;  %v22433_v29 = vld [vmem:[%s21469_s24 + $0x138] sm:$0xff] }
 0x106   : > { %18934 = vmatmul.mubr.msk.f32.gmra.mrb[8].mxu1 %vm254_vm1, %v21621_v30  ;;  %18702 = vmatprep.mubr.msk.f32.mxu0 %vm254_vm1, %v21624_v31  ;;  %v22447_v31 = vld [vmem:[%s21469_s24 + $0x140] sm:$0xff] }
 0x107   : > { %18936 = vmatprep.mubr.msk.f32.mxu1 %vm254_vm1, %v21627_v32 }
 0x109   : > { %18703 = vmatmul.mubr.msk.f32.gmra.mrb[10].mxu0 %vm254_vm1, %v21638_v33  ;;  %v22453_v33 = vld [vmem:[%s21469_s24 + $0x150] sm:$0xff] }
 0x10a   : > { %18937 = vmatmul.mubr.msk.f32.gmra.mrb[10].mxu1 %vm254_vm1, %v21641_v34  ;;  %18705 = vmatprep.mubr.msk.f32.mxu0 %vm254_vm1, %v21938_v35 }
 0x10b   : > { %18939 = vmatprep.mubr.msk.f32.mxu1 %vm254_vm1, %v22018_v6 }
 0x10d   : > { %18706 = vmatmul.mubr.msk.f32.gmra.mrb[12].mxu0 %vm254_vm1, %v21952_v37 }
 0x10e   : > { %18940 = vmatmul.mubr.msk.f32.gmra.mrb[12].mxu1 %vm254_vm1, %v22029_v9  ;;  %18708 = vmatprep.mubr.msk.f32.mxu0 %vm254_vm1, %v22175_v41 }
 0x10f   : > { %18942 = vmatprep.mubr.msk.f32.mxu1 %vm254_vm1, %v22255_v11 }
 0x111   : > { %18709 = vmatmul.mubr.msk.f32.gmra.mrb[14].mxu0 %vm254_vm1, %v22189_v43 }
 0x112   : > { %18943 = vmatmul.mubr.msk.f32.gmra.mrb[14].mxu1 %vm254_vm1, %v22266_v13  ;;  %18713 = vmatprep.mubr.msk.f32.mxu0 %vm254_vm1, %v21523_v12  ;;  %v22332_v12 = vld [vmem:[%s21469_s24 + $0xd9] sm:$0xff] }
 0x113   : > { %18947 = vmatprep.mubr.msk.f32.mxu1 %vm254_vm1, %v21786_v57  ;;  %v22546_v57 = vld [vmem:[%s21474_s27 + $0x120] sm:$0xff] }
 0x115   : > { %18714 = vmatmul.mubr.msk.f32.vlgmr.msra.gmra.mrb[0].mxu0 %vm254_vm1, %v21541_v14  ;;  %v22343_v14 = vld [vmem:[%s21469_s24 + $0xe1] sm:$0xff] }
 0x116   : > { %18948 = vmatmul.mubr.msk.f32.vlgmr.msra.gmra.mrb[0].mxu1 %vm254_vm1, %v21799_v58  ;;  %18972 = vmatpush3.msk.msra.mxu0 %vm303_vm0, %v15766_v44  ;;  %v22557_v58 = vld [vmem:[%s21474_s27 + $0x128] sm:$0xff] }
 0x117   : > { %19206 = vmatpush3.msk.msra.mxu1 %vm303_vm0, %v15766_v44  ;;  %18716 = vmatprep.mubr.msk.f32.mxu0 %vm254_vm1, %v21547_v16  ;;  %v22360_v16 = vld [vmem:[%s25038_s2 + $0x8] sm:$0x7]  ;;  %v15953_v44 = vld [vmem:[%s25038_s2 + $0x18] sm:$0x7] }
 0x118   : > { %18950 = vmatprep.mubr.msk.f32.mxu1 %vm254_vm1, %v21802_v59  ;;  %18997 = vmatprep.subr.msk.mxu0 %vm303_vm0, %v3994_v15  ;;  %v22560_v59 = vld [vmem:[%s21474_s27 + $0x138] sm:$0xff] }
 0x119   : > { %19231 = vmatprep.subr.msk.mxu1 %vm303_vm0, %v3994_v15  ;;  %18717 = vmatmul.mubr.msk.f32.gmra.mrb[2].mxu0 %vm254_vm1, %v21561_v18  ;;  %v22372_v18 = vld [vmem:[%s21474_s27 + $0xf1] sm:$0xff] }
 0x11a   : > { %18951 = vmatmul.mubr.msk.f32.gmra.mrb[2].mxu1 %vm254_vm1, %v21813_v60  ;;  %18719 = vmatprep.mubr.msk.f32.mxu0 %vm254_vm1, %v21567_v20  ;;  %v22390_v20 = vld [vmem:[%s21474_s27 + $0xf9] sm:$0xff] }
 0x11b   : > { %18953 = vmatprep.mubr.msk.f32.mxu1 %vm254_vm1, %v21816_v61  ;;  %v22571_v60 = vld [vmem:[%s21474_s27 + $0x140] sm:$0xff]  ;;  %v22574_v61 = vld [vmem:[%s21474_s27 + $0x150] sm:$0xff] }
 0x11d   : > { %18720 = vmatmul.mubr.msk.f32.gmra.mrb[4].mxu0 %vm254_vm1, %v21581_v22  ;;  %v22396_v22 = vld [vmem:[%s21474_s27 + $0x109] sm:$0xff] }
 0x11e   : > { %18954 = vmatmul.mubr.msk.f32.gmra.mrb[4].mxu1 %vm254_vm1, %v21827_v62  ;;  %18722 = vmatprep.mubr.msk.f32.mxu0 %vm254_vm1, %v21587_v24  ;;  %v22410_v24 = vld [vmem:[%s21474_s27 + $0x111] sm:$0xff] }
 0x11f   : > { %18956 = vmatprep.mubr.msk.f32.mxu1 %vm254_vm1, %v21830_v63  ;;  %v22585_v62 = vld [vmem:[%s21474_s27 + $0x158] sm:$0xff]  ;;  %v22588_v63 = vld [vmem:[%s21474_s27 + $0x168] sm:$0xff] }
 0x121   : > { %18723 = vmatmul.mubr.msk.f32.gmra.mrb[6].mxu0 %vm254_vm1, %v21601_v26  ;;  %v22416_v26 = vld [vmem:[%s21474_s27 + $0x121] sm:$0xff] }
 0x122   : > { %18957 = vmatmul.mubr.msk.f32.gmra.mrb[6].mxu1 %vm254_vm1, %v21841_v0  ;;  %18725 = vmatprep.mubr.msk.f32.mxu0 %vm254_vm1, %v21607_v28  ;;  %v22430_v28 = vld [vmem:[%s21474_s27 + $0x129] sm:$0xff] }
 0x123   : > { %18959 = vmatprep.mubr.msk.f32.mxu1 %vm254_vm1, %v21844_v1  ;;  %v22599_v0 = vld [vmem:[%s21474_s27 + $0x170] sm:$0xff] }
 0x124   : > { %v15885_v1 = vld [vmem:[%s25038_s2 + $0x10] sm:$0x7] }
 0x125   : > { %18726 = vmatmul.mubr.msk.f32.gmra.mrb[8].mxu0 %vm254_vm1, %v21621_v30  ;;  %v22436_v30 = vld [vmem:[%s21474_s27 + $0x139] sm:$0xff] }
 0x126   : > { %18960 = vmatmul.mubr.msk.f32.gmra.mrb[8].mxu1 %vm254_vm1, %v21855_v2  ;;  %18728 = vmatprep.mubr.msk.f32.mxu0 %vm254_vm1, %v21627_v32  ;;  %v22450_v32 = vld [vmem:[%s21474_s27 + $0x141] sm:$0xff]  ;;  %v22623_v2 = vld [vmem:[%s21469_s24 + $0xf1] sm:$0xff] }
 0x127   : > { %18962 = vmatprep.mubr.msk.f32.mxu1 %vm254_vm1, %v21858_v3  ;;  %v22636_v3 = vld [vmem:[%s21469_s24 + $0xf9] sm:$0xff] }
 0x129   : > { %18729 = vmatmul.mubr.msk.f32.gmra.mrb[10].mxu0 %vm254_vm1, %v21641_v34  ;;  %v22456_v34 = vld [vmem:[%s21474_s27 + $0x151] sm:$0xff] }
 0x12a   : > { %18963 = vmatmul.mubr.msk.f32.gmra.mrb[10].mxu1 %vm254_vm1, %v21869_v4  ;;  %18731 = vmatprep.mubr.msk.f32.mxu0 %vm254_vm1, %v22018_v6  ;;  %v22639_v4 = vld [vmem:[%s21469_s24 + $0x109] sm:$0xff] }
 0x12b   : > { %18965 = vmatprep.mubr.msk.f32.mxu1 %vm254_vm1, %v22095_v7 }
 0x12d   : > { %18732 = vmatmul.mubr.msk.f32.gmra.mrb[12].mxu0 %vm254_vm1, %v22029_v9 }
 0x12e   : > { %18966 = vmatmul.mubr.msk.f32.gmra.mrb[12].mxu1 %vm254_vm1, %v22106_v10  ;;  %18734 = vmatprep.mubr.msk.f32.mxu0 %vm254_vm1, %v22255_v11 }
 0x12f   : > { %18968 = vmatprep.mubr.msk.f32.mxu1 %vm254_vm1, %v22332_v12 }
 0x131   : > { %18735 = vmatmul.mubr.msk.f32.gmra.mrb[14].mxu0 %vm254_vm1, %v22266_v13 }
 0x132   : > { %18969 = vmatmul.mubr.msk.f32.gmra.mrb[14].mxu1 %vm254_vm1, %v22343_v14  ;;  %18973 = vmatprep.mubr.msk.f32.mxu0 %vm254_vm1, %v21938_v35 }
 0x133   : > { %19207 = vmatprep.mubr.msk.f32.mxu1 %vm254_vm1, %v22018_v6 }
 0x135   : > { %18974 = vmatmul.mubr.msk.f32.vlgmr.msra.gmra.mrb[16].mxu0 %vm254_vm1, %v21952_v37 }
 0x136   : > { %19208 = vmatmul.mubr.msk.f32.vlgmr.msra.gmra.mrb[16].mxu1 %vm254_vm1, %v22029_v9  ;;  %18998 = vmatpush3.msk.msra.mxu0 %vm303_vm0, %v3994_v15 }
 0x137   : > { %19232 = vmatpush3.msk.msra.mxu1 %vm303_vm0, %v3994_v15  ;;  %18976 = vmatprep.mubr.msk.f32.mxu0 %vm254_vm1, %v22175_v41  ;;  %v22883_v15 = vld [vmem:[%s25038_s2 + $0x1c] sm:$0x7] }
 0x138   : > { %19210 = vmatprep.mubr.msk.f32.mxu1 %vm254_vm1, %v22255_v11  ;;  %19023 = vmatprep.subr.msk.mxu0 %vm303_vm0, %v22360_v16 }
 0x139   : > { %19257 = vmatprep.subr.msk.mxu1 %vm303_vm0, %v22360_v16  ;;  %18977 = vmatmul.mubr.msk.f32.gmra.mrb[18].mxu0 %vm254_vm1, %v22189_v43 }
 0x13a   : > { %19211 = vmatmul.mubr.msk.f32.gmra.mrb[18].mxu1 %vm254_vm1, %v22266_v13  ;;  %18979 = vmatprep.mubr.msk.f32.mxu0 %vm254_vm1, %v22369_v17 }
 0x13b   : > { %19213 = vmatprep.mubr.msk.f32.mxu1 %vm254_vm1, %v22372_v18 }
 0x13d   : > { %18980 = vmatmul.mubr.msk.f32.gmra.mrb[20].mxu0 %vm254_vm1, %v22387_v19 }
 0x13e   : > { %19214 = vmatmul.mubr.msk.f32.gmra.mrb[20].mxu1 %vm254_vm1, %v22390_v20  ;;  %18982 = vmatprep.mubr.msk.f32.mxu0 %vm254_vm1, %v22393_v21 }
 0x13f   : > { %19216 = vmatprep.mubr.msk.f32.mxu1 %vm254_vm1, %v22396_v22 }
 0x141   : > { %18983 = vmatmul.mubr.msk.f32.gmra.mrb[22].mxu0 %vm254_vm1, %v22407_v23 }
 0x142   : > { %19217 = vmatmul.mubr.msk.f32.gmra.mrb[22].mxu1 %vm254_vm1, %v22410_v24  ;;  %18985 = vmatprep.mubr.msk.f32.mxu0 %vm254_vm1, %v22413_v25 }
 0x143   : > { %19219 = vmatprep.mubr.msk.f32.mxu1 %vm254_vm1, %v22416_v26 }
 0x145   : > { %18986 = vmatmul.mubr.msk.f32.gmra.mrb[24].mxu0 %vm254_vm1, %v22427_v27 }
 0x146   : > { %19220 = vmatmul.mubr.msk.f32.gmra.mrb[24].mxu1 %vm254_vm1, %v22430_v28  ;;  %18988 = vmatprep.mubr.msk.f32.mxu0 %vm254_vm1, %v22433_v29 }
 0x147   : > { %19222 = vmatprep.mubr.msk.f32.mxu1 %vm254_vm1, %v22436_v30 }
 0x149   : > { %18989 = vmatmul.mubr.msk.f32.gmra.mrb[26].mxu0 %vm254_vm1, %v22447_v31 }
 0x14a   : > { %19223 = vmatmul.mubr.msk.f32.gmra.mrb[26].mxu1 %vm254_vm1, %v22450_v32  ;;  %18991 = vmatprep.mubr.msk.f32.mxu0 %vm254_vm1, %v22453_v33 }
 0x14b   : > { %19225 = vmatprep.mubr.msk.f32.mxu1 %vm254_vm1, %v22456_v34 }
 0x14d   : > { %18992 = vmatmul.mubr.msk.f32.gmra.mrb[28].mxu0 %vm254_vm1, %v22467_v45 }
 0x14e   : > { %19226 = vmatmul.mubr.msk.f32.gmra.mrb[28].mxu1 %vm254_vm1, %v22470_v46  ;;  %18994 = vmatprep.mubr.msk.f32.mxu0 %vm254_vm1, %v22473_v47 }
 0x14f   : > { %19228 = vmatprep.mubr.msk.f32.mxu1 %vm254_vm1, %v22476_v48 }
 0x151   : > { %18995 = vmatmul.mubr.msk.f32.gmra.mrb[30].mxu0 %vm254_vm1, %v22487_v49 }
 0x152   : > { %19229 = vmatmul.mubr.msk.f32.gmra.mrb[30].mxu1 %vm254_vm1, %v22490_v50  ;;  %18999 = vmatprep.mubr.msk.f32.mxu0 %vm254_vm1, %v21935_v8  ;;  %v22653_v8 = vld [vmem:[%s21469_s24 + $0x121] sm:$0xff] }
 0x153   : > { %19233 = vmatprep.mubr.msk.f32.mxu1 %vm254_vm1, %v21938_v35  ;;  %v22664_v35 = vld [vmem:[%s21469_s24 + $0x129] sm:$0xff] }
 0x155   : > { %19000 = vmatmul.mubr.msk.f32.vlgmr.msra.gmra.mrb[16].mxu0 %vm254_vm1, %v21949_v36  ;;  %v22667_v36 = vld [vmem:[%s21469_s24 + $0x139] sm:$0xff] }
 0x156   : > { %19234 = vmatmul.mubr.msk.f32.vlgmr.msra.gmra.mrb[16].mxu1 %vm254_vm1, %v21952_v37  ;;  %19024 = vmatpush3.msk.msra.mxu0 %vm303_vm0, %v22360_v16  ;;  %v22678_v37 = vld [vmem:[%s21469_s24 + $0x141] sm:$0xff] }
 0x157   : > { %19258 = vmatpush3.msk.msra.mxu1 %vm303_vm0, %v22360_v16  ;;  %19002 = vmatprep.mubr.msk.f32.mxu0 %vm254_vm1, %v22172_v40 }
 0x158   : > { %19236 = vmatprep.mubr.msk.f32.mxu1 %vm254_vm1, %v22175_v41  ;;  %19049 = vmatprep.subr.msk.mxu0 %vm303_vm0, %v15851_v51 }
 0x159   : > { %19283 = vmatprep.subr.msk.mxu1 %vm303_vm0, %v15851_v51  ;;  %19003 = vmatmul.mubr.msk.f32.gmra.mrb[18].mxu0 %vm254_vm1, %v22186_v42 }
 0x15a   : > { %19237 = vmatmul.mubr.msk.f32.gmra.mrb[18].mxu1 %vm254_vm1, %v22189_v43  ;;  %19005 = vmatprep.mubr.msk.f32.mxu0 %vm254_vm1, %v22516_v53 }
 0x15b   : > { %19239 = vmatprep.mubr.msk.f32.mxu1 %vm254_vm1, %v22369_v17 }
 0x15d   : > { %19006 = vmatmul.mubr.msk.f32.gmra.mrb[20].mxu0 %vm254_vm1, %v22529_v54 }
 0x15e   : > { %19240 = vmatmul.mubr.msk.f32.gmra.mrb[20].mxu1 %vm254_vm1, %v22387_v19  ;;  %19008 = vmatprep.mubr.msk.f32.mxu0 %vm254_vm1, %v22532_v55 }
 0x15f   : > { %19242 = vmatprep.mubr.msk.f32.mxu1 %vm254_vm1, %v22393_v21 }
 0x161   : > { %19009 = vmatmul.mubr.msk.f32.gmra.mrb[22].mxu0 %vm254_vm1, %v22543_v56 }
 0x162   : > { %19243 = vmatmul.mubr.msk.f32.gmra.mrb[22].mxu1 %vm254_vm1, %v22407_v23  ;;  %19011 = vmatprep.mubr.msk.f32.mxu0 %vm254_vm1, %v22546_v57 }
 0x163   : > { %19245 = vmatprep.mubr.msk.f32.mxu1 %vm254_vm1, %v22413_v25 }
 0x165   : > { %19012 = vmatmul.mubr.msk.f32.gmra.mrb[24].mxu0 %vm254_vm1, %v22557_v58 }
 0x166   : > { %19246 = vmatmul.mubr.msk.f32.gmra.mrb[24].mxu1 %vm254_vm1, %v22427_v27  ;;  %19014 = vmatprep.mubr.msk.f32.mxu0 %vm254_vm1, %v22560_v59 }
 0x167   : > { %19248 = vmatprep.mubr.msk.f32.mxu1 %vm254_vm1, %v22433_v29 }
 0x169   : > { %19015 = vmatmul.mubr.msk.f32.gmra.mrb[26].mxu0 %vm254_vm1, %v22571_v60 }
 0x16a   : > { %19249 = vmatmul.mubr.msk.f32.gmra.mrb[26].mxu1 %vm254_vm1, %v22447_v31  ;;  %19017 = vmatprep.mubr.msk.f32.mxu0 %vm254_vm1, %v22574_v61 }
 0x16b   : > { %19251 = vmatprep.mubr.msk.f32.mxu1 %vm254_vm1, %v22453_v33 }
 0x16d   : > { %19018 = vmatmul.mubr.msk.f32.gmra.mrb[28].mxu0 %vm254_vm1, %v22585_v62 }
 0x16e   : > { %19252 = vmatmul.mubr.msk.f32.gmra.mrb[28].mxu1 %vm254_vm1, %v22467_v45  ;;  %19020 = vmatprep.mubr.msk.f32.mxu0 %vm254_vm1, %v22588_v63 }
 0x16f   : > { %19254 = vmatprep.mubr.msk.f32.mxu1 %vm254_vm1, %v22473_v47 }
 0x171   : > { %19021 = vmatmul.mubr.msk.f32.gmra.mrb[30].mxu0 %vm254_vm1, %v22599_v0 }
 0x172   : > { %19255 = vmatmul.mubr.msk.f32.gmra.mrb[30].mxu1 %vm254_vm1, %v22487_v49  ;;  %19025 = vmatprep.mubr.msk.f32.mxu0 %vm254_vm1, %v22018_v6  ;;  %v22692_v6 = vld [vmem:[%s21469_s24 + $0x159] sm:$0xff] }
 0x173   : > { %19259 = vmatprep.mubr.msk.f32.mxu1 %vm254_vm1, %v22095_v7  ;;  %v15919_v7 = vld [vmem:[%s25038_s2 + $0x14] sm:$0x7] }
 0x175   : > { %19026 = vmatmul.mubr.msk.f32.vlgmr.msra.gmra.mrb[16].mxu0 %vm254_vm1, %v22029_v9  ;;  %v22695_v9 = vld [vmem:[%s21469_s24 + $0x169] sm:$0xff] }
 0x176   : > { %19260 = vmatmul.mubr.msk.f32.vlgmr.msra.gmra.mrb[16].mxu1 %vm254_vm1, %v22106_v10  ;;  %19050 = vmatpush3.msk.msra.mxu0 %vm303_vm0, %v15851_v51  ;;  %v22772_v10 = vld [vmem:[%s21474_s27 + $0x180] sm:$0xff] }
 0x177   : > { %19284 = vmatpush3.msk.msra.mxu1 %vm303_vm0, %v15851_v51  ;;  %19028 = vmatprep.mubr.msk.f32.mxu0 %vm254_vm1, %v22255_v11 }
 0x178   : > { %19262 = vmatprep.mubr.msk.f32.mxu1 %vm254_vm1, %v22332_v12  ;;  %19075 = vmatprep.subr.msk.mxu0 %vm303_vm0, %v15885_v1 }
 0x179   : > { %19309 = vmatprep.subr.msk.mxu1 %vm303_vm0, %v15885_v1  ;;  %19029 = vmatmul.mubr.msk.f32.gmra.mrb[18].mxu0 %vm254_vm1, %v22266_v13 }
 0x17a   : > { %19263 = vmatmul.mubr.msk.f32.gmra.mrb[18].mxu1 %vm254_vm1, %v22343_v14  ;;  %19031 = vmatprep.mubr.msk.f32.mxu0 %vm254_vm1, %v22372_v18 }
 0x17b   : > { %19265 = vmatprep.mubr.msk.f32.mxu1 %vm254_vm1, %v22623_v2 }
 0x17d   : > { %19032 = vmatmul.mubr.msk.f32.gmra.mrb[20].mxu0 %vm254_vm1, %v22390_v20 }
 0x17e   : > { %19266 = vmatmul.mubr.msk.f32.gmra.mrb[20].mxu1 %vm254_vm1, %v22636_v3  ;;  %19034 = vmatprep.mubr.msk.f32.mxu0 %vm254_vm1, %v22396_v22 }
 0x17f   : > { %19268 = vmatprep.mubr.msk.f32.mxu1 %vm254_vm1, %v22639_v4 }
 0x181   : > { %19035 = vmatmul.mubr.msk.f32.gmra.mrb[22].mxu0 %vm254_vm1, %v22410_v24 }
 0x182   : > { %19269 = vmatmul.mubr.msk.f32.gmra.mrb[22].mxu1 %vm254_vm1, %v22650_v5  ;;  %19037 = vmatprep.mubr.msk.f32.mxu0 %vm254_vm1, %v22416_v26 }
 0x183   : > { %19271 = vmatprep.mubr.msk.f32.mxu1 %vm254_vm1, %v22653_v8 }
 0x185   : > { %19038 = vmatmul.mubr.msk.f32.gmra.mrb[24].mxu0 %vm254_vm1, %v22430_v28 }
 0x186   : > { %19272 = vmatmul.mubr.msk.f32.gmra.mrb[24].mxu1 %vm254_vm1, %v22664_v35  ;;  %19040 = vmatprep.mubr.msk.f32.mxu0 %vm254_vm1, %v22436_v30 }
 0x187   : > { %19274 = vmatprep.mubr.msk.f32.mxu1 %vm254_vm1, %v22667_v36 }
 0x189   : > { %19041 = vmatmul.mubr.msk.f32.gmra.mrb[26].mxu0 %vm254_vm1, %v22450_v32 }
 0x18a   : > { %19275 = vmatmul.mubr.msk.f32.gmra.mrb[26].mxu1 %vm254_vm1, %v22678_v37  ;;  %19043 = vmatprep.mubr.msk.f32.mxu0 %vm254_vm1, %v22456_v34 }
 0x18b   : > { %19277 = vmatprep.mubr.msk.f32.mxu1 %vm254_vm1, %v22681_v38 }
 0x18d   : > { %19044 = vmatmul.mubr.msk.f32.gmra.mrb[28].mxu0 %vm254_vm1, %v22470_v46 }
 0x18e   : > { %19278 = vmatmul.mubr.msk.f32.gmra.mrb[28].mxu1 %vm254_vm1, %v22692_v6  ;;  %19046 = vmatprep.mubr.msk.f32.mxu0 %vm254_vm1, %v22476_v48 }
 0x18f   : > { %19280 = vmatprep.mubr.msk.f32.mxu1 %vm254_vm1, %v22695_v9 }
 0x191   : > { %19047 = vmatmul.mubr.msk.f32.gmra.mrb[30].mxu0 %vm254_vm1, %v22490_v50 }
 0x192   : > { %19281 = vmatmul.mubr.msk.f32.gmra.mrb[30].mxu1 %vm254_vm1, %v22706_v39  ;;  %19051 = vmatprep.mubr.msk.f32.mxu0 %vm254_vm1, %v22172_v40  ;;  %v22786_v40 = vld [vmem:[%s21474_s27 + $0x188] sm:$0xff] }
 0x193   : > { %19285 = vmatprep.mubr.msk.f32.mxu1 %vm254_vm1, %v22175_v41 }
 0x195   : > { %19052 = vmatmul.mubr.msk.f32.vlgmr.msra.gmra.mrb[16].mxu0 %vm254_vm1, %v22186_v42  ;;  %v22789_v42 = vld [vmem:[%s21469_s24 + $0x188] sm:$0xff] }
 0x196   : > { %19286 = vmatmul.mubr.msk.f32.vlgmr.msra.gmra.mrb[16].mxu1 %vm254_vm1, %v22189_v43  ;;  %19076 = vmatpush3.msk.msra.mxu0 %vm303_vm0, %v15885_v1 }
 0x197   : > { %19310 = vmatpush3.msk.msra.mxu1 %vm303_vm0, %v15885_v1  ;;  %19054 = vmatprep.mubr.msk.f32.mxu0 %vm254_vm1, %v22516_v53 }
 0x198   : > { %19288 = vmatprep.mubr.msk.f32.mxu1 %vm254_vm1, %v22369_v17  ;;  %19101 = vmatprep.subr.msk.mxu0 %vm303_vm0, %v15919_v7 }
 0x199   : > { %19335 = vmatprep.subr.msk.mxu1 %vm303_vm0, %v15919_v7  ;;  %19055 = vmatmul.mubr.msk.f32.gmra.mrb[18].mxu0 %vm254_vm1, %v22529_v54 }
 0x19a   : > { %19289 = vmatmul.mubr.msk.f32.gmra.mrb[18].mxu1 %vm254_vm1, %v22387_v19  ;;  %19057 = vmatprep.mubr.msk.f32.mxu0 %vm254_vm1, %v22532_v55 }
 0x19b   : > { %19291 = vmatprep.mubr.msk.f32.mxu1 %vm254_vm1, %v22393_v21 }
 0x19d   : > { %19058 = vmatmul.mubr.msk.f32.gmra.mrb[20].mxu0 %vm254_vm1, %v22543_v56 }
 0x19e   : > { %19292 = vmatmul.mubr.msk.f32.gmra.mrb[20].mxu1 %vm254_vm1, %v22407_v23  ;;  %19060 = vmatprep.mubr.msk.f32.mxu0 %vm254_vm1, %v22546_v57 }
 0x19f   : > { %19294 = vmatprep.mubr.msk.f32.mxu1 %vm254_vm1, %v22413_v25 }
 0x1a1   : > { %19061 = vmatmul.mubr.msk.f32.gmra.mrb[22].mxu0 %vm254_vm1, %v22557_v58 }
 0x1a2   : > { %19295 = vmatmul.mubr.msk.f32.gmra.mrb[22].mxu1 %vm254_vm1, %v22427_v27  ;;  %19063 = vmatprep.mubr.msk.f32.mxu0 %vm254_vm1, %v22560_v59 }
 0x1a3   : > { %19297 = vmatprep.mubr.msk.f32.mxu1 %vm254_vm1, %v22433_v29 }
 0x1a5   : > { %19064 = vmatmul.mubr.msk.f32.gmra.mrb[24].mxu0 %vm254_vm1, %v22571_v60 }
 0x1a6   : > { %19298 = vmatmul.mubr.msk.f32.gmra.mrb[24].mxu1 %vm254_vm1, %v22447_v31  ;;  %19066 = vmatprep.mubr.msk.f32.mxu0 %vm254_vm1, %v22574_v61 }
 0x1a7   : > { %19300 = vmatprep.mubr.msk.f32.mxu1 %vm254_vm1, %v22453_v33 }
 0x1a9   : > { %19067 = vmatmul.mubr.msk.f32.gmra.mrb[26].mxu0 %vm254_vm1, %v22585_v62 }
 0x1aa   : > { %19301 = vmatmul.mubr.msk.f32.gmra.mrb[26].mxu1 %vm254_vm1, %v22467_v45  ;;  %19069 = vmatprep.mubr.msk.f32.mxu0 %vm254_vm1, %v22588_v63 }
 0x1ab   : > { %19303 = vmatprep.mubr.msk.f32.mxu1 %vm254_vm1, %v22473_v47 }
 0x1ad   : > { %19070 = vmatmul.mubr.msk.f32.gmra.mrb[28].mxu0 %vm254_vm1, %v22599_v0 }
 0x1ae   : > { %19304 = vmatmul.mubr.msk.f32.gmra.mrb[28].mxu1 %vm254_vm1, %v22487_v49  ;;  %19072 = vmatprep.mubr.msk.f32.mxu0 %vm254_vm1, %v22772_v10 }
 0x1af   : > { %19306 = vmatprep.mubr.msk.f32.mxu1 %vm254_vm1, %v22775_v52 }
 0x1b1   : > { %19073 = vmatmul.mubr.msk.f32.gmra.mrb[30].mxu0 %vm254_vm1, %v22786_v40 }
 0x1b2   : > { %19307 = vmatmul.mubr.msk.f32.gmra.mrb[30].mxu1 %vm254_vm1, %v22789_v42  ;;  %19077 = vmatprep.mubr.msk.f32.mxu0 %vm254_vm1, %v22175_v41  ;;  %v22855_v41 = vld [vmem:[%s21474_s27 + $0x181] sm:$0xff] }
 0x1b3   : > { %19311 = vmatprep.mubr.msk.f32.mxu1 %vm254_vm1, %v22255_v11 }
 0x1b5   : > { %19078 = vmatmul.mubr.msk.f32.vlgmr.msra.gmra.mrb[16].mxu0 %vm254_vm1, %v22189_v43  ;;  %v22866_v43 = vld [vmem:[%s21474_s27 + $0x189] sm:$0xff] }
 0x1b6   : > { %19312 = vmatmul.mubr.msk.f32.vlgmr.msra.gmra.mrb[16].mxu1 %vm254_vm1, %v22266_v13  ;;  %19102 = vmatpush3.msk.msra.mxu0 %vm303_vm0, %v15919_v7 }
 0x1b7   : > { %19336 = vmatpush3.msk.msra.mxu1 %vm303_vm0, %v15919_v7  ;;  %19080 = vmatprep.mubr.msk.f32.mxu0 %vm254_vm1, %v22369_v17 }
 0x1b8   : > { %19314 = vmatprep.mubr.msk.f32.mxu1 %vm254_vm1, %v22372_v18  ;;  %19127 = vmatprep.subr.msk.mxu0 %vm303_vm0, %v15953_v44 }
 0x1b9   : > { %19361 = vmatprep.subr.msk.mxu1 %vm303_vm0, %v15953_v44  ;;  %19081 = vmatmul.mubr.msk.f32.gmra.mrb[18].mxu0 %vm254_vm1, %v22387_v19 }
 0x1ba   : > { %19315 = vmatmul.mubr.msk.f32.gmra.mrb[18].mxu1 %vm254_vm1, %v22390_v20  ;;  %19083 = vmatprep.mubr.msk.f32.mxu0 %vm254_vm1, %v22393_v21 }
 0x1bb   : > { %19317 = vmatprep.mubr.msk.f32.mxu1 %vm254_vm1, %v22396_v22 }
 0x1bd   : > { %19084 = vmatmul.mubr.msk.f32.gmra.mrb[20].mxu0 %vm254_vm1, %v22407_v23 }
 0x1be   : > { %19318 = vmatmul.mubr.msk.f32.gmra.mrb[20].mxu1 %vm254_vm1, %v22410_v24  ;;  %19086 = vmatprep.mubr.msk.f32.mxu0 %vm254_vm1, %v22413_v25 }
 0x1bf   : > { %19320 = vmatprep.mubr.msk.f32.mxu1 %vm254_vm1, %v22416_v26 }
 0x1c1   : > { %19087 = vmatmul.mubr.msk.f32.gmra.mrb[22].mxu0 %vm254_vm1, %v22427_v27 }
 0x1c2   : > { %19321 = vmatmul.mubr.msk.f32.gmra.mrb[22].mxu1 %vm254_vm1, %v22430_v28  ;;  %19089 = vmatprep.mubr.msk.f32.mxu0 %vm254_vm1, %v22433_v29 }
 0x1c3   : > { %19323 = vmatprep.mubr.msk.f32.mxu1 %vm254_vm1, %v22436_v30 }
 0x1c5   : > { %19090 = vmatmul.mubr.msk.f32.gmra.mrb[24].mxu0 %vm254_vm1, %v22447_v31 }
 0x1c6   : > { %19324 = vmatmul.mubr.msk.f32.gmra.mrb[24].mxu1 %vm254_vm1, %v22450_v32  ;;  %19092 = vmatprep.mubr.msk.f32.mxu0 %vm254_vm1, %v22453_v33 }
 0x1c7   : > { %19326 = vmatprep.mubr.msk.f32.mxu1 %vm254_vm1, %v22456_v34 }
 0x1c9   : > { %19093 = vmatmul.mubr.msk.f32.gmra.mrb[26].mxu0 %vm254_vm1, %v22467_v45 }
 0x1ca   : > { %19327 = vmatmul.mubr.msk.f32.gmra.mrb[26].mxu1 %vm254_vm1, %v22470_v46  ;;  %19095 = vmatprep.mubr.msk.f32.mxu0 %vm254_vm1, %v22473_v47 }
 0x1cb   : > { %19329 = vmatprep.mubr.msk.f32.mxu1 %vm254_vm1, %v22476_v48 }
 0x1cd   : > { %19096 = vmatmul.mubr.msk.f32.gmra.mrb[28].mxu0 %vm254_vm1, %v22487_v49 }
 0x1ce   : > { %19330 = vmatmul.mubr.msk.f32.gmra.mrb[28].mxu1 %vm254_vm1, %v22490_v50  ;;  %19098 = vmatprep.mubr.msk.f32.mxu0 %vm254_vm1, %v22775_v52 }
 0x1cf   : > { %19332 = vmatprep.mubr.msk.f32.mxu1 %vm254_vm1, %v22855_v41 }
 0x1d1   : > { %19099 = vmatmul.mubr.msk.f32.gmra.mrb[30].mxu0 %vm254_vm1, %v22789_v42 }
 0x1d2   : > { %19333 = vmatmul.mubr.msk.f32.gmra.mrb[30].mxu1 %vm254_vm1, %v22866_v43  ;;  %19103 = vmatprep.mubr.msk.f32.mxu0 %vm254_vm1, %v22255_v11  ;;  %v22926_v11 = vld [vmem:[%s25039_s3] ss:$0 sm:$0xff] }
 0x1d3   : > { %19337 = vmatprep.mubr.msk.f32.mxu1 %vm254_vm1, %v22332_v12 }
 0x1d5   : > { %19104 = vmatmul.mubr.msk.f32.vlgmr.msra.gmra.mrb[16].mxu0 %vm254_vm1, %v22266_v13 }
 0x1d6   : > { %19338 = vmatmul.mubr.msk.f32.vlgmr.msra.gmra.mrb[16].mxu1 %vm254_vm1, %v22343_v14  ;;  %19128 = vmatpush3.msk.msra.mxu0 %vm303_vm0, %v15953_v44 }
 0x1d7   : > { %19362 = vmatpush3.msk.msra.mxu1 %vm303_vm0, %v15953_v44  ;;  %19106 = vmatprep.mubr.msk.f32.mxu0 %vm254_vm1, %v22372_v18 }
 0x1d8   : > { %19340 = vmatprep.mubr.msk.f32.mxu1 %vm254_vm1, %v22623_v2  ;;  %19153 = vmatprep.subr.msk.mxu0 %vm303_vm0, %v22883_v15 }
 0x1d9   : > { %19387 = vmatprep.subr.msk.mxu1 %vm303_vm0, %v22883_v15  ;;  %19107 = vmatmul.mubr.msk.f32.gmra.mrb[18].mxu0 %vm254_vm1, %v22390_v20 }
 0x1da   : > { %19341 = vmatmul.mubr.msk.f32.gmra.mrb[18].mxu1 %vm254_vm1, %v22636_v3  ;;  %19109 = vmatprep.mubr.msk.f32.mxu0 %vm254_vm1, %v22396_v22 }
 0x1db   : > { %19343 = vmatprep.mubr.msk.f32.mxu1 %vm254_vm1, %v22639_v4 }
 0x1dd   : > { %19110 = vmatmul.mubr.msk.f32.gmra.mrb[20].mxu0 %vm254_vm1, %v22410_v24 }
 0x1de   : > { %19344 = vmatmul.mubr.msk.f32.gmra.mrb[20].mxu1 %vm254_vm1, %v22650_v5  ;;  %19112 = vmatprep.mubr.msk.f32.mxu0 %vm254_vm1, %v22416_v26 }
 0x1df   : > { %19346 = vmatprep.mubr.msk.f32.mxu1 %vm254_vm1, %v22653_v8 }
 0x1e1   : > { %19113 = vmatmul.mubr.msk.f32.gmra.mrb[22].mxu0 %vm254_vm1, %v22430_v28 }
 0x1e2   : > { %19347 = vmatmul.mubr.msk.f32.gmra.mrb[22].mxu1 %vm254_vm1, %v22664_v35  ;;  %19115 = vmatprep.mubr.msk.f32.mxu0 %vm254_vm1, %v22436_v30  ;;  %v22945_v30 = vld [vmem:[%s21469_s24 + $0x181] sm:$0xff] }
 0x1e3   : > { %19349 = vmatprep.mubr.msk.f32.mxu1 %vm254_vm1, %v22667_v36  ;;  %25051 = vst [vmem:[#allocation2_spill] sm:$0xff] %v22945_v30 }
 0x1e5   : > { %19116 = vmatmul.mubr.msk.f32.gmra.mrb[24].mxu0 %vm254_vm1, %v22450_v32 }
 0x1e6   : > { %19350 = vmatmul.mubr.msk.f32.gmra.mrb[24].mxu1 %vm254_vm1, %v22678_v37  ;;  %19118 = vmatprep.mubr.msk.f32.mxu0 %vm254_vm1, %v22456_v34 }
 0x1e7   : > { %19352 = vmatprep.mubr.msk.f32.mxu1 %vm254_vm1, %v22681_v38 }
 0x1e8   : > { %v18715_v13 = vpop.f32.mrb[0].mxu0 }
 0x1e9   : > { %v18949_v12 = vpop.f32.mrb[0].mxu1  ;;  %v2269_v14 = vadd.f32 %v18715_v13, %v22926_v11  ;;  %v2167_v18 = vpop.f32.mrb[1].mxu0  ;;  %19119 = vmatmul.mubr.msk.f32.gmra.mrb[26].mxu0 %vm254_vm1, %v22470_v46 }
 0x1ea   : > { %v3910_v16 = vadd.f32 %v18949_v12, %v22926_v11  ;;  %v3814_v20 = vpop.f32.mrb[1].mxu1  ;;  %19353 = vmatmul.mubr.msk.f32.gmra.mrb[26].mxu1 %vm254_vm1, %v22692_v6  ;;  %v2268_v22 = vadd.f32 %v22926_v11, %v2167_v18  ;;  %19121 = vmatprep.mubr.msk.f32.mxu0 %vm254_vm1, %v22476_v48  ;;  %v22960_v18 = vld [vmem:[%s21469_s24 + $0x189] sm:$0xff] }
 0x1eb   : > { %v3909_v24 = vadd.f32 %v22926_v11, %v3814_v20  ;;  %19355 = vmatprep.mubr.msk.f32.mxu1 %vm254_vm1, %v22695_v9  ;;  %v2285_v26 = vmax.f32 %v2269_v14, 0.0  ;;  %25052 = vst [vmem:[#allocation3_spill] sm:$0xff] %v22960_v18 }
 0x1ec   : > { %v3926_v28 = vmax.f32 %v3910_v16, 0.0  ;;  %v2284_v32 = vmax.f32 %v2268_v22, 0.0  ;;  %v18718_v46 = vpop.f32.mrb[2].mxu0 }
 0x1ed   : > { %v3925_v34 = vmax.f32 %v3909_v24, 0.0  ;;  %v18952_v51 = vpop.f32.mrb[2].mxu1  ;;  %v2271_v7 = vadd.f32 %v18718_v46, %v22926_v11  ;;  %v2177_v13 = vpop.f32.mrb[3].mxu0  ;;  %19122 = vmatmul.mubr.msk.f32.gmra.mrb[28].mxu0 %vm254_vm1, %v22490_v50 }
 0x1ee   : > { %v3942_v1 = vmax.f32 %v2285_v26, %v3926_v28  ;;  %v3912_v44 = vadd.f32 %v18952_v51, %v22926_v11  ;;  %v3824_v48 = vpop.f32.mrb[3].mxu1  ;;  %19356 = vmatmul.mubr.msk.f32.gmra.mrb[28].mxu1 %vm254_vm1, %v22706_v39  ;;  %v2270_v14 = vadd.f32 %v22926_v11, %v2177_v13  ;;  %19124 = vmatprep.mubr.msk.f32.mxu0 %vm254_vm1, %v22855_v41 }
 0x1ef   : > { %v3941_v12 = vmax.f32 %v2284_v32, %v3925_v34  ;;  %v3911_v16 = vadd.f32 %v22926_v11, %v3824_v48  ;;  %19358 = vmatprep.mubr.msk.f32.mxu1 %vm254_vm1, %v22945_v30  ;;  %v2287_v20 = vmax.f32 %v2271_v7, 0.0 }
 0x1f0   : > { %v3928_v22 = vmax.f32 %v3912_v44, 0.0  ;;  %v2286_v50 = vmax.f32 %v2270_v14, 0.0  ;;  %v18721_v26 = vpop.f32.mrb[4].mxu0 }
 0x1f1   : > { %v3927_v24 = vmax.f32 %v3911_v16, 0.0  ;;  %v18955_v28 = vpop.f32.mrb[4].mxu1  ;;  %v2273_v34 = vadd.f32 %v18721_v26, %v22926_v11  ;;  %v2187_v51 = vpop.f32.mrb[5].mxu0  ;;  %19125 = vmatmul.mubr.msk.f32.gmra.mrb[30].mxu0 %vm254_vm1, %v22866_v43 }
 0x1f2   : > { %v3944_v32 = vmax.f32 %v2287_v20, %v3928_v22  ;;  %v3914_v46 = vadd.f32 %v18955_v28, %v22926_v11  ;;  %v3834_v13 = vpop.f32.mrb[5].mxu1  ;;  %19359 = vmatmul.mubr.msk.f32.gmra.mrb[30].mxu1 %vm254_vm1, %v22960_v18  ;;  %v2272_v44 = vadd.f32 %v22926_v11, %v2187_v51  ;;  %19129 = vmatprep.mubr.msk.f32.mxu0 %vm254_vm1, %v22516_v53 }
 0x1f3   : > { %v3943_v7 = vmax.f32 %v2286_v50, %v3927_v24  ;;  %v3913_v48 = vadd.f32 %v22926_v11, %v3834_v13  ;;  %19363 = vmatprep.mubr.msk.f32.mxu1 %vm254_vm1, %v22369_v17  ;;  %v2289_v16 = vmax.f32 %v2273_v34, 0.0 }
 0x1f4   : > { %v3958_v14 = vmax.f32 %v3942_v1, %v3944_v32  ;;  %v3930_v20 = vmax.f32 %v3914_v46, 0.0  ;;  %v2288_v26 = vmax.f32 %v2272_v44, 0.0  ;;  %v18724_v18 = vpop.f32.mrb[6].mxu0  ;;  %v22991_v1 = vld [vmem:[%s25038_s2 + $0x20] sm:$0x7] }
 0x1f5   : > { %v3957_v22 = vmax.f32 %v3941_v12, %v3943_v7  ;;  %v3929_v28 = vmax.f32 %v3913_v48, 0.0  ;;  %v18958_v30 = vpop.f32.mrb[6].mxu1  ;;  %v2275_v24 = vadd.f32 %v18724_v18, %v22926_v11  ;;  %v2197_v53 = vpop.f32.mrb[7].mxu0  ;;  %19130 = vmatmul.mubr.msk.f32.vlgmr.msra.gmra.mrb[16].mxu0 %vm254_vm1, %v22529_v54 }
 0x1f6   : > { %3961 = vst.msk [vmem:[%s22972_s14 + $0x8] sm:$0xff] %vm3959_vm2, %v3958_v14  ;;  %v3946_v50 = vmax.f32 %v2289_v16, %v3930_v20  ;;  %v3916_v51 = vadd.f32 %v18958_v30, %v22926_v11  ;;  %v3844_v13 = vpop.f32.mrb[7].mxu1  ;;  %19364 = vmatmul.mubr.msk.f32.vlgmr.msra.gmra.mrb[16].mxu1 %vm254_vm1, %v22387_v19  ;;  %v2274_v18 = vadd.f32 %v22926_v11, %v2197_v53 }
 0x1f7   : > { %3960 = vst.msk [vmem:[%s22972_s14] sm:$0xff] %vm3959_vm2, %v3957_v22  ;;  %v3945_v12 = vmax.f32 %v2288_v26, %v3929_v28  ;;  %v3915_v30 = vadd.f32 %v22926_v11, %v3844_v13  ;;  %19154 = vmatpush3.msk.msra.mxu0 %vm303_vm0, %v22883_v15  ;;  %19388 = vmatpush3.msk.msra.mxu1 %vm303_vm0, %v22883_v15  ;;  %v2291_v54 = vmax.f32 %v2275_v24, 0.0 }
 0x1f8   : > { %v3932_v32 = vmax.f32 %v3916_v51, 0.0  ;;  %19132 = vmatprep.mubr.msk.f32.mxu0 %vm254_vm1, %v22532_v55  ;;  %19366 = vmatprep.mubr.msk.f32.mxu1 %vm254_vm1, %v22393_v21  ;;  %v2290_v34 = vmax.f32 %v2274_v18, 0.0  ;;  %v18727_v7 = vpop.f32.mrb[8].mxu0 }
 0x1f9   : > { %v3931_v46 = vmax.f32 %v3915_v30, 0.0  ;;  %v18961_v44 = vpop.f32.mrb[8].mxu1  ;;  %19179 = vmatprep.subr.msk.mxu0 %vm303_vm0, %v22991_v1  ;;  %19413 = vmatprep.subr.msk.mxu1 %vm303_vm0, %v22991_v1  ;;  %v2277_v15 = vadd.f32 %v18727_v7, %v22926_v11  ;;  %v2207_v16 = vpop.f32.mrb[9].mxu0 }
 0x1fa   : > { %v3948_v48 = vmax.f32 %v2291_v54, %v3932_v32  ;;  %v3918_v14 = vadd.f32 %v18961_v44, %v22926_v11  ;;  %v3854_v55 = vpop.f32.mrb[9].mxu1  ;;  %19133 = vmatmul.mubr.msk.f32.gmra.mrb[18].mxu0 %vm254_vm1, %v22543_v56  ;;  %19367 = vmatmul.mubr.msk.f32.gmra.mrb[18].mxu1 %vm254_vm1, %v22407_v23  ;;  %v2276_v22 = vadd.f32 %v22926_v11, %v2207_v16 }
 0x1fb   : > { %v3947_v20 = vmax.f32 %v2290_v34, %v3931_v46  ;;  %v3917_v26 = vadd.f32 %v22926_v11, %v3854_v55  ;;  %19135 = vmatprep.mubr.msk.f32.mxu0 %vm254_vm1, %v22546_v57  ;;  %19369 = vmatprep.mubr.msk.f32.mxu1 %vm254_vm1, %v22413_v25  ;;  %v2293_v24 = vmax.f32 %v2277_v15, 0.0 }
 0x1fc   : > { %v3963_v28 = vmax.f32 %v3946_v50, %v3948_v48  ;;  %v3934_v51 = vmax.f32 %v3918_v14, 0.0  ;;  %v2292_v56 = vmax.f32 %v2276_v22, 0.0  ;;  %v18730_v18 = vpop.f32.mrb[10].mxu0 }
 0x1fd   : > { %v3962_v53 = vmax.f32 %v3945_v12, %v3947_v20  ;;  %v3933_v13 = vmax.f32 %v3917_v26, 0.0  ;;  %v18964_v30 = vpop.f32.mrb[10].mxu1  ;;  %v2279_v32 = vadd.f32 %v18730_v18, %v22926_v11  ;;  %v2217_v57 = vpop.f32.mrb[11].mxu0 }
 0x1fe   : > { %15729 = vst.msk [vmem:[%s22972_s14 + $0x18] sm:$0xff] %vm3959_vm2, %v3963_v28  ;;  %v3950_v54 = vmax.f32 %v2293_v24, %v3934_v51  ;;  %v3920_v34 = vadd.f32 %v18964_v30, %v22926_v11  ;;  %v3864_v46 = vpop.f32.mrb[11].mxu1  ;;  %19136 = vmatmul.mubr.msk.f32.gmra.mrb[20].mxu0 %vm254_vm1, %v22557_v58  ;;  %19370 = vmatmul.mubr.msk.f32.gmra.mrb[20].mxu1 %vm254_vm1, %v22427_v27 }
 0x1ff   : > { %15728 = vst.msk [vmem:[%s22972_s14 + $0x10] sm:$0xff] %vm3959_vm2, %v3962_v53  ;;  %v3949_v50 = vmax.f32 %v2292_v56, %v3933_v13  ;;  %v2278_v12 = vadd.f32 %v22926_v11, %v2217_v57  ;;  %v3919_v7 = vadd.f32 %v22926_v11, %v3864_v46  ;;  %19138 = vmatprep.mubr.msk.f32.mxu0 %vm254_vm1, %v22560_v59  ;;  %v2295_v44 = vmax.f32 %v2279_v32, 0.0 }
 0x200   : > { %19372 = vmatprep.mubr.msk.f32.mxu1 %vm254_vm1, %v22433_v29  ;;  %v3936_v48 = vmax.f32 %v3920_v34, 0.0  ;;  %v18733_v14 = vpop.f32.mrb[12].mxu0 }
 0x201   : > { %v2294_v15 = vmax.f32 %v2278_v12, 0.0  ;;  %v3935_v58 = vmax.f32 %v3919_v7, 0.0  ;;  %v18967_v16 = vpop.f32.mrb[12].mxu1  ;;  %v2281_v20 = vadd.f32 %v18733_v14, %v22926_v11  ;;  %v2227_v26 = vpop.f32.mrb[13].mxu0 }
 0x202   : > { %v3952_v55 = vmax.f32 %v2295_v44, %v3936_v48  ;;  %v3922_v22 = vadd.f32 %v18967_v16, %v22926_v11  ;;  %v3874_v28 = vpop.f32.mrb[13].mxu1  ;;  %19139 = vmatmul.mubr.msk.f32.gmra.mrb[22].mxu0 %vm254_vm1, %v22571_v60  ;;  %19373 = vmatmul.mubr.msk.f32.gmra.mrb[22].mxu1 %vm254_vm1, %v22447_v31  ;;  %v2280_v24 = vadd.f32 %v22926_v11, %v2227_v26  ;;  %v23074_v16 = vld [vmem:[%s21474_s27 + $0x198] sm:$0xff] }
 0x203   : > { %v3951_v59 = vmax.f32 %v2294_v15, %v3935_v58  ;;  %v3921_v51 = vadd.f32 %v22926_v11, %v3874_v28  ;;  %19141 = vmatprep.mubr.msk.f32.mxu0 %vm254_vm1, %v22574_v61  ;;  %19375 = vmatprep.mubr.msk.f32.mxu1 %vm254_vm1, %v22453_v33  ;;  %v2297_v56 = vmax.f32 %v2281_v20, 0.0  ;;  %v23092_v20 = vld [vmem:[%s21474_s27 + $0x1a0] sm:$0xff]  ;;  %v16005_v26 = vld [vmem:[%s21474_s27 + $0xf1] sm:$0xff] }
 0x204   : > { %v3968_v53 = vmax.f32 %v3950_v54, %v3952_v55  ;;  %v3938_v13 = vmax.f32 %v3922_v22, 0.0  ;;  %v2296_v60 = vmax.f32 %v2280_v24, 0.0  ;;  %v18736_v32 = vpop.f32.mrb[14].mxu0  ;;  %v23077_v55 = vld [vmem:[%s21469_s24 + $0x198] sm:$0xff]  ;;  %v23095_v22 = vld [vmem:[%s21469_s24 + $0x1a0] sm:$0xff] }
 0x205   : > { %v3967_v18 = vmax.f32 %v3949_v50, %v3951_v59  ;;  %v3937_v30 = vmax.f32 %v3921_v51, 0.0  ;;  %v18970_v34 = vpop.f32.mrb[14].mxu1  ;;  %v2283_v46 = vadd.f32 %v18736_v32, %v22926_v11  ;;  %v2237_v61 = vpop.f32.mrb[15].mxu0  ;;  %v16006_v28 = vld [vmem:[%s21474_s27 + $0xf9] sm:$0xff]  ;;  %v16007_v59 = vld [vmem:[%s21474_s27 + $0x109] sm:$0xff]  ;;  %v16013_v51 = vld [vmem:[%s21474_s27 + $0x151] sm:$0xff] }
 0x206   : > { %15731 = vst.msk [vmem:[%s22972_s14 + $0x28] sm:$0xff] %vm3959_vm2, %v3968_v53  ;;  %v3954_v57 = vmax.f32 %v2297_v56, %v3938_v13  ;;  %v3924_v12 = vadd.f32 %v18970_v34, %v22926_v11  ;;  %v3884_v7 = vpop.f32.mrb[15].mxu1  ;;  %19142 = vmatmul.mubr.msk.f32.gmra.mrb[24].mxu0 %vm254_vm1, %v22585_v62  ;;  %19376 = vmatmul.mubr.msk.f32.gmra.mrb[24].mxu1 %vm254_vm1, %v22467_v45  ;;  %v16280_v24 = vld [vmem:[%s25038_s2 + $0x4] sm:$0x7]  ;;  %v23323_v56 = vld [vmem:[%s21469_s24 + $0x1e8] sm:$0xff]  ;;  %v23349_v34 = vld [vmem:[%s21469_s24 + $0x210] sm:$0xff] }
 0x207   : > { %15730 = vst.msk [vmem:[%s22972_s14 + $0x20] sm:$0xff] %vm3959_vm2, %v3967_v18  ;;  %v3953_v54 = vmax.f32 %v2296_v60, %v3937_v30  ;;  %v2282_v50 = vadd.f32 %v22926_v11, %v2237_v61  ;;  %v3923_v44 = vadd.f32 %v22926_v11, %v3884_v7  ;;  %19144 = vmatprep.mubr.msk.f32.mxu0 %vm254_vm1, %v22588_v63  ;;  %v2299_v62 = vmax.f32 %v2283_v46, 0.0  ;;  %v23312_v53 = vld [vmem:[%s21474_s27 + $0x1e1] sm:$0xff]  ;;  %v23326_v13 = vld [vmem:[%s21474_s27 + $0x1e9] sm:$0xff]  ;;  %v23329_v18 = vld [vmem:[%s21469_s24 + $0x1f8] sm:$0xff] }
 0x208   : > { %19378 = vmatprep.mubr.msk.f32.mxu1 %vm254_vm1, %v22473_v47  ;;  %v3940_v48 = vmax.f32 %v3924_v12, 0.0  ;;  %v23332_v60 = vld [vmem:[%s21474_s27 + $0x1f9] sm:$0xff]  ;;  %v23346_v32 = vld [vmem:[%s21474_s27 + $0x201] sm:$0xff]  ;;  %v23372_v7 = vld [vmem:[%s21474_s27 + $0x229] sm:$0xff] }
 0x209   : > { %v2298_v15 = vmax.f32 %v2282_v50, 0.0  ;;  %v3939_v58 = vmax.f32 %v3923_v44, 0.0  ;;  %v23343_v30 = vld [vmem:[%s21469_s24 + $0x200] sm:$0xff]  ;;  %v23363_v46 = vld [vmem:[%s21469_s24 + $0x218] sm:$0xff]  ;;  %v23369_v61 = vld [vmem:[%s21469_s24 + $0x228] sm:$0xff] }
 0x20a   : > { %v3956_v14 = vmax.f32 %v2299_v62, %v3940_v48  ;;  %19145 = vmatmul.mubr.msk.f32.gmra.mrb[26].mxu0 %vm254_vm1, %v22599_v0  ;;  %19379 = vmatmul.mubr.msk.f32.gmra.mrb[26].mxu1 %vm254_vm1, %v22487_v49  ;;  %v23366_v12 = vld [vmem:[%s21474_s27 + $0x219] sm:$0xff]  ;;  %v23386_v50 = vld [vmem:[%s21474_s27 + $0x231] sm:$0xff]  ;;  %v16365_v44 = vld [vmem:[%s25038_s2 + $0xc] sm:$0x7] }
 0x20b   : > { %v3955_v63 = vmax.f32 %v2298_v15, %v3939_v58  ;;  %19147 = vmatprep.mubr.msk.f32.mxu0 %vm254_vm1, %v22772_v10  ;;  %19381 = vmatprep.mubr.msk.f32.mxu1 %vm254_vm1, %v22775_v52  ;;  %v23442_v62 = vld [vmem:[%s21474_s27 + $0x1e0] sm:$0xff]  ;;  %v23453_v48 = vld [vmem:[%s21474_s27 + $0x1e8] sm:$0xff]  ;;  %v23456_v15 = vld [vmem:[%s21474_s27 + $0x1f8] sm:$0xff] }
 0x20c   : > { %v3973_v11 = vmax.f32 %v3954_v57, %v3956_v14  ;;  %v23352_v57 = vld [vmem:[%s21474_s27 + $0x211] sm:$0xff]  ;;  %v23467_v58 = vld [vmem:[%s21474_s27 + $0x200] sm:$0xff] }
 0x20d   : > { %v3972_v0 = vmax.f32 %v3953_v54, %v3955_v63  ;;  %v23383_v54 = vld [vmem:[%s21469_s24 + $0x230] sm:$0xff]  ;;  %v23481_v63 = vld [vmem:[%s21474_s27 + $0x218] sm:$0xff] }
 0x20e   : > { %15733 = vst.msk [vmem:[%s22972_s14 + $0x38] sm:$0xff] %vm3959_vm2, %v3973_v11  ;;  %19148 = vmatmul.mubr.msk.f32.gmra.mrb[28].mxu0 %vm254_vm1, %v22786_v40  ;;  %19382 = vmatmul.mubr.msk.f32.gmra.mrb[28].mxu1 %vm254_vm1, %v22789_v42  ;;  %v23470_v14 = vld [vmem:[%s21474_s27 + $0x210] sm:$0xff]  ;;  %v23484_v11 = vld [vmem:[%s21474_s27 + $0x228] sm:$0xff] }
 0x20f   : > { %15732 = vst.msk [vmem:[%s22972_s14 + $0x30] sm:$0xff] %vm3959_vm2, %v3972_v0  ;;  %19150 = vmatprep.mubr.msk.f32.mxu0 %vm254_vm1, %v23074_v16  ;;  %19384 = vmatprep.mubr.msk.f32.mxu1 %vm254_vm1, %v23077_v55  ;;  %v23495_v0 = vld [vmem:[%s21474_s27 + $0x230] sm:$0xff] }
 0x212   : > { %19151 = vmatmul.mubr.msk.f32.gmra.mrb[30].mxu0 %vm254_vm1, %v23092_v20  ;;  %19385 = vmatmul.mubr.msk.f32.gmra.mrb[30].mxu1 %vm254_vm1, %v23095_v22 }
 0x213   : > { %19155 = vmatprep.mubr.msk.f32.mxu0 %vm254_vm1, %v22369_v17  ;;  %19389 = vmatprep.mubr.msk.f32.mxu1 %vm254_vm1, %v16005_v26  ;;  %v16008_v17 = vld [vmem:[%s21474_s27 + $0x111] sm:$0xff] }
 0x216   : > { %19156 = vmatmul.mubr.msk.f32.vlgmr.msra.gmra.mrb[16].mxu0 %vm254_vm1, %v22387_v19  ;;  %19390 = vmatmul.mubr.msk.f32.vlgmr.msra.gmra.mrb[16].mxu1 %vm254_vm1, %v16006_v28  ;;  %v16009_v19 = vld [vmem:[%s21474_s27 + $0x121] sm:$0xff] }
 0x217   : > { %19180 = vmatpush3.msk.msra.mxu0 %vm303_vm0, %v22991_v1  ;;  %19414 = vmatpush3.msk.msra.mxu1 %vm303_vm0, %v22991_v1  ;;  %v16011_v1 = vld [vmem:[%s21474_s27 + $0x139] sm:$0xff] }
 0x218   : > { %19158 = vmatprep.mubr.msk.f32.mxu0 %vm254_vm1, %v22393_v21  ;;  %19392 = vmatprep.mubr.msk.f32.mxu1 %vm254_vm1, %v16007_v59  ;;  %v16010_v21 = vld [vmem:[%s21474_s27 + $0x129] sm:$0xff] }
 0x219   : > { %19439 = vmatprep.subr.msk.mxu0 %vm303_vm0, %v16280_v24  ;;  %19673 = vmatprep.subr.msk.mxu1 %vm303_vm0, %v16280_v24 }
 0x21a   : > { %19159 = vmatmul.mubr.msk.f32.gmra.mrb[18].mxu0 %vm254_vm1, %v22407_v23  ;;  %19393 = vmatmul.mubr.msk.f32.gmra.mrb[18].mxu1 %vm254_vm1, %v16008_v17  ;;  %v16012_v23 = vld [vmem:[%s21474_s27 + $0x141] sm:$0xff] }
 0x21b   : > { %19161 = vmatprep.mubr.msk.f32.mxu0 %vm254_vm1, %v22413_v25  ;;  %19395 = vmatprep.mubr.msk.f32.mxu1 %vm254_vm1, %v16009_v19  ;;  %v16014_v25 = vld [vmem:[%s21474_s27 + $0x159] sm:$0xff] }
 0x21e   : > { %19162 = vmatmul.mubr.msk.f32.gmra.mrb[20].mxu0 %vm254_vm1, %v22427_v27  ;;  %19396 = vmatmul.mubr.msk.f32.gmra.mrb[20].mxu1 %vm254_vm1, %v16010_v21  ;;  %v16015_v27 = vld [vmem:[%s21474_s27 + $0x169] sm:$0xff] }
 0x21f   : > { %19164 = vmatprep.mubr.msk.f32.mxu0 %vm254_vm1, %v22433_v29  ;;  %19398 = vmatprep.mubr.msk.f32.mxu1 %vm254_vm1, %v16011_v1  ;;  %v16016_v29 = vld [vmem:[%s21474_s27 + $0x171] sm:$0xff] }
 0x222   : > { %19165 = vmatmul.mubr.msk.f32.gmra.mrb[22].mxu0 %vm254_vm1, %v22447_v31  ;;  %19399 = vmatmul.mubr.msk.f32.gmra.mrb[22].mxu1 %vm254_vm1, %v16012_v23  ;;  %v23163_v31 = vld [vmem:[%s21474_s27 + $0x199] sm:$0xff] }
 0x223   : > { %19167 = vmatprep.mubr.msk.f32.mxu0 %vm254_vm1, %v22453_v33  ;;  %19401 = vmatprep.mubr.msk.f32.mxu1 %vm254_vm1, %v16013_v51  ;;  %v23174_v33 = vld [vmem:[%s21474_s27 + $0x1a1] sm:$0xff] }
 0x226   : > { %19168 = vmatmul.mubr.msk.f32.gmra.mrb[24].mxu0 %vm254_vm1, %v22467_v45  ;;  %19402 = vmatmul.mubr.msk.f32.gmra.mrb[24].mxu1 %vm254_vm1, %v16014_v25  ;;  %v7738_v45 = vld [vmem:[%s25038_s2] sm:$0x7] }
 0x227   : > { %19170 = vmatprep.mubr.msk.f32.mxu0 %vm254_vm1, %v22473_v47  ;;  %19404 = vmatprep.mubr.msk.f32.mxu1 %vm254_vm1, %v16015_v27  ;;  %v25053_v47 = vld [vmem:[#allocation2_spill] sm:$0xff] }
 0x22a   : > { %19171 = vmatmul.mubr.msk.f32.gmra.mrb[26].mxu0 %vm254_vm1, %v22487_v49  ;;  %19405 = vmatmul.mubr.msk.f32.gmra.mrb[26].mxu1 %vm254_vm1, %v16016_v29  ;;  %v23228_v49 = vld [vmem:[%s21469_s24 + $0x199] sm:$0xff] }
 0x22b   : > { %19173 = vmatprep.mubr.msk.f32.mxu0 %vm254_vm1, %v22775_v52  ;;  %19407 = vmatprep.mubr.msk.f32.mxu1 %vm254_vm1, %v22855_v41 }
 0x22e   : > { %19174 = vmatmul.mubr.msk.f32.gmra.mrb[28].mxu0 %vm254_vm1, %v22789_v42  ;;  %19408 = vmatmul.mubr.msk.f32.gmra.mrb[28].mxu1 %vm254_vm1, %v22866_v43 }
 0x22f   : > { %19176 = vmatprep.mubr.msk.f32.mxu0 %vm254_vm1, %v23077_v55  ;;  %19410 = vmatprep.mubr.msk.f32.mxu1 %vm254_vm1, %v23163_v31 }
 0x232   : > { %19177 = vmatmul.mubr.msk.f32.gmra.mrb[30].mxu0 %vm254_vm1, %v23095_v22  ;;  %19411 = vmatmul.mubr.msk.f32.gmra.mrb[30].mxu1 %vm254_vm1, %v23174_v33 }
 0x233   : > { %19181 = vmatprep.mubr.msk.f32.mxu0 %vm254_vm1, %v16005_v26  ;;  %19415 = vmatprep.mubr.msk.f32.mxu1 %vm254_vm1, %v22623_v2  ;;  %v25054_v2 = vld [vmem:[#allocation3_spill] sm:$0xff]  ;;  %v16399_v26 = vld [vmem:[%s25038_s2 + $0x10] sm:$0x7] }
 0x236   : > { %19182 = vmatmul.mubr.msk.f32.vlgmr.msra.gmra.mrb[16].mxu0 %vm254_vm1, %v16006_v28  ;;  %19416 = vmatmul.mubr.msk.f32.vlgmr.msra.gmra.mrb[16].mxu1 %vm254_vm1, %v22636_v3  ;;  %v23239_v3 = vld [vmem:[%s21469_s24 + $0x1a1] sm:$0xff]  ;;  %v23535_v28 = vld [vmem:[%s21469_s24 + $0x1c9] sm:$0xff] }
 0x237   : > { %19440 = vmatpush3.msk.msra.mxu0 %vm303_vm0, %v16280_v24  ;;  %19674 = vmatpush3.msk.msra.mxu1 %vm303_vm0, %v16280_v24  ;;  %v23549_v24 = vld [vmem:[%s21469_s24 + $0x1e1] sm:$0xff] }
 0x238   : > { %19184 = vmatprep.mubr.msk.f32.mxu0 %vm254_vm1, %v16007_v59  ;;  %19418 = vmatprep.mubr.msk.f32.mxu1 %vm254_vm1, %v22639_v4  ;;  %v23256_v4 = vld [vmem:[%s25038_s2 + $0x8] sm:$0x7]  ;;  %v23546_v59 = vld [vmem:[%s21469_s24 + $0x1d1] sm:$0xff] }
 0x239   : > { %19465 = vmatprep.subr.msk.mxu0 %vm303_vm0, %v7738_v45  ;;  %19699 = vmatprep.subr.msk.mxu1 %vm303_vm0, %v7738_v45 }
 0x23a   : > { %19185 = vmatmul.mubr.msk.f32.gmra.mrb[18].mxu0 %vm254_vm1, %v16008_v17  ;;  %19419 = vmatmul.mubr.msk.f32.gmra.mrb[18].mxu1 %vm254_vm1, %v22650_v5  ;;  %v23265_v5 = vld [vmem:[%s21469_s24 + $0x1b0] sm:$0xff] }
 0x23b   : > { %19187 = vmatprep.mubr.msk.f32.mxu0 %vm254_vm1, %v16009_v19  ;;  %19421 = vmatprep.mubr.msk.f32.mxu1 %vm254_vm1, %v22653_v8  ;;  %v23268_v8 = vld [vmem:[%s21474_s27 + $0x1b1] sm:$0xff]  ;;  %v23560_v17 = vld [vmem:[%s21469_s24 + $0x1e9] sm:$0xff]  ;;  %v23563_v19 = vld [vmem:[%s21469_s24 + $0x1f9] sm:$0xff] }
 0x23e   : > { %19188 = vmatmul.mubr.msk.f32.gmra.mrb[20].mxu0 %vm254_vm1, %v16010_v21  ;;  %19422 = vmatmul.mubr.msk.f32.gmra.mrb[20].mxu1 %vm254_vm1, %v22664_v35  ;;  %v23283_v35 = vld [vmem:[%s21469_s24 + $0x1b8] sm:$0xff]  ;;  %v23574_v21 = vld [vmem:[%s21469_s24 + $0x201] sm:$0xff] }
 0x23f   : > { %19190 = vmatprep.mubr.msk.f32.mxu0 %vm254_vm1, %v16011_v1  ;;  %19424 = vmatprep.mubr.msk.f32.mxu1 %vm254_vm1, %v22667_v36  ;;  %v23286_v36 = vld [vmem:[%s21474_s27 + $0x1b9] sm:$0xff]  ;;  %v23577_v1 = vld [vmem:[%s21469_s24 + $0x211] sm:$0xff] }
 0x242   : > { %19191 = vmatmul.mubr.msk.f32.gmra.mrb[22].mxu0 %vm254_vm1, %v16012_v23  ;;  %19425 = vmatmul.mubr.msk.f32.gmra.mrb[22].mxu1 %vm254_vm1, %v22678_v37  ;;  %v23289_v37 = vld [vmem:[%s21469_s24 + $0x1c8] sm:$0xff]  ;;  %v23588_v23 = vld [vmem:[%s21469_s24 + $0x219] sm:$0xff] }
 0x243   : > { %19193 = vmatprep.mubr.msk.f32.mxu0 %vm254_vm1, %v16013_v51  ;;  %19427 = vmatprep.mubr.msk.f32.mxu1 %vm254_vm1, %v22681_v38  ;;  %v23292_v38 = vld [vmem:[%s21474_s27 + $0x1c9] sm:$0xff] }
 0x244   : > { %v23591_v51 = vld [vmem:[%s21469_s24 + $0x229] sm:$0xff] }
 0x246   : > { %19194 = vmatmul.mubr.msk.f32.gmra.mrb[24].mxu0 %vm254_vm1, %v16014_v25  ;;  %19428 = vmatmul.mubr.msk.f32.gmra.mrb[24].mxu1 %vm254_vm1, %v22692_v6  ;;  %v23303_v6 = vld [vmem:[%s21469_s24 + $0x1d0] sm:$0xff] }
 0x247   : > { %19196 = vmatprep.mubr.msk.f32.mxu0 %vm254_vm1, %v16015_v27  ;;  %19430 = vmatprep.mubr.msk.f32.mxu1 %vm254_vm1, %v22695_v9  ;;  %v23306_v9 = vld [vmem:[%s21474_s27 + $0x1d1] sm:$0xff] }
 0x248   : > { %v23602_v25 = vld [vmem:[%s21469_s24 + $0x231] sm:$0xff] }
 0x249   : > { %v16433_v27 = vld [vmem:[%s25038_s2 + $0x14] sm:$0x7] }
 0x24a   : > { %19197 = vmatmul.mubr.msk.f32.gmra.mrb[26].mxu0 %vm254_vm1, %v16016_v29  ;;  %19431 = vmatmul.mubr.msk.f32.gmra.mrb[26].mxu1 %vm254_vm1, %v22706_v39  ;;  %v23309_v39 = vld [vmem:[%s21469_s24 + $0x1e0] sm:$0xff]  ;;  %v23682_v29 = vld [vmem:[%s21474_s27 + $0x248] sm:$0xff] }
 0x24b   : > { %19199 = vmatprep.mubr.msk.f32.mxu0 %vm254_vm1, %v22855_v41  ;;  %19433 = vmatprep.mubr.msk.f32.mxu1 %vm254_vm1, %v25053_v47 }
 0x24e   : > { %19200 = vmatmul.mubr.msk.f32.gmra.mrb[28].mxu0 %vm254_vm1, %v22866_v43  ;;  %19434 = vmatmul.mubr.msk.f32.gmra.mrb[28].mxu1 %vm254_vm1, %v25054_v2 }
 0x24f   : > { %19202 = vmatprep.mubr.msk.f32.mxu0 %vm254_vm1, %v23163_v31  ;;  %19436 = vmatprep.mubr.msk.f32.mxu1 %vm254_vm1, %v23228_v49 }
 0x252   : > { %19203 = vmatmul.mubr.msk.f32.gmra.mrb[30].mxu0 %vm254_vm1, %v23174_v33  ;;  %19437 = vmatmul.mubr.msk.f32.gmra.mrb[30].mxu1 %vm254_vm1, %v23239_v3 }
 0x253   : > { %19441 = vmatprep.mubr.msk.f32.mxu0 %vm254_vm1, %v22775_v52  ;;  %19675 = vmatprep.mubr.msk.f32.mxu1 %vm254_vm1, %v22855_v41 }
 0x256   : > { %19442 = vmatmul.mubr.msk.f32.vlgmr.msra.gmra.mrb[32].mxu0 %vm254_vm1, %v22789_v42  ;;  %19676 = vmatmul.mubr.msk.f32.vlgmr.msra.gmra.mrb[32].mxu1 %vm254_vm1, %v22866_v43 }
 0x257   : > { %19466 = vmatpush3.msk.msra.mxu0 %vm303_vm0, %v7738_v45  ;;  %19700 = vmatpush3.msk.msra.mxu1 %vm303_vm0, %v7738_v45  ;;  %v23685_v45 = vld [vmem:[%s21469_s24 + $0x248] sm:$0xff] }
 0x258   : > { %19444 = vmatprep.mubr.msk.f32.mxu0 %vm254_vm1, %v23077_v55  ;;  %19678 = vmatprep.mubr.msk.f32.mxu1 %vm254_vm1, %v23163_v31 }
 0x259   : > { %19491 = vmatprep.subr.msk.mxu0 %vm303_vm0, %v23256_v4  ;;  %19725 = vmatprep.subr.msk.mxu1 %vm303_vm0, %v23256_v4 }
 0x25a   : > { %19445 = vmatmul.mubr.msk.f32.gmra.mrb[34].mxu0 %vm254_vm1, %v23095_v22  ;;  %19679 = vmatmul.mubr.msk.f32.gmra.mrb[34].mxu1 %vm254_vm1, %v23174_v33 }
 0x25b   : > { %19447 = vmatprep.mubr.msk.f32.mxu0 %vm254_vm1, %v23265_v5  ;;  %19681 = vmatprep.mubr.msk.f32.mxu1 %vm254_vm1, %v23268_v8 }
 0x25e   : > { %19448 = vmatmul.mubr.msk.f32.gmra.mrb[36].mxu0 %vm254_vm1, %v23283_v35  ;;  %19682 = vmatmul.mubr.msk.f32.gmra.mrb[36].mxu1 %vm254_vm1, %v23286_v36 }
 0x25f   : > { %19450 = vmatprep.mubr.msk.f32.mxu0 %vm254_vm1, %v23289_v37  ;;  %19684 = vmatprep.mubr.msk.f32.mxu1 %vm254_vm1, %v23292_v38 }
 0x262   : > { %19451 = vmatmul.mubr.msk.f32.gmra.mrb[38].mxu0 %vm254_vm1, %v23303_v6  ;;  %19685 = vmatmul.mubr.msk.f32.gmra.mrb[38].mxu1 %vm254_vm1, %v23306_v9 }
 0x263   : > { %19453 = vmatprep.mubr.msk.f32.mxu0 %vm254_vm1, %v23309_v39  ;;  %19687 = vmatprep.mubr.msk.f32.mxu1 %vm254_vm1, %v23312_v53 }
 0x266   : > { %19454 = vmatmul.mubr.msk.f32.gmra.mrb[40].mxu0 %vm254_vm1, %v23323_v56  ;;  %19688 = vmatmul.mubr.msk.f32.gmra.mrb[40].mxu1 %vm254_vm1, %v23326_v13 }
 0x267   : > { %19456 = vmatprep.mubr.msk.f32.mxu0 %vm254_vm1, %v23329_v18  ;;  %19690 = vmatprep.mubr.msk.f32.mxu1 %vm254_vm1, %v23332_v60 }
 0x26a   : > { %19457 = vmatmul.mubr.msk.f32.gmra.mrb[42].mxu0 %vm254_vm1, %v23343_v30  ;;  %19691 = vmatmul.mubr.msk.f32.gmra.mrb[42].mxu1 %vm254_vm1, %v23346_v32 }
 0x26b   : > { %19459 = vmatprep.mubr.msk.f32.mxu0 %vm254_vm1, %v23349_v34  ;;  %19693 = vmatprep.mubr.msk.f32.mxu1 %vm254_vm1, %v23352_v57 }
 0x26e   : > { %19460 = vmatmul.mubr.msk.f32.gmra.mrb[44].mxu0 %vm254_vm1, %v23363_v46  ;;  %19694 = vmatmul.mubr.msk.f32.gmra.mrb[44].mxu1 %vm254_vm1, %v23366_v12 }
 0x26f   : > { %19462 = vmatprep.mubr.msk.f32.mxu0 %vm254_vm1, %v23369_v61  ;;  %19696 = vmatprep.mubr.msk.f32.mxu1 %vm254_vm1, %v23372_v7 }
 0x272   : > { %19463 = vmatmul.mubr.msk.f32.gmra.mrb[46].mxu0 %vm254_vm1, %v23383_v54  ;;  %19697 = vmatmul.mubr.msk.f32.gmra.mrb[46].mxu1 %vm254_vm1, %v23386_v50 }
 0x273   : > { %19467 = vmatprep.mubr.msk.f32.mxu0 %vm254_vm1, %v22772_v10  ;;  %19701 = vmatprep.mubr.msk.f32.mxu1 %vm254_vm1, %v22775_v52  ;;  %v23412_v10 = vld [vmem:[%s21474_s27 + $0x1b0] sm:$0xff]  ;;  %v23425_v52 = vld [vmem:[%s21474_s27 + $0x1b8] sm:$0xff] }
 0x276   : > { %19468 = vmatmul.mubr.msk.f32.vlgmr.msra.gmra.mrb[32].mxu0 %vm254_vm1, %v22786_v40  ;;  %19702 = vmatmul.mubr.msk.f32.vlgmr.msra.gmra.mrb[32].mxu1 %vm254_vm1, %v22789_v42  ;;  %v23428_v40 = vld [vmem:[%s21474_s27 + $0x1c8] sm:$0xff]  ;;  %v23439_v42 = vld [vmem:[%s21474_s27 + $0x1d0] sm:$0xff] }
 0x277   : > { %19492 = vmatpush3.msk.msra.mxu0 %vm303_vm0, %v23256_v4  ;;  %19726 = vmatpush3.msk.msra.mxu1 %vm303_vm0, %v23256_v4 }
 0x278   : > { %19470 = vmatprep.mubr.msk.f32.mxu0 %vm254_vm1, %v23074_v16  ;;  %19704 = vmatprep.mubr.msk.f32.mxu1 %vm254_vm1, %v23077_v55 }
 0x279   : > { %19517 = vmatprep.subr.msk.mxu0 %vm303_vm0, %v16365_v44  ;;  %19751 = vmatprep.subr.msk.mxu1 %vm303_vm0, %v16365_v44 }
 0x27a   : > { %19471 = vmatmul.mubr.msk.f32.gmra.mrb[34].mxu0 %vm254_vm1, %v23092_v20  ;;  %19705 = vmatmul.mubr.msk.f32.gmra.mrb[34].mxu1 %vm254_vm1, %v23095_v22 }
 0x27b   : > { %19473 = vmatprep.mubr.msk.f32.mxu0 %vm254_vm1, %v23412_v10  ;;  %19707 = vmatprep.mubr.msk.f32.mxu1 %vm254_vm1, %v23265_v5 }
 0x27e   : > { %19474 = vmatmul.mubr.msk.f32.gmra.mrb[36].mxu0 %vm254_vm1, %v23425_v52  ;;  %19708 = vmatmul.mubr.msk.f32.gmra.mrb[36].mxu1 %vm254_vm1, %v23283_v35 }
 0x27f   : > { %19476 = vmatprep.mubr.msk.f32.mxu0 %vm254_vm1, %v23428_v40  ;;  %19710 = vmatprep.mubr.msk.f32.mxu1 %vm254_vm1, %v23289_v37 }
 0x282   : > { %19477 = vmatmul.mubr.msk.f32.gmra.mrb[38].mxu0 %vm254_vm1, %v23439_v42  ;;  %19711 = vmatmul.mubr.msk.f32.gmra.mrb[38].mxu1 %vm254_vm1, %v23303_v6 }
 0x283   : > { %19479 = vmatprep.mubr.msk.f32.mxu0 %vm254_vm1, %v23442_v62  ;;  %19713 = vmatprep.mubr.msk.f32.mxu1 %vm254_vm1, %v23309_v39 }
 0x286   : > { %19480 = vmatmul.mubr.msk.f32.gmra.mrb[40].mxu0 %vm254_vm1, %v23453_v48  ;;  %19714 = vmatmul.mubr.msk.f32.gmra.mrb[40].mxu1 %vm254_vm1, %v23323_v56 }
 0x287   : > { %19482 = vmatprep.mubr.msk.f32.mxu0 %vm254_vm1, %v23456_v15  ;;  %19716 = vmatprep.mubr.msk.f32.mxu1 %vm254_vm1, %v23329_v18 }
 0x28a   : > { %19483 = vmatmul.mubr.msk.f32.gmra.mrb[42].mxu0 %vm254_vm1, %v23467_v58  ;;  %19717 = vmatmul.mubr.msk.f32.gmra.mrb[42].mxu1 %vm254_vm1, %v23343_v30 }
 0x28b   : > { %19485 = vmatprep.mubr.msk.f32.mxu0 %vm254_vm1, %v23470_v14  ;;  %19719 = vmatprep.mubr.msk.f32.mxu1 %vm254_vm1, %v23349_v34 }
 0x28e   : > { %19486 = vmatmul.mubr.msk.f32.gmra.mrb[44].mxu0 %vm254_vm1, %v23481_v63  ;;  %19720 = vmatmul.mubr.msk.f32.gmra.mrb[44].mxu1 %vm254_vm1, %v23363_v46 }
 0x28f   : > { %19488 = vmatprep.mubr.msk.f32.mxu0 %vm254_vm1, %v23484_v11  ;;  %19722 = vmatprep.mubr.msk.f32.mxu1 %vm254_vm1, %v23369_v61 }
 0x292   : > { %19489 = vmatmul.mubr.msk.f32.gmra.mrb[46].mxu0 %vm254_vm1, %v23495_v0  ;;  %19723 = vmatmul.mubr.msk.f32.gmra.mrb[46].mxu1 %vm254_vm1, %v23383_v54 }
 0x293   : > { %19493 = vmatprep.mubr.msk.f32.mxu0 %vm254_vm1, %v22855_v41  ;;  %19727 = vmatprep.mubr.msk.f32.mxu1 %vm254_vm1, %v25053_v47  ;;  %v23519_v41 = vld [vmem:[%s21469_s24 + $0x1b1] sm:$0xff] }
 0x294   : > { %v16467_v47 = vld [vmem:[%s25038_s2 + $0x18] sm:$0x7] }
 0x296   : > { %19494 = vmatmul.mubr.msk.f32.vlgmr.msra.gmra.mrb[32].mxu0 %vm254_vm1, %v22866_v43  ;;  %19728 = vmatmul.mubr.msk.f32.vlgmr.msra.gmra.mrb[32].mxu1 %vm254_vm1, %v25054_v2  ;;  %v23532_v43 = vld [vmem:[%s21469_s24 + $0x1b9] sm:$0xff] }
 0x297   : > { %19518 = vmatpush3.msk.msra.mxu0 %vm303_vm0, %v16365_v44  ;;  %19752 = vmatpush3.msk.msra.mxu1 %vm303_vm0, %v16365_v44  ;;  %v23779_v2 = vld [vmem:[%s25038_s2 + $0x1c] sm:$0x7] }
 0x298   : > { %19496 = vmatprep.mubr.msk.f32.mxu0 %vm254_vm1, %v23163_v31  ;;  %19730 = vmatprep.mubr.msk.f32.mxu1 %vm254_vm1, %v23228_v49 }
 0x299   : > { %19543 = vmatprep.subr.msk.mxu0 %vm303_vm0, %v16399_v26  ;;  %19777 = vmatprep.subr.msk.mxu1 %vm303_vm0, %v16399_v26 }
 0x29a   : > { %19497 = vmatmul.mubr.msk.f32.gmra.mrb[34].mxu0 %vm254_vm1, %v23174_v33  ;;  %19731 = vmatmul.mubr.msk.f32.gmra.mrb[34].mxu1 %vm254_vm1, %v23239_v3 }
 0x29b   : > { %19499 = vmatprep.mubr.msk.f32.mxu0 %vm254_vm1, %v23268_v8  ;;  %19733 = vmatprep.mubr.msk.f32.mxu1 %vm254_vm1, %v23519_v41 }
 0x29e   : > { %19500 = vmatmul.mubr.msk.f32.gmra.mrb[36].mxu0 %vm254_vm1, %v23286_v36  ;;  %19734 = vmatmul.mubr.msk.f32.gmra.mrb[36].mxu1 %vm254_vm1, %v23532_v43 }
 0x29f   : > { %19502 = vmatprep.mubr.msk.f32.mxu0 %vm254_vm1, %v23292_v38  ;;  %19736 = vmatprep.mubr.msk.f32.mxu1 %vm254_vm1, %v23535_v28 }
 0x2a2   : > { %19503 = vmatmul.mubr.msk.f32.gmra.mrb[38].mxu0 %vm254_vm1, %v23306_v9  ;;  %19737 = vmatmul.mubr.msk.f32.gmra.mrb[38].mxu1 %vm254_vm1, %v23546_v59 }
 0x2a3   : > { %19505 = vmatprep.mubr.msk.f32.mxu0 %vm254_vm1, %v23312_v53  ;;  %19739 = vmatprep.mubr.msk.f32.mxu1 %vm254_vm1, %v23549_v24 }
 0x2a6   : > { %19506 = vmatmul.mubr.msk.f32.gmra.mrb[40].mxu0 %vm254_vm1, %v23326_v13  ;;  %19740 = vmatmul.mubr.msk.f32.gmra.mrb[40].mxu1 %vm254_vm1, %v23560_v17 }
 0x2a7   : > { %19508 = vmatprep.mubr.msk.f32.mxu0 %vm254_vm1, %v23332_v60  ;;  %19742 = vmatprep.mubr.msk.f32.mxu1 %vm254_vm1, %v23563_v19 }
 0x2aa   : > { %19509 = vmatmul.mubr.msk.f32.gmra.mrb[42].mxu0 %vm254_vm1, %v23346_v32  ;;  %19743 = vmatmul.mubr.msk.f32.gmra.mrb[42].mxu1 %vm254_vm1, %v23574_v21 }
 0x2ab   : > { %19511 = vmatprep.mubr.msk.f32.mxu0 %vm254_vm1, %v23352_v57  ;;  %19745 = vmatprep.mubr.msk.f32.mxu1 %vm254_vm1, %v23577_v1 }
 0x2ae   : > { %19512 = vmatmul.mubr.msk.f32.gmra.mrb[44].mxu0 %vm254_vm1, %v23366_v12  ;;  %19746 = vmatmul.mubr.msk.f32.gmra.mrb[44].mxu1 %vm254_vm1, %v23588_v23 }
 0x2af   : > { %19514 = vmatprep.mubr.msk.f32.mxu0 %vm254_vm1, %v23372_v7  ;;  %19748 = vmatprep.mubr.msk.f32.mxu1 %vm254_vm1, %v23591_v51 }
 0x2b2   : > { %19515 = vmatmul.mubr.msk.f32.gmra.mrb[46].mxu0 %vm254_vm1, %v23386_v50  ;;  %19749 = vmatmul.mubr.msk.f32.gmra.mrb[46].mxu1 %vm254_vm1, %v23602_v25 }
 0x2b3   : > { %19519 = vmatprep.mubr.msk.f32.mxu0 %vm254_vm1, %v23074_v16  ;;  %19753 = vmatprep.mubr.msk.f32.mxu1 %vm254_vm1, %v23077_v55  ;;  %v23668_v16 = vld [vmem:[%s21474_s27 + $0x240] sm:$0xff] }
 0x2b6   : > { %19520 = vmatmul.mubr.msk.f32.vlgmr.msra.gmra.mrb[32].mxu0 %vm254_vm1, %v23092_v20  ;;  %19754 = vmatmul.mubr.msk.f32.vlgmr.msra.gmra.mrb[32].mxu1 %vm254_vm1, %v23095_v22  ;;  %v23671_v20 = vld [vmem:[%s21469_s24 + $0x240] sm:$0xff] }
 0x2b7   : > { %19544 = vmatpush3.msk.msra.mxu0 %vm303_vm0, %v16399_v26  ;;  %19778 = vmatpush3.msk.msra.mxu1 %vm303_vm0, %v16399_v26 }
 0x2b8   : > { %19522 = vmatprep.mubr.msk.f32.mxu0 %vm254_vm1, %v23412_v10  ;;  %19756 = vmatprep.mubr.msk.f32.mxu1 %vm254_vm1, %v23265_v5 }
 0x2b9   : > { %19569 = vmatprep.subr.msk.mxu0 %vm303_vm0, %v16433_v27  ;;  %19803 = vmatprep.subr.msk.mxu1 %vm303_vm0, %v16433_v27 }
 0x2ba   : > { %19523 = vmatmul.mubr.msk.f32.gmra.mrb[34].mxu0 %vm254_vm1, %v23425_v52  ;;  %19757 = vmatmul.mubr.msk.f32.gmra.mrb[34].mxu1 %vm254_vm1, %v23283_v35 }
 0x2bb   : > { %19525 = vmatprep.mubr.msk.f32.mxu0 %vm254_vm1, %v23428_v40  ;;  %19759 = vmatprep.mubr.msk.f32.mxu1 %vm254_vm1, %v23289_v37 }
 0x2be   : > { %19526 = vmatmul.mubr.msk.f32.gmra.mrb[36].mxu0 %vm254_vm1, %v23439_v42  ;;  %19760 = vmatmul.mubr.msk.f32.gmra.mrb[36].mxu1 %vm254_vm1, %v23303_v6 }
 0x2bf   : > { %19528 = vmatprep.mubr.msk.f32.mxu0 %vm254_vm1, %v23442_v62  ;;  %19762 = vmatprep.mubr.msk.f32.mxu1 %vm254_vm1, %v23309_v39 }
 0x2c2   : > { %19529 = vmatmul.mubr.msk.f32.gmra.mrb[38].mxu0 %vm254_vm1, %v23453_v48  ;;  %19763 = vmatmul.mubr.msk.f32.gmra.mrb[38].mxu1 %vm254_vm1, %v23323_v56 }
 0x2c3   : > { %19531 = vmatprep.mubr.msk.f32.mxu0 %vm254_vm1, %v23456_v15  ;;  %19765 = vmatprep.mubr.msk.f32.mxu1 %vm254_vm1, %v23329_v18 }
 0x2c6   : > { %19532 = vmatmul.mubr.msk.f32.gmra.mrb[40].mxu0 %vm254_vm1, %v23467_v58  ;;  %19766 = vmatmul.mubr.msk.f32.gmra.mrb[40].mxu1 %vm254_vm1, %v23343_v30 }
 0x2c7   : > { %19534 = vmatprep.mubr.msk.f32.mxu0 %vm254_vm1, %v23470_v14  ;;  %19768 = vmatprep.mubr.msk.f32.mxu1 %vm254_vm1, %v23349_v34 }
 0x2ca   : > { %19535 = vmatmul.mubr.msk.f32.gmra.mrb[42].mxu0 %vm254_vm1, %v23481_v63  ;;  %19769 = vmatmul.mubr.msk.f32.gmra.mrb[42].mxu1 %vm254_vm1, %v23363_v46 }
 0x2cb   : > { %19537 = vmatprep.mubr.msk.f32.mxu0 %vm254_vm1, %v23484_v11  ;;  %19771 = vmatprep.mubr.msk.f32.mxu1 %vm254_vm1, %v23369_v61 }
 0x2ce   : > { %19538 = vmatmul.mubr.msk.f32.gmra.mrb[44].mxu0 %vm254_vm1, %v23495_v0  ;;  %19772 = vmatmul.mubr.msk.f32.gmra.mrb[44].mxu1 %vm254_vm1, %v23383_v54 }
 0x2cf   : > { %19540 = vmatprep.mubr.msk.f32.mxu0 %vm254_vm1, %v23668_v16  ;;  %19774 = vmatprep.mubr.msk.f32.mxu1 %vm254_vm1, %v23671_v20 }
 0x2d2   : > { %19541 = vmatmul.mubr.msk.f32.gmra.mrb[46].mxu0 %vm254_vm1, %v23682_v29  ;;  %19775 = vmatmul.mubr.msk.f32.gmra.mrb[46].mxu1 %vm254_vm1, %v23685_v45 }
 0x2d3   : > { %19545 = vmatprep.mubr.msk.f32.mxu0 %vm254_vm1, %v23077_v55  ;;  %19779 = vmatprep.mubr.msk.f32.mxu1 %vm254_vm1, %v23163_v31  ;;  %v23751_v55 = vld [vmem:[%s21474_s27 + $0x241] sm:$0xff] }
 0x2d6   : > { %19546 = vmatmul.mubr.msk.f32.vlgmr.msra.gmra.mrb[32].mxu0 %vm254_vm1, %v23095_v22  ;;  %19780 = vmatmul.mubr.msk.f32.vlgmr.msra.gmra.mrb[32].mxu1 %vm254_vm1, %v23174_v33  ;;  %v23762_v22 = vld [vmem:[%s21474_s27 + $0x249] sm:$0xff] }
 0x2d7   : > { %19570 = vmatpush3.msk.msra.mxu0 %vm303_vm0, %v16433_v27  ;;  %19804 = vmatpush3.msk.msra.mxu1 %vm303_vm0, %v16433_v27 }
 0x2d8   : > { %19548 = vmatprep.mubr.msk.f32.mxu0 %vm254_vm1, %v23265_v5  ;;  %19782 = vmatprep.mubr.msk.f32.mxu1 %vm254_vm1, %v23268_v8 }
 0x2d9   : > { %19595 = vmatprep.subr.msk.mxu0 %vm303_vm0, %v16467_v47  ;;  %19829 = vmatprep.subr.msk.mxu1 %vm303_vm0, %v16467_v47 }
 0x2da   : > { %19549 = vmatmul.mubr.msk.f32.gmra.mrb[34].mxu0 %vm254_vm1, %v23283_v35  ;;  %19783 = vmatmul.mubr.msk.f32.gmra.mrb[34].mxu1 %vm254_vm1, %v23286_v36 }
 0x2db   : > { %19551 = vmatprep.mubr.msk.f32.mxu0 %vm254_vm1, %v23289_v37  ;;  %19785 = vmatprep.mubr.msk.f32.mxu1 %vm254_vm1, %v23292_v38 }
 0x2de   : > { %19552 = vmatmul.mubr.msk.f32.gmra.mrb[36].mxu0 %vm254_vm1, %v23303_v6  ;;  %19786 = vmatmul.mubr.msk.f32.gmra.mrb[36].mxu1 %vm254_vm1, %v23306_v9 }
 0x2df   : > { %19554 = vmatprep.mubr.msk.f32.mxu0 %vm254_vm1, %v23309_v39  ;;  %19788 = vmatprep.mubr.msk.f32.mxu1 %vm254_vm1, %v23312_v53 }
 0x2e2   : > { %19555 = vmatmul.mubr.msk.f32.gmra.mrb[38].mxu0 %vm254_vm1, %v23323_v56  ;;  %19789 = vmatmul.mubr.msk.f32.gmra.mrb[38].mxu1 %vm254_vm1, %v23326_v13 }
 0x2e3   : > { %19557 = vmatprep.mubr.msk.f32.mxu0 %vm254_vm1, %v23329_v18  ;;  %19791 = vmatprep.mubr.msk.f32.mxu1 %vm254_vm1, %v23332_v60 }
 0x2e6   : > { %19558 = vmatmul.mubr.msk.f32.gmra.mrb[40].mxu0 %vm254_vm1, %v23343_v30  ;;  %19792 = vmatmul.mubr.msk.f32.gmra.mrb[40].mxu1 %vm254_vm1, %v23346_v32 }
 0x2e7   : > { %19560 = vmatprep.mubr.msk.f32.mxu0 %vm254_vm1, %v23349_v34  ;;  %19794 = vmatprep.mubr.msk.f32.mxu1 %vm254_vm1, %v23352_v57 }
 0x2ea   : > { %19561 = vmatmul.mubr.msk.f32.gmra.mrb[42].mxu0 %vm254_vm1, %v23363_v46  ;;  %19795 = vmatmul.mubr.msk.f32.gmra.mrb[42].mxu1 %vm254_vm1, %v23366_v12 }
 0x2eb   : > { %19563 = vmatprep.mubr.msk.f32.mxu0 %vm254_vm1, %v23369_v61  ;;  %19797 = vmatprep.mubr.msk.f32.mxu1 %vm254_vm1, %v23372_v7 }
 0x2ee   : > { %19564 = vmatmul.mubr.msk.f32.gmra.mrb[44].mxu0 %vm254_vm1, %v23383_v54  ;;  %19798 = vmatmul.mubr.msk.f32.gmra.mrb[44].mxu1 %vm254_vm1, %v23386_v50 }
 0x2ef   : > { %19566 = vmatprep.mubr.msk.f32.mxu0 %vm254_vm1, %v23671_v20  ;;  %19800 = vmatprep.mubr.msk.f32.mxu1 %vm254_vm1, %v23751_v55 }
 0x2f2   : > { %19567 = vmatmul.mubr.msk.f32.gmra.mrb[46].mxu0 %vm254_vm1, %v23685_v45  ;;  %19801 = vmatmul.mubr.msk.f32.gmra.mrb[46].mxu1 %vm254_vm1, %v23762_v22 }
 0x2f3   : > { %19571 = vmatprep.mubr.msk.f32.mxu0 %vm254_vm1, %v23163_v31  ;;  %19805 = vmatprep.mubr.msk.f32.mxu1 %vm254_vm1, %v23228_v49  ;;  %v23826_v49 = vld [vmem:[%s25039_s3] ss:$0 sm:$0xff] }
 0x2f6   : > { %19572 = vmatmul.mubr.msk.f32.vlgmr.msra.gmra.mrb[32].mxu0 %vm254_vm1, %v23174_v33  ;;  %19806 = vmatmul.mubr.msk.f32.vlgmr.msra.gmra.mrb[32].mxu1 %vm254_vm1, %v23239_v3 }
 0x2f7   : > { %19596 = vmatpush3.msk.msra.mxu0 %vm303_vm0, %v16467_v47  ;;  %19830 = vmatpush3.msk.msra.mxu1 %vm303_vm0, %v16467_v47 }
 0x2f8   : > { %19574 = vmatprep.mubr.msk.f32.mxu0 %vm254_vm1, %v23268_v8  ;;  %19808 = vmatprep.mubr.msk.f32.mxu1 %vm254_vm1, %v23519_v41 }
 0x2f9   : > { %19621 = vmatprep.subr.msk.mxu0 %vm303_vm0, %v23779_v2  ;;  %19855 = vmatprep.subr.msk.mxu1 %vm303_vm0, %v23779_v2 }
 0x2fa   : > { %19575 = vmatmul.mubr.msk.f32.gmra.mrb[34].mxu0 %vm254_vm1, %v23286_v36  ;;  %19809 = vmatmul.mubr.msk.f32.gmra.mrb[34].mxu1 %vm254_vm1, %v23532_v43 }
 0x2fb   : > { %19577 = vmatprep.mubr.msk.f32.mxu0 %vm254_vm1, %v23292_v38  ;;  %19811 = vmatprep.mubr.msk.f32.mxu1 %vm254_vm1, %v23535_v28 }
 0x2fe   : > { %19578 = vmatmul.mubr.msk.f32.gmra.mrb[36].mxu0 %vm254_vm1, %v23306_v9  ;;  %19812 = vmatmul.mubr.msk.f32.gmra.mrb[36].mxu1 %vm254_vm1, %v23546_v59 }
 0x2ff   : > { %19580 = vmatprep.mubr.msk.f32.mxu0 %vm254_vm1, %v23312_v53  ;;  %19814 = vmatprep.mubr.msk.f32.mxu1 %vm254_vm1, %v23549_v24 }
 0x302   : > { %19581 = vmatmul.mubr.msk.f32.gmra.mrb[38].mxu0 %vm254_vm1, %v23326_v13  ;;  %19815 = vmatmul.mubr.msk.f32.gmra.mrb[38].mxu1 %vm254_vm1, %v23560_v17 }
 0x303   : > { %19583 = vmatprep.mubr.msk.f32.mxu0 %vm254_vm1, %v23332_v60  ;;  %19817 = vmatprep.mubr.msk.f32.mxu1 %vm254_vm1, %v23563_v19  ;;  %v23841_v60 = vld [vmem:[%s21469_s24 + $0x241] sm:$0xff] }
 0x304   : > { %25055 = vst [vmem:[#allocation2_spill] sm:$0xff] %v23841_v60 }
 0x306   : > { %19584 = vmatmul.mubr.msk.f32.gmra.mrb[40].mxu0 %vm254_vm1, %v23346_v32  ;;  %19818 = vmatmul.mubr.msk.f32.gmra.mrb[40].mxu1 %vm254_vm1, %v23574_v21 }
 0x307   : > { %19586 = vmatprep.mubr.msk.f32.mxu0 %vm254_vm1, %v23352_v57  ;;  %19820 = vmatprep.mubr.msk.f32.mxu1 %vm254_vm1, %v23577_v1 }
 0x309   : > { %v19183_v31 = vpop.f32.mrb[16].mxu0  ;;  %v19417_v33 = vpop.f32.mrb[16].mxu1 }
 0x30a   : > { %v6013_v3 = vadd.f32 %v23826_v49, %v19183_v31  ;;  %v7654_v4 = vadd.f32 %v23826_v49, %v19417_v33  ;;  %v5917_v8 = vpop.f32.mrb[17].mxu0  ;;  %v7558_v36 = vpop.f32.mrb[17].mxu1  ;;  %19587 = vmatmul.mubr.msk.f32.gmra.mrb[42].mxu0 %vm254_vm1, %v23366_v12  ;;  %19821 = vmatmul.mubr.msk.f32.gmra.mrb[42].mxu1 %vm254_vm1, %v23588_v23 }
 0x30b   : > { %v6012_v38 = vadd.f32 %v23826_v49, %v5917_v8  ;;  %v7653_v9 = vadd.f32 %v23826_v49, %v7558_v36  ;;  %19589 = vmatprep.mubr.msk.f32.mxu0 %vm254_vm1, %v23372_v7  ;;  %19823 = vmatprep.mubr.msk.f32.mxu1 %vm254_vm1, %v23591_v51  ;;  %v23856_v8 = vld [vmem:[%s21469_s24 + $0x249] sm:$0xff] }
 0x30c   : > { %v6029_v53 = vmax.f32 %v6013_v3, 0.0  ;;  %v7670_v13 = vmax.f32 %v7654_v4, 0.0  ;;  %25056 = vst [vmem:[#allocation3_spill] sm:$0xff] %v23856_v8 }
 0x30d   : > { %v6028_v32 = vmax.f32 %v6012_v38, 0.0  ;;  %v7669_v57 = vmax.f32 %v7653_v9, 0.0  ;;  %v19186_v12 = vpop.f32.mrb[18].mxu0  ;;  %v19420_v44 = vpop.f32.mrb[18].mxu1 }
 0x30e   : > { %v7686_v26 = vmax.f32 %v6029_v53, %v7670_v13  ;;  %v6015_v27 = vadd.f32 %v23826_v49, %v19186_v12  ;;  %v7656_v47 = vadd.f32 %v23826_v49, %v19420_v44  ;;  %v5927_v31 = vpop.f32.mrb[19].mxu0  ;;  %v7568_v33 = vpop.f32.mrb[19].mxu1  ;;  %19590 = vmatmul.mubr.msk.f32.gmra.mrb[44].mxu0 %vm254_vm1, %v23386_v50  ;;  %19824 = vmatmul.mubr.msk.f32.gmra.mrb[44].mxu1 %vm254_vm1, %v23602_v25 }
 0x30f   : > { %v7685_v7 = vmax.f32 %v6028_v32, %v7669_v57  ;;  %v6014_v3 = vadd.f32 %v23826_v49, %v5927_v31  ;;  %v7655_v4 = vadd.f32 %v23826_v49, %v7568_v33  ;;  %19592 = vmatprep.mubr.msk.f32.mxu0 %vm254_vm1, %v23751_v55  ;;  %19826 = vmatprep.mubr.msk.f32.mxu1 %vm254_vm1, %v23841_v60 }
 0x310   : > { %v6031_v36 = vmax.f32 %v6015_v27, 0.0  ;;  %v7672_v38 = vmax.f32 %v7656_v47, 0.0 }
 0x311   : > { %v6030_v9 = vmax.f32 %v6014_v3, 0.0  ;;  %v7671_v50 = vmax.f32 %v7655_v4, 0.0  ;;  %v19189_v53 = vpop.f32.mrb[20].mxu0  ;;  %v19423_v13 = vpop.f32.mrb[20].mxu1 }
 0x312   : > { %v7688_v12 = vmax.f32 %v6031_v36, %v7672_v38  ;;  %v6017_v32 = vadd.f32 %v23826_v49, %v19189_v53  ;;  %v7658_v57 = vadd.f32 %v23826_v49, %v19423_v13  ;;  %v5937_v44 = vpop.f32.mrb[21].mxu0  ;;  %v7578_v31 = vpop.f32.mrb[21].mxu1  ;;  %19593 = vmatmul.mubr.msk.f32.gmra.mrb[46].mxu0 %vm254_vm1, %v23762_v22  ;;  %19827 = vmatmul.mubr.msk.f32.gmra.mrb[46].mxu1 %vm254_vm1, %v23856_v8 }
 0x313   : > { %v7687_v27 = vmax.f32 %v6030_v9, %v7671_v50  ;;  %v6016_v47 = vadd.f32 %v23826_v49, %v5937_v44  ;;  %v7657_v33 = vadd.f32 %v23826_v49, %v7578_v31  ;;  %19597 = vmatprep.mubr.msk.f32.mxu0 %vm254_vm1, %v23412_v10  ;;  %19831 = vmatprep.mubr.msk.f32.mxu1 %vm254_vm1, %v23265_v5 }
 0x314   : > { %v7702_v3 = vmax.f32 %v7686_v26, %v7688_v12  ;;  %v6033_v4 = vmax.f32 %v6017_v32, 0.0  ;;  %v7674_v36 = vmax.f32 %v7658_v57, 0.0  ;;  %v23881_v26 = vld [vmem:[%s25038_s2 + $0x20] sm:$0x7] }
 0x315   : > { %v7701_v38 = vmax.f32 %v7685_v7, %v7687_v27  ;;  %v6032_v53 = vmax.f32 %v6016_v47, 0.0  ;;  %v7673_v13 = vmax.f32 %v7657_v33, 0.0  ;;  %v19192_v60 = vpop.f32.mrb[22].mxu0  ;;  %v19426_v8 = vpop.f32.mrb[22].mxu1 }
 0x316   : > { %16241 = vst.msk [vmem:[%s22972_s14 + $0x48] sm:$0xff] %vm3959_vm2, %v7702_v3  ;;  %v7690_v9 = vmax.f32 %v6033_v4, %v7674_v36  ;;  %v6019_v50 = vadd.f32 %v23826_v49, %v19192_v60  ;;  %v7660_v44 = vadd.f32 %v23826_v49, %v19426_v8  ;;  %v5947_v10 = vpop.f32.mrb[23].mxu0  ;;  %v7588_v31 = vpop.f32.mrb[23].mxu1  ;;  %19598 = vmatmul.mubr.msk.f32.vlgmr.msra.gmra.mrb[32].mxu0 %vm254_vm1, %v23425_v52 }
 0x317   : > { %19832 = vmatmul.mubr.msk.f32.vlgmr.msra.gmra.mrb[32].mxu1 %vm254_vm1, %v23283_v35  ;;  %16240 = vst.msk [vmem:[%s22972_s14 + $0x40] sm:$0xff] %vm3959_vm2, %v7701_v38  ;;  %v7689_v7 = vmax.f32 %v6032_v53, %v7673_v13  ;;  %v6018_v60 = vadd.f32 %v23826_v49, %v5947_v10  ;;  %v7659_v8 = vadd.f32 %v23826_v49, %v7588_v31 }
 0x318   : > { %19622 = vmatpush3.msk.msra.mxu0 %vm303_vm0, %v23779_v2  ;;  %19856 = vmatpush3.msk.msra.mxu1 %vm303_vm0, %v23779_v2  ;;  %v6035_v52 = vmax.f32 %v6019_v50, 0.0  ;;  %v7676_v12 = vmax.f32 %v7660_v44, 0.0 }
 0x319   : > { %19600 = vmatprep.mubr.msk.f32.mxu0 %vm254_vm1, %v23428_v40  ;;  %19834 = vmatprep.mubr.msk.f32.mxu1 %vm254_vm1, %v23289_v37  ;;  %v6034_v32 = vmax.f32 %v6018_v60, 0.0  ;;  %v7675_v57 = vmax.f32 %v7659_v8, 0.0  ;;  %v19195_v27 = vpop.f32.mrb[24].mxu0  ;;  %v19429_v47 = vpop.f32.mrb[24].mxu1 }
 0x31a   : > { %19647 = vmatprep.subr.msk.mxu0 %vm303_vm0, %v23881_v26  ;;  %19881 = vmatprep.subr.msk.mxu1 %vm303_vm0, %v23881_v26  ;;  %v7692_v33 = vmax.f32 %v6035_v52, %v7676_v12  ;;  %v6021_v2 = vadd.f32 %v23826_v49, %v19195_v27  ;;  %v7662_v3 = vadd.f32 %v23826_v49, %v19429_v47  ;;  %v5957_v4 = vpop.f32.mrb[25].mxu0  ;;  %v7598_v40 = vpop.f32.mrb[25].mxu1 }
 0x31b   : > { %19601 = vmatmul.mubr.msk.f32.gmra.mrb[34].mxu0 %vm254_vm1, %v23439_v42  ;;  %19835 = vmatmul.mubr.msk.f32.gmra.mrb[34].mxu1 %vm254_vm1, %v23303_v6  ;;  %v7691_v36 = vmax.f32 %v6034_v32, %v7675_v57  ;;  %v6020_v38 = vadd.f32 %v23826_v49, %v5957_v4  ;;  %v7661_v53 = vadd.f32 %v23826_v49, %v7598_v40 }
 0x31c   : > { %19603 = vmatprep.mubr.msk.f32.mxu0 %vm254_vm1, %v23442_v62  ;;  %19837 = vmatprep.mubr.msk.f32.mxu1 %vm254_vm1, %v23309_v39  ;;  %v7707_v13 = vmax.f32 %v7690_v9, %v7692_v33  ;;  %v6037_v50 = vmax.f32 %v6021_v2, 0.0  ;;  %v7678_v44 = vmax.f32 %v7662_v3, 0.0 }
 0x31d   : > { %v7706_v10 = vmax.f32 %v7689_v7, %v7691_v36  ;;  %v6036_v42 = vmax.f32 %v6020_v38, 0.0  ;;  %v7677_v31 = vmax.f32 %v7661_v53, 0.0  ;;  %v19198_v60 = vpop.f32.mrb[26].mxu0  ;;  %v19432_v8 = vpop.f32.mrb[26].mxu1 }
 0x31e   : > { %16243 = vst.msk [vmem:[%s22972_s14 + $0x58] sm:$0xff] %vm3959_vm2, %v7707_v13  ;;  %v7694_v52 = vmax.f32 %v6037_v50, %v7678_v44  ;;  %v6023_v12 = vadd.f32 %v23826_v49, %v19198_v60  ;;  %v7664_v32 = vadd.f32 %v23826_v49, %v19432_v8  ;;  %v5967_v62 = vpop.f32.mrb[27].mxu0  ;;  %v7608_v57 = vpop.f32.mrb[27].mxu1 }
 0x31f   : > { %19604 = vmatmul.mubr.msk.f32.gmra.mrb[36].mxu0 %vm254_vm1, %v23453_v48  ;;  %19838 = vmatmul.mubr.msk.f32.gmra.mrb[36].mxu1 %vm254_vm1, %v23323_v56  ;;  %16242 = vst.msk [vmem:[%s22972_s14 + $0x50] sm:$0xff] %vm3959_vm2, %v7706_v10  ;;  %v7693_v9 = vmax.f32 %v6036_v42, %v7677_v31  ;;  %v6022_v7 = vadd.f32 %v23826_v49, %v5967_v62 }
 0x320   : > { %v7663_v27 = vadd.f32 %v23826_v49, %v7608_v57  ;;  %19606 = vmatprep.mubr.msk.f32.mxu0 %vm254_vm1, %v23456_v15  ;;  %19840 = vmatprep.mubr.msk.f32.mxu1 %vm254_vm1, %v23329_v18  ;;  %v6039_v47 = vmax.f32 %v6023_v12, 0.0  ;;  %v7680_v33 = vmax.f32 %v7664_v32, 0.0 }
 0x321   : > { %v6038_v2 = vmax.f32 %v6022_v7, 0.0  ;;  %v19201_v3 = vpop.f32.mrb[28].mxu0  ;;  %v19435_v4 = vpop.f32.mrb[28].mxu1 }
 0x322   : > { %v7679_v48 = vmax.f32 %v7663_v27, 0.0  ;;  %v7696_v40 = vmax.f32 %v6039_v47, %v7680_v33  ;;  %v6025_v36 = vadd.f32 %v23826_v49, %v19201_v3  ;;  %v7666_v38 = vadd.f32 %v23826_v49, %v19435_v4  ;;  %v5977_v53 = vpop.f32.mrb[29].mxu0  ;;  %v7618_v13 = vpop.f32.mrb[29].mxu1  ;;  %v23964_v4 = vld [vmem:[%s21474_s27 + $0x258] sm:$0xff] }
 0x323   : > { %19607 = vmatmul.mubr.msk.f32.gmra.mrb[38].mxu0 %vm254_vm1, %v23467_v58  ;;  %19841 = vmatmul.mubr.msk.f32.gmra.mrb[38].mxu1 %vm254_vm1, %v23343_v30  ;;  %v6024_v50 = vadd.f32 %v23826_v49, %v5977_v53  ;;  %v7665_v44 = vadd.f32 %v23826_v49, %v7618_v13  ;;  %v16519_v53 = vld [vmem:[%s21474_s27 + $0x1b1] sm:$0xff]  ;;  %v16520_v13 = vld [vmem:[%s21474_s27 + $0x1b9] sm:$0xff] }
 0x324   : > { %v7695_v15 = vmax.f32 %v6038_v2, %v7679_v48  ;;  %19609 = vmatprep.mubr.msk.f32.mxu0 %vm254_vm1, %v23470_v14  ;;  %19843 = vmatprep.mubr.msk.f32.mxu1 %vm254_vm1, %v23349_v34  ;;  %v7712_v10 = vmax.f32 %v7694_v52, %v7696_v40  ;;  %v6041_v42 = vmax.f32 %v6025_v36, 0.0  ;;  %v7682_v31 = vmax.f32 %v7666_v38, 0.0  ;;  %v23967_v40 = vld [vmem:[%s21469_s24 + $0x258] sm:$0xff]  ;;  %v23982_v36 = vld [vmem:[%s21474_s27 + $0x260] sm:$0xff] }
 0x325   : > { %v6040_v58 = vmax.f32 %v6024_v50, 0.0  ;;  %v7681_v8 = vmax.f32 %v7665_v44, 0.0  ;;  %v19204_v12 = vpop.f32.mrb[30].mxu0  ;;  %v19438_v32 = vpop.f32.mrb[30].mxu1  ;;  %v23985_v38 = vld [vmem:[%s21469_s24 + $0x260] sm:$0xff]  ;;  %v16527_v44 = vld [vmem:[%s21474_s27 + $0x211] sm:$0xff] }
 0x326   : > { %v7711_v60 = vmax.f32 %v7693_v9, %v7695_v15  ;;  %16245 = vst.msk [vmem:[%s22972_s14 + $0x68] sm:$0xff] %vm3959_vm2, %v7712_v10  ;;  %v7698_v62 = vmax.f32 %v6041_v42, %v7682_v31  ;;  %v6027_v57 = vadd.f32 %v23826_v49, %v19204_v12  ;;  %v7668_v7 = vadd.f32 %v23826_v49, %v19438_v32  ;;  %v5987_v14 = vpop.f32.mrb[31].mxu0  ;;  %v7628_v27 = vpop.f32.mrb[31].mxu1  ;;  %v16521_v15 = vld [vmem:[%s21474_s27 + $0x1c9] sm:$0xff]  ;;  %v16794_v50 = vld [vmem:[%s25038_s2 + $0x4] sm:$0x7] }
 0x327   : > { %19610 = vmatmul.mubr.msk.f32.gmra.mrb[40].mxu0 %vm254_vm1, %v23481_v63  ;;  %19844 = vmatmul.mubr.msk.f32.gmra.mrb[40].mxu1 %vm254_vm1, %v23363_v46  ;;  %v7697_v52 = vmax.f32 %v6040_v58, %v7681_v8  ;;  %v6026_v9 = vadd.f32 %v23826_v49, %v5987_v14  ;;  %v7667_v47 = vadd.f32 %v23826_v49, %v7628_v27  ;;  %v24202_v10 = vld [vmem:[%s21474_s27 + $0x2a1] sm:$0xff]  ;;  %v24216_v31 = vld [vmem:[%s21474_s27 + $0x2a9] sm:$0xff]  ;;  %v24222_v58 = vld [vmem:[%s21474_s27 + $0x2b9] sm:$0xff] }
 0x328   : > { %16244 = vst.msk [vmem:[%s22972_s14 + $0x60] sm:$0xff] %vm3959_vm2, %v7711_v60  ;;  %19612 = vmatprep.mubr.msk.f32.mxu0 %vm254_vm1, %v23484_v11  ;;  %19846 = vmatprep.mubr.msk.f32.mxu1 %vm254_vm1, %v23369_v61  ;;  %v6043_v63 = vmax.f32 %v6027_v57, 0.0  ;;  %v7684_v33 = vmax.f32 %v7668_v7, 0.0  ;;  %v24213_v42 = vld [vmem:[%s21469_s24 + $0x2a8] sm:$0xff]  ;;  %v24219_v60 = vld [vmem:[%s21469_s24 + $0x2b8] sm:$0xff]  ;;  %v24233_v8 = vld [vmem:[%s21469_s24 + $0x2c0] sm:$0xff] }
 0x329   : > { %v6042_v2 = vmax.f32 %v6026_v9, 0.0  ;;  %v7683_v48 = vmax.f32 %v7667_v47, 0.0  ;;  %v24236_v12 = vld [vmem:[%s21474_s27 + $0x2c1] sm:$0xff]  ;;  %v24239_v32 = vld [vmem:[%s21469_s24 + $0x2d0] sm:$0xff]  ;;  %v24253_v57 = vld [vmem:[%s21469_s24 + $0x2d8] sm:$0xff] }
 0x32a   : > { %v7700_v3 = vmax.f32 %v6043_v63, %v7684_v33  ;;  %v24256_v7 = vld [vmem:[%s21474_s27 + $0x2d9] sm:$0xff]  ;;  %v24259_v14 = vld [vmem:[%s21469_s24 + $0x2e8] sm:$0xff]  ;;  %v24276_v9 = vld [vmem:[%s21474_s27 + $0x2f1] sm:$0xff] }
 0x32b   : > { %19613 = vmatmul.mubr.msk.f32.gmra.mrb[42].mxu0 %vm254_vm1, %v23495_v0  ;;  %19847 = vmatmul.mubr.msk.f32.gmra.mrb[42].mxu1 %vm254_vm1, %v23383_v54  ;;  %v7699_v11 = vmax.f32 %v6042_v2, %v7683_v48  ;;  %v24262_v27 = vld [vmem:[%s21474_s27 + $0x2e9] sm:$0xff]  ;;  %v24332_v63 = vld [vmem:[%s21474_s27 + $0x2a0] sm:$0xff]  ;;  %v24346_v2 = vld [vmem:[%s21474_s27 + $0x2b8] sm:$0xff] }
 0x32c   : > { %19615 = vmatprep.mubr.msk.f32.mxu0 %vm254_vm1, %v23668_v16  ;;  %19849 = vmatprep.mubr.msk.f32.mxu1 %vm254_vm1, %v23671_v20  ;;  %v7717_v49 = vmax.f32 %v7698_v62, %v7700_v3  ;;  %v24242_v62 = vld [vmem:[%s21474_s27 + $0x2d1] sm:$0xff]  ;;  %v16879_v47 = vld [vmem:[%s25038_s2 + $0xc] sm:$0x7]  ;;  %v24357_v48 = vld [vmem:[%s21474_s27 + $0x2c0] sm:$0xff] }
 0x32d   : > { %v7716_v0 = vmax.f32 %v7697_v52, %v7699_v11  ;;  %v24273_v52 = vld [vmem:[%s21469_s24 + $0x2f0] sm:$0xff]  ;;  %v24343_v33 = vld [vmem:[%s21474_s27 + $0x2a8] sm:$0xff]  ;;  %v24371_v11 = vld [vmem:[%s21474_s27 + $0x2d8] sm:$0xff] }
 0x32e   : > { %16247 = vst.msk [vmem:[%s22972_s14 + $0x78] sm:$0xff] %vm3959_vm2, %v7717_v49  ;;  %v24360_v3 = vld [vmem:[%s21474_s27 + $0x2d0] sm:$0xff]  ;;  %v24374_v49 = vld [vmem:[%s21474_s27 + $0x2e8] sm:$0xff] }
 0x32f   : > { %19616 = vmatmul.mubr.msk.f32.gmra.mrb[44].mxu0 %vm254_vm1, %v23682_v29  ;;  %19850 = vmatmul.mubr.msk.f32.gmra.mrb[44].mxu1 %vm254_vm1, %v23685_v45  ;;  %16246 = vst.msk [vmem:[%s22972_s14 + $0x70] sm:$0xff] %vm3959_vm2, %v7716_v0  ;;  %v24385_v0 = vld [vmem:[%s21474_s27 + $0x2f0] sm:$0xff] }
 0x330   : > { %19618 = vmatprep.mubr.msk.f32.mxu0 %vm254_vm1, %v23964_v4  ;;  %19852 = vmatprep.mubr.msk.f32.mxu1 %vm254_vm1, %v23967_v40 }
 0x333   : > { %19619 = vmatmul.mubr.msk.f32.gmra.mrb[46].mxu0 %vm254_vm1, %v23982_v36  ;;  %19853 = vmatmul.mubr.msk.f32.gmra.mrb[46].mxu1 %vm254_vm1, %v23985_v38 }
 0x334   : > { %19623 = vmatprep.mubr.msk.f32.mxu0 %vm254_vm1, %v23265_v5  ;;  %19857 = vmatprep.mubr.msk.f32.mxu1 %vm254_vm1, %v16519_v53  ;;  %v16522_v5 = vld [vmem:[%s21474_s27 + $0x1d1] sm:$0xff] }
 0x337   : > { %19624 = vmatmul.mubr.msk.f32.vlgmr.msra.gmra.mrb[32].mxu0 %vm254_vm1, %v23283_v35  ;;  %19858 = vmatmul.mubr.msk.f32.vlgmr.msra.gmra.mrb[32].mxu1 %vm254_vm1, %v16520_v13  ;;  %v16523_v35 = vld [vmem:[%s21474_s27 + $0x1e1] sm:$0xff] }
 0x338   : > { %19648 = vmatpush3.msk.msra.mxu0 %vm303_vm0, %v23881_v26  ;;  %19882 = vmatpush3.msk.msra.mxu1 %vm303_vm0, %v23881_v26  ;;  %v16525_v26 = vld [vmem:[%s21474_s27 + $0x1f9] sm:$0xff] }
 0x339   : > { %19626 = vmatprep.mubr.msk.f32.mxu0 %vm254_vm1, %v23289_v37  ;;  %19860 = vmatprep.mubr.msk.f32.mxu1 %vm254_vm1, %v16521_v15  ;;  %v16524_v37 = vld [vmem:[%s21474_s27 + $0x1e9] sm:$0xff] }
 0x33a   : > { %19907 = vmatprep.subr.msk.mxu0 %vm303_vm0, %v16794_v50  ;;  %20141 = vmatprep.subr.msk.mxu1 %vm303_vm0, %v16794_v50 }
 0x33b   : > { %19627 = vmatmul.mubr.msk.f32.gmra.mrb[34].mxu0 %vm254_vm1, %v23303_v6  ;;  %19861 = vmatmul.mubr.msk.f32.gmra.mrb[34].mxu1 %vm254_vm1, %v16522_v5  ;;  %v16526_v6 = vld [vmem:[%s21474_s27 + $0x201] sm:$0xff] }
 0x33c   : > { %19629 = vmatprep.mubr.msk.f32.mxu0 %vm254_vm1, %v23309_v39  ;;  %19863 = vmatprep.mubr.msk.f32.mxu1 %vm254_vm1, %v16523_v35  ;;  %v16528_v39 = vld [vmem:[%s21474_s27 + $0x219] sm:$0xff] }
 0x33f   : > { %19630 = vmatmul.mubr.msk.f32.gmra.mrb[36].mxu0 %vm254_vm1, %v23323_v56  ;;  %19864 = vmatmul.mubr.msk.f32.gmra.mrb[36].mxu1 %vm254_vm1, %v16524_v37  ;;  %v16529_v56 = vld [vmem:[%s21474_s27 + $0x229] sm:$0xff] }
 0x340   : > { %19632 = vmatprep.mubr.msk.f32.mxu0 %vm254_vm1, %v23329_v18  ;;  %19866 = vmatprep.mubr.msk.f32.mxu1 %vm254_vm1, %v16525_v26  ;;  %v16530_v18 = vld [vmem:[%s21474_s27 + $0x231] sm:$0xff] }
 0x343   : > { %19633 = vmatmul.mubr.msk.f32.gmra.mrb[38].mxu0 %vm254_vm1, %v23343_v30  ;;  %19867 = vmatmul.mubr.msk.f32.gmra.mrb[38].mxu1 %vm254_vm1, %v16526_v6  ;;  %v24053_v30 = vld [vmem:[%s21474_s27 + $0x259] sm:$0xff] }
 0x344   : > { %19635 = vmatprep.mubr.msk.f32.mxu0 %vm254_vm1, %v23349_v34  ;;  %19869 = vmatprep.mubr.msk.f32.mxu1 %vm254_vm1, %v16527_v44  ;;  %v24064_v34 = vld [vmem:[%s21474_s27 + $0x261] sm:$0xff] }
 0x347   : > { %19636 = vmatmul.mubr.msk.f32.gmra.mrb[40].mxu0 %vm254_vm1, %v23363_v46  ;;  %19870 = vmatmul.mubr.msk.f32.gmra.mrb[40].mxu1 %vm254_vm1, %v16528_v39  ;;  %v11482_v46 = vld [vmem:[%s25038_s2] sm:$0x7] }
 0x348   : > { %19638 = vmatprep.mubr.msk.f32.mxu0 %vm254_vm1, %v23369_v61  ;;  %19872 = vmatprep.mubr.msk.f32.mxu1 %vm254_vm1, %v16529_v56  ;;  %v25057_v61 = vld [vmem:[#allocation2_spill] sm:$0xff] }
 0x34b   : > { %19639 = vmatmul.mubr.msk.f32.gmra.mrb[42].mxu0 %vm254_vm1, %v23383_v54  ;;  %19873 = vmatmul.mubr.msk.f32.gmra.mrb[42].mxu1 %vm254_vm1, %v16530_v18  ;;  %v24118_v54 = vld [vmem:[%s21469_s24 + $0x259] sm:$0xff] }
 0x34c   : > { %19641 = vmatprep.mubr.msk.f32.mxu0 %vm254_vm1, %v23671_v20  ;;  %19875 = vmatprep.mubr.msk.f32.mxu1 %vm254_vm1, %v23751_v55 }
 0x34f   : > { %19642 = vmatmul.mubr.msk.f32.gmra.mrb[44].mxu0 %vm254_vm1, %v23685_v45  ;;  %19876 = vmatmul.mubr.msk.f32.gmra.mrb[44].mxu1 %vm254_vm1, %v23762_v22 }
 0x350   : > { %19644 = vmatprep.mubr.msk.f32.mxu0 %vm254_vm1, %v23967_v40  ;;  %19878 = vmatprep.mubr.msk.f32.mxu1 %vm254_vm1, %v24053_v30 }
 0x353   : > { %19645 = vmatmul.mubr.msk.f32.gmra.mrb[46].mxu0 %vm254_vm1, %v23985_v38  ;;  %19879 = vmatmul.mubr.msk.f32.gmra.mrb[46].mxu1 %vm254_vm1, %v24064_v34 }
 0x354   : > { %19649 = vmatprep.mubr.msk.f32.mxu0 %vm254_vm1, %v16519_v53  ;;  %19883 = vmatprep.mubr.msk.f32.mxu1 %vm254_vm1, %v23519_v41  ;;  %v25058_v41 = vld [vmem:[#allocation3_spill] sm:$0xff]  ;;  %v16913_v53 = vld [vmem:[%s25038_s2 + $0x10] sm:$0x7] }
 0x357   : > { %19650 = vmatmul.mubr.msk.f32.vlgmr.msra.gmra.mrb[32].mxu0 %vm254_vm1, %v16520_v13  ;;  %19884 = vmatmul.mubr.msk.f32.vlgmr.msra.gmra.mrb[32].mxu1 %vm254_vm1, %v23532_v43  ;;  %v24129_v43 = vld [vmem:[%s21469_s24 + $0x261] sm:$0xff]  ;;  %v24425_v13 = vld [vmem:[%s21469_s24 + $0x289] sm:$0xff] }
 0x358   : > { %19908 = vmatpush3.msk.msra.mxu0 %vm303_vm0, %v16794_v50  ;;  %20142 = vmatpush3.msk.msra.mxu1 %vm303_vm0, %v16794_v50  ;;  %v24439_v50 = vld [vmem:[%s21469_s24 + $0x2a1] sm:$0xff] }
 0x359   : > { %19652 = vmatprep.mubr.msk.f32.mxu0 %vm254_vm1, %v16521_v15  ;;  %19886 = vmatprep.mubr.msk.f32.mxu1 %vm254_vm1, %v23535_v28  ;;  %v24146_v28 = vld [vmem:[%s25038_s2 + $0x8] sm:$0x7]  ;;  %v24436_v15 = vld [vmem:[%s21469_s24 + $0x291] sm:$0xff] }
 0x35a   : > { %19933 = vmatprep.subr.msk.mxu0 %vm303_vm0, %v11482_v46  ;;  %20167 = vmatprep.subr.msk.mxu1 %vm303_vm0, %v11482_v46 }
 0x35b   : > { %19653 = vmatmul.mubr.msk.f32.gmra.mrb[34].mxu0 %vm254_vm1, %v16522_v5  ;;  %19887 = vmatmul.mubr.msk.f32.gmra.mrb[34].mxu1 %vm254_vm1, %v23546_v59  ;;  %v24155_v59 = vld [vmem:[%s21469_s24 + $0x270] sm:$0xff] }
 0x35c   : > { %19655 = vmatprep.mubr.msk.f32.mxu0 %vm254_vm1, %v16523_v35  ;;  %19889 = vmatprep.mubr.msk.f32.mxu1 %vm254_vm1, %v23549_v24  ;;  %v24158_v24 = vld [vmem:[%s21474_s27 + $0x271] sm:$0xff]  ;;  %v24450_v5 = vld [vmem:[%s21469_s24 + $0x2a9] sm:$0xff]  ;;  %v24453_v35 = vld [vmem:[%s21469_s24 + $0x2b9] sm:$0xff] }
 0x35f   : > { %19656 = vmatmul.mubr.msk.f32.gmra.mrb[36].mxu0 %vm254_vm1, %v16524_v37  ;;  %19890 = vmatmul.mubr.msk.f32.gmra.mrb[36].mxu1 %vm254_vm1, %v23560_v17  ;;  %v24173_v17 = vld [vmem:[%s21469_s24 + $0x278] sm:$0xff]  ;;  %v24464_v37 = vld [vmem:[%s21469_s24 + $0x2c1] sm:$0xff] }
 0x360   : > { %19658 = vmatprep.mubr.msk.f32.mxu0 %vm254_vm1, %v16525_v26  ;;  %19892 = vmatprep.mubr.msk.f32.mxu1 %vm254_vm1, %v23563_v19  ;;  %v24176_v19 = vld [vmem:[%s21474_s27 + $0x279] sm:$0xff]  ;;  %v24467_v26 = vld [vmem:[%s21469_s24 + $0x2d1] sm:$0xff] }
 0x363   : > { %19659 = vmatmul.mubr.msk.f32.gmra.mrb[38].mxu0 %vm254_vm1, %v16526_v6  ;;  %19893 = vmatmul.mubr.msk.f32.gmra.mrb[38].mxu1 %vm254_vm1, %v23574_v21  ;;  %v24179_v21 = vld [vmem:[%s21469_s24 + $0x288] sm:$0xff]  ;;  %v24478_v6 = vld [vmem:[%s21469_s24 + $0x2d9] sm:$0xff] }
 0x364   : > { %19661 = vmatprep.mubr.msk.f32.mxu0 %vm254_vm1, %v16527_v44  ;;  %19895 = vmatprep.mubr.msk.f32.mxu1 %vm254_vm1, %v23577_v1  ;;  %v24182_v1 = vld [vmem:[%s21474_s27 + $0x289] sm:$0xff] }
 0x365   : > { %v24481_v44 = vld [vmem:[%s21469_s24 + $0x2e9] sm:$0xff] }
 0x367   : > { %19662 = vmatmul.mubr.msk.f32.gmra.mrb[40].mxu0 %vm254_vm1, %v16528_v39  ;;  %19896 = vmatmul.mubr.msk.f32.gmra.mrb[40].mxu1 %vm254_vm1, %v23588_v23  ;;  %v24193_v23 = vld [vmem:[%s21469_s24 + $0x290] sm:$0xff] }
 0x368   : > { %19664 = vmatprep.mubr.msk.f32.mxu0 %vm254_vm1, %v16529_v56  ;;  %19898 = vmatprep.mubr.msk.f32.mxu1 %vm254_vm1, %v23591_v51  ;;  %v24196_v51 = vld [vmem:[%s21474_s27 + $0x291] sm:$0xff] }
 0x369   : > { %v24492_v39 = vld [vmem:[%s21469_s24 + $0x2f1] sm:$0xff] }
 0x36a   : > { %v16947_v56 = vld [vmem:[%s25038_s2 + $0x14] sm:$0x7] }
 0x36b   : > { %19665 = vmatmul.mubr.msk.f32.gmra.mrb[42].mxu0 %vm254_vm1, %v16530_v18  ;;  %19899 = vmatmul.mubr.msk.f32.gmra.mrb[42].mxu1 %vm254_vm1, %v23602_v25  ;;  %v24199_v25 = vld [vmem:[%s21469_s24 + $0x2a0] sm:$0xff]  ;;  %v24572_v18 = vld [vmem:[%s21474_s27 + $0x308] sm:$0xff] }
 0x36c   : > { %19667 = vmatprep.mubr.msk.f32.mxu0 %vm254_vm1, %v23751_v55  ;;  %19901 = vmatprep.mubr.msk.f32.mxu1 %vm254_vm1, %v25057_v61 }
 0x36f   : > { %19668 = vmatmul.mubr.msk.f32.gmra.mrb[44].mxu0 %vm254_vm1, %v23762_v22  ;;  %19902 = vmatmul.mubr.msk.f32.gmra.mrb[44].mxu1 %vm254_vm1, %v25058_v41 }
 0x370   : > { %19670 = vmatprep.mubr.msk.f32.mxu0 %vm254_vm1, %v24053_v30  ;;  %19904 = vmatprep.mubr.msk.f32.mxu1 %vm254_vm1, %v24118_v54 }
 0x373   : > { %19671 = vmatmul.mubr.msk.f32.gmra.mrb[46].mxu0 %vm254_vm1, %v24064_v34  ;;  %19905 = vmatmul.mubr.msk.f32.gmra.mrb[46].mxu1 %vm254_vm1, %v24129_v43 }
 0x374   : > { %19909 = vmatprep.mubr.msk.f32.mxu0 %vm254_vm1, %v23671_v20  ;;  %20143 = vmatprep.mubr.msk.f32.mxu1 %vm254_vm1, %v23751_v55 }
 0x377   : > { %19910 = vmatmul.mubr.msk.f32.vlgmr.msra.gmra.mrb[48].mxu0 %vm254_vm1, %v23685_v45  ;;  %20144 = vmatmul.mubr.msk.f32.vlgmr.msra.gmra.mrb[48].mxu1 %vm254_vm1, %v23762_v22 }
 0x378   : > { %19934 = vmatpush3.msk.msra.mxu0 %vm303_vm0, %v11482_v46  ;;  %20168 = vmatpush3.msk.msra.mxu1 %vm303_vm0, %v11482_v46  ;;  %v24575_v46 = vld [vmem:[%s21469_s24 + $0x308] sm:$0xff] }
 0x379   : > { %19912 = vmatprep.mubr.msk.f32.mxu0 %vm254_vm1, %v23967_v40  ;;  %20146 = vmatprep.mubr.msk.f32.mxu1 %vm254_vm1, %v24053_v30 }
 0x37a   : > { %19959 = vmatprep.subr.msk.mxu0 %vm303_vm0, %v24146_v28  ;;  %20193 = vmatprep.subr.msk.mxu1 %vm303_vm0, %v24146_v28 }
 0x37b   : > { %19913 = vmatmul.mubr.msk.f32.gmra.mrb[50].mxu0 %vm254_vm1, %v23985_v38  ;;  %20147 = vmatmul.mubr.msk.f32.gmra.mrb[50].mxu1 %vm254_vm1, %v24064_v34 }
 0x37c   : > { %19915 = vmatprep.mubr.msk.f32.mxu0 %vm254_vm1, %v24155_v59  ;;  %20149 = vmatprep.mubr.msk.f32.mxu1 %vm254_vm1, %v24158_v24 }
 0x37f   : > { %19916 = vmatmul.mubr.msk.f32.gmra.mrb[52].mxu0 %vm254_vm1, %v24173_v17  ;;  %20150 = vmatmul.mubr.msk.f32.gmra.mrb[52].mxu1 %vm254_vm1, %v24176_v19 }
 0x380   : > { %19918 = vmatprep.mubr.msk.f32.mxu0 %vm254_vm1, %v24179_v21  ;;  %20152 = vmatprep.mubr.msk.f32.mxu1 %vm254_vm1, %v24182_v1 }
 0x383   : > { %19919 = vmatmul.mubr.msk.f32.gmra.mrb[54].mxu0 %vm254_vm1, %v24193_v23  ;;  %20153 = vmatmul.mubr.msk.f32.gmra.mrb[54].mxu1 %vm254_vm1, %v24196_v51 }
 0x384   : > { %19921 = vmatprep.mubr.msk.f32.mxu0 %vm254_vm1, %v24199_v25  ;;  %20155 = vmatprep.mubr.msk.f32.mxu1 %vm254_vm1, %v24202_v10 }
 0x387   : > { %19922 = vmatmul.mubr.msk.f32.gmra.mrb[56].mxu0 %vm254_vm1, %v24213_v42  ;;  %20156 = vmatmul.mubr.msk.f32.gmra.mrb[56].mxu1 %vm254_vm1, %v24216_v31 }
 0x388   : > { %19924 = vmatprep.mubr.msk.f32.mxu0 %vm254_vm1, %v24219_v60  ;;  %20158 = vmatprep.mubr.msk.f32.mxu1 %vm254_vm1, %v24222_v58 }
 0x38b   : > { %19925 = vmatmul.mubr.msk.f32.gmra.mrb[58].mxu0 %vm254_vm1, %v24233_v8  ;;  %20159 = vmatmul.mubr.msk.f32.gmra.mrb[58].mxu1 %vm254_vm1, %v24236_v12 }
 0x38c   : > { %19927 = vmatprep.mubr.msk.f32.mxu0 %vm254_vm1, %v24239_v32  ;;  %20161 = vmatprep.mubr.msk.f32.mxu1 %vm254_vm1, %v24242_v62 }
 0x38f   : > { %19928 = vmatmul.mubr.msk.f32.gmra.mrb[60].mxu0 %vm254_vm1, %v24253_v57  ;;  %20162 = vmatmul.mubr.msk.f32.gmra.mrb[60].mxu1 %vm254_vm1, %v24256_v7 }
 0x390   : > { %19930 = vmatprep.mubr.msk.f32.mxu0 %vm254_vm1, %v24259_v14  ;;  %20164 = vmatprep.mubr.msk.f32.mxu1 %vm254_vm1, %v24262_v27 }
 0x393   : > { %19931 = vmatmul.mubr.msk.f32.gmra.mrb[62].mxu0 %vm254_vm1, %v24273_v52  ;;  %20165 = vmatmul.mubr.msk.f32.gmra.mrb[62].mxu1 %vm254_vm1, %v24276_v9 }
 0x394   : > { %19935 = vmatprep.mubr.msk.f32.mxu0 %vm254_vm1, %v23668_v16  ;;  %20169 = vmatprep.mubr.msk.f32.mxu1 %vm254_vm1, %v23671_v20  ;;  %v24302_v16 = vld [vmem:[%s21474_s27 + $0x270] sm:$0xff]  ;;  %v24315_v20 = vld [vmem:[%s21474_s27 + $0x278] sm:$0xff] }
 0x397   : > { %19936 = vmatmul.mubr.msk.f32.vlgmr.msra.gmra.mrb[48].mxu0 %vm254_vm1, %v23682_v29  ;;  %20170 = vmatmul.mubr.msk.f32.vlgmr.msra.gmra.mrb[48].mxu1 %vm254_vm1, %v23685_v45  ;;  %v24318_v29 = vld [vmem:[%s21474_s27 + $0x288] sm:$0xff]  ;;  %v24329_v45 = vld [vmem:[%s21474_s27 + $0x290] sm:$0xff] }
 0x398   : > { %19960 = vmatpush3.msk.msra.mxu0 %vm303_vm0, %v24146_v28  ;;  %20194 = vmatpush3.msk.msra.mxu1 %vm303_vm0, %v24146_v28 }
 0x399   : > { %19938 = vmatprep.mubr.msk.f32.mxu0 %vm254_vm1, %v23964_v4  ;;  %20172 = vmatprep.mubr.msk.f32.mxu1 %vm254_vm1, %v23967_v40 }
 0x39a   : > { %19985 = vmatprep.subr.msk.mxu0 %vm303_vm0, %v16879_v47  ;;  %20219 = vmatprep.subr.msk.mxu1 %vm303_vm0, %v16879_v47 }
 0x39b   : > { %19939 = vmatmul.mubr.msk.f32.gmra.mrb[50].mxu0 %vm254_vm1, %v23982_v36  ;;  %20173 = vmatmul.mubr.msk.f32.gmra.mrb[50].mxu1 %vm254_vm1, %v23985_v38 }
 0x39c   : > { %19941 = vmatprep.mubr.msk.f32.mxu0 %vm254_vm1, %v24302_v16  ;;  %20175 = vmatprep.mubr.msk.f32.mxu1 %vm254_vm1, %v24155_v59 }
 0x39f   : > { %19942 = vmatmul.mubr.msk.f32.gmra.mrb[52].mxu0 %vm254_vm1, %v24315_v20  ;;  %20176 = vmatmul.mubr.msk.f32.gmra.mrb[52].mxu1 %vm254_vm1, %v24173_v17 }
 0x3a0   : > { %19944 = vmatprep.mubr.msk.f32.mxu0 %vm254_vm1, %v24318_v29  ;;  %20178 = vmatprep.mubr.msk.f32.mxu1 %vm254_vm1, %v24179_v21 }
 0x3a3   : > { %19945 = vmatmul.mubr.msk.f32.gmra.mrb[54].mxu0 %vm254_vm1, %v24329_v45  ;;  %20179 = vmatmul.mubr.msk.f32.gmra.mrb[54].mxu1 %vm254_vm1, %v24193_v23 }
 0x3a4   : > { %19947 = vmatprep.mubr.msk.f32.mxu0 %vm254_vm1, %v24332_v63  ;;  %20181 = vmatprep.mubr.msk.f32.mxu1 %vm254_vm1, %v24199_v25 }
 0x3a7   : > { %19948 = vmatmul.mubr.msk.f32.gmra.mrb[56].mxu0 %vm254_vm1, %v24343_v33  ;;  %20182 = vmatmul.mubr.msk.f32.gmra.mrb[56].mxu1 %vm254_vm1, %v24213_v42 }
 0x3a8   : > { %19950 = vmatprep.mubr.msk.f32.mxu0 %vm254_vm1, %v24346_v2  ;;  %20184 = vmatprep.mubr.msk.f32.mxu1 %vm254_vm1, %v24219_v60 }
 0x3ab   : > { %19951 = vmatmul.mubr.msk.f32.gmra.mrb[58].mxu0 %vm254_vm1, %v24357_v48  ;;  %20185 = vmatmul.mubr.msk.f32.gmra.mrb[58].mxu1 %vm254_vm1, %v24233_v8 }
 0x3ac   : > { %19953 = vmatprep.mubr.msk.f32.mxu0 %vm254_vm1, %v24360_v3  ;;  %20187 = vmatprep.mubr.msk.f32.mxu1 %vm254_vm1, %v24239_v32 }
 0x3af   : > { %19954 = vmatmul.mubr.msk.f32.gmra.mrb[60].mxu0 %vm254_vm1, %v24371_v11  ;;  %20188 = vmatmul.mubr.msk.f32.gmra.mrb[60].mxu1 %vm254_vm1, %v24253_v57 }
 0x3b0   : > { %19956 = vmatprep.mubr.msk.f32.mxu0 %vm254_vm1, %v24374_v49  ;;  %20190 = vmatprep.mubr.msk.f32.mxu1 %vm254_vm1, %v24259_v14 }
 0x3b3   : > { %19957 = vmatmul.mubr.msk.f32.gmra.mrb[62].mxu0 %vm254_vm1, %v24385_v0  ;;  %20191 = vmatmul.mubr.msk.f32.gmra.mrb[62].mxu1 %vm254_vm1, %v24273_v52 }
 0x3b4   : > { %19961 = vmatprep.mubr.msk.f32.mxu0 %vm254_vm1, %v23751_v55  ;;  %20195 = vmatprep.mubr.msk.f32.mxu1 %vm254_vm1, %v25057_v61  ;;  %v24409_v55 = vld [vmem:[%s21469_s24 + $0x271] sm:$0xff] }
 0x3b5   : > { %v16981_v61 = vld [vmem:[%s25038_s2 + $0x18] sm:$0x7] }
 0x3b7   : > { %19962 = vmatmul.mubr.msk.f32.vlgmr.msra.gmra.mrb[48].mxu0 %vm254_vm1, %v23762_v22  ;;  %20196 = vmatmul.mubr.msk.f32.vlgmr.msra.gmra.mrb[48].mxu1 %vm254_vm1, %v25058_v41  ;;  %v24422_v22 = vld [vmem:[%s21469_s24 + $0x279] sm:$0xff] }
 0x3b8   : > { %19986 = vmatpush3.msk.msra.mxu0 %vm303_vm0, %v16879_v47  ;;  %20220 = vmatpush3.msk.msra.mxu1 %vm303_vm0, %v16879_v47  ;;  %v24669_v41 = vld [vmem:[%s25038_s2 + $0x1c] sm:$0x7] }
 0x3b9   : > { %19964 = vmatprep.mubr.msk.f32.mxu0 %vm254_vm1, %v24053_v30  ;;  %20198 = vmatprep.mubr.msk.f32.mxu1 %vm254_vm1, %v24118_v54 }
 0x3ba   : > { %20011 = vmatprep.subr.msk.mxu0 %vm303_vm0, %v16913_v53  ;;  %20245 = vmatprep.subr.msk.mxu1 %vm303_vm0, %v16913_v53 }
 0x3bb   : > { %19965 = vmatmul.mubr.msk.f32.gmra.mrb[50].mxu0 %vm254_vm1, %v24064_v34  ;;  %20199 = vmatmul.mubr.msk.f32.gmra.mrb[50].mxu1 %vm254_vm1, %v24129_v43 }
 0x3bc   : > { %19967 = vmatprep.mubr.msk.f32.mxu0 %vm254_vm1, %v24158_v24  ;;  %20201 = vmatprep.mubr.msk.f32.mxu1 %vm254_vm1, %v24409_v55 }
 0x3bf   : > { %19968 = vmatmul.mubr.msk.f32.gmra.mrb[52].mxu0 %vm254_vm1, %v24176_v19  ;;  %20202 = vmatmul.mubr.msk.f32.gmra.mrb[52].mxu1 %vm254_vm1, %v24422_v22 }
 0x3c0   : > { %19970 = vmatprep.mubr.msk.f32.mxu0 %vm254_vm1, %v24182_v1  ;;  %20204 = vmatprep.mubr.msk.f32.mxu1 %vm254_vm1, %v24425_v13 }
 0x3c3   : > { %19971 = vmatmul.mubr.msk.f32.gmra.mrb[54].mxu0 %vm254_vm1, %v24196_v51  ;;  %20205 = vmatmul.mubr.msk.f32.gmra.mrb[54].mxu1 %vm254_vm1, %v24436_v15 }
 0x3c4   : > { %19973 = vmatprep.mubr.msk.f32.mxu0 %vm254_vm1, %v24202_v10  ;;  %20207 = vmatprep.mubr.msk.f32.mxu1 %vm254_vm1, %v24439_v50 }
 0x3c7   : > { %19974 = vmatmul.mubr.msk.f32.gmra.mrb[56].mxu0 %vm254_vm1, %v24216_v31  ;;  %20208 = vmatmul.mubr.msk.f32.gmra.mrb[56].mxu1 %vm254_vm1, %v24450_v5 }
 0x3c8   : > { %19976 = vmatprep.mubr.msk.f32.mxu0 %vm254_vm1, %v24222_v58  ;;  %20210 = vmatprep.mubr.msk.f32.mxu1 %vm254_vm1, %v24453_v35 }
 0x3cb   : > { %19977 = vmatmul.mubr.msk.f32.gmra.mrb[58].mxu0 %vm254_vm1, %v24236_v12  ;;  %20211 = vmatmul.mubr.msk.f32.gmra.mrb[58].mxu1 %vm254_vm1, %v24464_v37 }
 0x3cc   : > { %19979 = vmatprep.mubr.msk.f32.mxu0 %vm254_vm1, %v24242_v62  ;;  %20213 = vmatprep.mubr.msk.f32.mxu1 %vm254_vm1, %v24467_v26 }
 0x3cf   : > { %19980 = vmatmul.mubr.msk.f32.gmra.mrb[60].mxu0 %vm254_vm1, %v24256_v7  ;;  %20214 = vmatmul.mubr.msk.f32.gmra.mrb[60].mxu1 %vm254_vm1, %v24478_v6 }
 0x3d0   : > { %19982 = vmatprep.mubr.msk.f32.mxu0 %vm254_vm1, %v24262_v27  ;;  %20216 = vmatprep.mubr.msk.f32.mxu1 %vm254_vm1, %v24481_v44 }
 0x3d3   : > { %19983 = vmatmul.mubr.msk.f32.gmra.mrb[62].mxu0 %vm254_vm1, %v24276_v9  ;;  %20217 = vmatmul.mubr.msk.f32.gmra.mrb[62].mxu1 %vm254_vm1, %v24492_v39 }
 0x3d4   : > { %19987 = vmatprep.mubr.msk.f32.mxu0 %vm254_vm1, %v23964_v4  ;;  %20221 = vmatprep.mubr.msk.f32.mxu1 %vm254_vm1, %v23967_v40  ;;  %v24558_v4 = vld [vmem:[%s21474_s27 + $0x300] sm:$0xff] }
 0x3d7   : > { %19988 = vmatmul.mubr.msk.f32.vlgmr.msra.gmra.mrb[48].mxu0 %vm254_vm1, %v23982_v36  ;;  %20222 = vmatmul.mubr.msk.f32.vlgmr.msra.gmra.mrb[48].mxu1 %vm254_vm1, %v23985_v38  ;;  %v24561_v36 = vld [vmem:[%s21469_s24 + $0x300] sm:$0xff] }
 0x3d8   : > { %20012 = vmatpush3.msk.msra.mxu0 %vm303_vm0, %v16913_v53  ;;  %20246 = vmatpush3.msk.msra.mxu1 %vm303_vm0, %v16913_v53 }
 0x3d9   : > { %19990 = vmatprep.mubr.msk.f32.mxu0 %vm254_vm1, %v24302_v16  ;;  %20224 = vmatprep.mubr.msk.f32.mxu1 %vm254_vm1, %v24155_v59 }
 0x3da   : > { %20037 = vmatprep.subr.msk.mxu0 %vm303_vm0, %v16947_v56  ;;  %20271 = vmatprep.subr.msk.mxu1 %vm303_vm0, %v16947_v56 }
 0x3db   : > { %19991 = vmatmul.mubr.msk.f32.gmra.mrb[50].mxu0 %vm254_vm1, %v24315_v20  ;;  %20225 = vmatmul.mubr.msk.f32.gmra.mrb[50].mxu1 %vm254_vm1, %v24173_v17 }
 0x3dc   : > { %19993 = vmatprep.mubr.msk.f32.mxu0 %vm254_vm1, %v24318_v29  ;;  %20227 = vmatprep.mubr.msk.f32.mxu1 %vm254_vm1, %v24179_v21 }
 0x3df   : > { %19994 = vmatmul.mubr.msk.f32.gmra.mrb[52].mxu0 %vm254_vm1, %v24329_v45  ;;  %20228 = vmatmul.mubr.msk.f32.gmra.mrb[52].mxu1 %vm254_vm1, %v24193_v23 }
 0x3e0   : > { %19996 = vmatprep.mubr.msk.f32.mxu0 %vm254_vm1, %v24332_v63  ;;  %20230 = vmatprep.mubr.msk.f32.mxu1 %vm254_vm1, %v24199_v25 }
 0x3e3   : > { %19997 = vmatmul.mubr.msk.f32.gmra.mrb[54].mxu0 %vm254_vm1, %v24343_v33  ;;  %20231 = vmatmul.mubr.msk.f32.gmra.mrb[54].mxu1 %vm254_vm1, %v24213_v42 }
 0x3e4   : > { %19999 = vmatprep.mubr.msk.f32.mxu0 %vm254_vm1, %v24346_v2  ;;  %20233 = vmatprep.mubr.msk.f32.mxu1 %vm254_vm1, %v24219_v60 }
 0x3e7   : > { %20000 = vmatmul.mubr.msk.f32.gmra.mrb[56].mxu0 %vm254_vm1, %v24357_v48  ;;  %20234 = vmatmul.mubr.msk.f32.gmra.mrb[56].mxu1 %vm254_vm1, %v24233_v8 }
 0x3e8   : > { %20002 = vmatprep.mubr.msk.f32.mxu0 %vm254_vm1, %v24360_v3  ;;  %20236 = vmatprep.mubr.msk.f32.mxu1 %vm254_vm1, %v24239_v32 }
 0x3eb   : > { %20003 = vmatmul.mubr.msk.f32.gmra.mrb[58].mxu0 %vm254_vm1, %v24371_v11  ;;  %20237 = vmatmul.mubr.msk.f32.gmra.mrb[58].mxu1 %vm254_vm1, %v24253_v57 }
 0x3ec   : > { %20005 = vmatprep.mubr.msk.f32.mxu0 %vm254_vm1, %v24374_v49  ;;  %20239 = vmatprep.mubr.msk.f32.mxu1 %vm254_vm1, %v24259_v14 }
 0x3ef   : > { %20006 = vmatmul.mubr.msk.f32.gmra.mrb[60].mxu0 %vm254_vm1, %v24385_v0  ;;  %20240 = vmatmul.mubr.msk.f32.gmra.mrb[60].mxu1 %vm254_vm1, %v24273_v52 }
 0x3f0   : > { %20008 = vmatprep.mubr.msk.f32.mxu0 %vm254_vm1, %v24558_v4  ;;  %20242 = vmatprep.mubr.msk.f32.mxu1 %vm254_vm1, %v24561_v36 }
 0x3f3   : > { %20009 = vmatmul.mubr.msk.f32.gmra.mrb[62].mxu0 %vm254_vm1, %v24572_v18  ;;  %20243 = vmatmul.mubr.msk.f32.gmra.mrb[62].mxu1 %vm254_vm1, %v24575_v46 }
 0x3f4   : > { %20013 = vmatprep.mubr.msk.f32.mxu0 %vm254_vm1, %v23967_v40  ;;  %20247 = vmatprep.mubr.msk.f32.mxu1 %vm254_vm1, %v24053_v30  ;;  %v24641_v40 = vld [vmem:[%s21474_s27 + $0x301] sm:$0xff] }
 0x3f7   : > { %20014 = vmatmul.mubr.msk.f32.vlgmr.msra.gmra.mrb[48].mxu0 %vm254_vm1, %v23985_v38  ;;  %20248 = vmatmul.mubr.msk.f32.vlgmr.msra.gmra.mrb[48].mxu1 %vm254_vm1, %v24064_v34  ;;  %v24652_v38 = vld [vmem:[%s21474_s27 + $0x309] sm:$0xff] }
 0x3f8   : > { %20038 = vmatpush3.msk.msra.mxu0 %vm303_vm0, %v16947_v56  ;;  %20272 = vmatpush3.msk.msra.mxu1 %vm303_vm0, %v16947_v56 }
 0x3f9   : > { %20016 = vmatprep.mubr.msk.f32.mxu0 %vm254_vm1, %v24155_v59  ;;  %20250 = vmatprep.mubr.msk.f32.mxu1 %vm254_vm1, %v24158_v24 }
 0x3fa   : > { %20063 = vmatprep.subr.msk.mxu0 %vm303_vm0, %v16981_v61  ;;  %20297 = vmatprep.subr.msk.mxu1 %vm303_vm0, %v16981_v61 }
 0x3fb   : > { %20017 = vmatmul.mubr.msk.f32.gmra.mrb[50].mxu0 %vm254_vm1, %v24173_v17  ;;  %20251 = vmatmul.mubr.msk.f32.gmra.mrb[50].mxu1 %vm254_vm1, %v24176_v19 }
 0x3fc   : > { %20019 = vmatprep.mubr.msk.f32.mxu0 %vm254_vm1, %v24179_v21  ;;  %20253 = vmatprep.mubr.msk.f32.mxu1 %vm254_vm1, %v24182_v1 }
 0x3ff   : > { %20020 = vmatmul.mubr.msk.f32.gmra.mrb[52].mxu0 %vm254_vm1, %v24193_v23  ;;  %20254 = vmatmul.mubr.msk.f32.gmra.mrb[52].mxu1 %vm254_vm1, %v24196_v51 }
 0x400   : > { %20022 = vmatprep.mubr.msk.f32.mxu0 %vm254_vm1, %v24199_v25  ;;  %20256 = vmatprep.mubr.msk.f32.mxu1 %vm254_vm1, %v24202_v10 }
 0x403   : > { %20023 = vmatmul.mubr.msk.f32.gmra.mrb[54].mxu0 %vm254_vm1, %v24213_v42  ;;  %20257 = vmatmul.mubr.msk.f32.gmra.mrb[54].mxu1 %vm254_vm1, %v24216_v31 }
 0x404   : > { %20025 = vmatprep.mubr.msk.f32.mxu0 %vm254_vm1, %v24219_v60  ;;  %20259 = vmatprep.mubr.msk.f32.mxu1 %vm254_vm1, %v24222_v58 }
 0x407   : > { %20026 = vmatmul.mubr.msk.f32.gmra.mrb[56].mxu0 %vm254_vm1, %v24233_v8  ;;  %20260 = vmatmul.mubr.msk.f32.gmra.mrb[56].mxu1 %vm254_vm1, %v24236_v12 }
 0x408   : > { %20028 = vmatprep.mubr.msk.f32.mxu0 %vm254_vm1, %v24239_v32  ;;  %20262 = vmatprep.mubr.msk.f32.mxu1 %vm254_vm1, %v24242_v62 }
 0x40b   : > { %20029 = vmatmul.mubr.msk.f32.gmra.mrb[58].mxu0 %vm254_vm1, %v24253_v57  ;;  %20263 = vmatmul.mubr.msk.f32.gmra.mrb[58].mxu1 %vm254_vm1, %v24256_v7 }
 0x40c   : > { %20031 = vmatprep.mubr.msk.f32.mxu0 %vm254_vm1, %v24259_v14  ;;  %20265 = vmatprep.mubr.msk.f32.mxu1 %vm254_vm1, %v24262_v27 }
 0x40f   : > { %20032 = vmatmul.mubr.msk.f32.gmra.mrb[60].mxu0 %vm254_vm1, %v24273_v52  ;;  %20266 = vmatmul.mubr.msk.f32.gmra.mrb[60].mxu1 %vm254_vm1, %v24276_v9 }
 0x410   : > { %20034 = vmatprep.mubr.msk.f32.mxu0 %vm254_vm1, %v24561_v36  ;;  %20268 = vmatprep.mubr.msk.f32.mxu1 %vm254_vm1, %v24641_v40 }
 0x413   : > { %20035 = vmatmul.mubr.msk.f32.gmra.mrb[62].mxu0 %vm254_vm1, %v24575_v46  ;;  %20269 = vmatmul.mubr.msk.f32.gmra.mrb[62].mxu1 %vm254_vm1, %v24652_v38 }
 0x414   : > { %20039 = vmatprep.mubr.msk.f32.mxu0 %vm254_vm1, %v24053_v30  ;;  %20273 = vmatprep.mubr.msk.f32.mxu1 %vm254_vm1, %v24118_v54  ;;  %v24716_v54 = vld [vmem:[%s25039_s3] ss:$0 sm:$0xff] }
 0x417   : > { %20040 = vmatmul.mubr.msk.f32.vlgmr.msra.gmra.mrb[48].mxu0 %vm254_vm1, %v24064_v34  ;;  %20274 = vmatmul.mubr.msk.f32.vlgmr.msra.gmra.mrb[48].mxu1 %vm254_vm1, %v24129_v43 }
 0x418   : > { %20064 = vmatpush3.msk.msra.mxu0 %vm303_vm0, %v16981_v61  ;;  %20298 = vmatpush3.msk.msra.mxu1 %vm303_vm0, %v16981_v61 }
 0x419   : > { %20042 = vmatprep.mubr.msk.f32.mxu0 %vm254_vm1, %v24158_v24  ;;  %20276 = vmatprep.mubr.msk.f32.mxu1 %vm254_vm1, %v24409_v55 }
 0x41a   : > { %20089 = vmatprep.subr.msk.mxu0 %vm303_vm0, %v24669_v41  ;;  %20323 = vmatprep.subr.msk.mxu1 %vm303_vm0, %v24669_v41 }
 0x41b   : > { %20043 = vmatmul.mubr.msk.f32.gmra.mrb[50].mxu0 %vm254_vm1, %v24176_v19  ;;  %20277 = vmatmul.mubr.msk.f32.gmra.mrb[50].mxu1 %vm254_vm1, %v24422_v22 }
 0x41c   : > { %20045 = vmatprep.mubr.msk.f32.mxu0 %vm254_vm1, %v24182_v1  ;;  %20279 = vmatprep.mubr.msk.f32.mxu1 %vm254_vm1, %v24425_v13 }
 0x41f   : > { %20046 = vmatmul.mubr.msk.f32.gmra.mrb[52].mxu0 %vm254_vm1, %v24196_v51  ;;  %20280 = vmatmul.mubr.msk.f32.gmra.mrb[52].mxu1 %vm254_vm1, %v24436_v15 }
 0x420   : > { %20048 = vmatprep.mubr.msk.f32.mxu0 %vm254_vm1, %v24202_v10  ;;  %20282 = vmatprep.mubr.msk.f32.mxu1 %vm254_vm1, %v24439_v50 }
 0x423   : > { %20049 = vmatmul.mubr.msk.f32.gmra.mrb[54].mxu0 %vm254_vm1, %v24216_v31  ;;  %20283 = vmatmul.mubr.msk.f32.gmra.mrb[54].mxu1 %vm254_vm1, %v24450_v5 }
 0x424   : > { %20051 = vmatprep.mubr.msk.f32.mxu0 %vm254_vm1, %v24222_v58  ;;  %20285 = vmatprep.mubr.msk.f32.mxu1 %vm254_vm1, %v24453_v35  ;;  %v24731_v58 = vld [vmem:[%s21469_s24 + $0x301] sm:$0xff] }
 0x425   : > { %25059 = vst [vmem:[#allocation2_spill] sm:$0xff] %v24731_v58 }
 0x427   : > { %20052 = vmatmul.mubr.msk.f32.gmra.mrb[56].mxu0 %vm254_vm1, %v24236_v12  ;;  %20286 = vmatmul.mubr.msk.f32.gmra.mrb[56].mxu1 %vm254_vm1, %v24464_v37 }
 0x428   : > { %20054 = vmatprep.mubr.msk.f32.mxu0 %vm254_vm1, %v24242_v62  ;;  %20288 = vmatprep.mubr.msk.f32.mxu1 %vm254_vm1, %v24467_v26 }
 0x42a   : > { %v19651_v30 = vpop.f32.mrb[32].mxu0  ;;  %v19885_v34 = vpop.f32.mrb[32].mxu1 }
 0x42b   : > { %v9757_v43 = vadd.f32 %v24716_v54, %v19651_v30  ;;  %v11398_v28 = vadd.f32 %v24716_v54, %v19885_v34  ;;  %v9661_v24 = vpop.f32.mrb[33].mxu0  ;;  %v11302_v19 = vpop.f32.mrb[33].mxu1  ;;  %20055 = vmatmul.mubr.msk.f32.gmra.mrb[58].mxu0 %vm254_vm1, %v24256_v7  ;;  %20289 = vmatmul.mubr.msk.f32.gmra.mrb[58].mxu1 %vm254_vm1, %v24478_v6 }
 0x42c   : > { %v9756_v1 = vadd.f32 %v24716_v54, %v9661_v24  ;;  %v11397_v51 = vadd.f32 %v24716_v54, %v11302_v19  ;;  %20057 = vmatprep.mubr.msk.f32.mxu0 %vm254_vm1, %v24262_v27  ;;  %20291 = vmatprep.mubr.msk.f32.mxu1 %vm254_vm1, %v24481_v44  ;;  %v24746_v24 = vld [vmem:[%s21469_s24 + $0x309] sm:$0xff] }
 0x42d   : > { %v9773_v10 = vmax.f32 %v9757_v43, 0.0  ;;  %v11414_v31 = vmax.f32 %v11398_v28, 0.0  ;;  %25060 = vst [vmem:[#allocation3_spill] sm:$0xff] %v24746_v24 }
 0x42e   : > { %v9772_v12 = vmax.f32 %v9756_v1, 0.0  ;;  %v11413_v62 = vmax.f32 %v11397_v51, 0.0  ;;  %v19654_v7 = vpop.f32.mrb[34].mxu0  ;;  %v19888_v47 = vpop.f32.mrb[34].mxu1 }
 0x42f   : > { %v11430_v53 = vmax.f32 %v9773_v10, %v11414_v31  ;;  %v9759_v56 = vadd.f32 %v24716_v54, %v19654_v7  ;;  %v11400_v61 = vadd.f32 %v24716_v54, %v19888_v47  ;;  %v9671_v30 = vpop.f32.mrb[35].mxu0  ;;  %v11312_v34 = vpop.f32.mrb[35].mxu1  ;;  %20058 = vmatmul.mubr.msk.f32.gmra.mrb[60].mxu0 %vm254_vm1, %v24276_v9  ;;  %20292 = vmatmul.mubr.msk.f32.gmra.mrb[60].mxu1 %vm254_vm1, %v24492_v39 }
 0x430   : > { %v11429_v27 = vmax.f32 %v9772_v12, %v11413_v62  ;;  %v9758_v43 = vadd.f32 %v24716_v54, %v9671_v30  ;;  %v11399_v28 = vadd.f32 %v24716_v54, %v11312_v34  ;;  %20060 = vmatprep.mubr.msk.f32.mxu0 %vm254_vm1, %v24641_v40  ;;  %20294 = vmatprep.mubr.msk.f32.mxu1 %vm254_vm1, %v24731_v58 }
 0x431   : > { %v9775_v19 = vmax.f32 %v9759_v56, 0.0  ;;  %v11416_v1 = vmax.f32 %v11400_v61, 0.0 }
 0x432   : > { %v9774_v51 = vmax.f32 %v9758_v43, 0.0  ;;  %v11415_v9 = vmax.f32 %v11399_v28, 0.0  ;;  %v19657_v10 = vpop.f32.mrb[36].mxu0  ;;  %v19891_v31 = vpop.f32.mrb[36].mxu1 }
 0x433   : > { %v11432_v7 = vmax.f32 %v9775_v19, %v11416_v1  ;;  %v9761_v12 = vadd.f32 %v24716_v54, %v19657_v10  ;;  %v11402_v62 = vadd.f32 %v24716_v54, %v19891_v31  ;;  %v9681_v47 = vpop.f32.mrb[37].mxu0  ;;  %v11322_v30 = vpop.f32.mrb[37].mxu1  ;;  %20061 = vmatmul.mubr.msk.f32.gmra.mrb[62].mxu0 %vm254_vm1, %v24652_v38  ;;  %20295 = vmatmul.mubr.msk.f32.gmra.mrb[62].mxu1 %vm254_vm1, %v24746_v24 }
 0x434   : > { %v11431_v56 = vmax.f32 %v9774_v51, %v11415_v9  ;;  %v9760_v61 = vadd.f32 %v24716_v54, %v9681_v47  ;;  %v11401_v34 = vadd.f32 %v24716_v54, %v11322_v30  ;;  %20065 = vmatprep.mubr.msk.f32.mxu0 %vm254_vm1, %v24302_v16  ;;  %20299 = vmatprep.mubr.msk.f32.mxu1 %vm254_vm1, %v24155_v59 }
 0x435   : > { %v11446_v43 = vmax.f32 %v11430_v53, %v11432_v7  ;;  %v9777_v28 = vmax.f32 %v9761_v12, 0.0  ;;  %v11418_v19 = vmax.f32 %v11402_v62, 0.0  ;;  %v24771_v53 = vld [vmem:[%s25038_s2 + $0x20] sm:$0x7] }
 0x436   : > { %v11445_v1 = vmax.f32 %v11429_v27, %v11431_v56  ;;  %v9776_v10 = vmax.f32 %v9760_v61, 0.0  ;;  %v11417_v31 = vmax.f32 %v11401_v34, 0.0  ;;  %v19660_v58 = vpop.f32.mrb[38].mxu0  ;;  %v19894_v24 = vpop.f32.mrb[38].mxu1 }
 0x437   : > { %16755 = vst.msk [vmem:[%s22972_s14 + $0x88] sm:$0xff] %vm3959_vm2, %v11446_v43  ;;  %v11434_v51 = vmax.f32 %v9777_v28, %v11418_v19  ;;  %v9763_v9 = vadd.f32 %v24716_v54, %v19660_v58  ;;  %v11404_v47 = vadd.f32 %v24716_v54, %v19894_v24  ;;  %v9691_v16 = vpop.f32.mrb[39].mxu0  ;;  %v11332_v30 = vpop.f32.mrb[39].mxu1  ;;  %20066 = vmatmul.mubr.msk.f32.vlgmr.msra.gmra.mrb[48].mxu0 %vm254_vm1, %v24315_v20 }
 0x438   : > { %20300 = vmatmul.mubr.msk.f32.vlgmr.msra.gmra.mrb[48].mxu1 %vm254_vm1, %v24173_v17  ;;  %16754 = vst.msk [vmem:[%s22972_s14 + $0x80] sm:$0xff] %vm3959_vm2, %v11445_v1  ;;  %v11433_v27 = vmax.f32 %v9776_v10, %v11417_v31  ;;  %v9762_v58 = vadd.f32 %v24716_v54, %v9691_v16  ;;  %v11403_v24 = vadd.f32 %v24716_v54, %v11332_v30 }
 0x439   : > { %20090 = vmatpush3.msk.msra.mxu0 %vm303_vm0, %v24669_v41  ;;  %20324 = vmatpush3.msk.msra.mxu1 %vm303_vm0, %v24669_v41  ;;  %v9779_v20 = vmax.f32 %v9763_v9, 0.0  ;;  %v11420_v7 = vmax.f32 %v11404_v47, 0.0 }
 0x43a   : > { %20068 = vmatprep.mubr.msk.f32.mxu0 %vm254_vm1, %v24318_v29  ;;  %20302 = vmatprep.mubr.msk.f32.mxu1 %vm254_vm1, %v24179_v21  ;;  %v9778_v12 = vmax.f32 %v9762_v58, 0.0  ;;  %v11419_v62 = vmax.f32 %v11403_v24, 0.0  ;;  %v19663_v56 = vpop.f32.mrb[40].mxu0  ;;  %v19897_v61 = vpop.f32.mrb[40].mxu1 }
 0x43b   : > { %20115 = vmatprep.subr.msk.mxu0 %vm303_vm0, %v24771_v53  ;;  %20349 = vmatprep.subr.msk.mxu1 %vm303_vm0, %v24771_v53  ;;  %v11436_v34 = vmax.f32 %v9779_v20, %v11420_v7  ;;  %v9765_v41 = vadd.f32 %v24716_v54, %v19663_v56  ;;  %v11406_v43 = vadd.f32 %v24716_v54, %v19897_v61  ;;  %v9701_v28 = vpop.f32.mrb[41].mxu0  ;;  %v11342_v29 = vpop.f32.mrb[41].mxu1 }
 0x43c   : > { %20069 = vmatmul.mubr.msk.f32.gmra.mrb[50].mxu0 %vm254_vm1, %v24329_v45  ;;  %20303 = vmatmul.mubr.msk.f32.gmra.mrb[50].mxu1 %vm254_vm1, %v24193_v23  ;;  %v11435_v19 = vmax.f32 %v9778_v12, %v11419_v62  ;;  %v9764_v1 = vadd.f32 %v24716_v54, %v9701_v28  ;;  %v11405_v10 = vadd.f32 %v24716_v54, %v11342_v29 }
 0x43d   : > { %20071 = vmatprep.mubr.msk.f32.mxu0 %vm254_vm1, %v24332_v63  ;;  %20305 = vmatprep.mubr.msk.f32.mxu1 %vm254_vm1, %v24199_v25  ;;  %v11451_v31 = vmax.f32 %v11434_v51, %v11436_v34  ;;  %v9781_v9 = vmax.f32 %v9765_v41, 0.0  ;;  %v11422_v47 = vmax.f32 %v11406_v43, 0.0 }
 0x43e   : > { %v11450_v16 = vmax.f32 %v11433_v27, %v11435_v19  ;;  %v9780_v45 = vmax.f32 %v9764_v1, 0.0  ;;  %v11421_v30 = vmax.f32 %v11405_v10, 0.0  ;;  %v19666_v58 = vpop.f32.mrb[42].mxu0  ;;  %v19900_v24 = vpop.f32.mrb[42].mxu1 }
 0x43f   : > { %16757 = vst.msk [vmem:[%s22972_s14 + $0x98] sm:$0xff] %vm3959_vm2, %v11451_v31  ;;  %v11438_v20 = vmax.f32 %v9781_v9, %v11422_v47  ;;  %v9767_v7 = vadd.f32 %v24716_v54, %v19666_v58  ;;  %v11408_v12 = vadd.f32 %v24716_v54, %v19900_v24  ;;  %v9711_v63 = vpop.f32.mrb[43].mxu0  ;;  %v11352_v62 = vpop.f32.mrb[43].mxu1 }
 0x440   : > { %20072 = vmatmul.mubr.msk.f32.gmra.mrb[52].mxu0 %vm254_vm1, %v24343_v33  ;;  %20306 = vmatmul.mubr.msk.f32.gmra.mrb[52].mxu1 %vm254_vm1, %v24213_v42  ;;  %16756 = vst.msk [vmem:[%s22972_s14 + $0x90] sm:$0xff] %vm3959_vm2, %v11450_v16  ;;  %v11437_v51 = vmax.f32 %v9780_v45, %v11421_v30  ;;  %v9766_v27 = vadd.f32 %v24716_v54, %v9711_v63 }
 0x441   : > { %v11407_v56 = vadd.f32 %v24716_v54, %v11352_v62  ;;  %20074 = vmatprep.mubr.msk.f32.mxu0 %vm254_vm1, %v24346_v2  ;;  %20308 = vmatprep.mubr.msk.f32.mxu1 %vm254_vm1, %v24219_v60  ;;  %v9783_v61 = vmax.f32 %v9767_v7, 0.0  ;;  %v11424_v34 = vmax.f32 %v11408_v12, 0.0 }
 0x442   : > { %v9782_v41 = vmax.f32 %v9766_v27, 0.0  ;;  %v19669_v43 = vpop.f32.mrb[44].mxu0  ;;  %v19903_v28 = vpop.f32.mrb[44].mxu1 }
 0x443   : > { %v11423_v33 = vmax.f32 %v11407_v56, 0.0  ;;  %v11440_v29 = vmax.f32 %v9783_v61, %v11424_v34  ;;  %v9769_v19 = vadd.f32 %v24716_v54, %v19669_v43  ;;  %v11410_v1 = vadd.f32 %v24716_v54, %v19903_v28  ;;  %v9721_v10 = vpop.f32.mrb[45].mxu0  ;;  %v11362_v31 = vpop.f32.mrb[45].mxu1 }
 0x444   : > { %20075 = vmatmul.mubr.msk.f32.gmra.mrb[54].mxu0 %vm254_vm1, %v24357_v48  ;;  %20309 = vmatmul.mubr.msk.f32.gmra.mrb[54].mxu1 %vm254_vm1, %v24233_v8  ;;  %v9768_v9 = vadd.f32 %v24716_v54, %v9721_v10  ;;  %v11409_v47 = vadd.f32 %v24716_v54, %v11362_v31  ;;  %v17033_v10 = vld [vmem:[%s21474_s27 + $0x271] sm:$0xff]  ;;  %v17035_v31 = vld [vmem:[%s21474_s27 + $0x289] sm:$0xff] }
 0x445   : > { %v11439_v2 = vmax.f32 %v9782_v41, %v11423_v33  ;;  %20077 = vmatprep.mubr.msk.f32.mxu0 %vm254_vm1, %v24360_v3  ;;  %20311 = vmatprep.mubr.msk.f32.mxu1 %vm254_vm1, %v24239_v32  ;;  %v11456_v16 = vmax.f32 %v11438_v20, %v11440_v29  ;;  %v9785_v45 = vmax.f32 %v9769_v19, 0.0  ;;  %v11426_v30 = vmax.f32 %v11410_v1, 0.0  ;;  %v16979_v29 = vld [vmem:[%s21474_s27 + $0x318] sm:$0xff] }
 0x446   : > { %v9784_v48 = vmax.f32 %v9768_v9, 0.0  ;;  %v11425_v24 = vmax.f32 %v11409_v47, 0.0  ;;  %v19672_v7 = vpop.f32.mrb[46].mxu0  ;;  %v19906_v12 = vpop.f32.mrb[46].mxu1  ;;  %v17013_v19 = vld [vmem:[%s21469_s24 + $0x318] sm:$0xff] }
 0x447   : > { %v11455_v58 = vmax.f32 %v11437_v51, %v11439_v2  ;;  %16759 = vst.msk [vmem:[%s22972_s14 + $0xa8] sm:$0xff] %vm3959_vm2, %v11456_v16  ;;  %v11442_v63 = vmax.f32 %v9785_v45, %v11426_v30  ;;  %v9771_v62 = vadd.f32 %v24716_v54, %v19672_v7  ;;  %v11412_v27 = vadd.f32 %v24716_v54, %v19906_v12  ;;  %v9731_v3 = vpop.f32.mrb[47].mxu0  ;;  %v11372_v56 = vpop.f32.mrb[47].mxu1  ;;  %v17037_v2 = vld [vmem:[%s21474_s27 + $0x2a1] sm:$0xff] }
 0x448   : > { %20078 = vmatmul.mubr.msk.f32.gmra.mrb[56].mxu0 %vm254_vm1, %v24371_v11  ;;  %20312 = vmatmul.mubr.msk.f32.gmra.mrb[56].mxu1 %vm254_vm1, %v24253_v57  ;;  %v11441_v20 = vmax.f32 %v9784_v48, %v11425_v24  ;;  %v9770_v51 = vadd.f32 %v24716_v54, %v9731_v3  ;;  %v11411_v61 = vadd.f32 %v24716_v54, %v11372_v56 }
 0x449   : > { %16758 = vst.msk [vmem:[%s22972_s14 + $0xa0] sm:$0xff] %vm3959_vm2, %v11455_v58  ;;  %20080 = vmatprep.mubr.msk.f32.mxu0 %vm254_vm1, %v24374_v49  ;;  %20314 = vmatprep.mubr.msk.f32.mxu1 %vm254_vm1, %v24259_v14  ;;  %v9787_v11 = vmax.f32 %v9771_v62, 0.0  ;;  %v11428_v34 = vmax.f32 %v11412_v27, 0.0 }
 0x44a   : > { %v9786_v41 = vmax.f32 %v9770_v51, 0.0  ;;  %v11427_v33 = vmax.f32 %v11411_v61, 0.0 }
 0x44b   : > { %v11444_v43 = vmax.f32 %v9787_v11, %v11428_v34 }
 0x44c   : > { %20081 = vmatmul.mubr.msk.f32.gmra.mrb[58].mxu0 %vm254_vm1, %v24385_v0  ;;  %20315 = vmatmul.mubr.msk.f32.gmra.mrb[58].mxu1 %vm254_vm1, %v24273_v52  ;;  %v11443_v49 = vmax.f32 %v9786_v41, %v11427_v33  ;;  %v16980_v0 = vld [vmem:[%s21474_s27 + $0x320] sm:$0xff] }
 0x44d   : > { %20083 = vmatprep.mubr.msk.f32.mxu0 %vm254_vm1, %v24558_v4  ;;  %20317 = vmatprep.mubr.msk.f32.mxu1 %vm254_vm1, %v24561_v36  ;;  %v11461_v28 = vmax.f32 %v11442_v63, %v11444_v43  ;;  %v17014_v4 = vld [vmem:[%s21469_s24 + $0x320] sm:$0xff] }
 0x44e   : > { %v11460_v1 = vmax.f32 %v11441_v20, %v11443_v49 }
 0x44f   : > { %16761 = vst.msk [vmem:[%s22972_s14 + $0xb8] sm:$0xff] %vm3959_vm2, %v11461_v28 }
 0x450   : > { %20084 = vmatmul.mubr.msk.f32.gmra.mrb[60].mxu0 %vm254_vm1, %v24572_v18  ;;  %20318 = vmatmul.mubr.msk.f32.gmra.mrb[60].mxu1 %vm254_vm1, %v24575_v46  ;;  %16760 = vst.msk [vmem:[%s22972_s14 + $0xb0] sm:$0xff] %vm3959_vm2, %v11460_v1  ;;  %v17034_v18 = vld [vmem:[%s21474_s27 + $0x279] sm:$0xff] }
 0x451   : > { %20086 = vmatprep.mubr.msk.f32.mxu0 %vm254_vm1, %v16979_v29  ;;  %20320 = vmatprep.mubr.msk.f32.mxu1 %vm254_vm1, %v17013_v19 }
 0x454   : > { %20087 = vmatmul.mubr.msk.f32.gmra.mrb[62].mxu0 %vm254_vm1, %v16980_v0  ;;  %20321 = vmatmul.mubr.msk.f32.gmra.mrb[62].mxu1 %vm254_vm1, %v17014_v4 }
 0x455   : > { %20091 = vmatprep.mubr.msk.f32.mxu0 %vm254_vm1, %v24155_v59  ;;  %20325 = vmatprep.mubr.msk.f32.mxu1 %vm254_vm1, %v17033_v10  ;;  %v17036_v59 = vld [vmem:[%s21474_s27 + $0x291] sm:$0xff] }
 0x458   : > { %20092 = vmatmul.mubr.msk.f32.vlgmr.msra.gmra.mrb[48].mxu0 %vm254_vm1, %v24173_v17  ;;  %20326 = vmatmul.mubr.msk.f32.vlgmr.msra.gmra.mrb[48].mxu1 %vm254_vm1, %v17034_v18  ;;  %v17038_v17 = vld [vmem:[%s21474_s27 + $0x2a9] sm:$0xff] }
 0x459   : > { %20116 = vmatpush3.msk.msra.mxu0 %vm303_vm0, %v24771_v53  ;;  %20350 = vmatpush3.msk.msra.mxu1 %vm303_vm0, %v24771_v53  ;;  %v17039_v53 = vld [vmem:[%s21474_s27 + $0x2b9] sm:$0xff] }
 0x45a   : > { %20094 = vmatprep.mubr.msk.f32.mxu0 %vm254_vm1, %v24179_v21  ;;  %20328 = vmatprep.mubr.msk.f32.mxu1 %vm254_vm1, %v17035_v31  ;;  %v17040_v21 = vld [vmem:[%s21474_s27 + $0x2c1] sm:$0xff] }
 0x45c   : > { %20095 = vmatmul.mubr.msk.f32.gmra.mrb[50].mxu0 %vm254_vm1, %v24193_v23  ;;  %20329 = vmatmul.mubr.msk.f32.gmra.mrb[50].mxu1 %vm254_vm1, %v17036_v59  ;;  %v17041_v23 = vld [vmem:[%s21474_s27 + $0x2d1] sm:$0xff] }
 0x45d   : > { %20097 = vmatprep.mubr.msk.f32.mxu0 %vm254_vm1, %v24199_v25  ;;  %20331 = vmatprep.mubr.msk.f32.mxu1 %vm254_vm1, %v17037_v2  ;;  %v17042_v25 = vld [vmem:[%s21474_s27 + $0x2d9] sm:$0xff] }
 0x460   : > { %20098 = vmatmul.mubr.msk.f32.gmra.mrb[52].mxu0 %vm254_vm1, %v24213_v42  ;;  %20332 = vmatmul.mubr.msk.f32.gmra.mrb[52].mxu1 %vm254_vm1, %v17038_v17  ;;  %v17043_v42 = vld [vmem:[%s21474_s27 + $0x2e9] sm:$0xff] }
 0x461   : > { %20100 = vmatprep.mubr.msk.f32.mxu0 %vm254_vm1, %v24219_v60  ;;  %20334 = vmatprep.mubr.msk.f32.mxu1 %vm254_vm1, %v17039_v53  ;;  %v17044_v60 = vld [vmem:[%s21474_s27 + $0x2f1] sm:$0xff] }
 0x464   : > { %20101 = vmatmul.mubr.msk.f32.gmra.mrb[54].mxu0 %vm254_vm1, %v24233_v8  ;;  %20335 = vmatmul.mubr.msk.f32.gmra.mrb[54].mxu1 %vm254_vm1, %v17040_v21  ;;  %v17047_v8 = vld [vmem:[%s21474_s27 + $0x319] sm:$0xff] }
 0x465   : > { %20103 = vmatprep.mubr.msk.f32.mxu0 %vm254_vm1, %v24239_v32  ;;  %20337 = vmatprep.mubr.msk.f32.mxu1 %vm254_vm1, %v17041_v23  ;;  %v17048_v32 = vld [vmem:[%s21474_s27 + $0x321] sm:$0xff] }
 0x468   : > { %20104 = vmatmul.mubr.msk.f32.gmra.mrb[56].mxu0 %vm254_vm1, %v24253_v57  ;;  %20338 = vmatmul.mubr.msk.f32.gmra.mrb[56].mxu1 %vm254_vm1, %v17042_v25  ;;  %v25061_v57 = vld [vmem:[#allocation2_spill] sm:$0xff] }
 0x469   : > { %20106 = vmatprep.mubr.msk.f32.mxu0 %vm254_vm1, %v24259_v14  ;;  %20340 = vmatprep.mubr.msk.f32.mxu1 %vm254_vm1, %v17043_v42  ;;  %v17249_v14 = vld [vmem:[%s21469_s24 + $0x319] sm:$0xff] }
 0x46c   : > { %20107 = vmatmul.mubr.msk.f32.gmra.mrb[58].mxu0 %vm254_vm1, %v24273_v52  ;;  %20341 = vmatmul.mubr.msk.f32.gmra.mrb[58].mxu1 %vm254_vm1, %v17044_v60  ;;  %v25062_v52 = vld [vmem:[#allocation3_spill] sm:$0xff] }
 0x46d   : > { %20109 = vmatprep.mubr.msk.f32.mxu0 %vm254_vm1, %v24561_v36  ;;  %20343 = vmatprep.mubr.msk.f32.mxu1 %vm254_vm1, %v24641_v40 }
 0x470   : > { %20110 = vmatmul.mubr.msk.f32.gmra.mrb[60].mxu0 %vm254_vm1, %v24575_v46  ;;  %20344 = vmatmul.mubr.msk.f32.gmra.mrb[60].mxu1 %vm254_vm1, %v24652_v38 }
 0x471   : > { %20112 = vmatprep.mubr.msk.f32.mxu0 %vm254_vm1, %v17013_v19  ;;  %20346 = vmatprep.mubr.msk.f32.mxu1 %vm254_vm1, %v17047_v8 }
 0x474   : > { %20113 = vmatmul.mubr.msk.f32.gmra.mrb[62].mxu0 %vm254_vm1, %v17014_v4  ;;  %20347 = vmatmul.mubr.msk.f32.gmra.mrb[62].mxu1 %vm254_vm1, %v17048_v32 }
 0x475   : > { %20117 = vmatprep.mubr.msk.f32.mxu0 %vm254_vm1, %v17033_v10  ;;  %20351 = vmatprep.mubr.msk.f32.mxu1 %vm254_vm1, %v24409_v55  ;;  %v17250_v55 = vld [vmem:[%s21469_s24 + $0x321] sm:$0xff] }
 0x478   : > { %20118 = vmatmul.mubr.msk.f32.vlgmr.msra.gmra.mrb[48].mxu0 %vm254_vm1, %v17034_v18  ;;  %20352 = vmatmul.mubr.msk.f32.vlgmr.msra.gmra.mrb[48].mxu1 %vm254_vm1, %v24422_v22 }
 0x479   : > { %20120 = vmatprep.mubr.msk.f32.mxu0 %vm254_vm1, %v17035_v31  ;;  %20354 = vmatprep.mubr.msk.f32.mxu1 %vm254_vm1, %v24425_v13 }
 0x47c   : > { %20121 = vmatmul.mubr.msk.f32.gmra.mrb[50].mxu0 %vm254_vm1, %v17036_v59  ;;  %20355 = vmatmul.mubr.msk.f32.gmra.mrb[50].mxu1 %vm254_vm1, %v24436_v15 }
 0x47d   : > { %20123 = vmatprep.mubr.msk.f32.mxu0 %vm254_vm1, %v17037_v2  ;;  %20357 = vmatprep.mubr.msk.f32.mxu1 %vm254_vm1, %v24439_v50 }
 0x480   : > { %20124 = vmatmul.mubr.msk.f32.gmra.mrb[52].mxu0 %vm254_vm1, %v17038_v17  ;;  %20358 = vmatmul.mubr.msk.f32.gmra.mrb[52].mxu1 %vm254_vm1, %v24450_v5 }
 0x481   : > { %20126 = vmatprep.mubr.msk.f32.mxu0 %vm254_vm1, %v17039_v53  ;;  %20360 = vmatprep.mubr.msk.f32.mxu1 %vm254_vm1, %v24453_v35 }
 0x484   : > { %20127 = vmatmul.mubr.msk.f32.gmra.mrb[54].mxu0 %vm254_vm1, %v17040_v21  ;;  %20361 = vmatmul.mubr.msk.f32.gmra.mrb[54].mxu1 %vm254_vm1, %v24464_v37 }
 0x485   : > { %20129 = vmatprep.mubr.msk.f32.mxu0 %vm254_vm1, %v17041_v23  ;;  %20363 = vmatprep.mubr.msk.f32.mxu1 %vm254_vm1, %v24467_v26 }
 0x488   : > { %20130 = vmatmul.mubr.msk.f32.gmra.mrb[56].mxu0 %vm254_vm1, %v17042_v25  ;;  %20364 = vmatmul.mubr.msk.f32.gmra.mrb[56].mxu1 %vm254_vm1, %v24478_v6 }
 0x489   : > { %20132 = vmatprep.mubr.msk.f32.mxu0 %vm254_vm1, %v17043_v42  ;;  %20366 = vmatprep.mubr.msk.f32.mxu1 %vm254_vm1, %v24481_v44 }
 0x48c   : > { %20133 = vmatmul.mubr.msk.f32.gmra.mrb[58].mxu0 %vm254_vm1, %v17044_v60  ;;  %20367 = vmatmul.mubr.msk.f32.gmra.mrb[58].mxu1 %vm254_vm1, %v24492_v39 }
 0x48d   : > { %20135 = vmatprep.mubr.msk.f32.mxu0 %vm254_vm1, %v24641_v40  ;;  %20369 = vmatprep.mubr.msk.f32.mxu1 %vm254_vm1, %v25061_v57 }
 0x490   : > { %20136 = vmatmul.mubr.msk.f32.gmra.mrb[60].mxu0 %vm254_vm1, %v24652_v38  ;;  %20370 = vmatmul.mubr.msk.f32.gmra.mrb[60].mxu1 %vm254_vm1, %v25062_v52 }
 0x491   : > { %20138 = vmatprep.mubr.msk.f32.mxu0 %vm254_vm1, %v17047_v8  ;;  %20372 = vmatprep.mubr.msk.f32.mxu1 %vm254_vm1, %v17249_v14 }
 0x494   : > { %20139 = vmatmul.mubr.msk.f32.gmra.mrb[62].mxu0 %vm254_vm1, %v17048_v32  ;;  %20373 = vmatmul.mubr.msk.f32.gmra.mrb[62].mxu1 %vm254_vm1, %v17250_v55 }
 0x54b   : > { %v20119_v22 = vpop.f32.mrb[48].mxu0  ;;  %v20353_v13 = vpop.f32.mrb[48].mxu1 }
 0x54c   : > { %v13501_v15 = vadd.f32 %v24716_v54, %v20119_v22  ;;  %v15142_v50 = vadd.f32 %v24716_v54, %v20353_v13  ;;  %v13405_v5 = vpop.f32.mrb[49].mxu0  ;;  %v15046_v35 = vpop.f32.mrb[49].mxu1 }
 0x54d   : > { %v13500_v37 = vadd.f32 %v24716_v54, %v13405_v5  ;;  %v15141_v26 = vadd.f32 %v24716_v54, %v15046_v35 }
 0x54e   : > { %v13517_v6 = vmax.f32 %v13501_v15, 0.0  ;;  %v15158_v44 = vmax.f32 %v15142_v50, 0.0 }
 0x54f   : > { %v13516_v39 = vmax.f32 %v13500_v37, 0.0  ;;  %v15157_v36 = vmax.f32 %v15141_v26, 0.0  ;;  %v20122_v46 = vpop.f32.mrb[50].mxu0  ;;  %v20356_v40 = vpop.f32.mrb[50].mxu1 }
 0x550   : > { %v15174_v38 = vmax.f32 %v13517_v6, %v15158_v44  ;;  %v13503_v9 = vadd.f32 %v24716_v54, %v20122_v46  ;;  %v15144_v47 = vadd.f32 %v24716_v54, %v20356_v40  ;;  %v13415_v16 = vpop.f32.mrb[51].mxu0  ;;  %v15056_v45 = vpop.f32.mrb[51].mxu1 }
 0x551   : > { %v15173_v30 = vmax.f32 %v13516_v39, %v15157_v36  ;;  %v13502_v58 = vadd.f32 %v24716_v54, %v13415_v16  ;;  %v15143_v48 = vadd.f32 %v24716_v54, %v15056_v45 }
 0x552   : > { %v13519_v24 = vmax.f32 %v13503_v9, 0.0  ;;  %v15160_v7 = vmax.f32 %v15144_v47, 0.0 }
 0x553   : > { %v13518_v12 = vmax.f32 %v13502_v58, 0.0  ;;  %v15159_v63 = vmax.f32 %v15143_v48, 0.0  ;;  %v20125_v62 = vpop.f32.mrb[52].mxu0  ;;  %v20359_v27 = vpop.f32.mrb[52].mxu1 }
 0x554   : > { %v15176_v3 = vmax.f32 %v13519_v24, %v15160_v7  ;;  %v13505_v56 = vadd.f32 %v24716_v54, %v20125_v62  ;;  %v15146_v20 = vadd.f32 %v24716_v54, %v20359_v27  ;;  %v13425_v51 = vpop.f32.mrb[53].mxu0  ;;  %v15066_v61 = vpop.f32.mrb[53].mxu1 }
 0x555   : > { %v15175_v11 = vmax.f32 %v13518_v12, %v15159_v63  ;;  %v13504_v34 = vadd.f32 %v24716_v54, %v13425_v51  ;;  %v15145_v41 = vadd.f32 %v24716_v54, %v15066_v61 }
 0x556   : > { %v15190_v33 = vmax.f32 %v15174_v38, %v15176_v3  ;;  %v13521_v43 = vmax.f32 %v13505_v56, 0.0  ;;  %v15162_v49 = vmax.f32 %v15146_v20, 0.0 }
 0x557   : > { %v15189_v28 = vmax.f32 %v15173_v30, %v15175_v11  ;;  %v13520_v29 = vmax.f32 %v13504_v34, 0.0  ;;  %v15161_v19 = vmax.f32 %v15145_v41, 0.0  ;;  %v20128_v1 = vpop.f32.mrb[54].mxu0  ;;  %v20362_v0 = vpop.f32.mrb[54].mxu1 }
 0x558   : > { %17269 = vst.msk [vmem:[%s22972_s14 + $0xc8] sm:$0xff] %vm3959_vm2, %v15190_v33  ;;  %v15178_v4 = vmax.f32 %v13521_v43, %v15162_v49  ;;  %v13507_v10 = vadd.f32 %v24716_v54, %v20128_v1  ;;  %v15148_v18 = vadd.f32 %v24716_v54, %v20362_v0  ;;  %v13435_v31 = vpop.f32.mrb[55].mxu0  ;;  %v15076_v59 = vpop.f32.mrb[55].mxu1 }
 0x559   : > { %17268 = vst.msk [vmem:[%s22972_s14 + $0xc0] sm:$0xff] %vm3959_vm2, %v15189_v28  ;;  %v15177_v2 = vmax.f32 %v13520_v29, %v15161_v19  ;;  %v13506_v17 = vadd.f32 %v24716_v54, %v13435_v31  ;;  %v15147_v53 = vadd.f32 %v24716_v54, %v15076_v59 }
 0x55a   : > { %v13523_v21 = vmax.f32 %v13507_v10, 0.0  ;;  %v15164_v23 = vmax.f32 %v15148_v18, 0.0 }
 0x55b   : > { %v13522_v25 = vmax.f32 %v13506_v17, 0.0  ;;  %v15163_v42 = vmax.f32 %v15147_v53, 0.0  ;;  %v20131_v60 = vpop.f32.mrb[56].mxu0  ;;  %v20365_v8 = vpop.f32.mrb[56].mxu1 }
 0x55c   : > { %v15180_v32 = vmax.f32 %v13523_v21, %v15164_v23  ;;  %v13509_v57 = vadd.f32 %v24716_v54, %v20131_v60  ;;  %v15150_v14 = vadd.f32 %v24716_v54, %v20365_v8  ;;  %v13445_v52 = vpop.f32.mrb[57].mxu0  ;;  %v15086_v55 = vpop.f32.mrb[57].mxu1 }
 0x55d   : > { %v15179_v22 = vmax.f32 %v13522_v25, %v15163_v42  ;;  %v13508_v13 = vadd.f32 %v24716_v54, %v13445_v52  ;;  %v15149_v15 = vadd.f32 %v24716_v54, %v15086_v55 }
 0x55e   : > { %v15195_v50 = vmax.f32 %v15178_v4, %v15180_v32  ;;  %v13525_v5 = vmax.f32 %v13509_v57, 0.0  ;;  %v15166_v35 = vmax.f32 %v15150_v14, 0.0 }
 0x55f   : > { %v15194_v37 = vmax.f32 %v15177_v2, %v15179_v22  ;;  %v13524_v26 = vmax.f32 %v13508_v13, 0.0  ;;  %v15165_v6 = vmax.f32 %v15149_v15, 0.0  ;;  %v20134_v44 = vpop.f32.mrb[58].mxu0  ;;  %v20368_v39 = vpop.f32.mrb[58].mxu1 }
 0x560   : > { %17271 = vst.msk [vmem:[%s22972_s14 + $0xd8] sm:$0xff] %vm3959_vm2, %v15195_v50  ;;  %v15182_v36 = vmax.f32 %v13525_v5, %v15166_v35  ;;  %v13511_v46 = vadd.f32 %v24716_v54, %v20134_v44  ;;  %v15152_v40 = vadd.f32 %v24716_v54, %v20368_v39  ;;  %v13455_v38 = vpop.f32.mrb[59].mxu0  ;;  %v15096_v9 = vpop.f32.mrb[59].mxu1 }
 0x561   : > { %17270 = vst.msk [vmem:[%s22972_s14 + $0xd0] sm:$0xff] %vm3959_vm2, %v15194_v37  ;;  %v15181_v47 = vmax.f32 %v13524_v26, %v15165_v6  ;;  %v13510_v16 = vadd.f32 %v24716_v54, %v13455_v38  ;;  %v15151_v45 = vadd.f32 %v24716_v54, %v15096_v9 }
 0x562   : > { %v13527_v30 = vmax.f32 %v13511_v46, 0.0  ;;  %v15168_v58 = vmax.f32 %v15152_v40, 0.0 }
 0x563   : > { %v13526_v48 = vmax.f32 %v13510_v16, 0.0  ;;  %v15167_v24 = vmax.f32 %v15151_v45, 0.0  ;;  %v20137_v7 = vpop.f32.mrb[60].mxu0  ;;  %v20371_v12 = vpop.f32.mrb[60].mxu1 }
 0x564   : > { %v15184_v63 = vmax.f32 %v13527_v30, %v15168_v58  ;;  %v13513_v62 = vadd.f32 %v24716_v54, %v20137_v7  ;;  %v15154_v27 = vadd.f32 %v24716_v54, %v20371_v12  ;;  %v13465_v3 = vpop.f32.mrb[61].mxu0  ;;  %v15106_v56 = vpop.f32.mrb[61].mxu1 }
 0x565   : > { %v15183_v20 = vmax.f32 %v13526_v48, %v15167_v24  ;;  %v13512_v51 = vadd.f32 %v24716_v54, %v13465_v3  ;;  %v15153_v61 = vadd.f32 %v24716_v54, %v15106_v56 }
 0x566   : > { %v15200_v11 = vmax.f32 %v15182_v36, %v15184_v63  ;;  %v13529_v34 = vmax.f32 %v13513_v62, 0.0  ;;  %v15170_v41 = vmax.f32 %v15154_v27, 0.0 }
 0x567   : > { %v15199_v33 = vmax.f32 %v15181_v47, %v15183_v20  ;;  %v13528_v43 = vmax.f32 %v13512_v51, 0.0  ;;  %v15169_v49 = vmax.f32 %v15153_v61, 0.0  ;;  %v20140_v28 = vpop.f32.mrb[62].mxu0  ;;  %v20374_v29 = vpop.f32.mrb[62].mxu1 }
 0x568   : > { %17273 = vst.msk [vmem:[%s22972_s14 + $0xe8] sm:$0xff] %vm3959_vm2, %v15200_v11  ;;  %v15186_v19 = vmax.f32 %v13529_v34, %v15170_v41  ;;  %v13515_v1 = vadd.f32 %v24716_v54, %v20140_v28  ;;  %v15156_v0 = vadd.f32 %v24716_v54, %v20374_v29  ;;  %v13475_v4 = vpop.f32.mrb[63].mxu0  ;;  %v15116_v10 = vpop.f32.mrb[63].mxu1 }
 0x569   : > { %17272 = vst.msk [vmem:[%s22972_s14 + $0xe0] sm:$0xff] %vm3959_vm2, %v15199_v33  ;;  %v15185_v18 = vmax.f32 %v13528_v43, %v15169_v49  ;;  %v13514_v31 = vadd.f32 %v24716_v54, %v13475_v4  ;;  %v15155_v59 = vadd.f32 %v24716_v54, %v15116_v10 }
 0x56a   : > { %v13531_v2 = vmax.f32 %v13515_v1, 0.0  ;;  %v15172_v17 = vmax.f32 %v15156_v0, 0.0 }
 0x56b   : > { %v13530_v53 = vmax.f32 %v13514_v31, 0.0  ;;  %v15171_v21 = vmax.f32 %v15155_v59, 0.0 }
 0x56c   : > { %v15188_v23 = vmax.f32 %v13531_v2, %v15172_v17 }
 0x56d   : > { %v15187_v25 = vmax.f32 %v13530_v53, %v15171_v21 }
 0x56e   : > { %v15205_v42 = vmax.f32 %v15186_v19, %v15188_v23 }
 0x56f   : > { %v15204_v60 = vmax.f32 %v15185_v18, %v15187_v25 }
 0x570   : > { %17275 = vst.msk [vmem:[%s22972_s14 + $0xf8] sm:$0xff] %vm3959_vm2, %v15205_v42 }
 0x571   : > { %17274 = vst.msk [vmem:[%s22972_s14 + $0xf0] sm:$0xff] %vm3959_vm2, %v15204_v60 }
 0x572 PF: > { %s14_s15 = sadd.s32 1, %s21416_s15  }
 0x573   : > { %p11_p4 = scmp.ge.s32.totalorder %s14_s15, 4  }
 0x575   :  { %13 = sbr.rel (!%p11_p4) target bundleno = 1 (0x1), region = 114 }

</bundles_post_ra>
